<compile_context>
chip_gen: v7x
topology: tpu7x:2x2x1
jax: 0.10.0
libtpu: 0.0.40
codegen_flags: <defaults>
</compile_context>

<pallas_src>
import jax
import jax.numpy as jnp
from jax.experimental import pallas as pl
from jax.experimental.pallas import tpu as pltpu

EPS = 1e-5  # ThumbInstanceNorm eps (std = sqrt(var_unbiased + eps))


# ---------------------------------------------------------------- kernel ----
def _make_kernel(H, W, C):
    Hp, Wp = H + 2, W + 2
    BAND = H * Wp                 # conv "band" rows; valid when (i % Wp) < W
    PADROWS = Hp * Wp + 2         # flattened padded image + 2 guard rows
    count = float(H * W)

    def kernel(xp_ref, w1_ref, w2_ref, aff_ref, o_ref):
        xp = xp_ref[...].astype(jnp.float32)          # (PADROWS, C)
        w1 = w1_ref[...].astype(jnp.float32)          # (9*C, C)
        w2 = w2_ref[...].astype(jnp.float32)          # (9*C, C)
        aff = aff_ref[...]                            # (4, C) f32
        g1, b1, g2, b2 = aff[0:1], aff[1:2], aff[2:3], aff[3:4]

        row = jax.lax.broadcasted_iota(jnp.int32, (BAND, C), 0)
        colm = row % Wp
        valid = colm < W                              # (BAND, C) bool

        def conv3x3(src, w):
            # 9 shifted matmuls over the flattened padded image / intermediate.
            acc = jnp.zeros((BAND, C), jnp.float32)
            for k in range(9):
                s = (k // 3) * Wp + (k % 3)
                acc = acc + jnp.dot(src[s:s + BAND, :],
                                    w[k * C:(k + 1) * C, :],
                                    preferred_element_type=jnp.float32)
            return acc

        def inorm(acc, gamma, beta):
            # instance norm over the H*W valid band positions only
            zero = jnp.zeros_like(acc)
            mean = jnp.sum(jnp.where(valid, acc, zero), axis=0,
                           keepdims=True) * (1.0 / count)
            diff = acc - mean
            dm = jnp.where(valid, diff, zero)
            var = jnp.sum(dm * dm, axis=0,
                          keepdims=True) * (1.0 / (count - 1.0))
            return diff * jax.lax.rsqrt(var + EPS) * gamma + beta

        # ---------------- stage 1: h = relu(in1(conv1(x))) ----------------
        h = jnp.maximum(inorm(conv3x3(xp, w1), g1, b1), 0.0)   # (BAND, C)

        # Rebuild the reflection-padded intermediate in VMEM.  In the band,
        # the don't-care columns W / W+1 of each row-group land exactly on the
        # right / next-row-left border rows of the padded image, so fill them
        # with the reflected values (h[., W-2] / h[.+1, 1]) first.
        dn2 = jnp.concatenate([h[:2], h[:-2]], axis=0)   # dn2[i] = h[i-2]
        up2 = jnp.concatenate([h[2:], h[-2:]], axis=0)   # up2[i] = h[i+2]
        corr = jnp.where(colm == W, dn2, jnp.where(colm == W + 1, up2, h))
        hpad = jnp.concatenate([
            corr[Wp - 1:2 * Wp - 1],                     # padded row 0 (= row 2)
            corr[1:2],                                   # padded (1, 0) border
            corr[0:BAND - 1],                            # interior + l/r borders
            corr[(H - 2) * Wp - 1:(H - 1) * Wp - 1],     # padded bottom row
            jnp.zeros((PADROWS - Hp * Wp, C), jnp.float32),  # guard rows
        ], axis=0)                                       # (PADROWS, C)

        # ---------------- stage 2: out = in2(conv2(h)) + x -----------------
        y2 = inorm(conv3x3(hpad, w2), g2, b2)
        res = xp[Wp + 1:Wp + 1 + BAND, :]                # residual in band layout
        o_ref[...] = (y2 + res).astype(o_ref.dtype)

    return kernel, BAND, PADROWS


# ------------------------------------------------------------------- glue ---
def _conv_weight_to_mat(w_oihw):
    # torch Conv2d weight (Cout, Cin, 3, 3) -> (9*Cin, Cout); rows of tap
    # k = dy*3+dx occupy [k*Cin, (k+1)*Cin).
    Co, Ci, kh, kw = w_oihw.shape
    return jnp.transpose(w_oihw, (2, 3, 1, 0)).reshape(kh * kw * Ci, Co)


def residual_block(x_nchw, params):
    N, C, H, W = x_nchw.shape
    assert H >= 3 and W >= 3, "kernel assumes H, W >= 3 (3x3 reflect pad)"
    Hp, Wp = H + 2, W + 2

    kernel, BAND, PADROWS = _make_kernel(H, W, C)

    # NCHW -> NHWC, reflection pad, flatten spatial, add guard rows, cast bf16.
    x = jnp.transpose(x_nchw, (0, 2, 3, 1))
    xp = jnp.pad(x, ((0, 0), (1, 1), (1, 1), (0, 0)), mode="reflect")
    xp = xp.reshape(N, Hp * Wp, C)
    xp = jnp.concatenate(
        [xp, jnp.zeros((N, PADROWS - Hp * Wp, C), xp.dtype)], axis=1)
    xp = xp.astype(jnp.bfloat16)

    # Conv biases (params["b1"/"b2"]) are intentionally dropped: a per-channel
    # constant added before instance norm is cancelled by the mean subtraction.
    w1 = _conv_weight_to_mat(params["w1"]).astype(jnp.bfloat16)
    w2 = _conv_weight_to_mat(params["w2"]).astype(jnp.bfloat16)
    aff = jnp.stack([params["gamma1"], params["beta1"],
                     params["gamma2"], params["beta2"]]).astype(jnp.float32)

    out_band = pl.pallas_call(
        kernel,
        out_shape=jax.ShapeDtypeStruct((N, BAND, C), jnp.float32),
        grid_spec=pltpu.PrefetchScalarGridSpec(
            num_scalar_prefetch=0,
            grid=(N,),
            in_specs=[
                pl.BlockSpec((None, PADROWS, C), lambda n: (n, 0, 0)),
                pl.BlockSpec((9 * C, C), lambda n: (0, 0)),
                pl.BlockSpec((9 * C, C), lambda n: (0, 0)),
                pl.BlockSpec((4, C), lambda n: (0, 0)),
            ],
            out_specs=pl.BlockSpec((None, BAND, C), lambda n: (n, 0, 0)),
        ),
        compiler_params=pltpu.CompilerParams(
            dimension_semantics=("parallel",)),
    )(xp, w1, w2, aff)

    # band (N, H*Wp, C) -> drop the 2 don't-care columns per row group -> NCHW
    out = out_band.reshape(N, H, Wp, C)[:, :, :W, :]
    return jnp.transpose(out, (0, 3, 1, 2))


# ------------------------------------------------------------------- main ---
if __name__ == "__main__":
    key = jax.random.PRNGKey(0)
    N, C, H, W = 2, 4, 16, 16
    ks = jax.random.split(key, 8)

    x = jax.random.normal(ks[0], (N, C, H, W), jnp.float32)

    # Deterministic synthetic parameters (shapes per ResidualBlock.__init__).
    params = dict(
        w1=0.1 * jax.random.normal(ks[1], (C, C, 3, 3), jnp.float32),
        b1=0.1 * jax.random.normal(ks[2], (C,), jnp.float32),   # cancelled by IN
        gamma1=1.0 + 0.1 * jax.random.normal(ks[3], (C,), jnp.float32),
        beta1=0.1 * jax.random.normal(ks[4], (C,), jnp.float32),
        w2=0.1 * jax.random.normal(ks[5], (C, C, 3, 3), jnp.float32),
        b2=0.1 * jax.random.normal(ks[6], (C,), jnp.float32),   # cancelled by IN
        gamma2=1.0 + 0.05 * jax.random.normal(ks[7], (C,), jnp.float32),
        beta2=jnp.zeros((C,), jnp.float32),
    )

    out = residual_block(x, params)
    jax.block_until_ready(out)
    assert out.shape == (N, C, H, W), out.shape
    print("KERNEL_OK")
</pallas_src>

<mosaic_0001>
module attributes {stable_mosaic.version = 11 : i64} {
  func.func @kernel(%arg0: i32, %arg1: memref<1x326x4xbf16, #tpu.memory_space<vmem>>, %arg2: memref<36x4xbf16, #tpu.memory_space<vmem>>, %arg3: memref<36x4xbf16, #tpu.memory_space<vmem>>, %arg4: memref<4x4xf32, #tpu.memory_space<vmem>>, %arg5: memref<1x288x4xf32, #tpu.memory_space<vmem>>) attributes {dimension_semantics = [#tpu.dimension_semantics<parallel>], iteration_bounds = array<i64: 2>, scalar_prefetch = 0 : i64, scratch_operands = 0 : i64, tpu.core_type = #tpu.core_type<tc>, window_params = [{transform_indices = @transform_0, window_bounds = array<i64: 1, 326, 4>}, {pipeline_mode = #tpu.pipeline_mode<synchronous>, transform_indices = @transform_1, window_bounds = array<i64: 36, 4>}, {pipeline_mode = #tpu.pipeline_mode<synchronous>, transform_indices = @transform_2, window_bounds = array<i64: 36, 4>}, {pipeline_mode = #tpu.pipeline_mode<synchronous>, transform_indices = @transform_3, window_bounds = array<i64: 4, 4>}, {transform_indices = @transform_4, window_bounds = array<i64: 1, 288, 4>}]} {
    %c0 = arith.constant 0 : index
    %c0_0 = arith.constant 0 : index
    %c0_1 = arith.constant 0 : index
    %0 = vector.load %arg1[%c0, %c0_0, %c0_1] : memref<1x326x4xbf16, #tpu.memory_space<vmem>>, vector<1x326x4xbf16>
    %1 = vector.shape_cast %0 : vector<1x326x4xbf16> to vector<326x4xbf16>
    %2 = arith.extf %1 : vector<326x4xbf16> to vector<326x4xf32>
    %c0_2 = arith.constant 0 : index
    %c0_3 = arith.constant 0 : index
    %3 = vector.load %arg2[%c0_2, %c0_3] : memref<36x4xbf16, #tpu.memory_space<vmem>>, vector<36x4xbf16>
    %4 = arith.extf %3 : vector<36x4xbf16> to vector<36x4xf32>
    %c0_4 = arith.constant 0 : index
    %c0_5 = arith.constant 0 : index
    %5 = vector.load %arg3[%c0_4, %c0_5] : memref<36x4xbf16, #tpu.memory_space<vmem>>, vector<36x4xbf16>
    %6 = arith.extf %5 : vector<36x4xbf16> to vector<36x4xf32>
    %c0_6 = arith.constant 0 : index
    %c0_7 = arith.constant 0 : index
    %7 = vector.load %arg4[%c0_6, %c0_7] : memref<4x4xf32, #tpu.memory_space<vmem>>, vector<4x4xf32>
    %8 = vector.extract_strided_slice %7 {offsets = [0, 0], sizes = [1, 4], strides = [1, 1]} : vector<4x4xf32> to vector<1x4xf32>
    %9 = vector.extract_strided_slice %7 {offsets = [1, 0], sizes = [1, 4], strides = [1, 1]} : vector<4x4xf32> to vector<1x4xf32>
    %10 = vector.extract_strided_slice %7 {offsets = [2, 0], sizes = [1, 4], strides = [1, 1]} : vector<4x4xf32> to vector<1x4xf32>
    %11 = vector.extract_strided_slice %7 {offsets = [3, 0], sizes = [1, 4], strides = [1, 1]} : vector<4x4xf32> to vector<1x4xf32>
    %12 = tpu.iota {dimensions = array<i32: 0>} : vector<288x4xi32>
    %c18_i32 = arith.constant 18 : i32
    %c0_i32 = arith.constant 0 : i32
    %13 = arith.cmpi eq, %c18_i32, %c0_i32 : i32
    %c1_i32 = arith.constant 1 : i32
    %14 = arith.select %13, %c1_i32, %c18_i32 : i32
    %15 = vector.broadcast %14 : i32 to vector<288x4xi32>
    %16 = arith.remsi %12, %15 : vector<288x4xi32>
    %c0_i32_8 = arith.constant 0 : i32
    %17 = vector.broadcast %c0_i32_8 : i32 to vector<288x4xi32>
    %18 = arith.cmpi ne, %16, %17 : vector<288x4xi32>
    %c0_i32_9 = arith.constant 0 : i32
    %19 = vector.broadcast %c0_i32_9 : i32 to vector<288x4xi32>
    %20 = arith.cmpi slt, %16, %19 : vector<288x4xi32>
    %c0_i32_10 = arith.constant 0 : i32
    %21 = arith.cmpi slt, %14, %c0_i32_10 : i32
    %22 = vector.broadcast %21 : i1 to vector<288x4xi1>
    %23 = vector.broadcast %22 : vector<288x4xi1> to vector<288x4xi1>
    %24 = arith.xori %20, %23 : vector<288x4xi1>
    %25 = arith.andi %24, %18 : vector<288x4xi1>
    %26 = vector.broadcast %14 : i32 to vector<288x4xi32>
    %27 = arith.addi %16, %26 : vector<288x4xi32>
    %28 = arith.select %25, %27, %16 : vector<288x4xi1>, vector<288x4xi32>
    %c16_i32 = arith.constant 16 : i32
    %29 = vector.broadcast %c16_i32 : i32 to vector<288x4xi32>
    %30 = arith.cmpi slt, %28, %29 : vector<288x4xi32>
    %cst = arith.constant 0.000000e+00 : f32
    %31 = vector.broadcast %cst : f32 to vector<288x4xf32>
    %32 = vector.extract_strided_slice %2 {offsets = [0, 0], sizes = [288, 4], strides = [1, 1]} : vector<326x4xf32> to vector<288x4xf32>
    %33 = vector.extract_strided_slice %4 {offsets = [0, 0], sizes = [4, 4], strides = [1, 1]} : vector<36x4xf32> to vector<4x4xf32>
    %cst_11 = arith.constant dense<0.000000e+00> : vector<288x4xf32>
    %34 = tpu.matmul %32, %33, %cst_11 {dimension_numbers = #tpu.dot_dimension_numbers<[1], [0], [0], [1], [0, 0, 1, 1], [], []>} : vector<288x4xf32>, vector<4x4xf32>, vector<288x4xf32> -> vector<288x4xf32>
    %35 = arith.addf %31, %34 : vector<288x4xf32>
    %36 = vector.extract_strided_slice %2 {offsets = [1, 0], sizes = [288, 4], strides = [1, 1]} : vector<326x4xf32> to vector<288x4xf32>
    %37 = vector.extract_strided_slice %4 {offsets = [4, 0], sizes = [4, 4], strides = [1, 1]} : vector<36x4xf32> to vector<4x4xf32>
    %cst_12 = arith.constant dense<0.000000e+00> : vector<288x4xf32>
    %38 = tpu.matmul %36, %37, %cst_12 {dimension_numbers = #tpu.dot_dimension_numbers<[1], [0], [0], [1], [0, 0, 1, 1], [], []>} : vector<288x4xf32>, vector<4x4xf32>, vector<288x4xf32> -> vector<288x4xf32>
    %39 = arith.addf %35, %38 : vector<288x4xf32>
    %40 = vector.extract_strided_slice %2 {offsets = [2, 0], sizes = [288, 4], strides = [1, 1]} : vector<326x4xf32> to vector<288x4xf32>
    %41 = vector.extract_strided_slice %4 {offsets = [8, 0], sizes = [4, 4], strides = [1, 1]} : vector<36x4xf32> to vector<4x4xf32>
    %cst_13 = arith.constant dense<0.000000e+00> : vector<288x4xf32>
    %42 = tpu.matmul %40, %41, %cst_13 {dimension_numbers = #tpu.dot_dimension_numbers<[1], [0], [0], [1], [0, 0, 1, 1], [], []>} : vector<288x4xf32>, vector<4x4xf32>, vector<288x4xf32> -> vector<288x4xf32>
    %43 = arith.addf %39, %42 : vector<288x4xf32>
    %44 = vector.extract_strided_slice %2 {offsets = [18, 0], sizes = [288, 4], strides = [1, 1]} : vector<326x4xf32> to vector<288x4xf32>
    %45 = vector.extract_strided_slice %4 {offsets = [12, 0], sizes = [4, 4], strides = [1, 1]} : vector<36x4xf32> to vector<4x4xf32>
    %cst_14 = arith.constant dense<0.000000e+00> : vector<288x4xf32>
    %46 = tpu.matmul %44, %45, %cst_14 {dimension_numbers = #tpu.dot_dimension_numbers<[1], [0], [0], [1], [0, 0, 1, 1], [], []>} : vector<288x4xf32>, vector<4x4xf32>, vector<288x4xf32> -> vector<288x4xf32>
    %47 = arith.addf %43, %46 : vector<288x4xf32>
    %48 = vector.extract_strided_slice %2 {offsets = [19, 0], sizes = [288, 4], strides = [1, 1]} : vector<326x4xf32> to vector<288x4xf32>
    %49 = vector.extract_strided_slice %4 {offsets = [16, 0], sizes = [4, 4], strides = [1, 1]} : vector<36x4xf32> to vector<4x4xf32>
    %cst_15 = arith.constant dense<0.000000e+00> : vector<288x4xf32>
    %50 = tpu.matmul %48, %49, %cst_15 {dimension_numbers = #tpu.dot_dimension_numbers<[1], [0], [0], [1], [0, 0, 1, 1], [], []>} : vector<288x4xf32>, vector<4x4xf32>, vector<288x4xf32> -> vector<288x4xf32>
    %51 = arith.addf %47, %50 : vector<288x4xf32>
    %52 = vector.extract_strided_slice %2 {offsets = [20, 0], sizes = [288, 4], strides = [1, 1]} : vector<326x4xf32> to vector<288x4xf32>
    %53 = vector.extract_strided_slice %4 {offsets = [20, 0], sizes = [4, 4], strides = [1, 1]} : vector<36x4xf32> to vector<4x4xf32>
    %cst_16 = arith.constant dense<0.000000e+00> : vector<288x4xf32>
    %54 = tpu.matmul %52, %53, %cst_16 {dimension_numbers = #tpu.dot_dimension_numbers<[1], [0], [0], [1], [0, 0, 1, 1], [], []>} : vector<288x4xf32>, vector<4x4xf32>, vector<288x4xf32> -> vector<288x4xf32>
    %55 = arith.addf %51, %54 : vector<288x4xf32>
    %56 = vector.extract_strided_slice %2 {offsets = [36, 0], sizes = [288, 4], strides = [1, 1]} : vector<326x4xf32> to vector<288x4xf32>
    %57 = vector.extract_strided_slice %4 {offsets = [24, 0], sizes = [4, 4], strides = [1, 1]} : vector<36x4xf32> to vector<4x4xf32>
    %cst_17 = arith.constant dense<0.000000e+00> : vector<288x4xf32>
    %58 = tpu.matmul %56, %57, %cst_17 {dimension_numbers = #tpu.dot_dimension_numbers<[1], [0], [0], [1], [0, 0, 1, 1], [], []>} : vector<288x4xf32>, vector<4x4xf32>, vector<288x4xf32> -> vector<288x4xf32>
    %59 = arith.addf %55, %58 : vector<288x4xf32>
    %60 = vector.extract_strided_slice %2 {offsets = [37, 0], sizes = [288, 4], strides = [1, 1]} : vector<326x4xf32> to vector<288x4xf32>
    %61 = vector.extract_strided_slice %4 {offsets = [28, 0], sizes = [4, 4], strides = [1, 1]} : vector<36x4xf32> to vector<4x4xf32>
    %cst_18 = arith.constant dense<0.000000e+00> : vector<288x4xf32>
    %62 = tpu.matmul %60, %61, %cst_18 {dimension_numbers = #tpu.dot_dimension_numbers<[1], [0], [0], [1], [0, 0, 1, 1], [], []>} : vector<288x4xf32>, vector<4x4xf32>, vector<288x4xf32> -> vector<288x4xf32>
    %63 = arith.addf %59, %62 : vector<288x4xf32>
    %64 = vector.extract_strided_slice %2 {offsets = [38, 0], sizes = [288, 4], strides = [1, 1]} : vector<326x4xf32> to vector<288x4xf32>
    %65 = vector.extract_strided_slice %4 {offsets = [32, 0], sizes = [4, 4], strides = [1, 1]} : vector<36x4xf32> to vector<4x4xf32>
    %cst_19 = arith.constant dense<0.000000e+00> : vector<288x4xf32>
    %66 = tpu.matmul %64, %65, %cst_19 {dimension_numbers = #tpu.dot_dimension_numbers<[1], [0], [0], [1], [0, 0, 1, 1], [], []>} : vector<288x4xf32>, vector<4x4xf32>, vector<288x4xf32> -> vector<288x4xf32>
    %67 = arith.addf %63, %66 : vector<288x4xf32>
    %cst_20 = arith.constant 0.000000e+00 : f32
    %68 = vector.broadcast %cst_20 : f32 to vector<288x4xf32>
    %69 = arith.select %30, %67, %68 : vector<288x4xi1>, vector<288x4xf32>
    %cst_21 = arith.constant dense<0.000000e+00> : vector<4xf32>
    %70 = vector.multi_reduction <add>, %69, %cst_21 [0] : vector<288x4xf32> to vector<4xf32>
    %71 = vector.shape_cast %70 : vector<4xf32> to vector<1x4xf32>
    %cst_22 = arith.constant 3.906250e-03 : f32
    %72 = vector.broadcast %cst_22 : f32 to vector<1x4xf32>
    %73 = arith.mulf %71, %72 : vector<1x4xf32>
    %74 = vector.broadcast %73 : vector<1x4xf32> to vector<288x4xf32>
    %75 = arith.subf %67, %74 : vector<288x4xf32>
    %76 = arith.select %30, %75, %68 : vector<288x4xi1>, vector<288x4xf32>
    %77 = arith.mulf %76, %76 : vector<288x4xf32>
    %cst_23 = arith.constant dense<0.000000e+00> : vector<4xf32>
    %78 = vector.multi_reduction <add>, %77, %cst_23 [0] : vector<288x4xf32> to vector<4xf32>
    %79 = vector.shape_cast %78 : vector<4xf32> to vector<1x4xf32>
    %cst_24 = arith.constant 0.00392156886 : f32
    %80 = vector.broadcast %cst_24 : f32 to vector<1x4xf32>
    %81 = arith.mulf %79, %80 : vector<1x4xf32>
    %cst_25 = arith.constant 9.99999974E-6 : f32
    %82 = vector.broadcast %cst_25 : f32 to vector<1x4xf32>
    %83 = arith.addf %81, %82 : vector<1x4xf32>
    %84 = math.rsqrt %83 : vector<1x4xf32>
    %85 = vector.broadcast %84 : vector<1x4xf32> to vector<288x4xf32>
    %86 = arith.mulf %75, %85 : vector<288x4xf32>
    %87 = vector.broadcast %8 : vector<1x4xf32> to vector<288x4xf32>
    %88 = arith.mulf %86, %87 : vector<288x4xf32>
    %89 = vector.broadcast %9 : vector<1x4xf32> to vector<288x4xf32>
    %90 = arith.addf %88, %89 : vector<288x4xf32>
    %cst_26 = arith.constant 0.000000e+00 : f32
    %91 = vector.broadcast %cst_26 : f32 to vector<288x4xf32>
    %92 = arith.maximumf %90, %91 : vector<288x4xf32>
    %93 = vector.extract_strided_slice %92 {offsets = [0, 0], sizes = [2, 4], strides = [1, 1]} : vector<288x4xf32> to vector<2x4xf32>
    %94 = vector.extract_strided_slice %92 {offsets = [0, 0], sizes = [286, 4], strides = [1, 1]} : vector<288x4xf32> to vector<286x4xf32>
    %95 = tpu.concatenate %93, %94 in 0 : vector<2x4xf32>, vector<286x4xf32> -> vector<288x4xf32>
    %96 = vector.extract_strided_slice %92 {offsets = [2, 0], sizes = [286, 4], strides = [1, 1]} : vector<288x4xf32> to vector<286x4xf32>
    %97 = vector.extract_strided_slice %92 {offsets = [286, 0], sizes = [2, 4], strides = [1, 1]} : vector<288x4xf32> to vector<2x4xf32>
    %98 = tpu.concatenate %96, %97 in 0 : vector<286x4xf32>, vector<2x4xf32> -> vector<288x4xf32>
    %c16_i32_27 = arith.constant 16 : i32
    %99 = vector.broadcast %c16_i32_27 : i32 to vector<288x4xi32>
    %100 = arith.cmpi eq, %28, %99 : vector<288x4xi32>
    %c17_i32 = arith.constant 17 : i32
    %101 = vector.broadcast %c17_i32 : i32 to vector<288x4xi32>
    %102 = arith.cmpi eq, %28, %101 : vector<288x4xi32>
    %103 = arith.select %102, %98, %92 : vector<288x4xi1>, vector<288x4xf32>
    %104 = arith.select %100, %95, %103 : vector<288x4xi1>, vector<288x4xf32>
    %105 = vector.extract_strided_slice %104 {offsets = [17, 0], sizes = [18, 4], strides = [1, 1]} : vector<288x4xf32> to vector<18x4xf32>
    %106 = vector.extract_strided_slice %104 {offsets = [1, 0], sizes = [1, 4], strides = [1, 1]} : vector<288x4xf32> to vector<1x4xf32>
    %107 = vector.extract_strided_slice %104 {offsets = [0, 0], sizes = [287, 4], strides = [1, 1]} : vector<288x4xf32> to vector<287x4xf32>
    %108 = vector.extract_strided_slice %104 {offsets = [251, 0], sizes = [18, 4], strides = [1, 1]} : vector<288x4xf32> to vector<18x4xf32>
    %cst_28 = arith.constant 0.000000e+00 : f32
    %109 = vector.broadcast %cst_28 : f32 to vector<2x4xf32>
    %110 = tpu.concatenate %105, %106, %107, %108, %109 in 0 : vector<18x4xf32>, vector<1x4xf32>, vector<287x4xf32>, vector<18x4xf32>, vector<2x4xf32> -> vector<326x4xf32>
    %cst_29 = arith.constant 0.000000e+00 : f32
    %111 = vector.broadcast %cst_29 : f32 to vector<288x4xf32>
    %112 = vector.extract_strided_slice %110 {offsets = [0, 0], sizes = [288, 4], strides = [1, 1]} : vector<326x4xf32> to vector<288x4xf32>
    %113 = vector.extract_strided_slice %6 {offsets = [0, 0], sizes = [4, 4], strides = [1, 1]} : vector<36x4xf32> to vector<4x4xf32>
    %cst_30 = arith.constant dense<0.000000e+00> : vector<288x4xf32>
    %114 = tpu.matmul %112, %113, %cst_30 {dimension_numbers = #tpu.dot_dimension_numbers<[1], [0], [0], [1], [0, 0, 1, 1], [], []>} : vector<288x4xf32>, vector<4x4xf32>, vector<288x4xf32> -> vector<288x4xf32>
    %115 = arith.addf %111, %114 : vector<288x4xf32>
    %116 = vector.extract_strided_slice %110 {offsets = [1, 0], sizes = [288, 4], strides = [1, 1]} : vector<326x4xf32> to vector<288x4xf32>
    %117 = vector.extract_strided_slice %6 {offsets = [4, 0], sizes = [4, 4], strides = [1, 1]} : vector<36x4xf32> to vector<4x4xf32>
    %cst_31 = arith.constant dense<0.000000e+00> : vector<288x4xf32>
    %118 = tpu.matmul %116, %117, %cst_31 {dimension_numbers = #tpu.dot_dimension_numbers<[1], [0], [0], [1], [0, 0, 1, 1], [], []>} : vector<288x4xf32>, vector<4x4xf32>, vector<288x4xf32> -> vector<288x4xf32>
    %119 = arith.addf %115, %118 : vector<288x4xf32>
    %120 = vector.extract_strided_slice %110 {offsets = [2, 0], sizes = [288, 4], strides = [1, 1]} : vector<326x4xf32> to vector<288x4xf32>
    %121 = vector.extract_strided_slice %6 {offsets = [8, 0], sizes = [4, 4], strides = [1, 1]} : vector<36x4xf32> to vector<4x4xf32>
    %cst_32 = arith.constant dense<0.000000e+00> : vector<288x4xf32>
    %122 = tpu.matmul %120, %121, %cst_32 {dimension_numbers = #tpu.dot_dimension_numbers<[1], [0], [0], [1], [0, 0, 1, 1], [], []>} : vector<288x4xf32>, vector<4x4xf32>, vector<288x4xf32> -> vector<288x4xf32>
    %123 = arith.addf %119, %122 : vector<288x4xf32>
    %124 = vector.extract_strided_slice %110 {offsets = [18, 0], sizes = [288, 4], strides = [1, 1]} : vector<326x4xf32> to vector<288x4xf32>
    %125 = vector.extract_strided_slice %6 {offsets = [12, 0], sizes = [4, 4], strides = [1, 1]} : vector<36x4xf32> to vector<4x4xf32>
    %cst_33 = arith.constant dense<0.000000e+00> : vector<288x4xf32>
    %126 = tpu.matmul %124, %125, %cst_33 {dimension_numbers = #tpu.dot_dimension_numbers<[1], [0], [0], [1], [0, 0, 1, 1], [], []>} : vector<288x4xf32>, vector<4x4xf32>, vector<288x4xf32> -> vector<288x4xf32>
    %127 = arith.addf %123, %126 : vector<288x4xf32>
    %128 = vector.extract_strided_slice %110 {offsets = [19, 0], sizes = [288, 4], strides = [1, 1]} : vector<326x4xf32> to vector<288x4xf32>
    %129 = vector.extract_strided_slice %6 {offsets = [16, 0], sizes = [4, 4], strides = [1, 1]} : vector<36x4xf32> to vector<4x4xf32>
    %cst_34 = arith.constant dense<0.000000e+00> : vector<288x4xf32>
    %130 = tpu.matmul %128, %129, %cst_34 {dimension_numbers = #tpu.dot_dimension_numbers<[1], [0], [0], [1], [0, 0, 1, 1], [], []>} : vector<288x4xf32>, vector<4x4xf32>, vector<288x4xf32> -> vector<288x4xf32>
    %131 = arith.addf %127, %130 : vector<288x4xf32>
    %132 = vector.extract_strided_slice %110 {offsets = [20, 0], sizes = [288, 4], strides = [1, 1]} : vector<326x4xf32> to vector<288x4xf32>
    %133 = vector.extract_strided_slice %6 {offsets = [20, 0], sizes = [4, 4], strides = [1, 1]} : vector<36x4xf32> to vector<4x4xf32>
    %cst_35 = arith.constant dense<0.000000e+00> : vector<288x4xf32>
    %134 = tpu.matmul %132, %133, %cst_35 {dimension_numbers = #tpu.dot_dimension_numbers<[1], [0], [0], [1], [0, 0, 1, 1], [], []>} : vector<288x4xf32>, vector<4x4xf32>, vector<288x4xf32> -> vector<288x4xf32>
    %135 = arith.addf %131, %134 : vector<288x4xf32>
    %136 = vector.extract_strided_slice %110 {offsets = [36, 0], sizes = [288, 4], strides = [1, 1]} : vector<326x4xf32> to vector<288x4xf32>
    %137 = vector.extract_strided_slice %6 {offsets = [24, 0], sizes = [4, 4], strides = [1, 1]} : vector<36x4xf32> to vector<4x4xf32>
    %cst_36 = arith.constant dense<0.000000e+00> : vector<288x4xf32>
    %138 = tpu.matmul %136, %137, %cst_36 {dimension_numbers = #tpu.dot_dimension_numbers<[1], [0], [0], [1], [0, 0, 1, 1], [], []>} : vector<288x4xf32>, vector<4x4xf32>, vector<288x4xf32> -> vector<288x4xf32>
    %139 = arith.addf %135, %138 : vector<288x4xf32>
    %140 = vector.extract_strided_slice %110 {offsets = [37, 0], sizes = [288, 4], strides = [1, 1]} : vector<326x4xf32> to vector<288x4xf32>
    %141 = vector.extract_strided_slice %6 {offsets = [28, 0], sizes = [4, 4], strides = [1, 1]} : vector<36x4xf32> to vector<4x4xf32>
    %cst_37 = arith.constant dense<0.000000e+00> : vector<288x4xf32>
    %142 = tpu.matmul %140, %141, %cst_37 {dimension_numbers = #tpu.dot_dimension_numbers<[1], [0], [0], [1], [0, 0, 1, 1], [], []>} : vector<288x4xf32>, vector<4x4xf32>, vector<288x4xf32> -> vector<288x4xf32>
    %143 = arith.addf %139, %142 : vector<288x4xf32>
    %144 = vector.extract_strided_slice %110 {offsets = [38, 0], sizes = [288, 4], strides = [1, 1]} : vector<326x4xf32> to vector<288x4xf32>
    %145 = vector.extract_strided_slice %6 {offsets = [32, 0], sizes = [4, 4], strides = [1, 1]} : vector<36x4xf32> to vector<4x4xf32>
    %cst_38 = arith.constant dense<0.000000e+00> : vector<288x4xf32>
    %146 = tpu.matmul %144, %145, %cst_38 {dimension_numbers = #tpu.dot_dimension_numbers<[1], [0], [0], [1], [0, 0, 1, 1], [], []>} : vector<288x4xf32>, vector<4x4xf32>, vector<288x4xf32> -> vector<288x4xf32>
    %147 = arith.addf %143, %146 : vector<288x4xf32>
    %cst_39 = arith.constant 0.000000e+00 : f32
    %148 = vector.broadcast %cst_39 : f32 to vector<288x4xf32>
    %149 = arith.select %30, %147, %148 : vector<288x4xi1>, vector<288x4xf32>
    %cst_40 = arith.constant dense<0.000000e+00> : vector<4xf32>
    %150 = vector.multi_reduction <add>, %149, %cst_40 [0] : vector<288x4xf32> to vector<4xf32>
    %151 = vector.shape_cast %150 : vector<4xf32> to vector<1x4xf32>
    %cst_41 = arith.constant 3.906250e-03 : f32
    %152 = vector.broadcast %cst_41 : f32 to vector<1x4xf32>
    %153 = arith.mulf %151, %152 : vector<1x4xf32>
    %154 = vector.broadcast %153 : vector<1x4xf32> to vector<288x4xf32>
    %155 = arith.subf %147, %154 : vector<288x4xf32>
    %156 = arith.select %30, %155, %148 : vector<288x4xi1>, vector<288x4xf32>
    %157 = arith.mulf %156, %156 : vector<288x4xf32>
    %cst_42 = arith.constant dense<0.000000e+00> : vector<4xf32>
    %158 = vector.multi_reduction <add>, %157, %cst_42 [0] : vector<288x4xf32> to vector<4xf32>
    %159 = vector.shape_cast %158 : vector<4xf32> to vector<1x4xf32>
    %cst_43 = arith.constant 0.00392156886 : f32
    %160 = vector.broadcast %cst_43 : f32 to vector<1x4xf32>
    %161 = arith.mulf %159, %160 : vector<1x4xf32>
    %cst_44 = arith.constant 9.99999974E-6 : f32
    %162 = vector.broadcast %cst_44 : f32 to vector<1x4xf32>
    %163 = arith.addf %161, %162 : vector<1x4xf32>
    %164 = math.rsqrt %163 : vector<1x4xf32>
    %165 = vector.broadcast %164 : vector<1x4xf32> to vector<288x4xf32>
    %166 = arith.mulf %155, %165 : vector<288x4xf32>
    %167 = vector.broadcast %10 : vector<1x4xf32> to vector<288x4xf32>
    %168 = arith.mulf %166, %167 : vector<288x4xf32>
    %169 = vector.broadcast %11 : vector<1x4xf32> to vector<288x4xf32>
    %170 = arith.addf %168, %169 : vector<288x4xf32>
    %171 = vector.extract_strided_slice %2 {offsets = [19, 0], sizes = [288, 4], strides = [1, 1]} : vector<326x4xf32> to vector<288x4xf32>
    %172 = arith.addf %170, %171 : vector<288x4xf32>
    %c0_45 = arith.constant 0 : index
    %c0_46 = arith.constant 0 : index
    %c0_47 = arith.constant 0 : index
    %173 = vector.load %arg5[%c0_45, %c0_46, %c0_47] : memref<1x288x4xf32, #tpu.memory_space<vmem>>, vector<1x288x4xf32>
    %174 = vector.shape_cast %173 : vector<1x288x4xf32> to vector<288x4xf32>
    %175 = vector.shape_cast %172 : vector<288x4xf32> to vector<1x288x4xf32>
    tpu.vector_store %arg5[%c0_45, %c0_46, %c0_47], %175 {strides = array<i32>} : memref<1x288x4xf32, #tpu.memory_space<vmem>>, vector<1x288x4xf32>,
    return
  }
  func.func @transform_0(%arg0: i32) -> (i32, i32, i32) {
    %c0_i32 = arith.constant 0 : i32
    %c0_i32_0 = arith.constant 0 : i32
    %c0_i32_1 = arith.constant 0 : i32
    return %arg0, %c0_i32, %c0_i32_0 : i32, i32, i32
  }
  func.func @transform_1(%arg0: i32) -> (i32, i32) {
    %c0_i32 = arith.constant 0 : i32
    %c0_i32_0 = arith.constant 0 : i32
    %c0_i32_1 = arith.constant 0 : i32
    return %c0_i32, %c0_i32_0 : i32, i32
  }
  func.func @transform_2(%arg0: i32) -> (i32, i32) {
    %c0_i32 = arith.constant 0 : i32
    %c0_i32_0 = arith.constant 0 : i32
    %c0_i32_1 = arith.constant 0 : i32
    return %c0_i32, %c0_i32_0 : i32, i32
  }
  func.func @transform_3(%arg0: i32) -> (i32, i32) {
    %c0_i32 = arith.constant 0 : i32
    %c0_i32_0 = arith.constant 0 : i32
    %c0_i32_1 = arith.constant 0 : i32
    return %c0_i32, %c0_i32_0 : i32, i32
  }
  func.func @transform_4(%arg0: i32) -> (i32, i32, i32) {
    %c0_i32 = arith.constant 0 : i32
    %c0_i32_0 = arith.constant 0 : i32
    %c0_i32_1 = arith.constant 0 : i32
    return %arg0, %c0_i32, %c0_i32_0 : i32, i32, i32
  }
}

</mosaic_0001>

<bundles_post_ra>
// kernel: tpu_custom_call.1
= control target key start
LH: loop header
LB: loop body
LE: loop exit
PB: predicated region body
PF: predicated region fallthrough
CT: control target
= control target key end

     0   :  { %s12607_s15 = smov 0   ;;  %s17984_s0 = inlined_call_operand.vmem [shape: bf16[2,326,4], index: 0, kind: input, shape index: {}]   ;;  %s17985_s1 = inlined_call_operand.vmem [shape: bf16[36,4], index: 1, kind: input, shape index: {}]   ;;  %s17986_s2 = inlined_call_operand.vmem [shape: bf16[36,4], index: 2, kind: input, shape index: {}]   ;;  %s17987_s3 = inlined_call_operand.vmem [shape: f32[4,4], index: 3, kind: input, shape index: {}]   ;;  %s17988_s4 = inlined_call_operand.vmem [shape: f32[2,288,4], index: 4, kind: output, shape index: {}]  }
   0x1 LB: > { %s9444_s16 = sadd.s32 4294967295, %s12580_s15   ;;  %p9448_p0 = scmp.ge.s32.totalorder %s12580_s15, 1  ;;  %s12580_s15 = sphi %s12607_s15, %s14_s15  }
   0x2   : > { %p162_p1 = scmp.lt.s32.totalorder %s12580_s15, 3 }
   0x4   : > { %p163_p2 = pnand %p9448_p0, %p162_p1 }
   0x6   : > { %166 = sbr.rel (%p163_p2) target bundleno = 2237 (0x8bd), region = 36 }
   0xd   : > { %v10200_v0 = vld [vmem:[%s17985_s1] sm:$0xff]   ;;  %p188_p3 = scmp.lt.s32.totalorder %s9444_s16, 1  ;;  %vm18071_vm0 = vcmask 1043456   ;;  %vm18067_vm1 = vcmask 1046528   ;;  %vm18072_vm2 = vcmask 31744   ;;  %vm18069_vm3 = vcmask 1045504  }
   0xe   : > { %v10201_v1 = vunpack.c.l.bf16 %v10200_v0  ;;  %v12654_v20 = vunpack.c.h.bf16 %v10200_v0  ;;  %vm18066_vm4 = vcmask 1044480   ;;  %vm18068_vm5 = vcmask 1042432  }
   0xf   : > { %s19834_s16 = smov (!%p188_p3, %s9444_s16), 1  ;;  %vm18070_vm6 = vcmask 1041408  }
  0x10   : > { %v1062_v2 = vrot.slane %v10201_v1, 4  ;;  %s12486_s19 = smul.u32 164, %s19834_s16 }
  0x11   : > { %s12487_s13 = smul.u32 288, %s19834_s16 }
  0x12   : > { %10902 = vmatprep.subr.msk.mxu0 %vm18071_vm0, %v1062_v2  ;;  %s12626_s22 = scalar_lea.vmem %s17984_s0, %s12486_s19 }
  0x13   : > { %10903 = vmatpush3.msk.msra.mxu0 %vm18071_vm0, %v1062_v2  ;;  %v10120_v3 = vld [vmem:[%s12626_s22] sm:$0xff]   ;;  %v10215_v4 = vld [vmem:[%s12626_s22 + $0x8] sm:$0xff]   ;;  %v10216_v5 = vld [vmem:[%s12626_s22 + $0x10] sm:$0xff]   ;;  %s17867_s17 = scalar_lea.vmem %s17988_s4, %s12487_s13 }
  0x14   : > { %10958 = vmatprep.subr.msk.mxu0 %vm18071_vm0, %v10201_v1  ;;  %v12632_v6 = vunpack.c.l.bf16 %v10120_v3  ;;  %v12634_v7 = vunpack.c.h.bf16 %v10120_v3  ;;  %v12636_v8 = vunpack.c.l.bf16 %v10215_v4  ;;  %v12638_v9 = vunpack.c.h.bf16 %v10215_v4  ;;  %v10217_v10 = vld [vmem:[%s12626_s22 + $0x18] sm:$0xff]   ;;  %v10218_v25 = vld [vmem:[%s12626_s22 + $0x20] sm:$0xff]   ;;  %v10219_v32 = vld [vmem:[%s12626_s22 + $0x28] sm:$0xff]  }
  0x15   : > { %v12641_v11 = vunpack.c.l.bf16 %v10216_v5  ;;  %v12643_v12 = vunpack.c.h.bf16 %v10216_v5  ;;  %v12650_v18 = vunpack.c.l.bf16 %v10217_v10  ;;  %v12652_v19 = vunpack.c.h.bf16 %v10217_v10  ;;  %v10220_v39 = vld [vmem:[%s12626_s22 + $0x30] sm:$0xff]   ;;  %v10221_v46 = vld [vmem:[%s12626_s22 + $0x38] sm:$0xff]   ;;  %v10222_v53 = vld [vmem:[%s12626_s22 + $0x40] sm:$0xff]  }
  0x16   : > { %v988_v13 = vrot.slane %v12632_v6, 1  ;;  %v989_v14 = vrot.slane %v12634_v7, 1  ;;  %v991_v15 = vrot.slane %v12636_v8, 1  ;;  %v993_v16 = vrot.slane %v12638_v9, 1  ;;  %v10223_v60 = vld [vmem:[%s12626_s22 + $0x48] sm:$0xff]   ;;  %v10224_v3 = vld [vmem:[%s12626_s22 + $0x50] sm:$0xff]  }
  0x17   : > { %v995_v17 = vrot.slane %v12641_v11, 1  ;;  %v997_v24 = vrot.slane %v12643_v12, 1  ;;  %v999_v27 = vrot.slane %v12650_v18, 1  ;;  %v12667_v28 = vunpack.c.l.bf16 %v10218_v25 }
  0x18   : > { %v990_v21 = vsel %vm18067_vm1, %v988_v13, %v989_v14  ;;  %v992_v22 = vsel %vm18067_vm1, %v989_v14, %v991_v15  ;;  %v994_v23 = vsel %vm18067_vm1, %v991_v15, %v993_v16  ;;  %v1001_v30 = vrot.slane %v12652_v19, 1 }
  0x19   : > { %10904 = vmatprep.mubr.msk.f32.mxu0 %vm18072_vm2, %v990_v21  ;;  %v996_v26 = vsel %vm18067_vm1, %v993_v16, %v995_v17  ;;  %v998_v29 = vsel %vm18067_vm1, %v995_v17, %v997_v24  ;;  %v12671_v31 = vunpack.c.h.bf16 %v10218_v25  ;;  %v1000_v33 = vsel %vm18067_vm1, %v997_v24, %v999_v27  ;;  %v10225_v16 = vld [vmem:[%s12626_s22 + $0x58] sm:$0xff]  }
  0x1a   : > { %10905 = vmatmul.mubr.msk.f32.vlgmr.msra.gmra.mrb[0].mxu0 %vm18072_vm2, %v992_v22  ;;  %v1003_v34 = vrot.slane %v12667_v28, 1  ;;  %v12680_v35 = vunpack.c.l.bf16 %v10219_v32  ;;  %v1002_v36 = vsel %vm18067_vm1, %v999_v27, %v1001_v30  ;;  %v12684_v38 = vunpack.c.h.bf16 %v10219_v32 }
  0x1b   : > { %10959 = vmatpush3.msk.msra.mxu0 %vm18071_vm0, %v10201_v1  ;;  %10907 = vmatprep.mubr.msk.f32.mxu0 %vm18072_vm2, %v994_v23  ;;  %v1005_v37 = vrot.slane %v12671_v31, 1  ;;  %v12691_v42 = vunpack.c.l.bf16 %v10220_v39  ;;  %v12695_v45 = vunpack.c.h.bf16 %v10220_v39  ;;  %v12702_v49 = vunpack.c.l.bf16 %v10221_v46 }
  0x1c   : > { %11014 = vmatprep.subr.msk.mxu0 %vm18071_vm0, %v12654_v20  ;;  %v1004_v40 = vsel %vm18067_vm1, %v1001_v30, %v1003_v34  ;;  %v1007_v41 = vrot.slane %v12680_v35, 1  ;;  %v1009_v44 = vrot.slane %v12684_v38, 1  ;;  %v12706_v52 = vunpack.c.h.bf16 %v10221_v46  ;;  %v10228_v46 = vld [vmem:[%s12626_s22 + $0x70] sm:$0xff]  }
  0x1d   : > { %v1006_v43 = vsel %vm18067_vm1, %v1003_v34, %v1005_v37  ;;  %v1011_v48 = vrot.slane %v12691_v42, 1  ;;  %v1013_v51 = vrot.slane %v12695_v45, 1  ;;  %v1015_v55 = vrot.slane %v12702_v49, 1 }
  0x1e   : > { %10908 = vmatmul.mubr.msk.f32.gmra.mrb[2].mxu0 %vm18072_vm2, %v996_v26  ;;  %v1008_v47 = vsel %vm18067_vm1, %v1005_v37, %v1007_v41  ;;  %v1010_v50 = vsel %vm18067_vm1, %v1007_v41, %v1009_v44  ;;  %v12713_v56 = vunpack.c.l.bf16 %v10222_v53  ;;  %v1017_v58 = vrot.slane %v12706_v52, 1  ;;  %v10226_v26 = vld [vmem:[%s12626_s22 + $0x60] sm:$0xff]  }
  0x1f   : > { %10910 = vmatprep.mubr.msk.f32.mxu0 %vm18072_vm2, %v998_v29  ;;  %v1012_v54 = vsel %vm18067_vm1, %v1009_v44, %v1011_v48  ;;  %v1014_v57 = vsel %vm18067_vm1, %v1011_v48, %v1013_v51  ;;  %v12717_v59 = vunpack.c.h.bf16 %v10222_v53  ;;  %v1016_v61 = vsel %vm18067_vm1, %v1013_v51, %v1015_v55 }
  0x20   : > { %v1019_v62 = vrot.slane %v12713_v56, 1  ;;  %v12724_v63 = vunpack.c.l.bf16 %v10223_v60  ;;  %v1018_v0 = vsel %vm18067_vm1, %v1015_v55, %v1017_v58  ;;  %v12728_v2 = vunpack.c.h.bf16 %v10223_v60  ;;  %v10229_v55 = vld [vmem:[%s12626_s22 + $0x78] sm:$0xff]  }
  0x21   : > { %v1021_v1 = vrot.slane %v12717_v59, 1  ;;  %v12735_v10 = vunpack.c.l.bf16 %v10224_v3  ;;  %v12739_v15 = vunpack.c.h.bf16 %v10224_v3  ;;  %v12746_v22 = vunpack.c.l.bf16 %v10225_v16 }
  0x22   : > { %10911 = vmatmul.mubr.msk.f32.gmra.mrb[4].mxu0 %vm18072_vm2, %v1000_v33  ;;  %v1020_v4 = vsel %vm18067_vm1, %v1017_v58, %v1019_v62  ;;  %v1023_v5 = vrot.slane %v12724_v63, 1  ;;  %v1025_v14 = vrot.slane %v12728_v2, 1  ;;  %v12750_v25 = vunpack.c.h.bf16 %v10225_v16 }
  0x23   : > { %10913 = vmatprep.mubr.msk.f32.mxu0 %vm18072_vm2, %v1002_v36  ;;  %18314 = vst [vmem:[#allocation2_spill] sm:$0xff] %v12735_v10  ;;  %v1022_v13 = vsel %vm18067_vm1, %v1019_v62, %v1021_v1  ;;  %18315 = vst [vmem:[#allocation3_spill] sm:$0xff] %v12739_v15  ;;  %v1027_v21 = vrot.slane %v12735_v10, 1  ;;  %v1029_v24 = vrot.slane %v12739_v15, 1  ;;  %v1031_v29 = vrot.slane %v12746_v22, 1  ;;  %v10227_v36 = vld [vmem:[%s12626_s22 + $0x68] sm:$0xff]  }
  0x24   : > { %v1024_v17 = vsel %vm18067_vm1, %v1021_v1, %v1023_v5  ;;  %18316 = vst [vmem:[#allocation4_spill] sm:$0xff] %v12746_v22  ;;  %v1026_v23 = vsel %vm18067_vm1, %v1023_v5, %v1025_v14  ;;  %18317 = vst [vmem:[#allocation5_spill] sm:$0xff] %v12750_v25  ;;  %v12757_v30 = vunpack.c.l.bf16 %v10226_v26  ;;  %v1033_v33 = vrot.slane %v12750_v25, 1  ;;  %v10230_v1 = vld [vmem:[%s12626_s22 + $0x80] sm:$0xff]  }
  0x25   : > { %v1028_v27 = vsel %vm18067_vm1, %v1025_v14, %v1027_v21  ;;  %v1030_v32 = vsel %vm18067_vm1, %v1027_v21, %v1029_v24  ;;  %v12761_v34 = vunpack.c.h.bf16 %v10226_v26  ;;  %v1032_v37 = vsel %vm18067_vm1, %v1029_v24, %v1031_v29 }
  0x26   : > { %10914 = vmatmul.mubr.msk.f32.gmra.mrb[6].mxu0 %vm18072_vm2, %v1004_v40  ;;  %18318 = vst [vmem:[#allocation6_spill] sm:$0xff] %v12757_v30  ;;  %v1035_v39 = vrot.slane %v12757_v30, 1  ;;  %v12768_v40 = vunpack.c.l.bf16 %v10227_v36  ;;  %v1034_v41 = vsel %vm18067_vm1, %v1031_v29, %v1033_v33  ;;  %v12772_v44 = vunpack.c.h.bf16 %v10227_v36 }
  0x27   : > { %10916 = vmatprep.mubr.msk.f32.mxu0 %vm18072_vm2, %v1006_v43  ;;  %18319 = vst [vmem:[#allocation7_spill] sm:$0xff] %v12761_v34  ;;  %v1037_v43 = vrot.slane %v12761_v34, 1  ;;  %v12790_v60 = vunpack.c.l.bf16 %v10229_v55  ;;  %v12801_v5 = vunpack.c.l.bf16 %v10230_v1  ;;  %v12805_v16 = vunpack.c.h.bf16 %v10230_v1 }
  0x28   : > { %18320 = vst [vmem:[#allocation8_spill] sm:$0xff] %v12768_v40  ;;  %18321 = vst [vmem:[#allocation9_spill] sm:$0xff] %v12772_v44  ;;  %v1039_v48 = vrot.slane %v12768_v40, 1  ;;  %v1041_v53 = vrot.slane %v12772_v44, 1  ;;  %v1713_v1 = vrot.slane %v12643_v12, 2 }
  0x29   : > { %v1038_v51 = vsel %vm18067_vm1, %v1035_v39, %v1037_v43  ;;  %18324 = vst [vmem:[#allocation12_spill] sm:$0xff] %v12790_v60  ;;  %18326 = vst [vmem:[#allocation14_spill] sm:$0xff] %v12801_v5 }
  0x2a   : > { %10917 = vmatmul.mubr.msk.f32.gmra.mrb[8].mxu0 %vm18072_vm2, %v1008_v47  ;;  %v1036_v47 = vsel %vm18067_vm1, %v1033_v33, %v1035_v39  ;;  %18327 = vst [vmem:[#allocation15_spill] sm:$0xff] %v12805_v16 }
  0x2b   : > { %10919 = vmatprep.mubr.msk.f32.mxu0 %vm18072_vm2, %v1010_v50  ;;  %v12779_v50 = vunpack.c.l.bf16 %v10228_v46 }
  0x2d   : > { %18322 = vst [vmem:[#allocation10_spill] sm:$0xff] %v12779_v50  ;;  %v1043_v58 = vrot.slane %v12779_v50, 1 }
  0x2e   : > { %10920 = vmatmul.mubr.msk.f32.gmra.mrb[10].mxu0 %vm18072_vm2, %v1012_v54  ;;  %v12783_v54 = vunpack.c.h.bf16 %v10228_v46 }
  0x2f   : > { %10922 = vmatprep.mubr.msk.f32.mxu0 %vm18072_vm2, %v1014_v57  ;;  %v1040_v57 = vsel %vm18067_vm1, %v1037_v43, %v1039_v48  ;;  %v1044_v3 = vsel %vm18067_vm1, %v1041_v53, %v1043_v58 }
  0x30   : > { %18323 = vst [vmem:[#allocation11_spill] sm:$0xff] %v12783_v54  ;;  %v1045_v62 = vrot.slane %v12783_v54, 1 }
  0x32   : > { %10923 = vmatmul.mubr.msk.f32.gmra.mrb[12].mxu0 %vm18072_vm2, %v1016_v61  ;;  %v1042_v61 = vsel %vm18067_vm1, %v1039_v48, %v1041_v53  ;;  %v1705_v53 = vrot.slane %v12634_v7, 2 }
  0x33   : > { %10925 = vmatprep.mubr.msk.f32.mxu0 %vm18072_vm2, %v1018_v0  ;;  %v12794_v0 = vunpack.c.h.bf16 %v10229_v55  ;;  %v1707_v55 = vrot.slane %v12636_v8, 2 }
  0x35   : > { %18325 = vst [vmem:[#allocation13_spill] sm:$0xff] %v12794_v0  ;;  %v1049_v14 = vrot.slane %v12794_v0, 1 }
  0x36   : > { %10926 = vmatmul.mubr.msk.f32.gmra.mrb[14].mxu0 %vm18072_vm2, %v1020_v4  ;;  %v1047_v4 = vrot.slane %v12790_v60, 1 }
  0x37   : > { %10928 = vmatprep.mubr.msk.f32.mxu0 %vm18072_vm2, %v1022_v13  ;;  %v1046_v13 = vsel %vm18067_vm1, %v1043_v58, %v1045_v62  ;;  %v1709_v58 = vrot.slane %v12638_v9, 2 }
  0x38   : > { %v1048_v21 = vsel %vm18067_vm1, %v1045_v62, %v1047_v4  ;;  %v1050_v26 = vsel %vm18067_vm1, %v1047_v4, %v1049_v14 }
  0x39   : > { %v12929_v62 = vsel %vm18069_vm3, %v1707_v55, %v1709_v58 }
  0x3a   : > { %10929 = vmatmul.mubr.msk.f32.gmra.mrb[16].mxu0 %vm18072_vm2, %v1024_v17  ;;  %v10231_v17 = vld [vmem:[%s12626_s22 + $0x88] sm:$0xff]  }
  0x3b   : > { %10931 = vmatprep.mubr.msk.f32.mxu0 %vm18072_vm2, %v1026_v23  ;;  %v1051_v23 = vrot.slane %v12801_v5, 1  ;;  %v12812_v24 = vunpack.c.l.bf16 %v10231_v17  ;;  %v12816_v29 = vunpack.c.h.bf16 %v10231_v17  ;;  %v1717_v17 = vrot.slane %v12652_v19, 2 }
  0x3d   : > { %18328 = vst [vmem:[#allocation16_spill] sm:$0xff] %v12816_v29  ;;  %v1052_v33 = vsel %vm18067_vm1, %v1049_v14, %v1051_v23  ;;  %v1055_v36 = vrot.slane %v12812_v24, 1 }
  0x3e   : > { %10932 = vmatmul.mubr.msk.f32.gmra.mrb[18].mxu0 %vm18072_vm2, %v1028_v27  ;;  %v1053_v27 = vrot.slane %v12805_v16, 1 }
  0x3f   : > { %10934 = vmatprep.mubr.msk.f32.mxu0 %vm18072_vm2, %v1030_v32  ;;  %v12819_v32 = vld [vmem:[%s12626_s22 + $0x90] sm:$0xff]  }
  0x40   : > { %v1054_v39 = vsel %vm18067_vm1, %v1051_v23, %v1053_v27  ;;  %v1056_v43 = vsel %vm18067_vm1, %v1053_v27, %v1055_v36  ;;  %v1719_v23 = vrot.slane %v12667_v28, 2  ;;  %v1721_v27 = vrot.slane %v12671_v31, 2 }
  0x42   : > { %10935 = vmatmul.mubr.msk.f32.gmra.mrb[20].mxu0 %vm18072_vm2, %v1032_v37  ;;  %v12826_v37 = vunpack.c.l.bf16 %v12819_v32 }
  0x43   : > { %10937 = vmatprep.mubr.msk.f32.mxu0 %vm18072_vm2, %v1034_v41  ;;  %v1057_v41 = vrot.slane %v12816_v29, 1 }
  0x44   : > { %v1059_v46 = vrot.slane %v12826_v37, 1 }
  0x46   : > { %10938 = vmatmul.mubr.msk.f32.gmra.mrb[22].mxu0 %vm18072_vm2, %v1036_v47  ;;  %v1058_v47 = vsel %vm18067_vm1, %v1055_v36, %v1057_v41  ;;  %v1060_v48 = vsel %vm18067_vm1, %v1057_v41, %v1059_v46  ;;  %v1723_v36 = vrot.slane %v12680_v35, 2  ;;  %v1725_v41 = vrot.slane %v12684_v38, 2 }
  0x47   : > { %10940 = vmatprep.mubr.msk.f32.mxu0 %vm18072_vm2, %v1038_v51  ;;  %v2139_v51 = vrot.slane %v12654_v20, 4  ;;  %v1727_v46 = vrot.slane %v12691_v42, 2 }
  0x4a   : > { %10941 = vmatmul.mubr.msk.f32.gmra.mrb[24].mxu0 %vm18072_vm2, %v1040_v57 }
  0x4b   : > { %10943 = vmatprep.mubr.msk.f32.mxu0 %vm18072_vm2, %v1042_v61  ;;  %v12921_v61 = vld [vmem:[%s17985_s1 + $0x8] sm:$0xff]  }
  0x4e   : > { %10944 = vmatmul.mubr.msk.f32.gmra.mrb[26].mxu0 %vm18072_vm2, %v1044_v3  ;;  %v12933_v3 = vunpack.c.l.bf16 %v12921_v61 }
  0x4f   : > { %10946 = vmatprep.mubr.msk.f32.mxu0 %vm18072_vm2, %v1046_v13  ;;  %v1715_v13 = vrot.slane %v12650_v18, 2 }
  0x52   : > { %10947 = vmatmul.mubr.msk.f32.gmra.mrb[28].mxu0 %vm18072_vm2, %v1048_v21  ;;  %v12954_v21 = vsel %vm18069_vm3, %v1713_v1, %v1715_v13 }
  0x53   : > { %10949 = vmatprep.mubr.msk.f32.mxu0 %vm18072_vm2, %v1050_v26  ;;  %v12958_v26 = vsel %vm18069_vm3, %v1715_v13, %v1717_v17  ;;  %v1739_v13 = vrot.slane %v12724_v63, 2 }
  0x56   : > { %10950 = vmatmul.mubr.msk.f32.gmra.mrb[30].mxu0 %vm18072_vm2, %v1052_v33  ;;  %v12966_v33 = vsel %vm18069_vm3, %v1717_v17, %v1719_v23 }
  0x57   : > { %10952 = vmatprep.mubr.msk.f32.mxu0 %vm18072_vm2, %v1054_v39  ;;  %v12970_v39 = vsel %vm18069_vm3, %v1719_v23, %v1721_v27  ;;  %v1741_v23 = vrot.slane %v12728_v2, 2 }
  0x5a   : > { %10953 = vmatmul.mubr.msk.f32.gmra.mrb[32].mxu0 %vm18072_vm2, %v1056_v43  ;;  %v12978_v43 = vsel %vm18069_vm3, %v1721_v27, %v1723_v36 }
  0x5b   : > { %10955 = vmatprep.mubr.msk.f32.mxu0 %vm18072_vm2, %v1058_v47  ;;  %v12982_v47 = vsel %vm18069_vm3, %v1723_v36, %v1725_v41  ;;  %v1743_v36 = vrot.slane %v12735_v10, 2 }
  0x5e   : > { %10956 = vmatmul.mubr.msk.f32.gmra.mrb[34].mxu0 %vm18072_vm2, %v1060_v48  ;;  %v1729_v48 = vrot.slane %v12695_v45, 2 }
  0x5f   : > { %10960 = vmatprep.mubr.msk.f32.mxu0 %vm18072_vm2, %v12632_v6 }
  0x62   : > { %10961 = vmatmul.mubr.msk.f32.vlgmr.msra.gmra.mrb[0].mxu0 %vm18072_vm2, %v12634_v7  ;;  %v1711_v7 = vrot.slane %v12641_v11, 2 }
  0x63   : > { %11015 = vmatpush3.msk.msra.mxu0 %vm18071_vm0, %v12654_v20  ;;  %10963 = vmatprep.mubr.msk.f32.mxu0 %vm18072_vm2, %v12636_v8  ;;  %v1704_v20 = vrot.slane %v12632_v6, 2  ;;  %v1708_v6 = vsel %vm18069_vm3, %v1705_v53, %v1707_v55  ;;  %v1733_v55 = vrot.slane %v12706_v52, 2 }
  0x64   : > { %11070 = vmatprep.subr.msk.mxu0 %vm18071_vm0, %v2139_v51  ;;  %v12940_v4 = vsel %vm18069_vm3, %v1709_v58, %v1711_v7  ;;  %v12944_v14 = vsel %vm18069_vm3, %v1711_v7, %v1713_v1  ;;  %v1735_v58 = vrot.slane %v12713_v56, 2  ;;  %v1737_v7 = vrot.slane %v12717_v59, 2 }
  0x65   : > { %v1706_v57 = vsel %vm18069_vm3, %v1704_v20, %v1705_v53  ;;  %v1731_v20 = vrot.slane %v12702_v49, 2  ;;  %v12994_v53 = vsel %vm18069_vm3, %v1727_v46, %v1729_v48 }
  0x66   : > { %10964 = vmatmul.mubr.msk.f32.gmra.mrb[2].mxu0 %vm18072_vm2, %v12638_v9  ;;  %v13014_v1 = vsel %vm18069_vm3, %v1733_v55, %v1735_v58  ;;  %v13018_v17 = vsel %vm18069_vm3, %v1735_v58, %v1737_v7  ;;  %v13026_v27 = vsel %vm18069_vm3, %v1737_v7, %v1739_v13  ;;  %v1749_v58 = vrot.slane %v12750_v25, 2 }
  0x67   : > { %10966 = vmatprep.mubr.msk.f32.mxu0 %vm18072_vm2, %v12641_v11 }
  0x6a   : > { %10967 = vmatmul.mubr.msk.f32.gmra.mrb[4].mxu0 %vm18072_vm2, %v12643_v12 }
  0x6b   : > { %10969 = vmatprep.mubr.msk.f32.mxu0 %vm18072_vm2, %v12650_v18 }
  0x6e   : > { %10970 = vmatmul.mubr.msk.f32.gmra.mrb[6].mxu0 %vm18072_vm2, %v12652_v19 }
  0x6f   : > { %10972 = vmatprep.mubr.msk.f32.mxu0 %vm18072_vm2, %v12667_v28 }
  0x72   : > { %10973 = vmatmul.mubr.msk.f32.gmra.mrb[8].mxu0 %vm18072_vm2, %v12671_v31 }
  0x73   : > { %10975 = vmatprep.mubr.msk.f32.mxu0 %vm18072_vm2, %v12680_v35 }
  0x76   : > { %10976 = vmatmul.mubr.msk.f32.gmra.mrb[10].mxu0 %vm18072_vm2, %v12684_v38 }
  0x77   : > { %10978 = vmatprep.mubr.msk.f32.mxu0 %vm18072_vm2, %v12691_v42 }
  0x7a   : > { %10979 = vmatmul.mubr.msk.f32.gmra.mrb[12].mxu0 %vm18072_vm2, %v12695_v45 }
  0x7b   : > { %10981 = vmatprep.mubr.msk.f32.mxu0 %vm18072_vm2, %v12702_v49 }
  0x7e   : > { %10982 = vmatmul.mubr.msk.f32.gmra.mrb[14].mxu0 %vm18072_vm2, %v12706_v52 }
  0x7f   : > { %10984 = vmatprep.mubr.msk.f32.mxu0 %vm18072_vm2, %v12713_v56 }
  0x82   : > { %10985 = vmatmul.mubr.msk.f32.gmra.mrb[16].mxu0 %vm18072_vm2, %v12717_v59 }
  0x83   : > { %10987 = vmatprep.mubr.msk.f32.mxu0 %vm18072_vm2, %v12724_v63 }
  0x86   : > { %10988 = vmatmul.mubr.msk.f32.gmra.mrb[18].mxu0 %vm18072_vm2, %v12728_v2 }
  0x87   : > { %10990 = vmatprep.mubr.msk.f32.mxu0 %vm18072_vm2, %v12735_v10  ;;  %v1761_v10 = vrot.slane %v12783_v54, 2 }
  0x8a   : > { %10991 = vmatmul.mubr.msk.f32.gmra.mrb[20].mxu0 %vm18072_vm2, %v12739_v15 }
  0x8b   : > { %10993 = vmatprep.mubr.msk.f32.mxu0 %vm18072_vm2, %v12746_v22 }
  0x8e   : > { %10994 = vmatmul.mubr.msk.f32.gmra.mrb[22].mxu0 %vm18072_vm2, %v12750_v25  ;;  %v1755_v25 = vrot.slane %v12768_v40, 2 }
  0x8f   : > { %10996 = vmatprep.mubr.msk.f32.mxu0 %vm18072_vm2, %v12757_v30 }
  0x92   : > { %10997 = vmatmul.mubr.msk.f32.gmra.mrb[24].mxu0 %vm18072_vm2, %v12761_v34 }
  0x93   : > { %10999 = vmatprep.mubr.msk.f32.mxu0 %vm18072_vm2, %v12768_v40  ;;  %v1765_v40 = vrot.slane %v12794_v0, 2 }
  0x96   : > { %11000 = vmatmul.mubr.msk.f32.gmra.mrb[26].mxu0 %vm18072_vm2, %v12772_v44 }
  0x97   : > { %11002 = vmatprep.mubr.msk.f32.mxu0 %vm18072_vm2, %v12779_v50 }
  0x9a   : > { %11003 = vmatmul.mubr.msk.f32.gmra.mrb[28].mxu0 %vm18072_vm2, %v12783_v54 }
  0x9b   : > { %11005 = vmatprep.mubr.msk.f32.mxu0 %vm18072_vm2, %v12790_v60 }
  0x9e   : > { %11006 = vmatmul.mubr.msk.f32.gmra.mrb[30].mxu0 %vm18072_vm2, %v12794_v0 }
  0x9f   : > { %11008 = vmatprep.mubr.msk.f32.mxu0 %vm18072_vm2, %v12801_v5 }
  0xa2   : > { %11009 = vmatmul.mubr.msk.f32.gmra.mrb[32].mxu0 %vm18072_vm2, %v12805_v16 }
  0xa3   : > { %11011 = vmatprep.mubr.msk.f32.mxu0 %vm18072_vm2, %v12812_v24 }
  0xa6   : > { %11012 = vmatmul.mubr.msk.f32.gmra.mrb[34].mxu0 %vm18072_vm2, %v12816_v29 }
  0xa7   : > { %11016 = vmatprep.mubr.msk.f32.mxu0 %vm18072_vm2, %v1706_v57  ;;  %v13002_v57 = vsel %vm18069_vm3, %v1729_v48, %v1731_v20  ;;  %v13038_v48 = vsel %vm18069_vm3, %v1741_v23, %v1743_v36 }
  0xaa   : > { %11017 = vmatmul.mubr.msk.f32.vlgmr.msra.gmra.mrb[0].mxu0 %vm18072_vm2, %v1708_v6  ;;  %v13006_v6 = vsel %vm18069_vm3, %v1731_v20, %v1733_v55  ;;  %v1747_v20 = vrot.slane %v12746_v22, 2  ;;  %v1753_v22 = vrot.slane %v12761_v34, 2  ;;  %v1759_v34 = vrot.slane %v12779_v50, 2 }
  0xab   : > { %11071 = vmatpush3.msk.msra.mxu0 %vm18071_vm0, %v2139_v51  ;;  %11019 = vmatprep.mubr.msk.f32.mxu0 %vm18072_vm2, %v12929_v62  ;;  %v12990_v51 = vsel %vm18069_vm3, %v1725_v41, %v1727_v46  ;;  %v13030_v41 = vsel %vm18069_vm3, %v1739_v13, %v1741_v23  ;;  %v1745_v46 = vrot.slane %v12739_v15, 2  ;;  %v1751_v13 = vrot.slane %v12757_v30, 2 }
  0xac   : > { %11126 = vmatprep.subr.msk.mxu0 %vm18071_vm0, %v12933_v3  ;;  %v13054_v23 = vsel %vm18069_vm3, %v1747_v20, %v1749_v58  ;;  %v1757_v15 = vrot.slane %v12772_v44, 2  ;;  %v1762_v44 = vsel %vm18069_vm3, %v1759_v34, %v1761_v10  ;;  %v1769_v50 = vrot.slane %v12805_v16, 2 }
  0xad   : > { %v13042_v55 = vsel %vm18069_vm3, %v1743_v36, %v1745_v46  ;;  %v13050_v7 = vsel %vm18069_vm3, %v1745_v46, %v1747_v20  ;;  %v1752_v36 = vsel %vm18069_vm3, %v1749_v58, %v1751_v13  ;;  %v1754_v46 = vsel %vm18069_vm3, %v1751_v13, %v1753_v22 }
  0xae   : > { %11020 = vmatmul.mubr.msk.f32.gmra.mrb[2].mxu0 %vm18072_vm2, %v12940_v4  ;;  %v1756_v20 = vsel %vm18069_vm3, %v1753_v22, %v1755_v25  ;;  %v1758_v30 = vsel %vm18069_vm3, %v1755_v25, %v1757_v15  ;;  %v1760_v58 = vsel %vm18069_vm3, %v1757_v15, %v1759_v34  ;;  %v1763_v13 = vrot.slane %v12790_v60, 2 }
  0xaf   : > { %11022 = vmatprep.mubr.msk.f32.mxu0 %vm18072_vm2, %v12944_v14  ;;  %v1767_v25 = vrot.slane %v12801_v5, 2  ;;  %v1771_v34 = vrot.slane %v12812_v24, 2  ;;  %v1773_v60 = vrot.slane %v12816_v29, 2 }
  0xb0   : > { %v1764_v22 = vsel %vm18069_vm3, %v1761_v10, %v1763_v13  ;;  %v1766_v54 = vsel %vm18069_vm3, %v1763_v13, %v1765_v40  ;;  %v1775_v13 = vrot.slane %v12826_v37, 2 }
  0xb1   : > { %v1768_v15 = vsel %vm18069_vm3, %v1765_v40, %v1767_v25  ;;  %v1770_v0 = vsel %vm18069_vm3, %v1767_v25, %v1769_v50  ;;  %v1772_v10 = vsel %vm18069_vm3, %v1769_v50, %v1771_v34  ;;  %v1774_v16 = vsel %vm18069_vm3, %v1771_v34, %v1773_v60 }
  0xb2   : > { %11023 = vmatmul.mubr.msk.f32.gmra.mrb[4].mxu0 %vm18072_vm2, %v12954_v21  ;;  %v1776_v40 = vsel %vm18069_vm3, %v1773_v60, %v1775_v13  ;;  %v2930_v25 = vrot.slane %v12933_v3, 4  ;;  %v13153_v50 = vunpack.c.h.bf16 %v12819_v32  ;;  %v13156_v60 = vld [vmem:[%s12626_s22 + $0x98] sm:$0xff]   ;;  %v2428_v32 = vrot.slane %v12636_v8, 3 }
  0xb3   : > { %11025 = vmatprep.mubr.msk.f32.mxu0 %vm18072_vm2, %v12958_v26 }
  0xb6   : > { %11026 = vmatmul.mubr.msk.f32.gmra.mrb[6].mxu0 %vm18072_vm2, %v12966_v33 }
  0xb7   : > { %11028 = vmatprep.mubr.msk.f32.mxu0 %vm18072_vm2, %v12970_v39 }
  0xba   : > { %11029 = vmatmul.mubr.msk.f32.gmra.mrb[8].mxu0 %vm18072_vm2, %v12978_v43 }
  0xbb   : > { %11031 = vmatprep.mubr.msk.f32.mxu0 %vm18072_vm2, %v12982_v47 }
  0xbe   : > { %11032 = vmatmul.mubr.msk.f32.gmra.mrb[10].mxu0 %vm18072_vm2, %v12990_v51 }
  0xbf   : > { %11034 = vmatprep.mubr.msk.f32.mxu0 %vm18072_vm2, %v12994_v53 }
  0xc2   : > { %11035 = vmatmul.mubr.msk.f32.gmra.mrb[12].mxu0 %vm18072_vm2, %v13002_v57 }
  0xc3   : > { %11037 = vmatprep.mubr.msk.f32.mxu0 %vm18072_vm2, %v13006_v6 }
  0xc6   : > { %11038 = vmatmul.mubr.msk.f32.gmra.mrb[14].mxu0 %vm18072_vm2, %v13014_v1 }
  0xc7   : > { %11040 = vmatprep.mubr.msk.f32.mxu0 %vm18072_vm2, %v13018_v17 }
  0xca   : > { %11041 = vmatmul.mubr.msk.f32.gmra.mrb[16].mxu0 %vm18072_vm2, %v13026_v27 }
  0xcb   : > { %11043 = vmatprep.mubr.msk.f32.mxu0 %vm18072_vm2, %v13030_v41 }
  0xce   : > { %11044 = vmatmul.mubr.msk.f32.gmra.mrb[18].mxu0 %vm18072_vm2, %v13038_v48 }
  0xcf   : > { %11046 = vmatprep.mubr.msk.f32.mxu0 %vm18072_vm2, %v13042_v55 }
  0xd2   : > { %11047 = vmatmul.mubr.msk.f32.gmra.mrb[20].mxu0 %vm18072_vm2, %v13050_v7 }
  0xd3   : > { %11049 = vmatprep.mubr.msk.f32.mxu0 %vm18072_vm2, %v13054_v23 }
  0xd6   : > { %11050 = vmatmul.mubr.msk.f32.gmra.mrb[22].mxu0 %vm18072_vm2, %v1752_v36 }
  0xd7   : > { %11052 = vmatprep.mubr.msk.f32.mxu0 %vm18072_vm2, %v1754_v46 }
  0xda   : > { %11053 = vmatmul.mubr.msk.f32.gmra.mrb[24].mxu0 %vm18072_vm2, %v1756_v20 }
  0xdb   : > { %11055 = vmatprep.mubr.msk.f32.mxu0 %vm18072_vm2, %v1758_v30 }
  0xde   : > { %11056 = vmatmul.mubr.msk.f32.gmra.mrb[26].mxu0 %vm18072_vm2, %v1760_v58 }
  0xdf   : > { %11058 = vmatprep.mubr.msk.f32.mxu0 %vm18072_vm2, %v1762_v44 }
  0xe2   : > { %11059 = vmatmul.mubr.msk.f32.gmra.mrb[28].mxu0 %vm18072_vm2, %v1764_v22 }
  0xe3   : > { %11061 = vmatprep.mubr.msk.f32.mxu0 %vm18072_vm2, %v1766_v54 }
  0xe6   : > { %11062 = vmatmul.mubr.msk.f32.gmra.mrb[30].mxu0 %vm18072_vm2, %v1768_v15 }
  0xe7   : > { %11064 = vmatprep.mubr.msk.f32.mxu0 %vm18072_vm2, %v1770_v0 }
  0xea   : > { %11065 = vmatmul.mubr.msk.f32.gmra.mrb[32].mxu0 %vm18072_vm2, %v1772_v10 }
  0xeb   : > { %11067 = vmatprep.mubr.msk.f32.mxu0 %vm18072_vm2, %v1774_v16 }
  0xee   : > { %11068 = vmatmul.mubr.msk.f32.gmra.mrb[34].mxu0 %vm18072_vm2, %v1776_v40 }
  0xef   : > { %11072 = vmatprep.mubr.msk.f32.mxu0 %vm18072_vm2, %v12929_v62  ;;  %v13161_v62 = vunpack.c.l.bf16 %v13156_v60 }
  0xf2   : > { %11073 = vmatmul.mubr.msk.f32.vlgmr.msra.gmra.mrb[0].mxu0 %vm18072_vm2, %v12940_v4  ;;  %v2431_v4 = vrot.slane %v12641_v11, 3 }
  0xf3   : > { %11127 = vmatpush3.msk.msra.mxu0 %vm18071_vm0, %v12933_v3  ;;  %11075 = vmatprep.mubr.msk.f32.mxu0 %vm18072_vm2, %v12944_v14  ;;  %v2429_v3 = vrot.slane %v12638_v9, 3 }
  0xf4   : > { %11182 = vmatprep.subr.msk.mxu0 %vm18071_vm0, %v2930_v25 }
  0xf5   : > { %v13175_v14 = vsel %vm18066_vm4, %v2428_v32, %v2429_v3  ;;  %v18347_v32 = vld [vmem:[#allocation3_spill] sm:$0xff] }
  0xf6   : > { %11076 = vmatmul.mubr.msk.f32.gmra.mrb[2].mxu0 %vm18072_vm2, %v12954_v21  ;;  %18329 = vst [vmem:[#allocation17_spill] sm:$0xff] %v13175_v14  ;;  %v13182_v21 = vsel %vm18066_vm4, %v2429_v3, %v2431_v4  ;;  %v2465_v3 = vrot.slane %v18347_v32, 3 }
  0xf7   : > { %11078 = vmatprep.mubr.msk.f32.mxu0 %vm18072_vm2, %v12958_v26  ;;  %18330 = vst [vmem:[#allocation18_spill] sm:$0xff] %v13182_v21  ;;  %v2435_v26 = vrot.slane %v12650_v18, 3 }
  0xfa   : > { %11079 = vmatmul.mubr.msk.f32.gmra.mrb[4].mxu0 %vm18072_vm2, %v12966_v33 }
  0xfb   : > { %11081 = vmatprep.mubr.msk.f32.mxu0 %vm18072_vm2, %v12970_v39  ;;  %v2437_v39 = vrot.slane %v12652_v19, 3 }
  0xfe   : > { %11082 = vmatmul.mubr.msk.f32.gmra.mrb[6].mxu0 %vm18072_vm2, %v12978_v43  ;;  %v13190_v43 = vunpack.c.h.bf16 %v12921_v61 }
  0xff   : > { %11084 = vmatprep.mubr.msk.f32.mxu0 %vm18072_vm2, %v12982_v47 }
 0x102   : > { %11085 = vmatmul.mubr.msk.f32.gmra.mrb[8].mxu0 %vm18072_vm2, %v12990_v51  ;;  %v2439_v51 = vrot.slane %v12667_v28, 3 }
 0x103   : > { %11087 = vmatprep.mubr.msk.f32.mxu0 %vm18072_vm2, %v12994_v53  ;;  %v13202_v53 = vsel %vm18066_vm4, %v2435_v26, %v2437_v39 }
 0x104   : > { %18333 = vst [vmem:[#allocation21_spill] sm:$0xff] %v13202_v53  ;;  %v13212_v61 = vsel %vm18066_vm4, %v2437_v39, %v2439_v51  ;;  %v18351_v39 = vld [vmem:[#allocation5_spill] sm:$0xff] }
 0x105   : > { %18334 = vst [vmem:[#allocation22_spill] sm:$0xff] %v13212_v61 }
 0x106   : > { %11088 = vmatmul.mubr.msk.f32.gmra.mrb[10].mxu0 %vm18072_vm2, %v13002_v57  ;;  %v2441_v57 = vrot.slane %v12671_v31, 3 }
 0x107   : > { %11090 = vmatprep.mubr.msk.f32.mxu0 %vm18072_vm2, %v13006_v6  ;;  %v2443_v6 = vrot.slane %v12680_v35, 3 }
 0x10a   : > { %11091 = vmatmul.mubr.msk.f32.gmra.mrb[12].mxu0 %vm18072_vm2, %v13014_v1  ;;  %v13216_v1 = vsel %vm18066_vm4, %v2439_v51, %v2441_v57  ;;  %v2469_v51 = vrot.slane %v18351_v39, 3 }
 0x10b   : > { %11093 = vmatprep.mubr.msk.f32.mxu0 %vm18072_vm2, %v13018_v17  ;;  %18335 = vst [vmem:[#allocation23_spill] sm:$0xff] %v13216_v1  ;;  %v2445_v17 = vrot.slane %v12684_v38, 3 }
 0x10e   : > { %11094 = vmatmul.mubr.msk.f32.gmra.mrb[14].mxu0 %vm18072_vm2, %v13026_v27  ;;  %v13224_v27 = vsel %vm18066_vm4, %v2441_v57, %v2443_v6 }
 0x10f   : > { %11096 = vmatprep.mubr.msk.f32.mxu0 %vm18072_vm2, %v13030_v41  ;;  %18336 = vst [vmem:[#allocation24_spill] sm:$0xff] %v13224_v27  ;;  %v2447_v41 = vrot.slane %v12691_v42, 3 }
 0x112   : > { %11097 = vmatmul.mubr.msk.f32.gmra.mrb[16].mxu0 %vm18072_vm2, %v13038_v48  ;;  %v13228_v48 = vsel %vm18066_vm4, %v2443_v6, %v2445_v17  ;;  %v18353_v6 = vld [vmem:[#allocation6_spill] sm:$0xff] }
 0x113   : > { %11099 = vmatprep.mubr.msk.f32.mxu0 %vm18072_vm2, %v13042_v55  ;;  %18337 = vst [vmem:[#allocation25_spill] sm:$0xff] %v13228_v48  ;;  %v2449_v55 = vrot.slane %v12695_v45, 3 }
 0x116   : > { %11100 = vmatmul.mubr.msk.f32.gmra.mrb[18].mxu0 %vm18072_vm2, %v13050_v7  ;;  %v13236_v7 = vsel %vm18066_vm4, %v2445_v17, %v2447_v41  ;;  %v2471_v17 = vrot.slane %v18353_v6, 3 }
 0x117   : > { %11102 = vmatprep.mubr.msk.f32.mxu0 %vm18072_vm2, %v13054_v23  ;;  %18338 = vst [vmem:[#allocation26_spill] sm:$0xff] %v13236_v7  ;;  %v2451_v23 = vrot.slane %v12702_v49, 3 }
 0x11a   : > { %11103 = vmatmul.mubr.msk.f32.gmra.mrb[20].mxu0 %vm18072_vm2, %v1752_v36  ;;  %v13240_v36 = vsel %vm18066_vm4, %v2447_v41, %v2449_v55 }
 0x11b   : > { %11105 = vmatprep.mubr.msk.f32.mxu0 %vm18072_vm2, %v1754_v46  ;;  %18339 = vst [vmem:[#allocation27_spill] sm:$0xff] %v13240_v36  ;;  %v2453_v46 = vrot.slane %v12706_v52, 3 }
 0x11e   : > { %11106 = vmatmul.mubr.msk.f32.gmra.mrb[22].mxu0 %vm18072_vm2, %v1756_v20  ;;  %v13248_v20 = vsel %vm18066_vm4, %v2449_v55, %v2451_v23  ;;  %v18355_v55 = vld [vmem:[#allocation7_spill] sm:$0xff] }
 0x11f   : > { %11108 = vmatprep.mubr.msk.f32.mxu0 %vm18072_vm2, %v1758_v30  ;;  %v2135_v30 = vrot.slane %v13153_v50, 2  ;;  %18340 = vst [vmem:[#allocation28_spill] sm:$0xff] %v13248_v20 }
 0x122   : > { %11109 = vmatmul.mubr.msk.f32.gmra.mrb[24].mxu0 %vm18072_vm2, %v1760_v58  ;;  %v2455_v58 = vrot.slane %v12713_v56, 3 }
 0x123   : > { %11111 = vmatprep.mubr.msk.f32.mxu0 %vm18072_vm2, %v1762_v44  ;;  %v2137_v44 = vrot.slane %v13161_v62, 2 }
 0x124   : > { %v13260_v34 = vsel %vm18066_vm4, %v2453_v46, %v2455_v58 }
 0x125   : > { %18342 = vst [vmem:[#allocation30_spill] sm:$0xff] %v13260_v34 }
 0x126   : > { %11112 = vmatmul.mubr.msk.f32.gmra.mrb[26].mxu0 %vm18072_vm2, %v1764_v22  ;;  %v13252_v22 = vsel %vm18066_vm4, %v2451_v23, %v2453_v46  ;;  %v2473_v23 = vrot.slane %v18355_v55, 3  ;;  %v13308_v46 = vsel %vm18066_vm4, %v2469_v51, %v2471_v17 }
 0x127   : > { %11114 = vmatprep.mubr.msk.f32.mxu0 %vm18072_vm2, %v1766_v54  ;;  %v2136_v54 = vsel %vm18069_vm3, %v1775_v13, %v2135_v30  ;;  %18341 = vst [vmem:[#allocation29_spill] sm:$0xff] %v13252_v22  ;;  %18356 = vst [vmem:[#allocation35_spill] sm:$0xff] %v13308_v46 }
 0x12a   : > { %11115 = vmatmul.mubr.msk.f32.gmra.mrb[28].mxu0 %vm18072_vm2, %v1768_v15  ;;  %v2457_v15 = vrot.slane %v12717_v59, 3 }
 0x12b   : > { %11117 = vmatprep.mubr.msk.f32.mxu0 %vm18072_vm2, %v1770_v0  ;;  %v2138_v0 = vsel %vm18069_vm3, %v2135_v30, %v2137_v44  ;;  %v18345_v30 = vld [vmem:[#allocation2_spill] sm:$0xff] }
 0x12c   : > { %v13264_v13 = vsel %vm18066_vm4, %v2455_v58, %v2457_v15  ;;  %v2463_v44 = vrot.slane %v18345_v30, 3  ;;  %v18357_v58 = vld [vmem:[#allocation8_spill] sm:$0xff] }
 0x12d   : > { %18343 = vst [vmem:[#allocation31_spill] sm:$0xff] %v13264_v13 }
 0x12e   : > { %11118 = vmatmul.mubr.msk.f32.gmra.mrb[30].mxu0 %vm18072_vm2, %v1772_v10  ;;  %v2459_v10 = vrot.slane %v12724_v63, 3 }
 0x12f   : > { %11120 = vmatprep.mubr.msk.f32.mxu0 %vm18072_vm2, %v1774_v16  ;;  %v2433_v16 = vrot.slane %v12643_v12, 3 }
 0x131   : > { %v13186_v33 = vsel %vm18066_vm4, %v2431_v4, %v2433_v16  ;;  %v13198_v47 = vsel %vm18066_vm4, %v2433_v16, %v2435_v26  ;;  %v18349_v4 = vld [vmem:[#allocation4_spill] sm:$0xff]  ;;  %v13288_v26 = vsel %vm18066_vm4, %v2463_v44, %v2465_v3 }
 0x132   : > { %11121 = vmatmul.mubr.msk.f32.gmra.mrb[32].mxu0 %vm18072_vm2, %v1776_v40  ;;  %18331 = vst [vmem:[#allocation19_spill] sm:$0xff] %v13186_v33  ;;  %18332 = vst [vmem:[#allocation20_spill] sm:$0xff] %v13198_v47  ;;  %v2461_v40 = vrot.slane %v12728_v2, 3  ;;  %v2467_v16 = vrot.slane %v18349_v4, 3 }
 0x133   : > { %11123 = vmatprep.mubr.msk.f32.mxu0 %vm18072_vm2, %v2136_v54  ;;  %18350 = vst [vmem:[#allocation4_spill] sm:$0xff] %v13288_v26 }
 0x134   : > { %v13276_v54 = vsel %vm18066_vm4, %v2459_v10, %v2461_v40  ;;  %v13296_v57 = vsel %vm18066_vm4, %v2465_v3, %v2467_v16  ;;  %v13300_v41 = vsel %vm18066_vm4, %v2467_v16, %v2469_v51  ;;  %v18361_v16 = vld [vmem:[#allocation10_spill] sm:$0xff] }
 0x135   : > { %18346 = vst [vmem:[#allocation2_spill] sm:$0xff] %v13276_v54  ;;  %18352 = vst [vmem:[#allocation33_spill] sm:$0xff] %v13296_v57 }
 0x136   : > { %11124 = vmatmul.mubr.msk.f32.gmra.mrb[34].mxu0 %vm18072_vm2, %v2138_v0  ;;  %v13284_v0 = vsel %vm18066_vm4, %v2461_v40, %v2463_v44  ;;  %18354 = vst [vmem:[#allocation34_spill] sm:$0xff] %v13300_v41  ;;  %v18359_v40 = vld [vmem:[#allocation9_spill] sm:$0xff] }
 0x137   : > { %11128 = vmatprep.mubr.msk.f32.mxu0 %vm18072_vm2, %v13175_v14  ;;  %18348 = vst [vmem:[#allocation3_spill] sm:$0xff] %v13284_v0  ;;  %v2477_v44 = vrot.slane %v18359_v40, 3  ;;  %v2906_v14 = vrot.slane %v18359_v40, 4 }
 0x13a   : > { %11129 = vmatmul.mubr.msk.f32.vlgmr.msra.gmra.mrb[0].mxu0 %vm18072_vm2, %v13182_v21  ;;  %v2904_v21 = vrot.slane %v18357_v58, 4 }
 0x13b   : > { %11183 = vmatpush3.msk.msra.mxu0 %vm18071_vm0, %v2930_v25  ;;  %11131 = vmatprep.mubr.msk.f32.mxu0 %vm18072_vm2, %v13186_v33  ;;  %v13272_v25 = vsel %vm18066_vm4, %v2457_v15, %v2459_v10  ;;  %v2475_v15 = vrot.slane %v18357_v58, 3  ;;  %v13312_v10 = vsel %vm18066_vm4, %v2471_v17, %v2473_v23  ;;  %v2902_v33 = vrot.slane %v18355_v55, 4 }
 0x13c   : > { %11238 = vmatprep.subr.msk.mxu0 %vm18071_vm0, %v13190_v43  ;;  %18344 = vst [vmem:[#allocation32_spill] sm:$0xff] %v13272_v25  ;;  %18358 = vst [vmem:[#allocation36_spill] sm:$0xff] %v13312_v10  ;;  %v2908_v55 = vrot.slane %v18361_v16, 4 }
 0x13d   : > { %v13320_v3 = vsel %vm18066_vm4, %v2473_v23, %v2475_v15  ;;  %v13324_v51 = vsel %vm18066_vm4, %v2475_v15, %v2477_v44 }
 0x13e   : > { %11132 = vmatmul.mubr.msk.f32.gmra.mrb[2].mxu0 %vm18072_vm2, %v13198_v47  ;;  %18360 = vst [vmem:[#allocation37_spill] sm:$0xff] %v13320_v3  ;;  %18362 = vst [vmem:[#allocation38_spill] sm:$0xff] %v13324_v51  ;;  %v2900_v47 = vrot.slane %v18353_v6, 4 }
 0x13f   : > { %11134 = vmatprep.mubr.msk.f32.mxu0 %vm18072_vm2, %v13202_v53  ;;  %v2898_v53 = vrot.slane %v18351_v39, 4 }
 0x142   : > { %11135 = vmatmul.mubr.msk.f32.gmra.mrb[4].mxu0 %vm18072_vm2, %v13212_v61  ;;  %v2896_v61 = vrot.slane %v18349_v4, 4 }
 0x143   : > { %11137 = vmatprep.mubr.msk.f32.mxu0 %vm18072_vm2, %v13216_v1  ;;  %v2894_v1 = vrot.slane %v18347_v32, 4 }
 0x146   : > { %11138 = vmatmul.mubr.msk.f32.gmra.mrb[6].mxu0 %vm18072_vm2, %v13224_v27  ;;  %v2892_v27 = vrot.slane %v18345_v30, 4 }
 0x147   : > { %11140 = vmatprep.mubr.msk.f32.mxu0 %vm18072_vm2, %v13228_v48  ;;  %v2890_v48 = vrot.slane %v12728_v2, 4 }
 0x14a   : > { %11141 = vmatmul.mubr.msk.f32.gmra.mrb[8].mxu0 %vm18072_vm2, %v13236_v7  ;;  %v2888_v7 = vrot.slane %v12724_v63, 4 }
 0x14b   : > { %11143 = vmatprep.mubr.msk.f32.mxu0 %vm18072_vm2, %v13240_v36  ;;  %v2886_v36 = vrot.slane %v12717_v59, 4 }
 0x14e   : > { %11144 = vmatmul.mubr.msk.f32.gmra.mrb[10].mxu0 %vm18072_vm2, %v13248_v20  ;;  %v2884_v20 = vrot.slane %v12713_v56, 4 }
 0x14f   : > { %11146 = vmatprep.mubr.msk.f32.mxu0 %vm18072_vm2, %v13252_v22  ;;  %v2882_v22 = vrot.slane %v12706_v52, 4 }
 0x152   : > { %11147 = vmatmul.mubr.msk.f32.gmra.mrb[12].mxu0 %vm18072_vm2, %v13260_v34  ;;  %v2880_v34 = vrot.slane %v12702_v49, 4 }
 0x153   : > { %11149 = vmatprep.mubr.msk.f32.mxu0 %vm18072_vm2, %v13264_v13  ;;  %v2878_v13 = vrot.slane %v12695_v45, 4 }
 0x156   : > { %11150 = vmatmul.mubr.msk.f32.gmra.mrb[14].mxu0 %vm18072_vm2, %v13272_v25 }
 0x157   : > { %11152 = vmatprep.mubr.msk.f32.mxu0 %vm18072_vm2, %v13276_v54 }
 0x15a   : > { %11153 = vmatmul.mubr.msk.f32.gmra.mrb[16].mxu0 %vm18072_vm2, %v13284_v0  ;;  %v18367_v0 = vld [vmem:[#allocation13_spill] sm:$0xff] }
 0x15b   : > { %11155 = vmatprep.mubr.msk.f32.mxu0 %vm18072_vm2, %v13288_v26  ;;  %v2485_v54 = vrot.slane %v18367_v0, 3  ;;  %v2914_v39 = vrot.slane %v18367_v0, 4 }
 0x15e   : > { %11156 = vmatmul.mubr.msk.f32.gmra.mrb[18].mxu0 %vm18072_vm2, %v13296_v57  ;;  %v18363_v57 = vld [vmem:[#allocation11_spill] sm:$0xff] }
 0x15f   : > { %11158 = vmatprep.mubr.msk.f32.mxu0 %vm18072_vm2, %v13300_v41  ;;  %v2479_v41 = vrot.slane %v18361_v16, 3  ;;  %v2481_v26 = vrot.slane %v18363_v57, 3  ;;  %v2910_v6 = vrot.slane %v18363_v57, 4 }
 0x161   : > { %v13332_v17 = vsel %vm18066_vm4, %v2477_v44, %v2479_v41  ;;  %v13336_v23 = vsel %vm18066_vm4, %v2479_v41, %v2481_v26  ;;  %v2911_v58 = vsel %vm18071_vm0, %v2908_v55, %v2910_v6 }
 0x162   : > { %11159 = vmatmul.mubr.msk.f32.gmra.mrb[20].mxu0 %vm18072_vm2, %v13308_v46  ;;  %18364 = vst [vmem:[#allocation39_spill] sm:$0xff] %v13332_v17  ;;  %18366 = vst [vmem:[#allocation40_spill] sm:$0xff] %v13336_v23 }
 0x163   : > { %11161 = vmatprep.mubr.msk.f32.mxu0 %vm18072_vm2, %v13312_v10  ;;  %v18365_v10 = vld [vmem:[#allocation12_spill] sm:$0xff] }
 0x164   : > { %v2483_v46 = vrot.slane %v18365_v10, 3  ;;  %v2912_v40 = vrot.slane %v18365_v10, 4  ;;  %v2922_v10 = vrot.slane %v12816_v29, 4 }
 0x166   : > { %11162 = vmatmul.mubr.msk.f32.gmra.mrb[22].mxu0 %vm18072_vm2, %v13320_v3  ;;  %v13344_v15 = vsel %vm18066_vm4, %v2481_v26, %v2483_v46  ;;  %v13348_v44 = vsel %vm18066_vm4, %v2483_v46, %v2485_v54  ;;  %v18370_v3 = vld [vmem:[#allocation15_spill] sm:$0xff]  ;;  %v2915_v57 = vsel %vm18071_vm0, %v2912_v40, %v2914_v39 }
 0x167   : > { %11164 = vmatprep.mubr.msk.f32.mxu0 %vm18072_vm2, %v13324_v51  ;;  %18368 = vst [vmem:[#allocation41_spill] sm:$0xff] %v13344_v15  ;;  %v2487_v51 = vrot.slane %v12801_v5, 3  ;;  %18369 = vst [vmem:[#allocation42_spill] sm:$0xff] %v13348_v44  ;;  %v2489_v25 = vrot.slane %v18370_v3, 3  ;;  %v2918_v16 = vrot.slane %v18370_v3, 4 }
 0x169   : > { %v13356_v41 = vsel %vm18066_vm4, %v2485_v54, %v2487_v51  ;;  %v13360_v26 = vsel %vm18066_vm4, %v2487_v51, %v2489_v25 }
 0x16a   : > { %11165 = vmatmul.mubr.msk.f32.gmra.mrb[24].mxu0 %vm18072_vm2, %v13332_v17  ;;  %18371 = vst [vmem:[#allocation43_spill] sm:$0xff] %v13356_v41  ;;  %18372 = vst [vmem:[#allocation44_spill] sm:$0xff] %v13360_v26  ;;  %v2493_v17 = vrot.slane %v12816_v29, 3 }
 0x16b   : > { %11167 = vmatprep.mubr.msk.f32.mxu0 %vm18072_vm2, %v13336_v23  ;;  %v2491_v23 = vrot.slane %v12812_v24, 3 }
 0x16d   : > { %v13368_v46 = vsel %vm18066_vm4, %v2489_v25, %v2491_v23  ;;  %v13372_v54 = vsel %vm18066_vm4, %v2491_v23, %v2493_v17  ;;  %v2858_v23 = vrot.slane %v12638_v9, 4  ;;  %v2864_v9 = vrot.slane %v12650_v18, 4 }
 0x16e   : > { %11168 = vmatmul.mubr.msk.f32.gmra.mrb[26].mxu0 %vm18072_vm2, %v13344_v15  ;;  %18373 = vst [vmem:[#allocation45_spill] sm:$0xff] %v13368_v46  ;;  %18374 = vst [vmem:[#allocation46_spill] sm:$0xff] %v13372_v54  ;;  %v2497_v15 = vrot.slane %v13153_v50, 3 }
 0x16f   : > { %11170 = vmatprep.mubr.msk.f32.mxu0 %vm18072_vm2, %v13348_v44  ;;  %v2495_v44 = vrot.slane %v12826_v37, 3 }
 0x171   : > { %v13380_v51 = vsel %vm18066_vm4, %v2493_v17, %v2495_v44  ;;  %v13384_v25 = vsel %vm18066_vm4, %v2495_v44, %v2497_v15  ;;  %v2860_v17 = vrot.slane %v12641_v11, 4  ;;  %v2862_v44 = vrot.slane %v12643_v12, 4 }
 0x172   : > { %11171 = vmatmul.mubr.msk.f32.gmra.mrb[28].mxu0 %vm18072_vm2, %v13356_v41  ;;  %18375 = vst [vmem:[#allocation47_spill] sm:$0xff] %v13380_v51  ;;  %18376 = vst [vmem:[#allocation48_spill] sm:$0xff] %v13384_v25  ;;  %v2857_v41 = vrot.slane %v12636_v8, 4 }
 0x173   : > { %11173 = vmatprep.mubr.msk.f32.mxu0 %vm18072_vm2, %v13360_v26  ;;  %v2499_v26 = vrot.slane %v13161_v62, 3  ;;  %v2861_v8 = vsel %vm18071_vm0, %v2858_v23, %v2860_v17 }
 0x176   : > { %11174 = vmatmul.mubr.msk.f32.gmra.mrb[30].mxu0 %vm18072_vm2, %v13368_v46  ;;  %v2859_v46 = vsel %vm18071_vm0, %v2857_v41, %v2858_v23  ;;  %v13414_v41 = vsel %vm18071_vm0, %v2862_v44, %v2864_v9 }
 0x177   : > { %11176 = vmatprep.mubr.msk.f32.mxu0 %vm18072_vm2, %v13372_v54  ;;  %v13393_v54 = vsel %vm18066_vm4, %v2497_v15, %v2499_v26  ;;  %v2866_v15 = vrot.slane %v12652_v19, 4  ;;  %v18035_v26 = vrot.slane %v13190_v43, 4 }
 0x178   : > { %18377 = vst [vmem:[#allocation49_spill] sm:$0xff] %v13393_v54 }
 0x179   : > { %v13418_v23 = vsel %vm18071_vm0, %v2864_v9, %v2866_v15 }
 0x17a   : > { %11177 = vmatmul.mubr.msk.f32.gmra.mrb[32].mxu0 %vm18072_vm2, %v13380_v51  ;;  %v2876_v51 = vrot.slane %v12691_v42, 4 }
 0x17b   : > { %11179 = vmatprep.mubr.msk.f32.mxu0 %vm18072_vm2, %v13384_v25  ;;  %v13404_v25 = vsel %vm18071_vm0, %v2860_v17, %v2862_v44  ;;  %v2870_v17 = vrot.slane %v12671_v31, 4 }
 0x17e   : > { %11180 = vmatmul.mubr.msk.f32.gmra.mrb[34].mxu0 %vm18072_vm2, %v13393_v54  ;;  %v2874_v54 = vrot.slane %v12684_v38, 4 }
 0x17f   : > { %11184 = vmatprep.mubr.msk.f32.mxu0 %vm18072_vm2, %v2859_v46  ;;  %v2868_v46 = vrot.slane %v12667_v28, 4 }
 0x181   : > { %v13429_v44 = vsel %vm18071_vm0, %v2866_v15, %v2868_v46  ;;  %v13433_v9 = vsel %vm18071_vm0, %v2868_v46, %v2870_v17  ;;  %v13453_v46 = vsel %vm18071_vm0, %v2874_v54, %v2876_v51 }
 0x182   : > { %11185 = vmatmul.mubr.msk.f32.vlgmr.msra.gmra.mrb[0].mxu0 %vm18072_vm2, %v2861_v8  ;;  %v2872_v8 = vrot.slane %v12680_v35, 4 }
 0x183   : > { %11239 = vmatpush3.msk.msra.mxu0 %vm18071_vm0, %v13190_v43  ;;  %11187 = vmatprep.mubr.msk.f32.mxu0 %vm18072_vm2, %v13404_v25 }
 0x184   : > { %11294 = vmatprep.subr.msk.mxu0 %vm18071_vm0, %v18035_v26  ;;  %v13441_v26 = vsel %vm18071_vm0, %v2870_v17, %v2872_v8  ;;  %v13445_v15 = vsel %vm18071_vm0, %v2872_v8, %v2874_v54  ;;  %v13457_v17 = vsel %vm18071_vm0, %v2876_v51, %v2878_v13  ;;  %v13465_v8 = vsel %vm18071_vm0, %v2878_v13, %v2880_v34 }
 0x185   : > { %v13469_v54 = vsel %vm18071_vm0, %v2880_v34, %v2882_v22  ;;  %v13477_v51 = vsel %vm18071_vm0, %v2882_v22, %v2884_v20  ;;  %v13481_v13 = vsel %vm18071_vm0, %v2884_v20, %v2886_v36  ;;  %v13489_v34 = vsel %vm18071_vm0, %v2886_v36, %v2888_v7 }
 0x186   : > { %11188 = vmatmul.mubr.msk.f32.gmra.mrb[2].mxu0 %vm18072_vm2, %v13414_v41  ;;  %v13493_v22 = vsel %vm18071_vm0, %v2888_v7, %v2890_v48  ;;  %v13501_v20 = vsel %vm18071_vm0, %v2890_v48, %v2892_v27  ;;  %v13505_v36 = vsel %vm18071_vm0, %v2892_v27, %v2894_v1  ;;  %v13513_v7 = vsel %vm18071_vm0, %v2894_v1, %v2896_v61 }
 0x187   : > { %11190 = vmatprep.mubr.msk.f32.mxu0 %vm18072_vm2, %v13418_v23  ;;  %v13517_v48 = vsel %vm18071_vm0, %v2896_v61, %v2898_v53  ;;  %v13525_v27 = vsel %vm18071_vm0, %v2898_v53, %v2900_v47  ;;  %v13529_v1 = vsel %vm18071_vm0, %v2900_v47, %v2902_v33  ;;  %v2905_v61 = vsel %vm18071_vm0, %v2902_v33, %v2904_v21 }
 0x188   : > { %v2907_v53 = vsel %vm18071_vm0, %v2904_v21, %v2906_v14  ;;  %v2909_v47 = vsel %vm18071_vm0, %v2906_v14, %v2908_v55  ;;  %v2913_v21 = vsel %vm18071_vm0, %v2910_v6, %v2912_v40  ;;  %v2916_v33 = vrot.slane %v12801_v5, 4 }
 0x189   : > { %v2920_v55 = vrot.slane %v12812_v24, 4  ;;  %v2924_v40 = vrot.slane %v12826_v37, 4  ;;  %v2926_v5 = vrot.slane %v13153_v50, 4 }
 0x18a   : > { %11191 = vmatmul.mubr.msk.f32.gmra.mrb[4].mxu0 %vm18072_vm2, %v13429_v44  ;;  %v2917_v14 = vsel %vm18071_vm0, %v2914_v39, %v2916_v33  ;;  %v2919_v0 = vsel %vm18071_vm0, %v2916_v33, %v2918_v16  ;;  %v2928_v33 = vrot.slane %v13161_v62, 4 }
 0x18b   : > { %11193 = vmatprep.mubr.msk.f32.mxu0 %vm18072_vm2, %v13433_v9  ;;  %v2921_v6 = vsel %vm18071_vm0, %v2918_v16, %v2920_v55  ;;  %v2923_v3 = vsel %vm18071_vm0, %v2920_v55, %v2922_v10  ;;  %v2925_v39 = vsel %vm18071_vm0, %v2922_v10, %v2924_v40  ;;  %v2927_v29 = vsel %vm18071_vm0, %v2924_v40, %v2926_v5  ;;  %v284_v55 = vld [vmem:[%s17985_s1 + $0x10] sm:$0x3] }
 0x18c   : > { %v2929_v16 = vsel %vm18071_vm0, %v2926_v5, %v2928_v33  ;;  %v289_v10 = vunpack.c.l.bf16 %v284_v55  ;;  %v18378_v40 = vrot.slane %v13190_v43, 4  ;;  %v13631_v5 = vunpack.c.h.bf16 %v13156_v60  ;;  %v238_v43 = vld [vmem:[%s12626_s22 + $0xa0] sm:$0x7] }
 0x18d   : > { %v3581_v60 = vrot.slane %v12641_v11, 5 }
 0x18e   : > { %11194 = vmatmul.mubr.msk.f32.gmra.mrb[6].mxu0 %vm18072_vm2, %v13441_v26 }
 0x18f   : > { %11196 = vmatprep.mubr.msk.f32.mxu0 %vm18072_vm2, %v13445_v15 }
 0x192   : > { %11197 = vmatmul.mubr.msk.f32.gmra.mrb[8].mxu0 %vm18072_vm2, %v13453_v46 }
 0x193   : > { %11199 = vmatprep.mubr.msk.f32.mxu0 %vm18072_vm2, %v13457_v17 }
 0x196   : > { %11200 = vmatmul.mubr.msk.f32.gmra.mrb[10].mxu0 %vm18072_vm2, %v13465_v8 }
 0x197   : > { %11202 = vmatprep.mubr.msk.f32.mxu0 %vm18072_vm2, %v13469_v54 }
 0x19a   : > { %11203 = vmatmul.mubr.msk.f32.gmra.mrb[12].mxu0 %vm18072_vm2, %v13477_v51 }
 0x19b   : > { %11205 = vmatprep.mubr.msk.f32.mxu0 %vm18072_vm2, %v13481_v13 }
 0x19e   : > { %11206 = vmatmul.mubr.msk.f32.gmra.mrb[14].mxu0 %vm18072_vm2, %v13489_v34 }
 0x19f   : > { %11208 = vmatprep.mubr.msk.f32.mxu0 %vm18072_vm2, %v13493_v22 }
 0x1a2   : > { %11209 = vmatmul.mubr.msk.f32.gmra.mrb[16].mxu0 %vm18072_vm2, %v13501_v20 }
 0x1a3   : > { %11211 = vmatprep.mubr.msk.f32.mxu0 %vm18072_vm2, %v13505_v36 }
 0x1a6   : > { %11212 = vmatmul.mubr.msk.f32.gmra.mrb[18].mxu0 %vm18072_vm2, %v13513_v7 }
 0x1a7   : > { %11214 = vmatprep.mubr.msk.f32.mxu0 %vm18072_vm2, %v13517_v48 }
 0x1aa   : > { %11215 = vmatmul.mubr.msk.f32.gmra.mrb[20].mxu0 %vm18072_vm2, %v13525_v27 }
 0x1ab   : > { %11217 = vmatprep.mubr.msk.f32.mxu0 %vm18072_vm2, %v13529_v1 }
 0x1ae   : > { %11218 = vmatmul.mubr.msk.f32.gmra.mrb[22].mxu0 %vm18072_vm2, %v2905_v61 }
 0x1af   : > { %11220 = vmatprep.mubr.msk.f32.mxu0 %vm18072_vm2, %v2907_v53 }
 0x1b2   : > { %11221 = vmatmul.mubr.msk.f32.gmra.mrb[24].mxu0 %vm18072_vm2, %v2909_v47 }
 0x1b3   : > { %11223 = vmatprep.mubr.msk.f32.mxu0 %vm18072_vm2, %v2911_v58 }
 0x1b6   : > { %11224 = vmatmul.mubr.msk.f32.gmra.mrb[26].mxu0 %vm18072_vm2, %v2913_v21 }
 0x1b7   : > { %11226 = vmatprep.mubr.msk.f32.mxu0 %vm18072_vm2, %v2915_v57 }
 0x1ba   : > { %11227 = vmatmul.mubr.msk.f32.gmra.mrb[28].mxu0 %vm18072_vm2, %v2917_v14 }
 0x1bb   : > { %11229 = vmatprep.mubr.msk.f32.mxu0 %vm18072_vm2, %v2919_v0 }
 0x1be   : > { %11230 = vmatmul.mubr.msk.f32.gmra.mrb[30].mxu0 %vm18072_vm2, %v2921_v6 }
 0x1bf   : > { %11232 = vmatprep.mubr.msk.f32.mxu0 %vm18072_vm2, %v2923_v3 }
 0x1c2   : > { %11233 = vmatmul.mubr.msk.f32.gmra.mrb[32].mxu0 %vm18072_vm2, %v2925_v39 }
 0x1c3   : > { %11235 = vmatprep.mubr.msk.f32.mxu0 %vm18072_vm2, %v2927_v29 }
 0x1c6   : > { %11236 = vmatmul.mubr.msk.f32.gmra.mrb[34].mxu0 %vm18072_vm2, %v2929_v16 }
 0x1c7   : > { %11240 = vmatprep.mubr.msk.f32.mxu0 %vm18072_vm2, %v13404_v25  ;;  %v13636_v25 = vunpack.c.l.bf16 %v238_v43  ;;  %v3616_v43 = vrot.slane %v18349_v4, 5 }
 0x1ca   : > { %11241 = vmatmul.mubr.msk.f32.vlgmr.msra.gmra.mrb[0].mxu0 %vm18072_vm2, %v13414_v41  ;;  %v3584_v41 = vrot.slane %v12650_v18, 5 }
 0x1cb   : > { %11295 = vmatpush3.msk.msra.mxu0 %vm18071_vm0, %v18378_v40  ;;  %11243 = vmatprep.mubr.msk.f32.mxu0 %vm18072_vm2, %v13418_v23 }
 0x1cc   : > { %11350 = vmatprep.subr.msk.mxu0 %vm18071_vm0, %v289_v10 }
 0x1ce   : > { %11244 = vmatmul.mubr.msk.f32.gmra.mrb[2].mxu0 %vm18072_vm2, %v13429_v44 }
 0x1cf   : > { %11246 = vmatprep.mubr.msk.f32.mxu0 %vm18072_vm2, %v13433_v9  ;;  %v3588_v9 = vrot.slane %v12667_v28, 5 }
 0x1d2   : > { %11247 = vmatmul.mubr.msk.f32.gmra.mrb[4].mxu0 %vm18072_vm2, %v13441_v26  ;;  %v3582_v26 = vrot.slane %v12643_v12, 5 }
 0x1d3   : > { %11249 = vmatprep.mubr.msk.f32.mxu0 %vm18072_vm2, %v13445_v15 }
 0x1d4   : > { %v3583_v23 = vsel %vm18068_vm5, %v3581_v60, %v3582_v26  ;;  %v3585_v44 = vsel %vm18068_vm5, %v3582_v26, %v3584_v41  ;;  %v18380_v26 = vld [vmem:[#allocation6_spill] sm:$0xff] }
 0x1d6   : > { %11250 = vmatmul.mubr.msk.f32.gmra.mrb[6].mxu0 %vm18072_vm2, %v13453_v46  ;;  %v3590_v46 = vrot.slane %v12671_v31, 5 }
 0x1d7   : > { %11252 = vmatprep.mubr.msk.f32.mxu0 %vm18072_vm2, %v13457_v17 }
 0x1da   : > { %11253 = vmatmul.mubr.msk.f32.gmra.mrb[8].mxu0 %vm18072_vm2, %v13465_v8  ;;  %v3592_v8 = vrot.slane %v12680_v35, 5 }
 0x1db   : > { %11255 = vmatprep.mubr.msk.f32.mxu0 %vm18072_vm2, %v13469_v54  ;;  %v3591_v54 = vsel %vm18068_vm5, %v3588_v9, %v3590_v46 }
 0x1de   : > { %11256 = vmatmul.mubr.msk.f32.gmra.mrb[10].mxu0 %vm18072_vm2, %v13477_v51  ;;  %v3594_v51 = vrot.slane %v12684_v38, 5 }
 0x1df   : > { %11258 = vmatprep.mubr.msk.f32.mxu0 %vm18072_vm2, %v13481_v13  ;;  %v3593_v13 = vsel %vm18068_vm5, %v3590_v46, %v3592_v8 }
 0x1e2   : > { %11259 = vmatmul.mubr.msk.f32.gmra.mrb[12].mxu0 %vm18072_vm2, %v13489_v34  ;;  %v3596_v34 = vrot.slane %v12691_v42, 5 }
 0x1e3   : > { %11261 = vmatprep.mubr.msk.f32.mxu0 %vm18072_vm2, %v13493_v22  ;;  %v3595_v22 = vsel %vm18068_vm5, %v3592_v8, %v3594_v51 }
 0x1e6   : > { %11262 = vmatmul.mubr.msk.f32.gmra.mrb[14].mxu0 %vm18072_vm2, %v13501_v20  ;;  %v3598_v20 = vrot.slane %v12695_v45, 5 }
 0x1e7   : > { %11264 = vmatprep.mubr.msk.f32.mxu0 %vm18072_vm2, %v13505_v36  ;;  %v3597_v36 = vsel %vm18068_vm5, %v3594_v51, %v3596_v34  ;;  %v18384_v51 = vld [vmem:[#allocation10_spill] sm:$0xff] }
 0x1ea   : > { %11265 = vmatmul.mubr.msk.f32.gmra.mrb[16].mxu0 %vm18072_vm2, %v13513_v7  ;;  %v3600_v7 = vrot.slane %v12702_v49, 5 }
 0x1eb   : > { %11267 = vmatprep.mubr.msk.f32.mxu0 %vm18072_vm2, %v13517_v48  ;;  %v3599_v48 = vsel %vm18068_vm5, %v3596_v34, %v3598_v20 }
 0x1ee   : > { %11268 = vmatmul.mubr.msk.f32.gmra.mrb[18].mxu0 %vm18072_vm2, %v13525_v27  ;;  %v3602_v27 = vrot.slane %v12706_v52, 5 }
 0x1ef   : > { %11270 = vmatprep.mubr.msk.f32.mxu0 %vm18072_vm2, %v13529_v1  ;;  %v3601_v1 = vsel %vm18068_vm5, %v3598_v20, %v3600_v7 }
 0x1f2   : > { %11271 = vmatmul.mubr.msk.f32.gmra.mrb[20].mxu0 %vm18072_vm2, %v2905_v61  ;;  %v3604_v61 = vrot.slane %v12713_v56, 5 }
 0x1f3   : > { %11273 = vmatprep.mubr.msk.f32.mxu0 %vm18072_vm2, %v2907_v53  ;;  %v3603_v53 = vsel %vm18068_vm5, %v3600_v7, %v3602_v27  ;;  %v18386_v7 = vld [vmem:[#allocation12_spill] sm:$0xff] }
 0x1f6   : > { %11274 = vmatmul.mubr.msk.f32.gmra.mrb[22].mxu0 %vm18072_vm2, %v2909_v47  ;;  %v3606_v47 = vrot.slane %v12717_v59, 5 }
 0x1f7   : > { %11276 = vmatprep.mubr.msk.f32.mxu0 %vm18072_vm2, %v2911_v58  ;;  %v3288_v58 = vrot.slane %v13631_v5, 4 }
 0x1fa   : > { %11277 = vmatmul.mubr.msk.f32.gmra.mrb[24].mxu0 %vm18072_vm2, %v2913_v21  ;;  %v3605_v21 = vsel %vm18068_vm5, %v3602_v27, %v3604_v61 }
 0x1fb   : > { %11279 = vmatprep.mubr.msk.f32.mxu0 %vm18072_vm2, %v2915_v57  ;;  %v3290_v57 = vrot.slane %v13636_v25, 4 }
 0x1fe   : > { %11280 = vmatmul.mubr.msk.f32.gmra.mrb[26].mxu0 %vm18072_vm2, %v2917_v14  ;;  %v3608_v14 = vrot.slane %v12724_v63, 5 }
 0x1ff   : > { %11282 = vmatprep.mubr.msk.f32.mxu0 %vm18072_vm2, %v2919_v0  ;;  %v3289_v0 = vsel %vm18071_vm0, %v2928_v33, %v3288_v58 }
 0x200   : > { %v3609_v33 = vsel %vm18068_vm5, %v3606_v47, %v3608_v14 }
 0x202   : > { %11283 = vmatmul.mubr.msk.f32.gmra.mrb[28].mxu0 %vm18072_vm2, %v2921_v6  ;;  %v3607_v6 = vsel %vm18068_vm5, %v3604_v61, %v3606_v47  ;;  %v18388_v47 = vld [vmem:[#allocation14_spill] sm:$0xff] }
 0x203   : > { %11285 = vmatprep.mubr.msk.f32.mxu0 %vm18072_vm2, %v2923_v3  ;;  %v3291_v3 = vsel %vm18071_vm0, %v3288_v58, %v3290_v57  ;;  %v18379_v57 = vld [vmem:[#allocation5_spill] sm:$0xff] }
 0x206   : > { %11286 = vmatmul.mubr.msk.f32.gmra.mrb[30].mxu0 %vm18072_vm2, %v2925_v39  ;;  %v3610_v39 = vrot.slane %v12728_v2, 5 }
 0x207   : > { %11288 = vmatprep.mubr.msk.f32.mxu0 %vm18072_vm2, %v2927_v29  ;;  %v3586_v29 = vrot.slane %v12652_v19, 5 }
 0x208   : > { %v3611_v55 = vsel %vm18068_vm5, %v3608_v14, %v3610_v39 }
 0x209   : > { %v3587_v15 = vsel %vm18068_vm5, %v3584_v41, %v3586_v29  ;;  %v3589_v17 = vsel %vm18068_vm5, %v3586_v29, %v3588_v9  ;;  %v18382_v9 = vld [vmem:[#allocation8_spill] sm:$0xff] }
 0x20a   : > { %11289 = vmatmul.mubr.msk.f32.gmra.mrb[32].mxu0 %vm18072_vm2, %v2929_v16  ;;  %v3612_v16 = vrot.slane %v18345_v30, 5 }
 0x20b   : > { %11291 = vmatprep.mubr.msk.f32.mxu0 %vm18072_vm2, %v3289_v0  ;;  %v3618_v0 = vrot.slane %v18379_v57, 5 }
 0x20c   : > { %v3613_v40 = vsel %vm18068_vm5, %v3610_v39, %v3612_v16 }
 0x20d   : > { %v3619_v41 = vsel %vm18068_vm5, %v3616_v43, %v3618_v0 }
 0x20e   : > { %11292 = vmatmul.mubr.msk.f32.gmra.mrb[34].mxu0 %vm18072_vm2, %v3291_v3  ;;  %v3620_v3 = vrot.slane %v18380_v26, 5 }
 0x20f   : > { %11296 = vmatprep.mubr.msk.f32.mxu0 %vm18072_vm2, %v3583_v23  ;;  %v18381_v23 = vld [vmem:[#allocation7_spill] sm:$0xff] }
 0x210   : > { %v3622_v29 = vrot.slane %v18381_v23, 5 }
 0x212   : > { %11297 = vmatmul.mubr.msk.f32.vlgmr.msra.gmra.mrb[0].mxu0 %vm18072_vm2, %v3585_v44  ;;  %v3621_v44 = vsel %vm18068_vm5, %v3618_v0, %v3620_v3  ;;  %v3623_v46 = vsel %vm18068_vm5, %v3620_v3, %v3622_v29 }
 0x213   : > { %11351 = vmatpush3.msk.msra.mxu0 %vm18071_vm0, %v289_v10  ;;  %11299 = vmatprep.mubr.msk.f32.mxu0 %vm18072_vm2, %v3587_v15  ;;  %v3614_v10 = vrot.slane %v18347_v32, 5  ;;  %v3624_v15 = vrot.slane %v18382_v9, 5 }
 0x215   : > { %v3615_v58 = vsel %vm18068_vm5, %v3612_v16, %v3614_v10  ;;  %v3617_v60 = vsel %vm18068_vm5, %v3614_v10, %v3616_v43  ;;  %v3640_v16 = vrot.slane %v12812_v24, 5  ;;  %v18390_v10 = vld [vmem:[#allocation16_spill] sm:$0xff] }
 0x216   : > { %11300 = vmatmul.mubr.msk.f32.gmra.mrb[2].mxu0 %vm18072_vm2, %v3589_v17  ;;  %v18383_v17 = vld [vmem:[#allocation9_spill] sm:$0xff] }
 0x217   : > { %11302 = vmatprep.mubr.msk.f32.mxu0 %vm18072_vm2, %v3591_v54  ;;  %v3626_v8 = vrot.slane %v18383_v17, 5  ;;  %v3625_v54 = vsel %vm18068_vm5, %v3622_v29, %v3624_v15 }
 0x219   : > { %v3627_v34 = vsel %vm18068_vm5, %v3624_v15, %v3626_v8 }
 0x21a   : > { %11303 = vmatmul.mubr.msk.f32.gmra.mrb[4].mxu0 %vm18072_vm2, %v3593_v13  ;;  %v3628_v13 = vrot.slane %v18384_v51, 5 }
 0x21b   : > { %11305 = vmatprep.mubr.msk.f32.mxu0 %vm18072_vm2, %v3595_v22  ;;  %v18385_v22 = vld [vmem:[#allocation11_spill] sm:$0xff] }
 0x21c   : > { %v3630_v20 = vrot.slane %v18385_v22, 5 }
 0x21e   : > { %11306 = vmatmul.mubr.msk.f32.gmra.mrb[6].mxu0 %vm18072_vm2, %v3597_v36  ;;  %v3629_v36 = vsel %vm18068_vm5, %v3626_v8, %v3628_v13  ;;  %v3631_v27 = vsel %vm18068_vm5, %v3628_v13, %v3630_v20  ;;  %v4012_v13 = vrot.slane %v12643_v12, 6  ;;  %v4018_v12 = vrot.slane %v12667_v28, 6 }
 0x21f   : > { %11308 = vmatprep.mubr.msk.f32.mxu0 %vm18072_vm2, %v3599_v48  ;;  %v3632_v48 = vrot.slane %v18386_v7, 5 }
 0x222   : > { %11309 = vmatmul.mubr.msk.f32.gmra.mrb[8].mxu0 %vm18072_vm2, %v3601_v1  ;;  %v18387_v1 = vld [vmem:[#allocation13_spill] sm:$0xff] }
 0x223   : > { %11311 = vmatprep.mubr.msk.f32.mxu0 %vm18072_vm2, %v3603_v53  ;;  %v3634_v61 = vrot.slane %v18387_v1, 5  ;;  %v3633_v53 = vsel %vm18068_vm5, %v3630_v20, %v3632_v48  ;;  %v4014_v20 = vrot.slane %v12650_v18, 6 }
 0x225   : > { %v3635_v14 = vsel %vm18068_vm5, %v3632_v48, %v3634_v61  ;;  %v4016_v48 = vrot.slane %v12652_v19, 6  ;;  %v4022_v19 = vrot.slane %v12680_v35, 6 }
 0x226   : > { %11312 = vmatmul.mubr.msk.f32.gmra.mrb[10].mxu0 %vm18072_vm2, %v3605_v21  ;;  %v3636_v21 = vrot.slane %v18388_v47, 5 }
 0x227   : > { %11314 = vmatprep.mubr.msk.f32.mxu0 %vm18072_vm2, %v3607_v6  ;;  %v18389_v6 = vld [vmem:[#allocation15_spill] sm:$0xff]  ;;  %v4019_v18 = vsel %vm18070_vm6, %v4016_v48, %v4018_v12 }
 0x228   : > { %v3638_v39 = vrot.slane %v18389_v6, 5 }
 0x22a   : > { %11315 = vmatmul.mubr.msk.f32.gmra.mrb[12].mxu0 %vm18072_vm2, %v3609_v33  ;;  %v3637_v33 = vsel %vm18068_vm5, %v3634_v61, %v3636_v21  ;;  %v3641_v43 = vsel %vm18068_vm5, %v3638_v39, %v3640_v16  ;;  %v4020_v61 = vrot.slane %v12671_v31, 6  ;;  %v4026_v31 = vrot.slane %v12691_v42, 6 }
 0x22b   : > { %11317 = vmatprep.mubr.msk.f32.mxu0 %vm18072_vm2, %v3611_v55  ;;  %v3639_v55 = vsel %vm18068_vm5, %v3636_v21, %v3638_v39  ;;  %v4024_v21 = vrot.slane %v12684_v38, 6  ;;  %v4028_v39 = vrot.slane %v12695_v45, 6  ;;  %v4030_v38 = vrot.slane %v12702_v49, 6 }
 0x22c   : > { %v4023_v28 = vsel %vm18070_vm6, %v4020_v61, %v4022_v19  ;;  %v4034_v45 = vrot.slane %v12713_v56, 6 }
 0x22d   : > { %v4027_v35 = vsel %vm18070_vm6, %v4024_v21, %v4026_v31  ;;  %v4031_v42 = vsel %vm18070_vm6, %v4028_v39, %v4030_v38 }
 0x22e   : > { %11318 = vmatmul.mubr.msk.f32.gmra.mrb[14].mxu0 %vm18072_vm2, %v3613_v40  ;;  %v3642_v40 = vrot.slane %v18390_v10, 5 }
 0x22f   : > { %11320 = vmatprep.mubr.msk.f32.mxu0 %vm18072_vm2, %v3615_v58  ;;  %v3644_v58 = vrot.slane %v12826_v37, 5 }
 0x230   : > { %v3643_v0 = vsel %vm18068_vm5, %v3640_v16, %v3642_v40  ;;  %v4032_v16 = vrot.slane %v12706_v52, 6  ;;  %v4038_v52 = vrot.slane %v12724_v63, 6 }
 0x231   : > { %v3645_v3 = vsel %vm18068_vm5, %v3642_v40, %v3644_v58  ;;  %v4036_v40 = vrot.slane %v12717_v59, 6  ;;  %v4042_v59 = vrot.slane %v18345_v30, 6 }
 0x232   : > { %11321 = vmatmul.mubr.msk.f32.gmra.mrb[16].mxu0 %vm18072_vm2, %v3617_v60  ;;  %v3646_v60 = vrot.slane %v13153_v50, 5  ;;  %v4035_v49 = vsel %vm18070_vm6, %v4032_v16, %v4034_v45 }
 0x233   : > { %11323 = vmatprep.mubr.msk.f32.mxu0 %vm18072_vm2, %v3619_v41  ;;  %v3648_v41 = vrot.slane %v13161_v62, 5  ;;  %v4039_v56 = vsel %vm18070_vm6, %v4036_v40, %v4038_v52 }
 0x234   : > { %v3647_v29 = vsel %vm18068_vm5, %v3644_v58, %v3646_v60  ;;  %v4040_v58 = vrot.slane %v12728_v2, 6  ;;  %v4046_v2 = vrot.slane %v18349_v4, 6 }
 0x235   : > { %v3649_v15 = vsel %vm18068_vm5, %v3646_v60, %v3648_v41  ;;  %v4044_v60 = vrot.slane %v18347_v32, 6  ;;  %v4050_v32 = vrot.slane %v18380_v26, 6 }
 0x236   : > { %11324 = vmatmul.mubr.msk.f32.gmra.mrb[18].mxu0 %vm18072_vm2, %v3621_v44  ;;  %v3650_v44 = vrot.slane %v13631_v5, 5  ;;  %v4043_v63 = vsel %vm18070_vm6, %v4040_v58, %v4042_v59 }
 0x237   : > { %11326 = vmatprep.mubr.msk.f32.mxu0 %vm18072_vm2, %v3623_v46  ;;  %v3652_v46 = vrot.slane %v13636_v25, 5  ;;  %v4047_v30 = vsel %vm18070_vm6, %v4044_v60, %v4046_v2 }
 0x238   : > { %v3651_v8 = vsel %vm18068_vm5, %v3648_v41, %v3650_v44  ;;  %v4048_v41 = vrot.slane %v18379_v57, 6  ;;  %v4054_v57 = vrot.slane %v18382_v9, 6 }
 0x23a   : > { %11327 = vmatmul.mubr.msk.f32.gmra.mrb[20].mxu0 %vm18072_vm2, %v3625_v54  ;;  %v4011_v54 = vrot.slane %v12641_v11, 6  ;;  %v4015_v11 = vsel %vm18070_vm6, %v4012_v13, %v4014_v20  ;;  %v4051_v4 = vsel %vm18070_vm6, %v4048_v41, %v4050_v32 }
 0x23b   : > { %11329 = vmatprep.mubr.msk.f32.mxu0 %vm18072_vm2, %v3627_v34  ;;  %v3653_v34 = vsel %vm18068_vm5, %v3650_v44, %v3652_v46  ;;  %v4052_v44 = vrot.slane %v18381_v23, 6  ;;  %v4056_v46 = vrot.slane %v18383_v17, 6  ;;  %v4058_v23 = vrot.slane %v18384_v51, 6 }
 0x23c   : > { %v4062_v17 = vrot.slane %v18386_v7, 6 }
 0x23d   : > { %v4055_v26 = vsel %vm18070_vm6, %v4052_v44, %v4054_v57  ;;  %v4059_v9 = vsel %vm18070_vm6, %v4056_v46, %v4058_v23 }
 0x23e   : > { %11330 = vmatmul.mubr.msk.f32.gmra.mrb[22].mxu0 %vm18072_vm2, %v3629_v36  ;;  %v4013_v36 = vsel %vm18070_vm6, %v4011_v54, %v4012_v13  ;;  %v4060_v54 = vrot.slane %v18385_v22, 6  ;;  %v4066_v22 = vrot.slane %v18388_v47, 6 }
 0x23f   : > { %11332 = vmatprep.mubr.msk.f32.mxu0 %vm18072_vm2, %v3631_v27  ;;  %v4017_v27 = vsel %vm18070_vm6, %v4014_v20, %v4016_v48 }
 0x240   : > { %v4061_v13 = vsel %vm18070_vm6, %v4058_v23, %v4060_v54  ;;  %v4063_v51 = vsel %vm18070_vm6, %v4060_v54, %v4062_v17 }
 0x242   : > { %11333 = vmatmul.mubr.msk.f32.gmra.mrb[24].mxu0 %vm18072_vm2, %v3633_v53  ;;  %v4021_v53 = vsel %vm18070_vm6, %v4018_v12, %v4020_v61 }
 0x243   : > { %11335 = vmatprep.mubr.msk.f32.mxu0 %vm18072_vm2, %v3635_v14  ;;  %v4025_v14 = vsel %vm18070_vm6, %v4022_v19, %v4024_v21 }
 0x246   : > { %11336 = vmatmul.mubr.msk.f32.gmra.mrb[26].mxu0 %vm18072_vm2, %v3637_v33  ;;  %v4029_v33 = vsel %vm18070_vm6, %v4026_v31, %v4028_v39 }
 0x247   : > { %11338 = vmatprep.mubr.msk.f32.mxu0 %vm18072_vm2, %v3639_v55  ;;  %v4033_v55 = vsel %vm18070_vm6, %v4030_v38, %v4032_v16 }
 0x24a   : > { %11339 = vmatmul.mubr.msk.f32.gmra.mrb[28].mxu0 %vm18072_vm2, %v3641_v43  ;;  %v4037_v43 = vsel %vm18070_vm6, %v4034_v45, %v4036_v40 }
 0x24b   : > { %11341 = vmatprep.mubr.msk.f32.mxu0 %vm18072_vm2, %v3643_v0  ;;  %v4041_v0 = vsel %vm18070_vm6, %v4038_v52, %v4040_v58 }
 0x24e   : > { %11342 = vmatmul.mubr.msk.f32.gmra.mrb[30].mxu0 %vm18072_vm2, %v3645_v3  ;;  %v4045_v3 = vsel %vm18070_vm6, %v4042_v59, %v4044_v60 }
 0x24f   : > { %11344 = vmatprep.mubr.msk.f32.mxu0 %vm18072_vm2, %v3647_v29  ;;  %v4049_v29 = vsel %vm18070_vm6, %v4046_v2, %v4048_v41 }
 0x252   : > { %11345 = vmatmul.mubr.msk.f32.gmra.mrb[32].mxu0 %vm18072_vm2, %v3649_v15  ;;  %v4053_v15 = vsel %vm18070_vm6, %v4050_v32, %v4052_v44 }
 0x253   : > { %11347 = vmatprep.mubr.msk.f32.mxu0 %vm18072_vm2, %v3651_v8  ;;  %v4057_v8 = vsel %vm18070_vm6, %v4054_v57, %v4056_v46 }
 0x256   : > { %11348 = vmatmul.mubr.msk.f32.gmra.mrb[34].mxu0 %vm18072_vm2, %v3653_v34  ;;  %v4064_v34 = vrot.slane %v18387_v1, 6  ;;  %v4070_v1 = vrot.slane %v12812_v24, 6 }
 0x257   : > { %11352 = vmatprep.mubr.msk.f32.mxu0 %vm18072_vm2, %v4013_v36  ;;  %v4068_v36 = vrot.slane %v18389_v6, 6  ;;  %v4074_v6 = vrot.slane %v12826_v37, 6 }
 0x258   : > { %v4065_v20 = vsel %vm18070_vm6, %v4062_v17, %v4064_v34  ;;  %v4067_v7 = vsel %vm18070_vm6, %v4064_v34, %v4066_v22 }
 0x259   : > { %v4069_v48 = vsel %vm18070_vm6, %v4066_v22, %v4068_v36  ;;  %v4071_v47 = vsel %vm18070_vm6, %v4068_v36, %v4070_v1 }
 0x25a   : > { %11353 = vmatmul.mubr.msk.f32.vlgmr.msra.gmra.mrb[0].mxu0 %vm18072_vm2, %v4015_v11  ;;  %v4072_v11 = vrot.slane %v18390_v10, 6  ;;  %v4078_v10 = vrot.slane %v13161_v62, 6 }
 0x25b   : > { %11355 = vmatprep.mubr.msk.f32.mxu0 %vm18072_vm2, %v4017_v27  ;;  %v4076_v27 = vrot.slane %v13153_v50, 6  ;;  %v4082_v50 = vrot.slane %v13636_v25, 6 }
 0x25c   : > { %v4073_v12 = vsel %vm18070_vm6, %v4070_v1, %v4072_v11  ;;  %v4075_v24 = vsel %vm18070_vm6, %v4072_v11, %v4074_v6 }
 0x25d   : > { %v4077_v61 = vsel %vm18070_vm6, %v4074_v6, %v4076_v27  ;;  %v4079_v37 = vsel %vm18070_vm6, %v4076_v27, %v4078_v10 }
 0x25e   : > { %11356 = vmatmul.mubr.msk.f32.gmra.mrb[2].mxu0 %vm18072_vm2, %v4019_v18  ;;  %v4080_v18 = vrot.slane %v13631_v5, 6 }
 0x25f   : > { %11358 = vmatprep.mubr.msk.f32.mxu0 %vm18072_vm2, %v4021_v53  ;;  %v301_v53 = vlaneseq }
 0x260   : > { %v4081_v19 = vsel %vm18070_vm6, %v4078_v10, %v4080_v18  ;;  %v4083_v62 = vsel %vm18070_vm6, %v4080_v18, %v4082_v50 }
 0x261   : > { %v13866_v5 = vshrl.u32 %v301_v53, 7 }
 0x262   : > { %11359 = vmatmul.mubr.msk.f32.gmra.mrb[4].mxu0 %vm18072_vm2, %v4023_v28 }
 0x263   : > { %11361 = vmatprep.mubr.msk.f32.mxu0 %vm18072_vm2, %v4025_v14  ;;  %18391 = vst [vmem:[#allocation5_spill] sm:$0xff] %v13866_v5  ;;  %v303_v21 = vadd.s32 8, %v13866_v5  ;;  %v305_v28 = vadd.s32 24, %v13866_v5  ;;  %v13874_v25 = vmul.u32.u64.low 3817748708, %v13866_v5  ;;  %v13875_v39 = vmul.u32.u64.high 3817748708, %v13866_v5, %v13874_v25 }
 0x264   : > { %v307_v38 = vadd.s32 40, %v13866_v5  ;;  %v309_v52 = vadd.s32 56, %v13866_v5  ;;  %v13930_v22 = vadd.s32 88, %v13866_v5  ;;  %v13949_v27 = vadd.s32 80, %v13866_v5 }
 0x265   : > { %v13870_v31 = vmul.u32.u64.low 3817748708, %v303_v21  ;;  %v13871_v14 = vmul.u32.u64.high 3817748708, %v303_v21, %v13870_v31  ;;  %v344_v58 = vshrl.u32 %v13875_v39, 4  ;;  %v13983_v39 = vadd.s32 120, %v13866_v5 }
 0x266   : > { %11362 = vmatmul.mubr.msk.f32.gmra.mrb[6].mxu0 %vm18072_vm2, %v4027_v35  ;;  %v304_v35 = vadd.s32 16, %v13866_v5  ;;  %v13975_v31 = vadd.s32 96, %v13866_v5 }
 0x267   : > { %11364 = vmatprep.mubr.msk.f32.mxu0 %vm18072_vm2, %v4029_v33  ;;  %v13879_v33 = vmul.u32.u64.low 3817748708, %v305_v28  ;;  %v13880_v16 = vmul.u32.u64.high 3817748708, %v305_v28, %v13879_v33 }
 0x269   : > { %v377_v2 = vshrl.u32 %v13880_v16, 4 }
 0x26a   : > { %11365 = vmatmul.mubr.msk.f32.gmra.mrb[8].mxu0 %vm18072_vm2, %v4031_v42  ;;  %v13882_v42 = vmul.u32.u64.low 3817748708, %v304_v35  ;;  %v13883_v45 = vmul.u32.u64.high 3817748708, %v304_v35, %v13882_v42 }
 0x26b   : > { %11367 = vmatprep.mubr.msk.f32.mxu0 %vm18072_vm2, %v4033_v55  ;;  %v306_v55 = vadd.s32 32, %v13866_v5  ;;  %v378_v57 = vmul.u32 18, %v377_v2  ;;  %v13992_v42 = vadd.s32 112, %v13866_v5  ;;  %v14037_v2 = vadd.s32 152, %v13866_v5 }
 0x26c   : > { %v366_v32 = vshrl.u32 %v13883_v45, 4 }
 0x26d   : > { %v13922_v34 = vsub.s32 %v305_v28, %v378_v57 }
 0x26e   : > { %11368 = vmatmul.mubr.msk.f32.gmra.mrb[10].mxu0 %vm18072_vm2, %v4035_v49  ;;  %v13886_v40 = vmul.u32.u64.low 3817748708, %v307_v38  ;;  %v13887_v49 = vmul.u32.u64.high 3817748708, %v307_v38, %v13886_v40 }
 0x26f   : > { %11370 = vmatprep.mubr.msk.f32.mxu0 %vm18072_vm2, %v4037_v43  ;;  %v355_v43 = vshrl.u32 %v13871_v14, 4  ;;  %vm737_vm11 = vcmp.ne.s32.totalorder %v13922_v34, 0  ;;  %vm773_vm12 = vcmp.lt.s32.totalorder %v13922_v34, 0  ;;  %v13960_v18 = vadd.s32 18, %v13922_v34 }
 0x271   : > { %v356_v41 = vmul.u32 18, %v355_v43 }
 0x272   : > { %11371 = vmatmul.mubr.msk.f32.gmra.mrb[12].mxu0 %vm18072_vm2, %v4039_v56  ;;  %v13892_v56 = vmul.u32.u64.low 3817748708, %v306_v55  ;;  %v13893_v59 = vmul.u32.u64.high 3817748708, %v306_v55, %v13892_v56 }
 0x273   : > { %11373 = vmatprep.mubr.msk.f32.mxu0 %vm18072_vm2, %v4041_v0  ;;  %v308_v0 = vadd.s32 48, %v13866_v5 }
 0x274   : > { %v388_v54 = vshrl.u32 %v13893_v59, 4  ;;  %v14021_v56 = vmul.u32.u64.low 3817748708, %v13983_v39  ;;  %v14022_v59 = vmul.u32.u64.high 3817748708, %v13983_v39, %v14021_v56 }
 0x276   : > { %11374 = vmatmul.mubr.msk.f32.gmra.mrb[14].mxu0 %vm18072_vm2, %v4043_v63  ;;  %v13896_v60 = vmul.u32.u64.low 3817748708, %v309_v52  ;;  %v13897_v63 = vmul.u32.u64.high 3817748708, %v309_v52, %v13896_v60  ;;  %v389_v36 = vmul.u32 18, %v388_v54 }
 0x277   : > { %11376 = vmatprep.mubr.msk.f32.mxu0 %vm18072_vm2, %v4045_v3  ;;  %v13901_v3 = vadd.s32 72, %v13866_v5 }
 0x278   : > { %v421_v17 = vshrl.u32 %v13897_v63, 4  ;;  %v14034_v63 = vadd.s32 128, %v13866_v5 }
 0x27a   : > { %11377 = vmatmul.mubr.msk.f32.gmra.mrb[16].mxu0 %vm18072_vm2, %v4047_v30  ;;  %v345_v30 = vmul.u32 18, %v344_v58 }
 0x27b   : > { %11379 = vmatprep.mubr.msk.f32.mxu0 %vm18072_vm2, %v4049_v29  ;;  %v13904_v29 = vmul.u32.u64.low 3817748708, %v308_v0  ;;  %v13905_v44 = vmul.u32.u64.high 3817748708, %v308_v0, %v13904_v29 }
 0x27c   : > { %v13915_v23 = vsub.s32 %v13866_v5, %v345_v30 }
 0x27e   : > { %11380 = vmatmul.mubr.msk.f32.gmra.mrb[18].mxu0 %vm18072_vm2, %v4051_v4  ;;  %v399_v4 = vshrl.u32 %v13887_v49, 4  ;;  %vm734_vm9 = vcmp.ne.s32.totalorder %v13915_v23, 0  ;;  %vm770_vm10 = vcmp.lt.s32.totalorder %v13915_v23, 0  ;;  %v13944_v6 = vadd.s32 18, %v13915_v23 }
 0x27f   : > { %11382 = vmatprep.mubr.msk.f32.mxu0 %vm18072_vm2, %v4053_v15  ;;  %v13909_v15 = vmul.u32.u64.low 3817748708, %v13901_v3  ;;  %v13910_v46 = vmul.u32.u64.high 3817748708, %v13901_v3, %v13909_v15  ;;  %v14004_v40 = vmul.u32.u64.low 3817748708, %v13975_v31  ;;  %v14005_v49 = vmul.u32.u64.high 3817748708, %v13975_v31, %v14004_v40  ;;  %vm14014_vm0 = vmand %vm770_vm10, %vm734_vm9 }
 0x280   : > { %v14174_v40 = vadd.s32 160, %v13866_v5 }
 0x282   : > { %11383 = vmatmul.mubr.msk.f32.gmra.mrb[20].mxu0 %vm18072_vm2, %v4055_v26  ;;  %v13912_v26 = vsub.s32 %v303_v21, %v356_v41  ;;  %v13971_v21 = vmul.u32.u64.low 3817748708, %v13949_v27  ;;  %v13972_v28 = vmul.u32.u64.high 3817748708, %v13949_v27, %v13971_v21 }
 0x283   : > { %11385 = vmatprep.mubr.msk.f32.mxu0 %vm18072_vm2, %v4057_v8  ;;  %v367_v8 = vmul.u32 18, %v366_v32  ;;  %v14048_v30 = vmul.u32.u64.low 3817748708, %v13992_v42  ;;  %v14049_v32 = vmul.u32.u64.high 3817748708, %v13992_v42, %v14048_v30 }
 0x284   : > { %vm735_vm7 = vcmp.ne.s32.totalorder %v13912_v26, 0  ;;  %vm771_vm8 = vcmp.lt.s32.totalorder %v13912_v26, 0 }
 0x285   : > { %vm13998_vm6 = vmand %vm771_vm8, %vm735_vm7 }
 0x286   : > { %11386 = vmatmul.mubr.msk.f32.gmra.mrb[22].mxu0 %vm18072_vm2, %v4059_v9  ;;  %v400_v9 = vmul.u32 18, %v399_v4  ;;  %vm14028_vm8 = vmand %vm773_vm12, %vm737_vm11 }
 0x287   : > { %11388 = vmatprep.mubr.msk.f32.mxu0 %vm18072_vm2, %v4061_v13  ;;  %v13920_v13 = vadd.s32 64, %v13866_v5 }
 0x288   : > { %v13937_v1 = vsub.s32 %v307_v38, %v400_v9 }
 0x28a   : > { %11389 = vmatmul.mubr.msk.f32.gmra.mrb[24].mxu0 %vm18072_vm2, %v4063_v51  ;;  %v13927_v51 = vadd.s32 18, %v13912_v26  ;;  %vm739_vm15 = vcmp.ne.s32.totalorder %v13937_v1, 0  ;;  %vm775_vm4 = vcmp.lt.s32.totalorder %v13937_v1, 0 }
 0x28b   : > { %11391 = vmatprep.mubr.msk.f32.mxu0 %vm18072_vm2, %v4065_v20  ;;  %v13934_v20 = vsub.s32 %v304_v35, %v367_v8  ;;  %v847_v35 = vadd.s32 18, %v13937_v1  ;;  %vm14055_vm12 = vmand %vm775_vm4, %vm739_vm15  ;;  %v454_v8 = vshrl.u32 %v13972_v28, 4 }
 0x28d   : > { %vm736_vm13 = vcmp.ne.s32.totalorder %v13934_v20, 0  ;;  %vm772_vm14 = vcmp.lt.s32.totalorder %v13934_v20, 0 }
 0x28e   : > { %11392 = vmatmul.mubr.msk.f32.gmra.mrb[26].mxu0 %vm18072_vm2, %v4067_v7  ;;  %v410_v7 = vshrl.u32 %v13905_v44, 4  ;;  %vm14043_vm10 = vmand %vm772_vm14, %vm736_vm13 }
 0x28f   : > { %11394 = vmatprep.mubr.msk.f32.mxu0 %vm18072_vm2, %v4069_v48  ;;  %v422_v48 = vmul.u32 18, %v421_v17 }
 0x290   : > { %v411_v50 = vmul.u32 18, %v410_v7 }
 0x292   : > { %11395 = vmatmul.mubr.msk.f32.gmra.mrb[28].mxu0 %vm18072_vm2, %v4071_v47  ;;  %v13940_v11 = vmul.u32.u64.low 3817748708, %v13920_v13  ;;  %v13941_v47 = vmul.u32.u64.high 3817748708, %v13920_v13, %v13940_v11  ;;  %v412_v38 = vsub.s32 %v308_v0, %v411_v50 }
 0x293   : > { %11397 = vmatprep.mubr.msk.f32.mxu0 %vm18072_vm2, %v4073_v12  ;;  %v443_v12 = vshrl.u32 %v13910_v46, 4  ;;  %v14093_v11 = vsel %vm13998_vm6, %v13927_v51, %v13912_v26  ;;  %v455_v51 = vmul.u32 18, %v454_v8 }
 0x294   : > { %v432_v16 = vshrl.u32 %v13941_v47, 4  ;;  %vm740_vm9 = vcmp.ne.s32.totalorder %v412_v38, 0  ;;  %vm776_vm11 = vcmp.lt.s32.totalorder %v412_v38, 0  ;;  %v848_v44 = vadd.s32 18, %v412_v38  ;;  %18406 = vst [vmem:[#allocation6_spill] sm:$0xff] %v14093_v11 }
 0x295   : > { %v444_v53 = vmul.u32 18, %v443_v12  ;;  %v14099_v47 = vsel %vm14014_vm0, %v13944_v6, %v13915_v23  ;;  %v14120_v23 = vsel %vm14055_vm12, %v847_v35, %v13937_v1  ;;  %v509_v6 = vshrl.u32 %v14022_v59, 4 }
 0x296   : > { %11398 = vmatmul.mubr.msk.f32.gmra.mrb[30].mxu0 %vm18072_vm2, %v4075_v24  ;;  %v13953_v24 = vmul.u32.u64.low 3817748708, %v13930_v22  ;;  %v13954_v10 = vmul.u32.u64.high 3817748708, %v13930_v22, %v13953_v24  ;;  %v433_v41 = vmul.u32 18, %v432_v16  ;;  %18407 = vst [vmem:[#allocation7_spill] sm:$0xff] %v14099_v47  ;;  %18410 = vst [vmem:[#allocation10_spill] sm:$0xff] %v14120_v23 }
 0x297   : > { %11400 = vmatprep.mubr.msk.f32.mxu0 %vm18072_vm2, %v4077_v61  ;;  %v13957_v61 = vadd.s32 104, %v13866_v5 }
 0x298   : > { %v465_v58 = vshrl.u32 %v13954_v10, 4  ;;  %v14104_v24 = vsub.s32 %v13920_v13, %v433_v41  ;;  %v14110_v10 = vsel %vm14028_vm8, %v13960_v18, %v13922_v34  ;;  %v476_v13 = vshrl.u32 %v14005_v49, 4 }
 0x299   : > { %v13979_v14 = vmul.u32.u64.low 3817748708, %v13957_v61  ;;  %v13980_v25 = vmul.u32.u64.high 3817748708, %v13957_v61, %v13979_v14  ;;  %18408 = vst [vmem:[#allocation8_spill] sm:$0xff] %v14110_v10  ;;  %v14196_v41 = vmul.u32.u64.low 3817748708, %v14174_v40  ;;  %v14197_v30 = vmul.u32.u64.high 3817748708, %v14174_v40, %v14196_v41 }
 0x29a   : > { %11401 = vmatmul.mubr.msk.f32.gmra.mrb[32].mxu0 %vm18072_vm2, %v4079_v37  ;;  %v13963_v37 = vsub.s32 %v306_v55, %v389_v36  ;;  %v445_v55 = vsub.s32 %v13901_v3, %v444_v53  ;;  %v466_v46 = vmul.u32 18, %v465_v58  ;;  %v14150_v21 = vadd.s32 18, %v14104_v24 }
 0x29b   : > { %11403 = vmatprep.mubr.msk.f32.mxu0 %vm18072_vm2, %v4081_v19  ;;  %v844_v19 = vadd.s32 18, %v13934_v20  ;;  %v487_v54 = vshrl.u32 %v13980_v25, 4  ;;  %v14082_v17 = vmul.u32.u64.low 3817748708, %v14034_v63  ;;  %v14083_v36 = vmul.u32.u64.high 3817748708, %v14034_v63, %v14082_v17 }
 0x29c   : > { %vm738_vm1 = vcmp.ne.s32.totalorder %v13963_v37, 0  ;;  %vm774_vm5 = vcmp.lt.s32.totalorder %v13963_v37, 0  ;;  %v846_v33 = vadd.s32 18, %v13963_v37  ;;  %vm779_vm14 = vcmp.lt.s32.totalorder %v445_v55, 0 }
 0x29d   : > { %vm14067_vm13 = vmand %vm774_vm5, %vm738_vm1  ;;  %v851_v12 = vadd.s32 18, %v445_v55  ;;  %v14115_v26 = vsel %vm14043_vm10, %v844_v19, %v13934_v20  ;;  %v14132_v20 = vadd.s32 144, %v13866_v5  ;;  %v14142_v50 = vsub.s32 %v13930_v22, %v466_v46 }
 0x29e   : > { %11404 = vmatmul.mubr.msk.f32.gmra.mrb[34].mxu0 %vm18072_vm2, %v4083_v62  ;;  %v13968_v62 = vsub.s32 %v309_v52, %v422_v48  ;;  %v14008_v52 = vadd.s32 136, %v13866_v5  ;;  %vm743_vm2 = vcmp.ne.s32.totalorder %v445_v55, 0  ;;  %vm812_vm1 = vmand %vm776_vm11, %vm740_vm9  ;;  %18409 = vst [vmem:[#allocation9_spill] sm:$0xff] %v14115_v26  ;;  %v14128_v34 = vsel %vm14067_vm13, %v846_v33, %v13963_v37 }
 0x29f   : > { %v14086_v7 = vmul.u32.u64.low 3817748708, %v14037_v2  ;;  %v14087_v48 = vmul.u32.u64.high 3817748708, %v14037_v2, %v14086_v7  ;;  %vm815_vm0 = vmand %vm779_vm14, %vm743_vm2  ;;  %18411 = vst [vmem:[#allocation11_spill] sm:$0xff] %v14128_v34  ;;  %v14139_v18 = vsel %vm812_vm1, %v848_v44, %v412_v38  ;;  %v488_v19 = vmul.u32 18, %v487_v54 }
 0x2a0   : > { %vm741_vm3 = vcmp.ne.s32.totalorder %v13968_v62, 0  ;;  %vm777_vm7 = vcmp.lt.s32.totalorder %v13968_v62, 0  ;;  %v849_v60 = vadd.s32 18, %v13968_v62  ;;  %18413 = vst [vmem:[#allocation13_spill] sm:$0xff] %v14139_v18  ;;  %v14144_v53 = vsel %vm815_vm0, %v851_v12, %v445_v55 }
 0x2a1   : > { %v14060_v4 = vmul.u32.u64.low 3817748708, %v14008_v52  ;;  %v14061_v57 = vmul.u32.u64.high 3817748708, %v14008_v52, %v14060_v4  ;;  %vm14077_vm4 = vmand %vm777_vm7, %vm741_vm3  ;;  %18414 = vst [vmem:[#allocation14_spill] sm:$0xff] %v14144_v53  ;;  %vm742_vm2 = vcmp.ne.s32.totalorder %v14104_v24, 0  ;;  %vm778_vm3 = vcmp.lt.s32.totalorder %v14104_v24, 0 }
 0x2a2   : > { %v14137_v1 = vsel %vm14077_vm4, %v849_v60, %v13968_v62  ;;  %v498_v37 = vshrl.u32 %v14049_v32, 4  ;;  %v477_v28 = vmul.u32 18, %v476_v13  ;;  %v14154_v14 = vadd.s32 168, %v13866_v5  ;;  %vm14209_vm14 = vmand %vm778_vm3, %vm742_vm2 }
 0x2a3   : > { %18412 = vst [vmem:[#allocation12_spill] sm:$0xff] %v14137_v1  ;;  %v531_v62 = vshrl.u32 %v14061_v57, 4  ;;  %v14157_v22 = vsub.s32 %v13949_v27, %v455_v51  ;;  %v510_v25 = vmul.u32 18, %v509_v6  ;;  %vm745_vm5 = vcmp.ne.s32.totalorder %v14142_v50, 0 }
 0x2a4   : > { %v14160_v35 = vmul.u32.u64.low 3817748708, %v14132_v20  ;;  %v14161_v38 = vmul.u32.u64.high 3817748708, %v14132_v20, %v14160_v35  ;;  %v14165_v33 = vsub.s32 %v13957_v61, %v488_v19  ;;  %v520_v16 = vshrl.u32 %v14083_v36, 4 }
 0x2a5   : > { %v553_v45 = vshrl.u32 %v14087_v48, 4  ;;  %vm781_vm6 = vcmp.lt.s32.totalorder %v14142_v50, 0  ;;  %v14171_v55 = vadd.s32 18, %v14142_v50  ;;  %v499_v27 = vmul.u32 18, %v498_v37 }
 0x2a6   : > { %v14177_v49 = vsub.s32 %v13975_v31, %v477_v28  ;;  %v532_v43 = vmul.u32 18, %v531_v62  ;;  %v14180_v61 = vmul.u32.u64.low 3817748708, %v14154_v14  ;;  %v14181_v58 = vmul.u32.u64.high 3817748708, %v14154_v14, %v14180_v61  ;;  %vm14223_vm1 = vmand %vm781_vm6, %vm745_vm5 }
 0x2a7   : > { %vm744_vm15 = vcmp.ne.s32.totalorder %v14157_v22, 0  ;;  %vm780_vm7 = vcmp.lt.s32.totalorder %v14157_v22, 0  ;;  %v852_v56 = vadd.s32 18, %v14157_v22  ;;  %v14187_v59 = vsub.s32 %v13983_v39, %v510_v25 }
 0x2a8   : > { %vm747_vm8 = vcmp.ne.s32.totalorder %v14165_v33, 0  ;;  %v521_v0 = vmul.u32 18, %v520_v16  ;;  %v554_v60 = vmul.u32 18, %v553_v45  ;;  %v14191_v31 = vadd.s32 184, %v13866_v5  ;;  %vm14237_vm0 = vmand %vm780_vm7, %vm744_vm15 }
 0x2a9   : > { %vm783_vm9 = vcmp.lt.s32.totalorder %v14165_v33, 0  ;;  %v500_v3 = vsub.s32 %v13992_v42, %v499_v27  ;;  %v855_v39 = vadd.s32 18, %v14165_v33  ;;  %vm746_vm11 = vcmp.ne.s32.totalorder %v14177_v49, 0 }
 0x2aa   : > { %vm782_vm12 = vcmp.lt.s32.totalorder %v14177_v49, 0  ;;  %v533_v32 = vsub.s32 %v14008_v52, %v532_v43  ;;  %v854_v29 = vadd.s32 18, %v14177_v49  ;;  %vm749_vm4 = vcmp.ne.s32.totalorder %v14187_v59, 0  ;;  %vm14250_vm5 = vmand %vm783_vm9, %vm747_vm8 }
 0x2ab   : > { %v542_v44 = vshrl.u32 %v14161_v38, 4  ;;  %v14217_v4 = vadd.s32 176, %v13866_v5  ;;  %v522_v57 = vsub.s32 %v14034_v63, %v521_v0  ;;  %v555_v15 = vsub.s32 %v14037_v2, %v554_v60  ;;  %vm14261_vm10 = vmand %vm782_vm12, %vm746_vm11 }
 0x2ac   : > { %v14230_v46 = vmul.u32.u64.low 3817748708, %v14191_v31  ;;  %v14231_v8 = vmul.u32.u64.high 3817748708, %v14191_v31, %v14230_v46  ;;  %vm785_vm2 = vcmp.lt.s32.totalorder %v14187_v59, 0  ;;  %v857_v9 = vadd.s32 18, %v14187_v59 }
 0x2ad   : > { %vm748_vm3 = vcmp.ne.s32.totalorder %v500_v3, 0  ;;  %v14244_v63 = vadd.s32 200, %v13866_v5  ;;  %vm784_vm6 = vcmp.lt.s32.totalorder %v500_v3, 0  ;;  %v856_v17 = vadd.s32 18, %v500_v3  ;;  %vm14273_vm9 = vmand %vm785_vm2, %vm749_vm4 }
 0x2ae   : > { %vm751_vm15 = vcmp.ne.s32.totalorder %v533_v32, 0  ;;  %v575_v36 = vshrl.u32 %v14181_v58, 4  ;;  %v543_v48 = vmul.u32 18, %v542_v44  ;;  %v859_v6 = vadd.s32 18, %v533_v32  ;;  %vm14279_vm7 = vmand %vm784_vm6, %vm748_vm3 }
 0x2af   : > { %v14266_v12 = vmul.u32.u64.low 3817748708, %v14217_v4  ;;  %v14267_v13 = vmul.u32.u64.high 3817748708, %v14217_v4, %v14266_v12  ;;  %vm750_vm13 = vcmp.ne.s32.totalorder %v522_v57, 0  ;;  %vm786_vm11 = vcmp.lt.s32.totalorder %v522_v57, 0 }
 0x2b0   : > { %vm753_vm12 = vcmp.ne.s32.totalorder %v555_v15, 0  ;;  %vm789_vm8 = vcmp.lt.s32.totalorder %v555_v15, 0  ;;  %v564_v37 = vshrl.u32 %v14197_v30, 4  ;;  %v14292_v25 = vsel %vm14209_vm14, %v14150_v21, %v14104_v24  ;;  %vm14320_vm14 = vmand %vm786_vm11, %vm750_vm13 }
 0x2b1   : > { %v14285_v28 = vmul.u32.u64.low 3817748708, %v14244_v63  ;;  %v14286_v62 = vmul.u32.u64.high 3817748708, %v14244_v63, %v14285_v28  ;;  %18429 = vst [vmem:[#allocation15_spill] sm:$0xff] %v14292_v25  ;;  %v14298_v35 = vsel %vm14223_vm1, %v14171_v55, %v14142_v50  ;;  %vm18431_vm4 = vcmp.lt.s32.totalorder %v533_v32, 0  ;;  %vm825_vm13 = vmand %vm789_vm8, %vm753_vm12 }
 0x2b2   : > { %18430 = vst [vmem:[#allocation16_spill] sm:$0xff] %v14298_v35  ;;  %vm14302_vm2 = vmand %vm18431_vm4, %vm751_vm15  ;;  %v858_v16 = vadd.s32 18, %v522_v57  ;;  %v576_v45 = vmul.u32 18, %v575_v36  ;;  %vm18075_vm3 = vcmp.lt.s32.totalorder %v14120_v23, 16  ;;  %vm18190_vm6 = vcmp.lt.s32.totalorder %v14128_v34, 16 }
 0x2b3   : > { %v14311_v24 = vsel %vm14237_vm0, %v852_v56, %v14157_v22  ;;  %v14316_v50 = vsel %vm14250_vm5, %v855_v39, %v14165_v33  ;;  %v861_v55 = vadd.s32 18, %v555_v15  ;;  %v14325_v27 = vsub.s32 %v14132_v20, %v543_v48 }
 0x2b4   : > { %18434 = vst [vmem:[#allocation50_spill] sm:$0xff] %v14311_v24  ;;  %18435 = vst [vmem:[#allocation51_spill] sm:$0xff] %v14316_v50  ;;  %v14332_v22 = vsel %vm14261_vm10, %v854_v29, %v14177_v49  ;;  %v14337_v33 = vsel %vm14273_vm9, %v857_v9, %v14187_v59  ;;  %v14341_v61 = vsel %vm14279_vm7, %v856_v17, %v500_v3  ;;  %v597_v20 = vshrl.u32 %v14231_v8, 4 }
 0x2b5   : > { %18438 = vst [vmem:[#allocation52_spill] sm:$0xff] %v14332_v22  ;;  %18439 = vst [vmem:[#allocation53_spill] sm:$0xff] %v14337_v33  ;;  %vm18441_vm1 = vcmp.lt.s32.totalorder %v14093_v11, 16  ;;  %v14353_v56 = vsel %vm14302_vm2, %v859_v6, %v533_v32  ;;  %v565_v59 = vmul.u32 18, %v564_v37  ;;  %v14356_v0 = vadd.s32 192, %v13866_v5 }
 0x2b6   : > { %18440 = vst [vmem:[#allocation54_spill] sm:$0xff] %v14341_v61  ;;  %18442 = vst [vmem:[#allocation55_spill] sm:$0xff] %v14353_v56  ;;  %vm18443_vm10 = vcmask 31744   ;;  %vm18444_vm0 = vcmp.lt.s32.totalorder %v14099_v47, 16  ;;  %v14364_v41 = vsel %vm14320_vm14, %v858_v16, %v522_v57  ;;  %v14367_v30 = vsub.s32 %v14154_v14, %v576_v45 }
 0x2b7   : > { %18445 = vst [vmem:[#allocation56_spill] sm:$0xff] %v14364_v41  ;;  %vm18446_vm5 = vmmov %vm18443_vm10  ;;  %vm18073_vm15 = vcmp.lt.s32.totalorder %v14137_v1, 16  ;;  %vm18074_vm7 = vcmp.lt.s32.totalorder %v14139_v18, 16  ;;  %v14372_v32 = vsel %vm825_vm13, %v861_v55, %v555_v15  ;;  %vm752_vm8 = vcmp.ne.s32.totalorder %v14325_v27, 0 }
 0x2b8   : > { %18447 = vst [vmem:[#allocation57_spill] sm:$0xff] %v14372_v32  ;;  %v586_v42 = vshrl.u32 %v14267_v13, 4  ;;  %vm788_vm9 = vcmp.lt.s32.totalorder %v14325_v27, 0  ;;  %v598_v52 = vmul.u32 18, %v597_v20  ;;  %v14380_v14 = vadd.s32 216, %v13866_v5  ;;  %vm18450_vm2 = vmmov %vm18446_vm5 }
 0x2b9   : > { %v566_v46 = vsub.s32 %v14174_v40, %v565_v59  ;;  %v619_v15 = vshrl.u32 %v14286_v62, 4  ;;  %v14387_v8 = vmul.u32.u64.low 3817748708, %v14356_v0  ;;  %v14388_v54 = vmul.u32.u64.high 3817748708, %v14356_v0, %v14387_v8 }
 0x2ba   : > { %vm18448_vm11 = vcmp.lt.s32.totalorder %v14110_v10, 16  ;;  %vm18449_vm12 = vcmp.lt.s32.totalorder %v14115_v26, 16  ;;  %v860_v17 = vadd.s32 18, %v14325_v27  ;;  %vm755_vm4 = vcmp.ne.s32.totalorder %v14367_v30, 0 }
 0x2bb   : > { %vm18124_vm14 = vcmp.lt.s32.totalorder %v14144_v53, 16  ;;  %vm18188_vm13 = vcmp.lt.s32.totalorder %v14292_v25, 16  ;;  %v587_v36 = vmul.u32 18, %v586_v42  ;;  %v14403_v7 = vadd.s32 208, %v13866_v5 }
 0x2bc   : > { %v599_v13 = vsub.s32 %v14191_v31, %v598_v52  ;;  %v14409_v51 = vmul.u32.u64.low 3817748708, %v14380_v14  ;;  %v14410_v6 = vmul.u32.u64.high 3817748708, %v14380_v14, %v14409_v51  ;;  %v620_v62 = vmul.u32 18, %v619_v15 }
 0x2bd   : > { %v863_v45 = vadd.s32 18, %v14367_v30  ;;  %v862_v20 = vadd.s32 18, %v566_v46 }
 0x2be   : > { %v621_v8 = vsub.s32 %v14244_v63, %v620_v62 }
 0x32d   : > { %v14327_v43 = vpop.f32.mrb[0].mxu0 }
 0x32e   : > { %v4441_v58 = vsel %vm18441_vm1, %v14327_v43, 0.0  ;;  %v14349_v49 = vpop.f32.mrb[1].mxu0  ;;  %vm791_vm1 = vcmp.lt.s32.totalorder %v14367_v30, 0 }
 0x32f   : > { %v4477_v60 = vsel %vm18443_vm10, %v4441_v58, 0.0  ;;  %v4440_v3 = vsel %vm18444_vm0, %v14349_v49, 0.0  ;;  %vm18451_vm10 = vmmov %vm18450_vm2  ;;  %v14442_v58 = vmul.u32.u64.low 3817748708, %v14403_v7  ;;  %v14443_v59 = vmul.u32.u64.high 3817748708, %v14403_v7, %v14442_v58 }
 0x330   : > { %v4476_v39 = vsel %vm18446_vm5, %v4440_v3, 0.0  ;;  %vm14419_vm0 = vmand %vm788_vm9, %vm752_vm8  ;;  %vm754_vm5 = vcmp.ne.s32.totalorder %v566_v46, 0  ;;  %vm18078_vm8 = vcmp.lt.s32.totalorder %v14298_v35, 16  ;;  %vm18081_vm9 = vcmp.lt.s32.totalorder %v14311_v24, 16 }
 0x331   : > { %v4478_v29 = vadd.f32 %v4477_v60, %v4476_v39  ;;  %v14376_v44 = vpop.f32.mrb[2].mxu0  ;;  %v14450_v39 = vsel %vm14419_vm0, %v860_v17, %v14325_v27  ;;  %v14518_v58 = vadd.s32 224, %v13866_v5 }
 0x332   : > { %v14382_v57 = vpop.f32.mrb[3].mxu0  ;;  %v4443_v9 = vsel %vm18448_vm11, %v14376_v44, 0.0  ;;  %vm790_vm11 = vcmp.lt.s32.totalorder %v566_v46, 0  ;;  %18457 = vst [vmem:[#allocation58_spill] sm:$0xff] %v14450_v39 }
 0x333   : > { %v4442_v2 = vsel %vm18449_vm12, %v14382_v57, 0.0  ;;  %v4481_v19 = vsel %vm18451_vm10, %v4443_v9, 0.0  ;;  %vm18454_vm12 = vmmov %vm18450_vm2  ;;  %v608_v9 = vshrl.u32 %v14388_v54, 4  ;;  %v865_v54 = vadd.s32 18, %v599_v13 }
 0x334   : > { %v4479_v40 = vsel %vm18450_vm2, %v4442_v2, 0.0  ;;  %vm14437_vm2 = vmand %vm791_vm1, %vm755_vm4  ;;  %vm757_vm4 = vcmp.ne.s32.totalorder %v599_v13, 0 }
 0x335   : > { %v4480_v48 = vadd.f32 %v4479_v40, %v4478_v29  ;;  %v14405_v12 = vpop.f32.mrb[4].mxu0  ;;  %vm14454_vm10 = vmand %vm790_vm11, %vm754_vm5  ;;  %v588_v29 = vsub.s32 %v14217_v4, %v587_v36  ;;  %v14473_v4 = vsel %vm14437_vm2, %v863_v45, %v14367_v30  ;;  %vm18076_vm5 = vcmp.lt.s32.totalorder %v14316_v50, 16 }
 0x336   : > { %v14413_v37 = vpop.f32.mrb[5].mxu0  ;;  %v4445_v31 = vsel %vm18075_vm3, %v14405_v12, 0.0  ;;  %vm18460_vm1 = vmmov %vm18454_vm12  ;;  %18461 = vst [vmem:[#allocation59_spill] sm:$0xff] %v14473_v4  ;;  %vm18077_vm11 = vcmp.lt.s32.totalorder %v14332_v22, 16  ;;  %v14480_v63 = vsel %vm14454_vm10, %v862_v20, %v566_v46  ;;  %v14483_v36 = vadd.s32 232, %v13866_v5 }
 0x337   : > { %v4444_v38 = vsel %vm18190_vm6, %v14413_v37, 0.0  ;;  %v4482_v16 = vadd.f32 %v4481_v19, %v4480_v48  ;;  %v4485_v52 = vsel %vm18460_vm1, %v4445_v31, 0.0  ;;  %vm18462_vm0 = vmmov %vm18460_vm1  ;;  %18463 = vst [vmem:[#allocation60_spill] sm:$0xff] %v14480_v63  ;;  %vm756_vm1 = vcmp.ne.s32.totalorder %v588_v29, 0 }
 0x338   : > { %v4483_v21 = vsel %vm18454_vm12, %v4444_v38, 0.0  ;;  %vm793_vm12 = vcmp.lt.s32.totalorder %v599_v13, 0  ;;  %v641_v19 = vshrl.u32 %v14410_v6, 4  ;;  %v864_v62 = vadd.s32 18, %v588_v29 }
 0x339   : > { %v4484_v60 = vadd.f32 %v4483_v21, %v4482_v16  ;;  %v14445_v3 = vpop.f32.mrb[6].mxu0  ;;  %vm14489_vm2 = vmand %vm793_vm12, %vm757_vm4  ;;  %vm759_vm10 = vcmp.ne.s32.totalorder %v621_v8, 0  ;;  %v609_v31 = vmul.u32 18, %v608_v9  ;;  %vm795_vm4 = vcmp.lt.s32.totalorder %v621_v8, 0 }
 0x33a   : > { %v14460_v15 = vpop.f32.mrb[7].mxu0  ;;  %v4447_v27 = vsel %vm18073_vm15, %v14445_v3, 0.0  ;;  %vm18466_vm15 = vcmask 31744   ;;  %v14508_v6 = vsel %vm14489_vm2, %v865_v54, %v599_v13  ;;  %v630_v20 = vshrl.u32 %v14443_v59, 4 }
 0x33b   : > { %v4446_v2 = vsel %vm18074_vm7, %v14460_v15, 0.0  ;;  %v4486_v17 = vadd.f32 %v4485_v52, %v4484_v60  ;;  %v4489_v46 = vsel %vm18466_vm15, %v4447_v27, 0.0  ;;  %vm18467_vm12 = vmmov %vm18466_vm15  ;;  %vm18092_vm7 = vcmp.lt.s32.totalorder %v14337_v33, 16  ;;  %18468 = vst [vmem:[#allocation61_spill] sm:$0xff] %v14508_v6 }
 0x33c   : > { %v4487_v40 = vsel %vm18462_vm0, %v4446_v2, 0.0  ;;  %vm792_vm0 = vcmp.lt.s32.totalorder %v588_v29, 0  ;;  %vm18093_vm15 = vcmp.lt.s32.totalorder %v14341_v61, 16  ;;  %v867_v52 = vadd.s32 18, %v621_v8  ;;  %vm18471_vm2 = vmmov %vm18467_vm12 }
 0x33d   : > { %v4488_v48 = vadd.f32 %v4487_v40, %v4486_v17  ;;  %v14485_v51 = vpop.f32.mrb[8].mxu0  ;;  %vm14512_vm3 = vmand %vm792_vm0, %vm756_vm1  ;;  %v642_v9 = vmul.u32 18, %v641_v19  ;;  %v14523_v27 = vadd.s32 248, %v13866_v5  ;;  %v610_v59 = vsub.s32 %v14356_v0, %v609_v31 }
 0x33e   : > { %v14495_v28 = vpop.f32.mrb[9].mxu0  ;;  %v4449_v38 = vsel %vm18124_vm14, %v14485_v51, 0.0  ;;  %vm831_vm1 = vmand %vm795_vm4, %vm759_vm10  ;;  %v14532_v17 = vmul.u32.u64.low 3817748708, %v14483_v36  ;;  %v14533_v40 = vmul.u32.u64.high 3817748708, %v14483_v36, %v14532_v17  ;;  %v14543_v19 = vsel %vm14512_vm3, %v864_v62, %v588_v29 }
 0x33f   : > { %v4448_v16 = vsel %vm18188_vm13, %v14495_v28, 0.0  ;;  %v4490_v45 = vadd.f32 %v4489_v46, %v4488_v48  ;;  %v4493_v13 = vsel %vm18471_vm2, %v4449_v38, 0.0  ;;  %18472 = vst [vmem:[#allocation62_spill] sm:$0xff] %v14543_v19  ;;  %vm18473_vm0 = vmmov %vm18471_vm2  ;;  %vm18104_vm10 = vcmp.lt.s32.totalorder %v14353_v56, 16 }
 0x340   : > { %v4491_v21 = vsel %vm18467_vm12, %v4448_v16, 0.0  ;;  %vm18121_vm4 = vcmp.lt.s32.totalorder %v14364_v41, 16  ;;  %v631_v0 = vmul.u32 18, %v630_v20  ;;  %v14557_v55 = vsub.s32 %v14380_v14, %v642_v9  ;;  %vm18475_vm3 = vmmov %vm18473_vm0 }
 0x341   : > { %v4492_v60 = vadd.f32 %v4491_v21, %v4490_v45  ;;  %v14520_v42 = vpop.f32.mrb[10].mxu0  ;;  %v14549_v31 = vmul.u32.u64.low 3817748708, %v14518_v58  ;;  %v14550_v38 = vmul.u32.u64.high 3817748708, %v14518_v58, %v14549_v31  ;;  %v14554_v21 = vsel %vm831_vm1, %v867_v52, %v621_v8  ;;  %vm18476_vm1 = vmmov %vm18473_vm0 }
 0x342   : > { %v14526_v2 = vpop.f32.mrb[11].mxu0  ;;  %v4451_v54 = vsel %vm18078_vm8, %v14520_v42, 0.0  ;;  %18474 = vst [vmem:[#allocation63_spill] sm:$0xff] %v14554_v21  ;;  %v14560_v29 = vadd.s32 240, %v13866_v5  ;;  %vm758_vm12 = vcmp.ne.s32.totalorder %v610_v59, 0  ;;  %vm794_vm2 = vcmp.lt.s32.totalorder %v610_v59, 0 }
 0x343   : > { %v4450_v48 = vsel %vm18081_vm9, %v14526_v2, 0.0  ;;  %v4494_v30 = vadd.f32 %v4493_v13, %v4492_v60  ;;  %v4497_v62 = vsel %vm18475_vm3, %v4451_v54, 0.0  ;;  %v14566_v20 = vadd.s32 264, %v13866_v5 }
 0x344   : > { %v4495_v46 = vsel %vm18473_vm0, %v4450_v48, 0.0  ;;  %v866_v9 = vadd.s32 18, %v610_v59  ;;  %vm18113_vm0 = vcmp.lt.s32.totalorder %v14372_v32, 16  ;;  %vm18118_vm3 = vcmp.lt.s32.totalorder %v14450_v39, 16 }
 0x345   : > { %v4496_v16 = vadd.f32 %v4495_v46, %v4494_v30  ;;  %v14552_v45 = vpop.f32.mrb[12].mxu0  ;;  %v14578_v17 = vsub.s32 %v14403_v7, %v631_v0  ;;  %v14581_v54 = vmul.u32.u64.low 3817748708, %v14523_v27  ;;  %v14582_v48 = vmul.u32.u64.high 3817748708, %v14523_v27, %v14581_v54 }
 0x346   : > { %v14563_v60 = vpop.f32.mrb[13].mxu0  ;;  %v4453_v8 = vsel %vm18076_vm5, %v14552_v45, 0.0  ;;  %vm830_vm5 = vmand %vm794_vm2, %vm758_vm12  ;;  %vm797_vm8 = vcmp.lt.s32.totalorder %v14557_v55, 0  ;;  %v869_v0 = vadd.s32 18, %v14557_v55  ;;  %vm18119_vm2 = vcmp.lt.s32.totalorder %v14473_v4, 16 }
 0x347   : > { %v4452_v14 = vsel %vm18077_vm11, %v14563_v60, 0.0  ;;  %v4498_v52 = vadd.f32 %v4497_v62, %v4496_v16  ;;  %vm761_vm11 = vcmp.ne.s32.totalorder %v14557_v55, 0  ;;  %v4501_v62 = vsel %vm18476_vm1, %v4453_v8, 0.0  ;;  %vm18477_vm12 = vmmov %vm18476_vm1 }
 0x348   : > { %v4499_v13 = vsel %vm18476_vm1, %v4452_v14, 0.0  ;;  %v14590_v31 = vmul.u32.u64.low 3817748708, %v14560_v29  ;;  %v14591_v16 = vmul.u32.u64.high 3817748708, %v14560_v29, %v14590_v31  ;;  %v14599_v14 = vadd.s32 256, %v13866_v5 }
 0x349   : > { %v4500_v30 = vadd.f32 %v4499_v13, %v4498_v52  ;;  %v14584_v46 = vpop.f32.mrb[14].mxu0  ;;  %v663_v8 = vshrl.u32 %v14533_v40, 4  ;;  %vm18120_vm1 = vcmp.lt.s32.totalorder %v14480_v63, 16  ;;  %v14611_v50 = vsel %vm830_vm5, %v866_v9, %v610_v59  ;;  %vm18479_vm5 = vmmov %vm18477_vm12 }
 0x34a   : > { %v14594_v7 = vpop.f32.mrb[15].mxu0  ;;  %v4455_v52 = vsel %vm18092_vm7, %v14584_v46, 0.0  ;;  %18478 = vst [vmem:[#allocation64_spill] sm:$0xff] %v14611_v50  ;;  %vm760_vm9 = vcmp.ne.s32.totalorder %v14578_v17, 0  ;;  %v652_v33 = vshrl.u32 %v14550_v38, 4  ;;  %v14622_v40 = vadd.s32 280, %v13866_v5 }
 0x34b   : > { %v4454_v13 = vsel %vm18093_vm15, %v14594_v7, 0.0  ;;  %v4502_v54 = vadd.f32 %v4501_v62, %v4500_v30  ;;  %v14618_v61 = vmul.u32.u64.low 3817748708, %v14566_v20  ;;  %v14619_v30 = vmul.u32.u64.high 3817748708, %v14566_v20, %v14618_v61 }
 0x34c   : > { %v4503_v31 = vsel %vm18477_vm12, %v4454_v13, 0.0  ;;  %v4505_v62 = vsel %vm18477_vm12, %v4455_v52, 0.0  ;;  %v14628_v59 = vmul.u32.u64.low 3817748708, %v14599_v14  ;;  %v14629_v9 = vmul.u32.u64.high 3817748708, %v14599_v14, %v14628_v59 }
 0x34d   : > { %v4504_v22 = vadd.f32 %v4503_v31, %v4502_v54  ;;  %v14615_v35 = vpop.f32.mrb[16].mxu0  ;;  %v14632_v38 = vadd.s32 272, %v13866_v5  ;;  %v664_v24 = vmul.u32 18, %v663_v8  ;;  %vm18122_vm12 = vcmp.lt.s32.totalorder %v14508_v6, 16 }
 0x34e   : > { %v14625_v13 = vpop.f32.mrb[17].mxu0  ;;  %v4457_v54 = vsel %vm18104_vm10, %v14615_v35, 0.0  ;;  %vm18123_vm7 = vcmp.lt.s32.totalorder %v14543_v19, 16  ;;  %vm796_vm15 = vcmp.lt.s32.totalorder %v14578_v17, 0  ;;  %v653_v59 = vmul.u32 18, %v652_v33  ;;  %vm18480_vm10 = vmmov %vm18479_vm5 }
 0x34f   : > { %v4456_v61 = vsel %vm18121_vm4, %v14625_v13, 0.0  ;;  %v4506_v31 = vadd.f32 %v4505_v62, %v4504_v22  ;;  %v685_v5 = vshrl.u32 %v14582_v48, 4  ;;  %v674_v25 = vshrl.u32 %v14591_v16, 4 }
 0x350   : > { %v4507_v52 = vsel %vm18479_vm5, %v4456_v61, 0.0  ;;  %v14649_v41 = vmul.u32.u64.low 3817748708, %v14622_v40  ;;  %v14650_v22 = vmul.u32.u64.high 3817748708, %v14622_v40, %v14649_v41  ;;  %v4509_v8 = vsel %vm18480_vm10, %v4457_v54, 0.0  ;;  %vm833_vm5 = vmand %vm797_vm8, %vm761_vm11 }
 0x351   : > { %v4508_v53 = vadd.f32 %v4507_v52, %v4506_v31  ;;  %v14645_v56 = vpop.f32.mrb[18].mxu0  ;;  %v868_v33 = vadd.s32 18, %v14578_v17  ;;  %v14661_v48 = vmul.u32.u64.low 3817748708, %v14632_v38  ;;  %v14662_v61 = vmul.u32.u64.high 3817748708, %v14632_v38, %v14661_v48  ;;  %vm832_vm8 = vmand %vm796_vm15, %vm760_vm9 }
 0x352   : > { %v14653_v62 = vpop.f32.mrb[19].mxu0  ;;  %v4459_v16 = vsel %vm18113_vm0, %v14645_v56, 0.0  ;;  %v665_v31 = vsub.s32 %v14483_v36, %v664_v24  ;;  %vm18481_vm11 = vmmov %vm18480_vm10  ;;  %vm18127_vm10 = vcmp.lt.s32.totalorder %v14554_v21, 16  ;;  %v654_v48 = vsub.s32 %v14518_v58, %v653_v59 }
 0x353   : > { %v4458_v41 = vsel %vm18118_vm3, %v14653_v62, 0.0  ;;  %v4510_v54 = vadd.f32 %v4509_v8, %v4508_v53  ;;  %v686_v32 = vmul.u32 18, %v685_v5  ;;  %v14681_v39 = vsel %vm833_vm5, %v869_v0, %v14557_v55  ;;  %vm18483_vm0 = vmmov %vm18481_vm11 }
 0x354   : > { %v4511_v52 = vsel %vm18481_vm11, %v4458_v41, 0.0  ;;  %18482 = vst [vmem:[#allocation65_spill] sm:$0xff] %v14681_v39  ;;  %v675_v53 = vmul.u32 18, %v674_v25  ;;  %v707_v8 = vshrl.u32 %v14619_v30, 4  ;;  %v4513_v23 = vsel %vm18483_vm0, %v4459_v16, 0.0 }
 0x355   : > { %v4512_v1 = vadd.f32 %v4511_v52, %v4510_v54  ;;  %v14678_v18 = vpop.f32.mrb[20].mxu0  ;;  %vm18128_vm9 = vcmp.lt.s32.totalorder %v14611_v50, 16  ;;  %v14689_v24 = vsel %vm832_vm8, %v868_v33, %v14578_v17  ;;  %v696_v5 = vshrl.u32 %v14629_v9, 4 }
 0x356   : > { %v14685_v34 = vpop.f32.mrb[21].mxu0  ;;  %18484 = vst [vmem:[#allocation66_spill] sm:$0xff] %v14689_v24  ;;  %v4461_v36 = vsel %vm18119_vm2, %v14678_v18, 0.0  ;;  %vm763_vm15 = vcmp.ne.s32.totalorder %v665_v31, 0  ;;  %vm18125_vm5 = vcmp.lt.s32.totalorder %v14681_v39, 16  ;;  %vm799_vm11 = vcmp.lt.s32.totalorder %v665_v31, 0  ;;  %vm18485_vm2 = vmmov %vm18483_vm0 }
 0x357   : > { %v4460_v25 = vsel %vm18120_vm1, %v14685_v34, 0.0  ;;  %v4514_v58 = vadd.f32 %v4513_v23, %v4512_v1  ;;  %vm762_vm3 = vcmp.ne.s32.totalorder %v654_v48, 0  ;;  %v687_v17 = vsub.s32 %v14523_v27, %v686_v32  ;;  %vm18486_vm1 = vmmov %vm18485_vm2 }
 0x358   : > { %v4515_v55 = vsel %vm18483_vm0, %v4460_v25, 0.0  ;;  %vm798_vm8 = vcmp.lt.s32.totalorder %v654_v48, 0  ;;  %v676_v9 = vsub.s32 %v14560_v29, %v675_v53  ;;  %v708_v59 = vmul.u32 18, %v707_v8 }
 0x359   : > { %v4516_v0 = vadd.f32 %v4515_v55, %v4514_v58  ;;  %v14701_v30 = vpop.f32.mrb[22].mxu0  ;;  %v4517_v33 = vsel %vm18485_vm2, %v4461_v36, 0.0  ;;  %v697_v23 = vmul.u32 18, %v696_v5  ;;  %v729_v1 = vshrl.u32 %v14650_v22, 4  ;;  %vm14719_vm2 = vmand %vm799_vm11, %vm763_vm15 }
 0x35a   : > { %v14705_v16 = vpop.f32.mrb[23].mxu0  ;;  %v718_v41 = vshrl.u32 %v14662_v61, 4  ;;  %v4463_v32 = vsel %vm18122_vm12, %v14701_v30, 0.0  ;;  %vm18126_vm0 = vcmp.lt.s32.totalorder %v14689_v24, 16  ;;  %v871_v22 = vadd.s32 18, %v665_v31  ;;  %vm834_vm12 = vmand %vm798_vm8, %vm762_vm3 }
 0x35b   : > { %v4462_v27 = vsel %vm18123_vm7, %v14705_v16, 0.0  ;;  %v4518_v54 = vadd.f32 %v4517_v33, %v4516_v0  ;;  %v870_v61 = vadd.s32 18, %v654_v48  ;;  %vm765_vm4 = vcmp.ne.s32.totalorder %v687_v17, 0  ;;  %vm18489_vm15 = vmmov %vm18486_vm1 }
 0x35c   : > { %v4519_v29 = vsel %vm18486_vm1, %v4462_v27, 0.0  ;;  %vm801_vm7 = vcmp.lt.s32.totalorder %v687_v17, 0  ;;  %vm764_vm14 = vcmp.ne.s32.totalorder %v676_v9, 0  ;;  %v709_v5 = vsub.s32 %v14566_v20, %v708_v59 }
 0x35d   : > { %v4520_v53 = vadd.f32 %v4519_v29, %v4518_v54  ;;  %v14723_v8 = vpop.f32.mrb[24].mxu0  ;;  %v4521_v36 = vsel %vm18486_vm1, %v4463_v32, 0.0  ;;  %v698_v58 = vsub.s32 %v14599_v14, %v697_v23  ;;  %v730_v55 = vmul.u32 18, %v729_v1  ;;  %vm14749_vm11 = vmand %vm801_vm7, %vm765_vm4 }
 0x35e   : > { %v14729_v25 = vpop.f32.mrb[25].mxu0  ;;  %v719_v0 = vmul.u32 18, %v718_v41  ;;  %v4465_v33 = vsel %vm18127_vm10, %v14723_v8, 0.0  ;;  %vm800_vm3 = vcmp.lt.s32.totalorder %v676_v9, 0  ;;  %v14741_v59 = vsel %vm14719_vm2, %v871_v22, %v665_v31  ;;  %vm18494_vm4 = vmmov %vm18489_vm15 }
 0x35f   : > { %v4464_v27 = vsel %vm18128_vm9, %v14729_v25, 0.0  ;;  %v4522_v54 = vadd.f32 %v4521_v36, %v4520_v53  ;;  %18490 = vst [vmem:[#allocation67_spill] sm:$0xff] %v14741_v59  ;;  %v14743_v32 = vsel %vm834_vm12, %v870_v61, %v654_v48  ;;  %v873_v14 = vadd.s32 18, %v687_v17  ;;  %vm836_vm12 = vmand %vm800_vm3, %vm764_vm14 }
 0x360   : > { %v4523_v20 = vsel %vm18489_vm15, %v4464_v27, 0.0  ;;  %18491 = vst [vmem:[#allocation68_spill] sm:$0xff] %v14743_v32  ;;  %v872_v29 = vadd.s32 18, %v676_v9  ;;  %vm767_vm8 = vcmp.ne.s32.totalorder %v709_v5, 0  ;;  %vm803_vm1 = vcmp.lt.s32.totalorder %v709_v5, 0 }
 0x361   : > { %v4524_v23 = vadd.f32 %v4523_v20, %v4522_v54  ;;  %v14745_v1 = vpop.f32.mrb[26].mxu0  ;;  %v4525_v53 = vsel %vm18489_vm15, %v4465_v33, 0.0  ;;  %vm766_vm2 = vcmp.ne.s32.totalorder %v698_v58, 0  ;;  %v731_v31 = vsub.s32 %v14622_v40, %v730_v55  ;;  %vm839_vm3 = vmand %vm803_vm1, %vm767_vm8 }
 0x362   : > { %v14754_v52 = vpop.f32.mrb[27].mxu0  ;;  %v720_v48 = vsub.s32 %v14632_v38, %v719_v0  ;;  %v4467_v22 = vsel %vm18125_vm5, %v14745_v1, 0.0  ;;  %vm802_vm7 = vcmp.lt.s32.totalorder %v698_v58, 0  ;;  %vm18184_vm15 = vcmp.lt.s32.totalorder %v14741_v59, 16  ;;  %vm18497_vm5 = vmmov %vm18494_vm4 }
 0x363   : > { %v4466_v61 = vsel %vm18126_vm0, %v14754_v52, 0.0  ;;  %v4526_v36 = vadd.f32 %v4525_v53, %v4524_v23  ;;  %vm18183_vm14 = vcmp.lt.s32.totalorder %v14743_v32, 16  ;;  %v875_v27 = vadd.s32 18, %v709_v5  ;;  %vm18498_vm8 = vmmov %vm18497_vm5 }
 0x364   : > { %v4527_v33 = vsel %vm18494_vm4, %v4466_v61, 0.0  ;;  %v14772_v38 = vsel %vm14749_vm11, %v873_v14, %v687_v17  ;;  %v14774_v0 = vsel %vm836_vm12, %v872_v29, %v676_v9  ;;  %v874_v54 = vadd.s32 18, %v698_v58  ;;  %vm838_vm4 = vmand %vm802_vm7, %vm766_vm2 }
 0x365   : > { %v4528_v40 = vadd.f32 %v4527_v33, %v4526_v36  ;;  %v14768_v55 = vpop.f32.mrb[28].mxu0  ;;  %18495 = vst [vmem:[#allocation69_spill] sm:$0xff] %v14772_v38  ;;  %18496 = vst [vmem:[#allocation70_spill] sm:$0xff] %v14774_v0  ;;  %v4529_v20 = vsel %vm18497_vm5, %v4467_v22, 0.0  ;;  %vm769_vm0 = vcmp.ne.s32.totalorder %v731_v31, 0  ;;  %vm805_vm10 = vcmp.lt.s32.totalorder %v731_v31, 0 }
 0x366   : > { %v14779_v23 = vpop.f32.mrb[29].mxu0  ;;  %vm768_vm9 = vcmp.ne.s32.totalorder %v720_v48, 0  ;;  %v4469_v17 = vsel %vm18184_vm15, %v14768_v55, 0.0  ;;  %vm804_vm11 = vcmp.lt.s32.totalorder %v720_v48, 0  ;;  %vm18166_vm5 = vcmp.lt.s32.totalorder %v14772_v38, 16  ;;  %vm841_vm12 = vmand %vm805_vm10, %vm769_vm0 }
 0x367   : > { %v4468_v9 = vsel %vm18183_vm14, %v14779_v23, 0.0  ;;  %v4530_v14 = vadd.f32 %v4529_v20, %v4528_v40  ;;  %vm18165_vm1 = vcmp.lt.s32.totalorder %v14774_v0, 16  ;;  %v14791_v29 = vsel %vm839_vm3, %v875_v27, %v709_v5  ;;  %vm18501_vm2 = vmmov %vm18498_vm8 }
 0x368   : > { %v4531_v41 = vsel %vm18498_vm8, %v4468_v9, 0.0  ;;  %18499 = vst [vmem:[#allocation71_spill] sm:$0xff] %v14791_v29  ;;  %v14795_v61 = vsel %vm838_vm4, %v874_v54, %v698_v58  ;;  %v877_v36 = vadd.s32 18, %v731_v31  ;;  %v876_v33 = vadd.s32 18, %v720_v48  ;;  %vm840_vm7 = vmand %vm804_vm11, %vm768_vm9 }
 0x369   : > { %v4532_v53 = vadd.f32 %v4531_v41, %v4530_v14  ;;  %v14793_v22 = vpop.f32.mrb[30].mxu0  ;;  %18500 = vst [vmem:[#allocation72_spill] sm:$0xff] %v14795_v61  ;;  %v4533_v59 = vsel %vm18501_vm2, %v4469_v17, 0.0  ;;  %vm18502_vm3 = vmmov %vm18501_vm2  ;;  %vm18164_vm10 = vcmp.lt.s32.totalorder %v14791_v29, 16  ;;  %vm18163_vm0 = vcmp.lt.s32.totalorder %v14795_v61, 16 }
 0x36a   : > { %v14798_v40 = vpop.f32.mrb[31].mxu0  ;;  %v4471_v20 = vsel %vm18166_vm5, %v14793_v22, 0.0  ;;  %v14810_v9 = vsel %vm841_vm12, %v877_v36, %v731_v31  ;;  %v14812_v14 = vsel %vm840_vm7, %v876_v33, %v720_v48  ;;  %vm18505_vm9 = vmmov %vm18501_vm2 }
 0x36b   : > { %v4470_v5 = vsel %vm18165_vm1, %v14798_v40, 0.0  ;;  %v4534_v27 = vadd.f32 %v4533_v59, %v4532_v53  ;;  %18503 = vst [vmem:[#allocation73_spill] sm:$0xff] %v14810_v9  ;;  %18504 = vst [vmem:[#allocation74_spill] sm:$0xff] %v14812_v14  ;;  %v4537_v41 = vsel %vm18505_vm9, %v4471_v20, 0.0  ;;  %vm18162_vm11 = vcmp.lt.s32.totalorder %v14810_v9, 16 }
 0x36c   : > { %v4535_v58 = vsel %vm18502_vm3, %v4470_v5, 0.0  ;;  %vm18506_vm4 = vmmov %vm18501_vm2  ;;  %vm18161_vm8 = vcmp.lt.s32.totalorder %v14812_v14, 16  ;;  %vm18509_vm3 = vcmp.lt.s32.totalorder %v14099_v47, 16  ;;  %vm18510_vm9 = vcmp.lt.s32.totalorder %v14093_v11, 16 }
 0x36d   : > { %v4536_v54 = vadd.f32 %v4535_v58, %v4534_v27  ;;  %v11402_v17 = vpop.f32.mrb[32].mxu0  ;;  %vm18507_vm12 = vmmov %vm18501_vm2 }
 0x36e   : > { %v4385_v38 = vpop.f32.mrb[33].mxu0  ;;  %v4473_v0 = vsel %vm18164_vm10, %v11402_v17, 0.0  ;;  %vm18508_vm7 = vmmov %vm18501_vm2 }
 0x36f   : > { %v4472_v59 = vsel %vm18163_vm0, %v4385_v38, 0.0  ;;  %v4538_v53 = vadd.f32 %v4537_v41, %v4536_v54  ;;  %v4541_v48 = vsel %vm18507_vm12, %v4473_v0, 0.0  ;;  %vm18512_vm12 = vcmp.lt.s32.totalorder %v14110_v10, 16 }
 0x370   : > { %v4539_v5 = vsel %vm18506_vm4, %v4472_v59, 0.0  ;;  %vm18511_vm4 = vcmp.lt.s32.totalorder %v14115_v26, 16 }
 0x371   : > { %v4540_v31 = vadd.f32 %v4539_v5, %v4538_v53  ;;  %v11405_v36 = vpop.f32.mrb[34].mxu0 }
 0x372   : > { %v4395_v33 = vpop.f32.mrb[35].mxu0  ;;  %v4475_v20 = vsel %vm18162_vm11, %v11405_v36, 0.0 }
 0x373   : > { %v4474_v27 = vsel %vm18161_vm8, %v4395_v33, 0.0  ;;  %v4542_v58 = vadd.f32 %v4541_v48, %v4540_v31  ;;  %v4545_v59 = vsel %vm18508_vm7, %v4475_v20, 0.0  ;;  %vm18514_vm7 = vmmov %vm18501_vm2 }
 0x374   : > { %v4543_v54 = vsel %vm18501_vm2, %v4474_v27, 0.0 }
 0x375   : > { %v4544_v41 = vadd.f32 %v4543_v54, %v4542_v58  ;;  %v18515_v54 = vld [vmem:[#allocation10_spill] sm:$0xff] }
 0x377   : > { %v4546_v29 = vadd.f32 %v4545_v59, %v4544_v41 }
 0x379   : > { %v4547_v61 = vrot.slane %v4546_v29, 4 }
 0x37b   : > { %v4548_v32 = vadd.f32 %v4547_v61, %v4546_v29 }
 0x37d   : > { %v4549_v53 = vrot.slane %v4548_v32, 2 }
 0x37f   : > { %v4550_v5 = vadd.f32 %v4549_v53, %v4548_v32 }
 0x381   : > { %v4551_v39 = vrot.slane %v4550_v5, 1 }
 0x383   : > { %v4552_v0 = vadd.f32 %v4551_v39, %v4550_v5 }
 0x385   : > { %v4553_v24 = vmul.f32 0.00390625, %v4552_v0  ;;  %v18518_v0 = vld [vmem:[#allocation13_spill] sm:$0xff] }
 0x387   : > { %v14830_v9 = vsub.f32 %v14349_v49, %v4553_v24  ;;  %v14833_v14 = vsub.f32 %v14327_v43, %v4553_v24  ;;  %v14836_v31 = vsub.f32 %v14382_v57, %v4553_v24  ;;  %v14839_v48 = vsub.f32 %v14376_v44, %v4553_v24 }
 0x388   : > { %v14842_v20 = vsub.f32 %v14413_v37, %v4553_v24  ;;  %v14845_v32 = vsub.f32 %v14405_v12, %v4553_v24  ;;  %v14848_v39 = vsub.f32 %v14460_v15, %v4553_v24  ;;  %v14851_v49 = vsub.f32 %v14445_v3, %v4553_v24 }
 0x389   : > { %v14854_v43 = vsub.f32 %v14495_v28, %v4553_v24  ;;  %v14857_v57 = vsub.f32 %v14485_v51, %v4553_v24  ;;  %v14860_v44 = vsub.f32 %v14526_v2, %v4553_v24  ;;  %v14863_v37 = vsub.f32 %v14520_v42, %v4553_v24 }
 0x38a   : > { %v14866_v12 = vsub.f32 %v14563_v60, %v4553_v24  ;;  %v14869_v15 = vsub.f32 %v14552_v45, %v4553_v24  ;;  %v14872_v3 = vsub.f32 %v14594_v7, %v4553_v24  ;;  %v14875_v28 = vsub.f32 %v14584_v46, %v4553_v24 }
 0x38b   : > { %v14878_v51 = vsub.f32 %v14625_v13, %v4553_v24  ;;  %v14881_v2 = vsub.f32 %v14615_v35, %v4553_v24  ;;  %v14884_v42 = vsub.f32 %v14653_v62, %v4553_v24  ;;  %v14887_v60 = vsub.f32 %v14645_v56, %v4553_v24 }
 0x38c   : > { %v14890_v45 = vsub.f32 %v14685_v34, %v4553_v24  ;;  %v14893_v7 = vsub.f32 %v14678_v18, %v4553_v24  ;;  %v14896_v46 = vsub.f32 %v14705_v16, %v4553_v24  ;;  %v14899_v13 = vsub.f32 %v14701_v30, %v4553_v24 }
 0x38d   : > { %v14902_v35 = vsub.f32 %v14729_v25, %v4553_v24  ;;  %v14905_v62 = vsub.f32 %v14723_v8, %v4553_v24  ;;  %v14908_v56 = vsub.f32 %v14754_v52, %v4553_v24  ;;  %v14911_v34 = vsub.f32 %v14745_v1, %v4553_v24 }
 0x38e   : > { %v14914_v18 = vsub.f32 %v14779_v23, %v4553_v24  ;;  %v14917_v16 = vsub.f32 %v14768_v55, %v4553_v24  ;;  %v14920_v30 = vsub.f32 %v14798_v40, %v4553_v24  ;;  %v14923_v25 = vsub.f32 %v14793_v22, %v4553_v24 }
 0x38f   : > { %v14925_v8 = vsub.f32 %v4385_v38, %v4553_v24  ;;  %v14927_v29 = vsub.f32 %v11402_v17, %v4553_v24  ;;  %v14929_v52 = vsub.f32 %v4395_v33, %v4553_v24  ;;  %v14931_v1 = vsub.f32 %v11405_v36, %v4553_v24 }
 0x390   : > { %v4590_v23 = vsel %vm18509_vm3, %v14830_v9, 0.0  ;;  %v4591_v55 = vsel %vm18510_vm9, %v14833_v14, 0.0  ;;  %v4592_v22 = vsel %vm18511_vm4, %v14836_v31, 0.0  ;;  %v4593_v40 = vsel %vm18512_vm12, %v14839_v48, 0.0  ;;  %vm18517_vm9 = vmmov %vm18501_vm2 }
 0x391   : > { %v4626_v38 = vmul.f32 %v4590_v23, %v4590_v23  ;;  %v4627_v61 = vmul.f32 %v4591_v55, %v4591_v55  ;;  %v4628_v24 = vmul.f32 %v4592_v22, %v4592_v22  ;;  %v4594_v36 = vsel %vm18190_vm6, %v14842_v20, 0.0  ;;  %vm18520_vm12 = vmmov %vm18501_vm2 }
 0x392   : > { %v4629_v33 = vmul.f32 %v4593_v40, %v4593_v40  ;;  %vm18516_vm3 = vcmp.lt.s32.totalorder %v18515_v54, 16  ;;  %v4630_v53 = vmul.f32 %v4594_v36, %v4594_v36  ;;  %vm18519_vm4 = vcmp.lt.s32.totalorder %v18518_v0, 16 }
 0x393   : > { %v4662_v27 = vsel %vm18501_vm2, %v4626_v38, 0.0  ;;  %v4663_v58 = vsel %vm18514_vm7, %v4627_v61, 0.0  ;;  %v4595_v41 = vsel %vm18516_vm3, %v14845_v32, 0.0  ;;  %v4665_v5 = vsel %vm18517_vm9, %v4628_v24, 0.0  ;;  %v18521_v38 = vld [vmem:[#allocation12_spill] sm:$0xff]  ;;  %vm18524_vm3 = vmmov %vm18514_vm7 }
 0x394   : > { %v4664_v59 = vadd.f32 %v4663_v58, %v4662_v27  ;;  %v4596_v23 = vsel %vm18519_vm4, %v14848_v39, 0.0  ;;  %v4631_v22 = vmul.f32 %v4595_v41, %v4595_v41  ;;  %v4667_v40 = vsel %vm18520_vm12, %v4629_v33, 0.0  ;;  %v18525_v41 = vld [vmem:[#allocation14_spill] sm:$0xff]  ;;  %vm18527_vm4 = vmmov %vm18524_vm3 }
 0x395   : > { %vm18522_vm2 = vcmp.lt.s32.totalorder %v18521_v38, 16  ;;  %v4632_v17 = vmul.f32 %v4596_v23, %v4596_v23  ;;  %v4669_v54 = vsel %vm18514_vm7, %v4630_v53, 0.0  ;;  %v4598_v24 = vsel %vm18188_vm13, %v14854_v43, 0.0  ;;  %v18528_v23 = vld [vmem:[#allocation50_spill] sm:$0xff] }
 0x396   : > { %v4666_v55 = vadd.f32 %v4665_v5, %v4664_v59  ;;  %v4597_v61 = vsel %vm18522_vm2, %v14851_v49, 0.0  ;;  %v4671_v0 = vsel %vm18524_vm3, %v4631_v22, 0.0  ;;  %vm18526_vm9 = vcmp.lt.s32.totalorder %v18525_v41, 16  ;;  %vm18530_vm2 = vmmov %vm18524_vm3 }
 0x397   : > { %v4633_v58 = vmul.f32 %v4597_v61, %v4597_v61  ;;  %v4599_v33 = vsel %vm18526_vm9, %v14857_v57, 0.0  ;;  %v4634_v5 = vmul.f32 %v4598_v24, %v4598_v24  ;;  %v4673_v38 = vsel %vm18527_vm4, %v4632_v17, 0.0  ;;  %vm18533_vm3 = vmmov %vm18530_vm2 }
 0x398   : > { %v4668_v10 = vadd.f32 %v4667_v40, %v4666_v55  ;;  %vm18529_vm12 = vcmp.lt.s32.totalorder %v18528_v23, 16  ;;  %v4635_v40 = vmul.f32 %v4599_v33, %v4599_v33  ;;  %vm18536_vm4 = vmmov %vm18530_vm2 }
 0x399   : > { %v4600_v53 = vsel %vm18529_vm12, %v14860_v44, 0.0  ;;  %v4675_v36 = vsel %vm18530_vm2, %v4633_v58, 0.0  ;;  %v4677_v41 = vsel %vm18533_vm3, %v4634_v5, 0.0  ;;  %vm18541_vm3 = vmmov %vm18530_vm2 }
 0x39a   : > { %v4670_v27 = vadd.f32 %v4669_v54, %v4668_v10  ;;  %v18531_v10 = vld [vmem:[#allocation16_spill] sm:$0xff]  ;;  %v4636_v61 = vmul.f32 %v4600_v53, %v4600_v53  ;;  %v4679_v23 = vsel %vm18536_vm4, %v4635_v40, 0.0  ;;  %vm18544_vm4 = vmmov %vm18530_vm2 }
 0x39b   : > { %vm18532_vm7 = vcmp.lt.s32.totalorder %v18531_v10, 16 }
 0x39c   : > { %v4672_v59 = vadd.f32 %v4671_v0, %v4670_v27  ;;  %v4601_v54 = vsel %vm18532_vm7, %v14863_v37, 0.0  ;;  %v18534_v0 = vld [vmem:[#allocation52_spill] sm:$0xff]  ;;  %v4681_v10 = vsel %vm18530_vm2, %v4636_v61, 0.0 }
 0x39d   : > { %vm18535_vm9 = vcmp.lt.s32.totalorder %v18534_v0, 16  ;;  %v4637_v27 = vmul.f32 %v4601_v54, %v4601_v54 }
 0x39e   : > { %v4674_v55 = vadd.f32 %v4673_v38, %v4672_v59  ;;  %v4602_v17 = vsel %vm18535_vm9, %v14866_v12, 0.0  ;;  %v18537_v38 = vld [vmem:[#allocation51_spill] sm:$0xff] }
 0x39f   : > { %vm18538_vm12 = vcmp.lt.s32.totalorder %v18537_v38, 16  ;;  %v4638_v59 = vmul.f32 %v4602_v17, %v4602_v17  ;;  %v4683_v0 = vsel %vm18541_vm3, %v4637_v27, 0.0  ;;  %vm18549_vm3 = vmmov %vm18530_vm2 }
 0x3a0   : > { %v4676_v22 = vadd.f32 %v4675_v36, %v4674_v55  ;;  %v4603_v58 = vsel %vm18538_vm12, %v14869_v15, 0.0  ;;  %v18539_v36 = vld [vmem:[#allocation54_spill] sm:$0xff] }
 0x3a1   : > { %vm18540_vm7 = vcmp.lt.s32.totalorder %v18539_v36, 16  ;;  %v4639_v55 = vmul.f32 %v4603_v58, %v4603_v58  ;;  %v4685_v38 = vsel %vm18544_vm4, %v4638_v59, 0.0  ;;  %vm18552_vm4 = vmmov %vm18530_vm2 }
 0x3a2   : > { %v4678_v24 = vadd.f32 %v4677_v41, %v4676_v22  ;;  %v4604_v5 = vsel %vm18540_vm7, %v14872_v3, 0.0  ;;  %v18542_v41 = vld [vmem:[#allocation53_spill] sm:$0xff] }
 0x3a3   : > { %vm18543_vm9 = vcmp.lt.s32.totalorder %v18542_v41, 16  ;;  %v4640_v22 = vmul.f32 %v4604_v5, %v4604_v5  ;;  %v4687_v36 = vsel %vm18530_vm2, %v4639_v55, 0.0 }
 0x3a4   : > { %v4680_v33 = vadd.f32 %v4679_v23, %v4678_v24  ;;  %v4605_v40 = vsel %vm18543_vm9, %v14875_v28, 0.0  ;;  %v18545_v23 = vld [vmem:[#allocation56_spill] sm:$0xff] }
 0x3a5   : > { %vm18546_vm12 = vcmp.lt.s32.totalorder %v18545_v23, 16  ;;  %v4641_v24 = vmul.f32 %v4605_v40, %v4605_v40  ;;  %v4689_v41 = vsel %vm18549_vm3, %v4640_v22, 0.0  ;;  %vm18556_vm3 = vmmov %vm18530_vm2 }
 0x3a6   : > { %v4682_v53 = vadd.f32 %v4681_v10, %v4680_v33  ;;  %v4606_v61 = vsel %vm18546_vm12, %v14878_v51, 0.0  ;;  %v18547_v10 = vld [vmem:[#allocation55_spill] sm:$0xff] }
 0x3a7   : > { %vm18548_vm7 = vcmp.lt.s32.totalorder %v18547_v10, 16  ;;  %v4642_v33 = vmul.f32 %v4606_v61, %v4606_v61  ;;  %v4691_v23 = vsel %vm18552_vm4, %v4641_v24, 0.0  ;;  %vm18558_vm4 = vmmov %vm18530_vm2 }
 0x3a8   : > { %v4684_v54 = vadd.f32 %v4683_v0, %v4682_v53  ;;  %v4607_v27 = vsel %vm18548_vm7, %v14881_v2, 0.0  ;;  %v18550_v0 = vld [vmem:[#allocation58_spill] sm:$0xff]  ;;  %vm18555_vm7 = vcmp.lt.s32.totalorder %v14480_v63, 16 }
 0x3a9   : > { %vm18551_vm9 = vcmp.lt.s32.totalorder %v18550_v0, 16  ;;  %v4643_v53 = vmul.f32 %v4607_v27, %v4607_v27  ;;  %v4693_v10 = vsel %vm18530_vm2, %v4642_v33, 0.0 }
 0x3aa   : > { %v4686_v17 = vadd.f32 %v4685_v38, %v4684_v54  ;;  %v4608_v59 = vsel %vm18551_vm9, %v14884_v42, 0.0  ;;  %v18553_v38 = vld [vmem:[#allocation57_spill] sm:$0xff]  ;;  %vm18557_vm9 = vcmp.lt.s32.totalorder %v14473_v4, 16 }
 0x3ab   : > { %vm18554_vm12 = vcmp.lt.s32.totalorder %v18553_v38, 16  ;;  %v4644_v54 = vmul.f32 %v4608_v59, %v4608_v59 }
 0x3ac   : > { %v4688_v58 = vadd.f32 %v4687_v36, %v4686_v17  ;;  %v4609_v55 = vsel %vm18554_vm12, %v14887_v60, 0.0  ;;  %v4610_v36 = vsel %vm18555_vm7, %v14890_v45, 0.0  ;;  %v4695_v17 = vsel %vm18556_vm3, %v4643_v53, 0.0  ;;  %vm18561_vm3 = vmmov %vm18530_vm2 }
 0x3ad   : > { %v4645_v61 = vmul.f32 %v4609_v55, %v4609_v55  ;;  %v4646_v27 = vmul.f32 %v4610_v36, %v4610_v36  ;;  %vm18559_vm12 = vcmp.lt.s32.totalorder %v14543_v19, 16  ;;  %vm18560_vm7 = vcmp.lt.s32.totalorder %v14508_v6, 16 }
 0x3ae   : > { %v4690_v5 = vadd.f32 %v4689_v41, %v4688_v58  ;;  %v4611_v41 = vsel %vm18557_vm9, %v14893_v7, 0.0  ;;  %v4697_v58 = vsel %vm18558_vm4, %v4644_v54, 0.0  ;;  %vm18562_vm9 = vcmp.lt.s32.totalorder %v14611_v50, 16  ;;  %vm18563_vm4 = vmmov %vm18530_vm2 }
 0x3af   : > { %v4647_v59 = vmul.f32 %v4611_v41, %v4611_v41  ;;  %v4614_v54 = vsel %vm18562_vm9, %v14902_v35, 0.0 }
 0x3b0   : > { %v4692_v40 = vadd.f32 %v4691_v23, %v4690_v5  ;;  %v4612_v23 = vsel %vm18559_vm12, %v14896_v46, 0.0  ;;  %v4699_v5 = vsel %vm18530_vm2, %v4645_v61, 0.0  ;;  %vm18564_vm12 = vcmp.lt.s32.totalorder %v14554_v21, 16 }
 0x3b1   : > { %v4648_v55 = vmul.f32 %v4612_v23, %v4612_v23  ;;  %v4615_v61 = vsel %vm18564_vm12, %v14905_v62, 0.0  ;;  %v18565_v23 = vld [vmem:[#allocation66_spill] sm:$0xff]  ;;  %vm18572_vm12 = vmmov %vm18530_vm2 }
 0x3b2   : > { %v4694_v22 = vadd.f32 %v4693_v10, %v4692_v40  ;;  %v4613_v10 = vsel %vm18560_vm7, %v14899_v13, 0.0  ;;  %v4701_v40 = vsel %vm18561_vm3, %v4646_v27, 0.0  ;;  %vm18566_vm7 = vcmp.lt.s32.totalorder %v18565_v23, 16  ;;  %vm18567_vm3 = vmmov %vm18530_vm2 }
 0x3b3   : > { %v4616_v27 = vsel %vm18566_vm7, %v14908_v56, 0.0  ;;  %vm18575_vm7 = vmmov %vm18530_vm2 }
 0x3b4   : > { %v4696_v24 = vadd.f32 %v4695_v17, %v4694_v22  ;;  %v4649_v22 = vmul.f32 %v4613_v10, %v4613_v10  ;;  %v4703_v17 = vsel %vm18563_vm4, %v4647_v59, 0.0  ;;  %v18568_v10 = vld [vmem:[#allocation65_spill] sm:$0xff]  ;;  %vm18570_vm4 = vmmov %vm18530_vm2 }
 0x3b5   : > { %vm18569_vm9 = vcmp.lt.s32.totalorder %v18568_v10, 16 }
 0x3b6   : > { %v4698_v33 = vadd.f32 %v4697_v58, %v4696_v24  ;;  %v4650_v24 = vmul.f32 %v4614_v54, %v4614_v54  ;;  %v4705_v58 = vsel %vm18530_vm2, %v4648_v55, 0.0  ;;  %v4707_v50 = vsel %vm18567_vm3, %v4649_v22, 0.0  ;;  %vm18577_vm3 = vmmov %vm18530_vm2 }
 0x3b7   : > { %v4617_v59 = vsel %vm18569_vm9, %v14911_v34, 0.0  ;;  %v4618_v55 = vsel %vm18183_vm14, %v14914_v18, 0.0  ;;  %v4619_v22 = vsel %vm18184_vm15, %v14917_v16, 0.0  ;;  %vm18579_vm9 = vmmov %vm18530_vm2 }
 0x3b8   : > { %v4700_v53 = vadd.f32 %v4699_v5, %v4698_v33  ;;  %v4651_v5 = vmul.f32 %v4615_v61, %v4615_v61  ;;  %v4709_v21 = vsel %vm18570_vm4, %v4650_v24, 0.0  ;;  %v4620_v24 = vsel %vm18165_vm1, %v14920_v30, 0.0  ;;  %vm18581_vm4 = vmmov %vm18530_vm2 }
 0x3ba   : > { %v4702_v36 = vadd.f32 %v4701_v40, %v4700_v53  ;;  %v4652_v40 = vmul.f32 %v4616_v27, %v4616_v27  ;;  %v4711_v23 = vsel %vm18572_vm12, %v4651_v5, 0.0  ;;  %v4621_v5 = vsel %vm18166_vm5, %v14923_v25, 0.0  ;;  %vm18583_vm12 = vmmov %vm18530_vm2 }
 0x3bc   : > { %v4704_v41 = vadd.f32 %v4703_v17, %v4702_v36  ;;  %v4653_v17 = vmul.f32 %v4617_v59, %v4617_v59  ;;  %v4713_v10 = vsel %vm18530_vm2, %v4652_v40, 0.0  ;;  %v4622_v40 = vsel %vm18163_vm0, %v14925_v8, 0.0 }
 0x3be   : > { %v4706_v33 = vadd.f32 %v4705_v58, %v4704_v41  ;;  %v4654_v58 = vmul.f32 %v4618_v55, %v4618_v55  ;;  %v4715_v54 = vsel %vm18575_vm7, %v4653_v17, 0.0  ;;  %v4623_v17 = vsel %vm18164_vm10, %v14927_v29, 0.0  ;;  %vm18585_vm7 = vmmov %vm18530_vm2 }
 0x3bf   : > { %vm18596_vm10 = vcmask 1045504  }
 0x3c0   : > { %v4708_v53 = vadd.f32 %v4707_v50, %v4706_v33  ;;  %v4655_v33 = vmul.f32 %v4619_v22, %v4619_v22  ;;  %v4717_v61 = vsel %vm18577_vm3, %v4654_v58, 0.0  ;;  %v4624_v58 = vsel %vm18161_vm8, %v14929_v52, 0.0  ;;  %vm18586_vm3 = vmmov %vm18530_vm2 }
 0x3c1   : > { %vm18593_vm8 = vcmask 1041408   ;;  %vm18597_vm1 = vmmov %vm18596_vm10 }
 0x3c2   : > { %v4710_v36 = vadd.f32 %v4709_v21, %v4708_v53  ;;  %v4656_v53 = vmul.f32 %v4620_v24, %v4620_v24  ;;  %v4719_v50 = vsel %vm18579_vm9, %v4655_v33, 0.0  ;;  %v4625_v33 = vsel %vm18162_vm11, %v14931_v1, 0.0  ;;  %vm18587_vm9 = vmmov %vm18530_vm2 }
 0x3c3   : > { %vm18594_vm11 = vmmov %vm18593_vm8 }
 0x3c4   : > { %v4712_v41 = vadd.f32 %v4711_v23, %v4710_v36  ;;  %v4657_v36 = vmul.f32 %v4621_v5, %v4621_v5  ;;  %v4721_v21 = vsel %vm18581_vm4, %v4656_v53, 0.0  ;;  %vm18589_vm4 = vcmask 1043456   ;;  %vm18595_vm0 = vmmov %vm18593_vm8 }
 0x3c5   : > { %vm18598_vm5 = vmmov %vm18597_vm1 }
 0x3c6   : > { %v4714_v27 = vadd.f32 %v4713_v10, %v4712_v41  ;;  %v18580_v10 = vld [vmem:[#allocation71_spill] sm:$0xff]  ;;  %v4658_v41 = vmul.f32 %v4622_v40, %v4622_v40  ;;  %v4723_v23 = vsel %vm18583_vm12, %v4657_v36, 0.0  ;;  %v4661_v40 = vmul.f32 %v4625_v33, %v4625_v33  ;;  %vm18590_vm12 = vmmov %vm18589_vm4 }
 0x3c8   : > { %v4716_v59 = vadd.f32 %v4715_v54, %v4714_v27  ;;  %v18582_v54 = vld [vmem:[#allocation74_spill] sm:$0xff]  ;;  %v4659_v27 = vmul.f32 %v4623_v17, %v4623_v17  ;;  %v4725_v6 = vsel %vm18530_vm2, %v4658_v41, 0.0  ;;  %v4731_v17 = vsel %vm18587_vm9, %v4661_v40, 0.0  ;;  %vm18591_vm2 = vmmov %vm18589_vm4 }
 0x3c9   : > { %v300_v40 = vld [vmem:[%s17987_s3] sm:$0xf]  ;;  %vm5179_vm9 = vcmp.eq.s32.totalorder %v18580_v10, 16 }
 0x3ca   : > { %v4718_v55 = vadd.f32 %v4717_v61, %v4716_v59  ;;  %v18584_v61 = vld [vmem:[#allocation73_spill] sm:$0xff]  ;;  %v4660_v59 = vmul.f32 %v4624_v58, %v4624_v58  ;;  %v4727_v53 = vsel %vm18585_vm7, %v4659_v27, 0.0  ;;  %vm5215_vm7 = vcmp.eq.s32.totalorder %v18580_v10, 17 }
 0x3cc   : > { %v4720_v22 = vadd.f32 %v4719_v50, %v4718_v55  ;;  %v4729_v19 = vsel %vm18586_vm3, %v4660_v59, 0.0  ;;  %v18592_v59 = vld [vmem:[#allocation5_spill] sm:$0xff]  ;;  %vm5217_vm3 = vcmp.eq.s32.totalorder %v18584_v61, 17 }
 0x3ce   : > { %v4722_v24 = vadd.f32 %v4721_v21, %v4720_v22  ;;  %v10208_v21 = vld [vmem:[%s17986_s2] sm:$0xff]  }
 0x3cf   : > { %v15080_v63 = vunpack.c.l.bf16 %v10208_v21 }
 0x3d0   : > { %v4724_v5 = vadd.f32 %v4723_v23, %v4722_v24 }
 0x3d1   : > { %18588 = vst [vmem:[#allocation75_spill] sm:$0xff] %v15080_v63 }
 0x3d2   : > { %v4726_v50 = vadd.f32 %v4725_v6, %v4724_v5  ;;  %v5493_v6 = vrot.slane %v15080_v63, 4 }
 0x3d4   : > { %v4728_v55 = vadd.f32 %v4727_v53, %v4726_v50  ;;  %11406 = vmatprep.subr.msk.mxu1 %vm18589_vm4, %v5493_v6  ;;  %v4780_v50 = vsub.s32 0, %v18592_v59  ;;  %v4820_v53 = vsub.s32 1, %v18592_v59  ;;  %vm5181_vm4 = vcmp.eq.s32.totalorder %v18584_v61, 16 }
 0x3d5   : > { %11407 = vmatpush3.msk.msra.mxu1 %vm18590_vm12, %v5493_v6  ;;  %vm5180_vm12 = vcmp.eq.s32.totalorder %v18582_v54, 16 }
 0x3d6   : > { %v4730_v36 = vadd.f32 %v4729_v19, %v4728_v55  ;;  %11462 = vmatprep.subr.msk.mxu1 %vm18591_vm2, %v15080_v63  ;;  %v15092_v55 = vrot.slane %v300_v40, %v4780_v50  ;;  %vm5216_vm2 = vcmp.eq.s32.totalorder %v18582_v54, 17 }
 0x3d8   : > { %v4732_v22 = vadd.f32 %v4731_v17, %v4730_v36  ;;  %v15096_v36 = vrot.slane %v300_v40, %v4820_v53 }
 0x3da   : > { %v4733_v23 = vrot.slane %v4732_v22, 4 }
 0x3dc   : > { %v4734_v58 = vadd.f32 %v4733_v23, %v4732_v22 }
 0x3de   : > { %v4735_v41 = vrot.slane %v4734_v58, 2 }
 0x3e0   : > { %v4736_v24 = vadd.f32 %v4735_v41, %v4734_v58 }
 0x3e2   : > { %v4737_v27 = vrot.slane %v4736_v24, 1 }
 0x3e4   : > { %v4738_v19 = vadd.f32 %v4737_v27, %v4736_v24 }
 0x3e6   : > { %v4739_v33 = vmul.f32 0.003921569, %v4738_v19 }
 0x3e8   : > { %v4740_v5 = vadd.f32 1e-05, %v4739_v33 }
 0x3ea   : > { %12568 = vrsqrt.f32 %v4740_v5 }
 0x3f4   : > { %v15094_v21 = vpop.eup %12568 }
 0x3f5   : > { %v4774_v17 = vmul.f32 %v15094_v21, %v14925_v8  ;;  %v4775_v22 = vmul.f32 %v15094_v21, %v14927_v29  ;;  %v4776_v23 = vmul.f32 %v15094_v21, %v14929_v52  ;;  %v4777_v58 = vmul.f32 %v15094_v21, %v14931_v1 }
 0x3f6   : > { %v4742_v52 = vmul.f32 %v15094_v21, %v14830_v9  ;;  %v4743_v1 = vmul.f32 %v15094_v21, %v14833_v14  ;;  %v4744_v5 = vmul.f32 %v15094_v21, %v14836_v31  ;;  %v4745_v50 = vmul.f32 %v15094_v21, %v14839_v48 }
 0x3f7   : > { %v4814_v6 = vmul.f32 %v15092_v55, %v4774_v17  ;;  %v4815_v8 = vmul.f32 %v15092_v55, %v4775_v22  ;;  %v4816_v29 = vmul.f32 %v15092_v55, %v4776_v23  ;;  %v4817_v41 = vmul.f32 %v15092_v55, %v4777_v58 }
 0x3f8   : > { %v4746_v9 = vmul.f32 %v15094_v21, %v14842_v20  ;;  %v4747_v14 = vmul.f32 %v15094_v21, %v14845_v32  ;;  %v4748_v23 = vmul.f32 %v15094_v21, %v14848_v39  ;;  %v4749_v31 = vmul.f32 %v15094_v21, %v14851_v49 }
 0x3f9   : > { %v4854_v24 = vadd.f32 %v15096_v36, %v4814_v6  ;;  %v4855_v27 = vadd.f32 %v15096_v36, %v4815_v8  ;;  %v4856_v19 = vadd.f32 %v15096_v36, %v4816_v29  ;;  %v4857_v33 = vadd.f32 %v15096_v36, %v4817_v41 }
 0x3fa   : > { %v4750_v48 = vmul.f32 %v15094_v21, %v14854_v43  ;;  %v4751_v20 = vmul.f32 %v15094_v21, %v14857_v57  ;;  %v4752_v39 = vmul.f32 %v15094_v21, %v14860_v44  ;;  %v4754_v44 = vmul.f32 %v15094_v21, %v14866_v12 }
 0x3fb   : > { %v15132_v40 = vmax.f32 %v4854_v24, 0.0  ;;  %v15134_v53 = vmax.f32 %v4855_v27, 0.0  ;;  %v4892_v17 = vmax.f32 %v4856_v19, 0.0  ;;  %v4893_v22 = vmax.f32 %v4857_v33, 0.0 }
 0x3fc   : > { %v4753_v27 = vmul.f32 %v15094_v21, %v14863_v37 }
 0x3fd   : > { %v18169_v32 = vrot.slane %v15132_v40, 6  ;;  %v4995_v58 = vrot.slane %v15134_v53, 6  ;;  %v4997_v6 = vrot.slane %v4892_v17, 6  ;;  %v4999_v8 = vrot.slane %v4893_v22, 6 }
 0x3fe   : > { %v18168_v29 = vrot.slane %v15134_v53, 2  ;;  %v5105_v41 = vrot.slane %v4892_v17, 2  ;;  %v5107_v24 = vrot.slane %v4893_v22, 2 }
 0x3ff   : > { %v4996_v49 = vsel %vm18593_vm8, %v18169_v32, %v4995_v58  ;;  %v4998_v43 = vsel %vm18594_vm11, %v4995_v58, %v4997_v6  ;;  %v5000_v57 = vsel %vm18595_vm0, %v4997_v6, %v4999_v8  ;;  %v4755_v8 = vmul.f32 %v15094_v21, %v14869_v15  ;;  %vm18636_vm11 = vmmov %vm18595_vm0 }
 0x400   : > { %v5106_v19 = vsel %vm18596_vm10, %v18168_v29, %v5105_v41  ;;  %v5108_v33 = vsel %vm18597_vm1, %v5105_v41, %v5107_v24  ;;  %v5145_v59 = vsel %vm18598_vm5, %v5107_v24, %v4893_v22  ;;  %v4758_v15 = vmul.f32 %v15094_v21, %v14878_v51  ;;  %vm18629_vm5 = vmmov %vm18595_vm0 }
 0x401   : > { %v5251_v58 = vsel %vm5215_vm7, %v5106_v19, %v15134_v53  ;;  %v5252_v6 = vsel %vm5216_vm2, %v5108_v33, %v4892_v17  ;;  %v5253_v37 = vsel %vm5217_vm3, %v5145_v59, %v4893_v22  ;;  %v4756_v17 = vmul.f32 %v15094_v21, %v14872_v3  ;;  %vm18631_vm1 = vmmov %vm18595_vm0 }
 0x402   : > { %v15174_v41 = vsel %vm5179_vm9, %v4996_v49, %v5251_v58  ;;  %v15178_v12 = vsel %vm5180_vm12, %v4998_v43, %v5252_v6  ;;  %v15182_v24 = vsel %vm5181_vm4, %v5000_v57, %v5253_v37  ;;  %v4757_v59 = vmul.f32 %v15094_v21, %v14875_v28  ;;  %vm18633_vm10 = vmmov %vm18595_vm0 }
 0x403   : > { %18599 = vst [vmem:[#allocation76_spill] sm:$0xff] %v15174_v41  ;;  %18600 = vst [vmem:[#allocation77_spill] sm:$0xff] %v15178_v12  ;;  %v4759_v22 = vmul.f32 %v15094_v21, %v14881_v2  ;;  %v4760_v49 = vmul.f32 %v15094_v21, %v14884_v42  ;;  %v4761_v43 = vmul.f32 %v15094_v21, %v14887_v60 }
 0x404   : > { %18601 = vst [vmem:[#allocation78_spill] sm:$0xff] %v15182_v24  ;;  %v4762_v57 = vmul.f32 %v15094_v21, %v14890_v45  ;;  %v4763_v3 = vmul.f32 %v15094_v21, %v14893_v7  ;;  %v4764_v28 = vmul.f32 %v15094_v21, %v14896_v46  ;;  %v4765_v51 = vmul.f32 %v15094_v21, %v14899_v13  ;;  %vm18638_vm8 = vmmov %vm18595_vm0 }
 0x405   : > { %v4766_v2 = vmul.f32 %v15094_v21, %v14902_v35  ;;  %v4767_v42 = vmul.f32 %v15094_v21, %v14905_v62  ;;  %v4768_v60 = vmul.f32 %v15094_v21, %v14908_v56  ;;  %v4769_v45 = vmul.f32 %v15094_v21, %v14911_v34  ;;  %vm18640_vm7 = vmmov %vm18595_vm0 }
 0x406   : > { %v4770_v7 = vmul.f32 %v15094_v21, %v14914_v18  ;;  %v4771_v46 = vmul.f32 %v15094_v21, %v14917_v16  ;;  %v4772_v13 = vmul.f32 %v15094_v21, %v14920_v30  ;;  %v4773_v35 = vmul.f32 %v15094_v21, %v14923_v25  ;;  %vm18642_vm3 = vmmov %vm18595_vm0 }
 0x407   : > { %v4782_v19 = vmul.f32 %v15092_v55, %v4742_v52  ;;  %v4783_v56 = vmul.f32 %v15092_v55, %v4743_v1  ;;  %v4784_v34 = vmul.f32 %v15092_v55, %v4744_v5  ;;  %v4785_v33 = vmul.f32 %v15092_v55, %v4745_v50  ;;  %vm18644_vm9 = vmmov %vm18595_vm0 }
 0x408   : > { %v4786_v18 = vmul.f32 %v15092_v55, %v4746_v9  ;;  %v4787_v16 = vmul.f32 %v15092_v55, %v4747_v14  ;;  %v4788_v58 = vmul.f32 %v15092_v55, %v4748_v23  ;;  %v4789_v30 = vmul.f32 %v15092_v55, %v4749_v31  ;;  %vm18646_vm4 = vmmov %vm18595_vm0 }
 0x409   : > { %v4790_v25 = vmul.f32 %v15092_v55, %v4750_v48  ;;  %v4791_v21 = vmul.f32 %v15092_v55, %v4751_v20  ;;  %v4792_v52 = vmul.f32 %v15092_v55, %v4752_v39  ;;  %v4793_v1 = vmul.f32 %v15092_v55, %v4753_v27  ;;  %vm18648_vm12 = vmmov %vm18595_vm0 }
 0x40a   : > { %v4794_v5 = vmul.f32 %v15092_v55, %v4754_v44  ;;  %v4795_v50 = vmul.f32 %v15092_v55, %v4755_v8  ;;  %v4796_v9 = vmul.f32 %v15092_v55, %v4756_v17  ;;  %v4797_v14 = vmul.f32 %v15092_v55, %v4757_v59  ;;  %vm18650_vm2 = vmmov %vm18595_vm0 }
 0x40b   : > { %v4798_v23 = vmul.f32 %v15092_v55, %v4758_v15  ;;  %v4799_v31 = vmul.f32 %v15092_v55, %v4759_v22  ;;  %v4800_v48 = vmul.f32 %v15092_v55, %v4760_v49  ;;  %v4801_v20 = vmul.f32 %v15092_v55, %v4761_v43 }
 0x40c   : > { %v4802_v39 = vmul.f32 %v15092_v55, %v4762_v57  ;;  %v4803_v27 = vmul.f32 %v15092_v55, %v4763_v3  ;;  %v4804_v44 = vmul.f32 %v15092_v55, %v4764_v28  ;;  %v4805_v6 = vmul.f32 %v15092_v55, %v4765_v51 }
 0x40d   : > { %v4806_v37 = vmul.f32 %v15092_v55, %v4766_v2  ;;  %v4807_v8 = vmul.f32 %v15092_v55, %v4767_v42  ;;  %v4808_v17 = vmul.f32 %v15092_v55, %v4768_v60  ;;  %v4809_v59 = vmul.f32 %v15092_v55, %v4769_v45 }
 0x40e   : > { %v4810_v15 = vmul.f32 %v15092_v55, %v4770_v7  ;;  %v4811_v22 = vmul.f32 %v15092_v55, %v4771_v46  ;;  %v4812_v49 = vmul.f32 %v15092_v55, %v4772_v13  ;;  %v4813_v43 = vmul.f32 %v15092_v55, %v4773_v35 }
 0x40f   : > { %v4822_v57 = vadd.f32 %v15096_v36, %v4782_v19  ;;  %v4823_v3 = vadd.f32 %v15096_v36, %v4783_v56  ;;  %v4824_v28 = vadd.f32 %v15096_v36, %v4784_v34  ;;  %v4825_v51 = vadd.f32 %v15096_v36, %v4785_v33 }
 0x410   : > { %v4826_v2 = vadd.f32 %v15096_v36, %v4786_v18  ;;  %v4827_v42 = vadd.f32 %v15096_v36, %v4787_v16  ;;  %v4828_v60 = vadd.f32 %v15096_v36, %v4788_v58  ;;  %v4829_v45 = vadd.f32 %v15096_v36, %v4789_v30 }
 0x411   : > { %v4830_v7 = vadd.f32 %v15096_v36, %v4790_v25  ;;  %v4831_v55 = vadd.f32 %v15096_v36, %v4791_v21  ;;  %v4832_v46 = vadd.f32 %v15096_v36, %v4792_v52  ;;  %v4833_v13 = vadd.f32 %v15096_v36, %v4793_v1 }
 0x412   : > { %v4834_v35 = vadd.f32 %v15096_v36, %v4794_v5  ;;  %v4835_v19 = vadd.f32 %v15096_v36, %v4795_v50  ;;  %v4836_v56 = vadd.f32 %v15096_v36, %v4796_v9  ;;  %v4837_v34 = vadd.f32 %v15096_v36, %v4797_v14 }
 0x413   : > { %v4838_v33 = vadd.f32 %v15096_v36, %v4798_v23  ;;  %v4839_v18 = vadd.f32 %v15096_v36, %v4799_v31  ;;  %v4840_v16 = vadd.f32 %v15096_v36, %v4800_v48  ;;  %v4841_v58 = vadd.f32 %v15096_v36, %v4801_v20 }
 0x414   : > { %v4842_v30 = vadd.f32 %v15096_v36, %v4802_v39  ;;  %v4843_v25 = vadd.f32 %v15096_v36, %v4803_v27  ;;  %v4844_v21 = vadd.f32 %v15096_v36, %v4804_v44  ;;  %v4845_v52 = vadd.f32 %v15096_v36, %v4805_v6 }
 0x415   : > { %v4846_v1 = vadd.f32 %v15096_v36, %v4806_v37  ;;  %v4847_v5 = vadd.f32 %v15096_v36, %v4807_v8  ;;  %v4848_v50 = vadd.f32 %v15096_v36, %v4808_v17  ;;  %v4849_v9 = vadd.f32 %v15096_v36, %v4809_v59 }
 0x416   : > { %v4850_v14 = vadd.f32 %v15096_v36, %v4810_v15  ;;  %v4851_v23 = vadd.f32 %v15096_v36, %v4811_v22  ;;  %v4852_v31 = vadd.f32 %v15096_v36, %v4812_v49  ;;  %v4853_v48 = vadd.f32 %v15096_v36, %v4813_v43 }
 0x417   : > { %v15285_v20 = vmax.f32 %v4822_v57, 0.0  ;;  %v15287_v39 = vmax.f32 %v4823_v3, 0.0  ;;  %v15289_v27 = vmax.f32 %v4824_v28, 0.0  ;;  %v15291_v44 = vmax.f32 %v4825_v51, 0.0 }
 0x418   : > { %v15293_v6 = vmax.f32 %v4826_v2, 0.0  ;;  %v15295_v37 = vmax.f32 %v4827_v42, 0.0  ;;  %v15297_v8 = vmax.f32 %v4828_v60, 0.0  ;;  %v15299_v17 = vmax.f32 %v4829_v45, 0.0 }
 0x419   : > { %18602 = vst [vmem:[#allocation79_spill] sm:$0xff] %v15289_v27  ;;  %18603 = vst [vmem:[#allocation80_spill] sm:$0xff] %v15291_v44  ;;  %v15301_v59 = vmax.f32 %v4830_v7, 0.0  ;;  %v15303_v15 = vmax.f32 %v4831_v55, 0.0  ;;  %v15305_v36 = vmax.f32 %v4832_v46, 0.0  ;;  %v15307_v22 = vmax.f32 %v4833_v13, 0.0 }
 0x41a   : > { %18604 = vst [vmem:[#allocation81_spill] sm:$0xff] %v15293_v6  ;;  %v15309_v49 = vmax.f32 %v4834_v35, 0.0  ;;  %v15311_v43 = vmax.f32 %v4835_v19, 0.0  ;;  %v15313_v57 = vmax.f32 %v4836_v56, 0.0  ;;  %v15315_v3 = vmax.f32 %v4837_v34, 0.0 }
 0x41b   : > { %18605 = vst [vmem:[#allocation82_spill] sm:$0xff] %v15301_v59  ;;  %18606 = vst [vmem:[#allocation83_spill] sm:$0xff] %v15303_v15  ;;  %v15317_v28 = vmax.f32 %v4838_v33, 0.0  ;;  %v15319_v51 = vmax.f32 %v4839_v18, 0.0  ;;  %v15321_v2 = vmax.f32 %v4840_v16, 0.0  ;;  %v15323_v42 = vmax.f32 %v4841_v58, 0.0 }
 0x41c   : > { %18607 = vst [vmem:[#allocation84_spill] sm:$0xff] %v15305_v36  ;;  %18608 = vst [vmem:[#allocation85_spill] sm:$0xff] %v15307_v22  ;;  %v15325_v60 = vmax.f32 %v4842_v30, 0.0  ;;  %v15327_v45 = vmax.f32 %v4843_v25, 0.0  ;;  %v15329_v7 = vmax.f32 %v4844_v21, 0.0  ;;  %v15331_v55 = vmax.f32 %v4845_v52, 0.0 }
 0x41d   : > { %18609 = vst [vmem:[#allocation86_spill] sm:$0xff] %v15309_v49  ;;  %18610 = vst [vmem:[#allocation87_spill] sm:$0xff] %v15311_v43  ;;  %v15333_v46 = vmax.f32 %v4846_v1, 0.0  ;;  %v15335_v13 = vmax.f32 %v4847_v5, 0.0  ;;  %v15337_v35 = vmax.f32 %v4848_v50, 0.0  ;;  %v15339_v19 = vmax.f32 %v4849_v9, 0.0 }
 0x41e   : > { %18611 = vst [vmem:[#allocation88_spill] sm:$0xff] %v15313_v57  ;;  %18612 = vst [vmem:[#allocation89_spill] sm:$0xff] %v15315_v3  ;;  %v15341_v56 = vmax.f32 %v4850_v14, 0.0  ;;  %v15343_v34 = vmax.f32 %v4851_v23, 0.0  ;;  %v18170_v33 = vrot.slane %v15285_v20, 6  ;;  %v4931_v18 = vrot.slane %v15287_v39, 6 }
 0x41f   : > { %18613 = vst [vmem:[#allocation90_spill] sm:$0xff] %v15317_v28  ;;  %18614 = vst [vmem:[#allocation91_spill] sm:$0xff] %v15319_v51  ;;  %v18171_v16 = vrot.slane %v15289_v27, 6  ;;  %v18172_v58 = vrot.slane %v15291_v44, 6  ;;  %v4937_v30 = vrot.slane %v15293_v6, 6  ;;  %v4939_v25 = vrot.slane %v15295_v37, 6 }
 0x420   : > { %18615 = vst [vmem:[#allocation92_spill] sm:$0xff] %v15321_v2  ;;  %18616 = vst [vmem:[#allocation93_spill] sm:$0xff] %v15323_v42  ;;  %v4941_v21 = vrot.slane %v15297_v8, 6  ;;  %v4943_v52 = vrot.slane %v15299_v17, 6  ;;  %v15353_v1 = vmax.f32 %v4852_v31, 0.0  ;;  %v15355_v5 = vmax.f32 %v4853_v48, 0.0 }
 0x421   : > { %18617 = vst [vmem:[#allocation94_spill] sm:$0xff] %v15325_v60  ;;  %18618 = vst [vmem:[#allocation95_spill] sm:$0xff] %v15327_v45  ;;  %v4945_v50 = vrot.slane %v15301_v59, 6  ;;  %v4947_v9 = vrot.slane %v15303_v15, 6  ;;  %v15362_v14 = vsel %vm18629_vm5, %v18170_v33, %v4931_v18  ;;  %v15367_v23 = vsel %vm18631_vm1, %v4931_v18, %v18171_v16 }
 0x422   : > { %18619 = vst [vmem:[#allocation96_spill] sm:$0xff] %v15329_v7  ;;  %18620 = vst [vmem:[#allocation97_spill] sm:$0xff] %v15331_v55  ;;  %v15372_v31 = vsel %vm18633_vm10, %v18172_v58, %v4937_v30  ;;  %v15375_v48 = vsel %vm18595_vm0, %v4937_v30, %v4939_v25  ;;  %v15378_v62 = vsel %vm18636_vm11, %v4939_v25, %v4941_v21  ;;  %v4949_v32 = vrot.slane %v15305_v36, 6 }
 0x423   : > { %18621 = vst [vmem:[#allocation98_spill] sm:$0xff] %v15333_v46  ;;  %18622 = vst [vmem:[#allocation99_spill] sm:$0xff] %v15335_v13  ;;  %v15381_v29 = vsel %vm18638_vm8, %v4941_v21, %v4943_v52  ;;  %v4951_v33 = vrot.slane %v15307_v22, 6  ;;  %v4953_v18 = vrot.slane %v15309_v49, 6  ;;  %v4955_v16 = vrot.slane %v15311_v43, 6 }
 0x424   : > { %18623 = vst [vmem:[#allocation100_spill] sm:$0xff] %v15337_v35  ;;  %18624 = vst [vmem:[#allocation101_spill] sm:$0xff] %v15339_v19  ;;  %v4957_v58 = vrot.slane %v15313_v57, 6  ;;  %v4959_v54 = vrot.slane %v15315_v3, 6  ;;  %v15390_v30 = vsel %vm18640_vm7, %v4943_v52, %v4945_v50  ;;  %v15393_v25 = vsel %vm18642_vm3, %v4945_v50, %v4947_v9 }
 0x425   : > { %18625 = vst [vmem:[#allocation102_spill] sm:$0xff] %v15341_v56  ;;  %18626 = vst [vmem:[#allocation103_spill] sm:$0xff] %v15343_v34  ;;  %v4961_v21 = vrot.slane %v15317_v28, 6  ;;  %v4963_v61 = vrot.slane %v15319_v51, 6  ;;  %v15398_v10 = vsel %vm18644_vm9, %v4947_v9, %v4949_v32  ;;  %v15401_v12 = vsel %vm18646_vm4, %v4949_v32, %v4951_v33 }
 0x426   : > { %18627 = vst [vmem:[#allocation104_spill] sm:$0xff] %v15353_v1  ;;  %18628 = vst [vmem:[#allocation105_spill] sm:$0xff] %v15355_v5  ;;  %v15404_v41 = vsel %vm18648_vm12, %v4951_v33, %v4953_v18  ;;  %v15407_v24 = vsel %vm18650_vm2, %v4953_v18, %v4955_v16  ;;  %v4965_v63 = vrot.slane %v15321_v2, 6  ;;  %v4967_v9 = vrot.slane %v15323_v42, 6 }
 0x427   : > { %18630 = vst [vmem:[#allocation106_spill] sm:$0xff] %v15362_v14  ;;  %18632 = vst [vmem:[#allocation107_spill] sm:$0xff] %v15367_v23  ;;  %v4971_v32 = vrot.slane %v15327_v45, 6  ;;  %v4973_v33 = vrot.slane %v15329_v7, 6  ;;  %v18708_v23 = vld [vmem:[#allocation12_spill] sm:$0xff]  ;;  %v18709_v14 = vld [vmem:[#allocation14_spill] sm:$0xff] }
 0x428   : > { %18634 = vst [vmem:[#allocation108_spill] sm:$0xff] %v15372_v31  ;;  %18635 = vst [vmem:[#allocation109_spill] sm:$0xff] %v15375_v48  ;;  %v5069_v31 = vrot.slane %v15317_v28, 2  ;;  %v18718_v28 = vld [vmem:[#allocation16_spill] sm:$0xff] }
 0x429   : > { %18637 = vst [vmem:[#allocation110_spill] sm:$0xff] %v15378_v62  ;;  %18639 = vst [vmem:[#allocation111_spill] sm:$0xff] %v15381_v29  ;;  %v18702_v29 = vld [vmem:[#allocation13_spill] sm:$0xff] }
 0x42a   : > { %18641 = vst [vmem:[#allocation112_spill] sm:$0xff] %v15390_v30  ;;  %18643 = vst [vmem:[#allocation113_spill] sm:$0xff] %v15393_v25  ;;  %v18701_v30 = vld [vmem:[#allocation11_spill] sm:$0xff] }
 0x42b   : > { %18645 = vst [vmem:[#allocation114_spill] sm:$0xff] %v15398_v10  ;;  %18647 = vst [vmem:[#allocation115_spill] sm:$0xff] %v15401_v12  ;;  %v4969_v10 = vrot.slane %v15325_v60, 6 }
 0x42c   : > { %18649 = vst [vmem:[#allocation116_spill] sm:$0xff] %v15404_v41  ;;  %18651 = vst [vmem:[#allocation117_spill] sm:$0xff] %v15407_v24  ;;  %v4975_v41 = vrot.slane %v15331_v55, 6 }
 0x42d   : > { %vm18652_vm5 = vmmov %vm18595_vm0 }
 0x42e   : > { %v15410_v52 = vsel %vm18652_vm5, %v4955_v16, %v4957_v58  ;;  %vm18654_vm1 = vmmov %vm18595_vm0  ;;  %v15425_v16 = vsel %vm18595_vm0, %v4961_v21, %v4963_v61 }
 0x42f   : > { %18653 = vst [vmem:[#allocation118_spill] sm:$0xff] %v15410_v52  ;;  %v15413_v50 = vsel %vm18654_vm1, %v4957_v58, %v4959_v54  ;;  %vm18656_vm10 = vmmov %vm18595_vm0  ;;  %v4977_v58 = vrot.slane %v15333_v46, 6 }
 0x430   : > { %18655 = vst [vmem:[#allocation119_spill] sm:$0xff] %v15413_v50  ;;  %v15422_v18 = vsel %vm18656_vm10, %v4959_v54, %v4961_v21  ;;  %18658 = vst [vmem:[#allocation121_spill] sm:$0xff] %v15425_v16  ;;  %v4979_v50 = vrot.slane %v15335_v13, 6  ;;  %v4981_v16 = vrot.slane %v15337_v35, 6 }
 0x431   : > { %18657 = vst [vmem:[#allocation120_spill] sm:$0xff] %v15422_v18  ;;  %vm18659_vm11 = vmmov %vm18595_vm0 }
 0x432   : > { %v15430_v52 = vsel %vm18659_vm11, %v4963_v61, %v4965_v63  ;;  %vm18661_vm8 = vmmov %vm18595_vm0  ;;  %v4983_v61 = vrot.slane %v15339_v19, 6 }
 0x433   : > { %18660 = vst [vmem:[#allocation122_spill] sm:$0xff] %v15430_v52  ;;  %v15433_v24 = vsel %vm18661_vm8, %v4965_v63, %v4967_v9  ;;  %vm18663_vm7 = vmmov %vm18595_vm0  ;;  %v4985_v63 = vrot.slane %v15341_v56, 6 }
 0x434   : > { %18662 = vst [vmem:[#allocation123_spill] sm:$0xff] %v15433_v24  ;;  %v15436_v12 = vsel %vm18663_vm7, %v4967_v9, %v4969_v10  ;;  %vm18665_vm3 = vmmov %vm18595_vm0  ;;  %v4987_v9 = vrot.slane %v15343_v34, 6  ;;  %v18694_v24 = vrot.slane %v15291_v44, 2  ;;  %v18700_v44 = vld [vmem:[#allocation10_spill] sm:$0xff] }
 0x435   : > { %18664 = vst [vmem:[#allocation124_spill] sm:$0xff] %v15436_v12  ;;  %v15439_v25 = vsel %vm18665_vm3, %v4969_v10, %v4971_v32  ;;  %vm18667_vm9 = vmmov %vm18595_vm0  ;;  %v4989_v10 = vrot.slane %v15353_v1, 6  ;;  %v18682_v12 = vrot.slane %v15285_v20, 6 }
 0x436   : > { %18666 = vst [vmem:[#allocation125_spill] sm:$0xff] %v15439_v25  ;;  %v15442_v54 = vsel %vm18667_vm9, %v4971_v32, %v4973_v33  ;;  %vm18669_vm4 = vmmov %vm18595_vm0  ;;  %vm18692_vm9 = vcmask 1045504  }
 0x437   : > { %18668 = vst [vmem:[#allocation126_spill] sm:$0xff] %v15442_v54  ;;  %v15445_v21 = vsel %vm18669_vm4, %v4973_v33, %v4975_v41  ;;  %vm18671_vm12 = vmmov %vm18595_vm0  ;;  %v4991_v33 = vrot.slane %v15355_v5, 6 }
 0x438   : > { %18670 = vst [vmem:[#allocation127_spill] sm:$0xff] %v15445_v21  ;;  %v15450_v52 = vsel %vm18671_vm12, %v4975_v41, %v4977_v58  ;;  %vm18673_vm2 = vmmov %vm18595_vm0  ;;  %v5038_v21 = vrot.slane %v15285_v20, 2 }
 0x439   : > { %18672 = vst [vmem:[#allocation128_spill] sm:$0xff] %v15450_v52  ;;  %v15456_v25 = vsel %vm18673_vm2, %v4977_v58, %v4979_v50  ;;  %vm18675_vm5 = vmmov %vm18595_vm0  ;;  %v15470_v52 = vsel %vm18595_vm0, %v4985_v63, %v4987_v9 }
 0x43a   : > { %18674 = vst [vmem:[#allocation129_spill] sm:$0xff] %v15456_v25  ;;  %v15459_v32 = vsel %vm18675_vm5, %v4979_v50, %v4981_v16  ;;  %vm18677_vm1 = vmmov %vm18595_vm0  ;;  %v5053_v25 = vrot.slane %v15301_v59, 2 }
 0x43b   : > { %18676 = vst [vmem:[#allocation130_spill] sm:$0xff] %v15459_v32  ;;  %v15464_v54 = vsel %vm18677_vm1, %v4981_v16, %v4983_v61  ;;  %vm18679_vm10 = vmmov %vm18595_vm0  ;;  %v5039_v32 = vrot.slane %v15287_v39, 2  ;;  %v5041_v16 = vrot.slane %v15289_v27, 2  ;;  %vm5183_vm1 = vcmp.eq.s32.totalorder %v14093_v11, 17 }
 0x43c   : > { %18678 = vst [vmem:[#allocation131_spill] sm:$0xff] %v15464_v54  ;;  %v15467_v41 = vsel %vm18679_vm10, %v4983_v61, %v4985_v63  ;;  %18681 = vst [vmem:[#allocation133_spill] sm:$0xff] %v15470_v52  ;;  %v5047_v63 = vrot.slane %v15295_v37, 2  ;;  %v5049_v52 = vrot.slane %v15297_v8, 2  ;;  %vm5182_vm10 = vcmp.eq.s32.totalorder %v14099_v47, 17 }
 0x43d   : > { %18680 = vst [vmem:[#allocation132_spill] sm:$0xff] %v15467_v41  ;;  %vm18683_vm11 = vmmov %vm18595_vm0  ;;  %v5051_v41 = vrot.slane %v15299_v17, 2  ;;  %v15497_v54 = vsel %vm18692_vm9, %v5038_v21, %v5039_v32 }
 0x43e   : > { %v15476_v58 = vsel %vm18683_vm11, %v15285_v20, %v18682_v12  ;;  %vm18685_vm8 = vmmov %vm18595_vm0  ;;  %vm5184_vm11 = vcmp.eq.s32.totalorder %v14115_v26, 17 }
 0x43f   : > { %18684 = vst [vmem:[#allocation134_spill] sm:$0xff] %v15476_v58  ;;  %v15479_v50 = vsel %vm18685_vm8, %v4987_v9, %v4989_v10  ;;  %vm18687_vm7 = vmmov %vm18595_vm0  ;;  %v18689_v9 = vrot.slane %v15132_v40, 6  ;;  %vm5187_vm8 = vcmp.eq.s32.totalorder %v18700_v44, 17  ;;  %v18710_v58 = vld [vmem:[#allocation15_spill] sm:$0xff] }
 0x440   : > { %18686 = vst [vmem:[#allocation135_spill] sm:$0xff] %v15479_v50  ;;  %v15489_v12 = vsel %vm18687_vm7, %v4989_v10, %v4991_v33  ;;  %vm18690_vm3 = vmmov %vm18595_vm0  ;;  %v18696_v10 = vrot.slane %v15293_v6, 2  ;;  %vm5186_vm7 = vcmp.eq.s32.totalorder %v18701_v30, 17 }
 0x441   : > { %18688 = vst [vmem:[#allocation136_spill] sm:$0xff] %v15489_v12  ;;  %v15494_v50 = vsel %vm18690_vm3, %v4991_v33, %v18689_v9  ;;  %vm18693_vm4 = vmmov %vm18692_vm9  ;;  %v5055_v33 = vrot.slane %v15303_v15, 2  ;;  %v5057_v9 = vrot.slane %v15305_v36, 2  ;;  %v18739_v15 = vld [vmem:[#allocation65_spill] sm:$0xff] }
 0x442   : > { %18691 = vst [vmem:[#allocation137_spill] sm:$0xff] %v15494_v50  ;;  %v15501_v61 = vsel %vm18693_vm4, %v5039_v32, %v5041_v16  ;;  %vm18695_vm12 = vmmov %vm18693_vm4  ;;  %v5059_v32 = vrot.slane %v15307_v22, 2  ;;  %v5061_v50 = vrot.slane %v15309_v49, 2  ;;  %v18720_v49 = vld [vmem:[#allocation52_spill] sm:$0xff]  ;;  %v18721_v22 = vld [vmem:[#allocation54_spill] sm:$0xff] }
 0x443   : > { %v15506_v18 = vsel %vm18695_vm12, %v5041_v16, %v18694_v24  ;;  %vm18697_vm2 = vmmov %vm18693_vm4  ;;  %v5063_v16 = vrot.slane %v15311_v43, 2  ;;  %v18719_v43 = vld [vmem:[#allocation51_spill] sm:$0xff] }
 0x444   : > { %v15511_v12 = vsel %vm18697_vm2, %v18696_v10, %v5047_v63  ;;  %vm18698_vm5 = vmmov %vm18697_vm2  ;;  %v5065_v10 = vrot.slane %v15313_v57, 2 }
 0x445   : > { %v15515_v21 = vsel %vm18698_vm5, %v5047_v63, %v5049_v52  ;;  %vm18699_vm0 = vmmov %vm18697_vm2  ;;  %v5067_v63 = vrot.slane %v15315_v3, 2  ;;  %v18711_v3 = vld [vmem:[#allocation50_spill] sm:$0xff]  ;;  %vm5157_vm2 = vcmp.eq.s32.totalorder %v18718_v28, 16  ;;  %vm5158_vm5 = vcmp.eq.s32.totalorder %v18720_v49, 16 }
 0x446   : > { %v15523_v24 = vsel %vm18699_vm0, %v5049_v52, %v5051_v41  ;;  %vm18703_vm9 = vmmov %vm18699_vm0 }
 0x447   : > { %v15533_v62 = vsel %vm18703_vm9, %v5051_v41, %v5053_v25  ;;  %vm18704_vm4 = vmmov %vm18699_vm0 }
 0x448   : > { %v15536_v52 = vsel %vm18704_vm4, %v5053_v25, %v5055_v33  ;;  %vm18706_vm12 = vmmov %vm18699_vm0 }
 0x449   : > { %18705 = vst [vmem:[#allocation138_spill] sm:$0xff] %v15536_v52  ;;  %v15539_v48 = vsel %vm18706_vm12, %v5055_v33, %v5057_v9  ;;  %vm18712_vm15 = vmmov %vm18699_vm0  ;;  %v5071_v33 = vrot.slane %v15319_v51, 2  ;;  %v18725_v51 = vld [vmem:[#allocation55_spill] sm:$0xff] }
 0x44a   : > { %18707 = vst [vmem:[#allocation139_spill] sm:$0xff] %v15539_v48  ;;  %v15547_v57 = vsel %vm18712_vm15, %v5057_v9, %v5059_v32  ;;  %vm18714_vm9 = vmmov %vm18699_vm0  ;;  %v5073_v9 = vrot.slane %v15321_v2, 2  ;;  %v5083_v2 = vrot.slane %v15331_v55, 2  ;;  %v18737_v55 = vld [vmem:[#allocation61_spill] sm:$0xff] }
 0x44b   : > { %18713 = vst [vmem:[#allocation140_spill] sm:$0xff] %v15547_v57  ;;  %v15550_v41 = vsel %vm18714_vm9, %v5059_v32, %v5061_v50  ;;  %vm18716_vm4 = vmmov %vm18699_vm0  ;;  %v5075_v32 = vrot.slane %v15323_v42, 2  ;;  %v18730_v42 = vld [vmem:[#allocation62_spill] sm:$0xff] }
 0x44c   : > { %18715 = vst [vmem:[#allocation141_spill] sm:$0xff] %v15550_v41  ;;  %v15553_v25 = vsel %vm18716_vm4, %v5061_v50, %v5063_v16  ;;  %vm18722_vm14 = vmmov %vm18699_vm0  ;;  %v5077_v50 = vrot.slane %v15325_v60, 2  ;;  %v18726_v41 = vld [vmem:[#allocation56_spill] sm:$0xff] }
 0x44d   : > { %18717 = vst [vmem:[#allocation142_spill] sm:$0xff] %v15553_v25  ;;  %v15561_v36 = vsel %vm18722_vm14, %v5063_v16, %v5065_v10  ;;  %v18724_v25 = vld [vmem:[#allocation53_spill] sm:$0xff]  ;;  %vm18727_vm6 = vmmov %vm18699_vm0  ;;  %v5079_v16 = vrot.slane %v15327_v45, 2  ;;  %v18729_v60 = vld [vmem:[#allocation60_spill] sm:$0xff] }
 0x44e   : > { %18723 = vst [vmem:[#allocation143_spill] sm:$0xff] %v15561_v36  ;;  %v15571_v57 = vsel %vm18727_vm6, %v5065_v10, %v5067_v63  ;;  %v5081_v36 = vrot.slane %v15329_v7, 2  ;;  %vm18731_vm4 = vmmov %vm18699_vm0  ;;  %v5085_v7 = vrot.slane %v15333_v46, 2  ;;  %v18746_v46 = vld [vmem:[#allocation67_spill] sm:$0xff] }
 0x44f   : > { %18728 = vst [vmem:[#allocation144_spill] sm:$0xff] %v15571_v57  ;;  %v15581_v48 = vsel %vm18731_vm4, %v5067_v63, %v5069_v31  ;;  %vm18733_vm13 = vmmov %vm18699_vm0  ;;  %v18738_v57 = vld [vmem:[#allocation64_spill] sm:$0xff] }
 0x450   : > { %18732 = vst [vmem:[#allocation145_spill] sm:$0xff] %v15581_v48  ;;  %v15584_v10 = vsel %vm18733_vm13, %v5069_v31, %v5071_v33  ;;  %vm18735_vm6 = vmmov %vm18699_vm0  ;;  %v18749_v48 = vld [vmem:[#allocation72_spill] sm:$0xff] }
 0x451   : > { %18734 = vst [vmem:[#allocation146_spill] sm:$0xff] %v15584_v10  ;;  %v15587_v45 = vsel %vm18735_vm6, %v5071_v33, %v5073_v9  ;;  %vm18741_vm9 = vmmov %vm18699_vm0  ;;  %v5087_v33 = vrot.slane %v15335_v13, 2  ;;  %v18748_v10 = vld [vmem:[#allocation70_spill] sm:$0xff]  ;;  %v18752_v13 = vld [vmem:[#allocation63_spill] sm:$0xff] }
 0x452   : > { %18736 = vst [vmem:[#allocation147_spill] sm:$0xff] %v15587_v45  ;;  %v15595_v59 = vsel %vm18741_vm9, %v5073_v9, %v5075_v32  ;;  %vm18742_vm4 = vmmov %vm18699_vm0  ;;  %v18747_v45 = vld [vmem:[#allocation69_spill] sm:$0xff]  ;;  %v5089_v9 = vrot.slane %v15337_v35, 2  ;;  %v5099_v35 = vrot.slane %v15355_v5, 2  ;;  %vm5160_vm9 = vcmp.eq.s32.totalorder %v18721_v22, 16 }
 0x453   : > { %v15598_v63 = vsel %vm18742_vm4, %v5075_v32, %v5077_v50  ;;  %vm18744_vm13 = vmmov %vm18699_vm0  ;;  %v5091_v32 = vrot.slane %v15339_v19, 2  ;;  %vm5154_vm4 = vcmp.eq.s32.totalorder %v18710_v58, 16 }
 0x454   : > { %18743 = vst [vmem:[#allocation148_spill] sm:$0xff] %v15598_v63  ;;  %v15601_v31 = vsel %vm18744_vm13, %v5077_v50, %v5079_v16  ;;  %vm18750_vm15 = vmmov %vm18699_vm0  ;;  %v5093_v50 = vrot.slane %v15341_v56, 2 }
 0x455   : > { %18745 = vst [vmem:[#allocation149_spill] sm:$0xff] %v15601_v31  ;;  %v15609_v52 = vsel %vm18750_vm15, %v5079_v16, %v5081_v36  ;;  %v18753_v31 = vld [vmem:[#allocation66_spill] sm:$0xff]  ;;  %vm18754_vm14 = vmmov %vm18699_vm0  ;;  %v5095_v16 = vrot.slane %v15343_v34, 2  ;;  %v18758_v34 = vrot.slane %v15134_v53, 2 }
 0x456   : > { %18751 = vst [vmem:[#allocation150_spill] sm:$0xff] %v15609_v52  ;;  %v15619_v63 = vsel %vm18754_vm14, %v5081_v36, %v5083_v2  ;;  %v5097_v52 = vrot.slane %v15353_v1, 2  ;;  %vm18755_vm13 = vmmov %vm18699_vm0  ;;  %v18759_v1 = vrot.slane %v15132_v40, 2 }
 0x457   : > { %v5086_v56 = vsel %vm18755_vm13, %v5083_v2, %v5085_v7  ;;  %vm18756_vm12 = vmmov %vm18699_vm0 }
 0x458   : > { %v5088_v19 = vsel %vm18756_vm12, %v5085_v7, %v5087_v33  ;;  %vm18757_vm14 = vmmov %vm18699_vm0  ;;  %v5098_v53 = vsel %vm18699_vm0, %v5095_v16, %v5097_v52 }
 0x459   : > { %v15631_v36 = vsel %vm18757_vm14, %v5087_v33, %v5089_v9  ;;  %vm18760_vm6 = vmmov %vm18699_vm0 }
 0x45a   : > { %v15638_v5 = vsel %vm18760_vm6, %v18759_v1, %v18758_v34  ;;  %vm18761_vm15 = vmmov %vm18699_vm0  ;;  %vm5159_vm6 = vcmp.eq.s32.totalorder %v18719_v43, 16 }
 0x45b   : > { %v5092_v2 = vsel %vm18761_vm15, %v5089_v9, %v5091_v32  ;;  %vm18762_vm12 = vmmov %vm18699_vm0  ;;  %vm5163_vm15 = vcmp.eq.s32.totalorder %v18725_v51, 16 }
 0x45c   : > { %v5094_v7 = vsel %vm18762_vm12, %v5091_v32, %v5093_v50  ;;  %vm18763_vm14 = vmmov %vm18699_vm0  ;;  %v5218_v32 = vsel %vm5182_vm10, %v15497_v54, %v15285_v20  ;;  %vm5164_vm12 = vcmp.eq.s32.totalorder %v18550_v0, 16  ;;  %v5222_v20 = vsel %vm5186_vm7, %v15511_v12, %v15293_v6  ;;  %v18781_v6 = vld [vmem:[#allocation86_spill] sm:$0xff] }
 0x45d   : > { %v5096_v33 = vsel %vm18763_vm14, %v5093_v50, %v5095_v16  ;;  %vm18764_vm3 = vmmov %vm18699_vm0  ;;  %v5219_v50 = vsel %vm5183_vm1, %v15501_v61, %v15287_v39  ;;  %v5223_v39 = vsel %vm5187_vm8, %v15515_v21, %v15295_v37  ;;  %vm18766_vm1 = vcmp.eq.s32.totalorder %v18702_v29, 17  ;;  %v18768_v61 = vld [vmem:[#allocation82_spill] sm:$0xff]  ;;  %v18771_v21 = vld [vmem:[#allocation83_spill] sm:$0xff] }
 0x45e   : > { %v5100_v34 = vsel %vm18764_vm3, %v5097_v52, %v5099_v35  ;;  %vm18765_vm13 = vmmov %vm18699_vm0  ;;  %vm5161_vm0 = vcmp.eq.s32.totalorder %v18724_v25, 16  ;;  %vm5162_vm3 = vcmp.eq.s32.totalorder %v18726_v41, 16  ;;  %v5224_v54 = vsel %vm18766_vm1, %v15523_v24, %v15297_v8  ;;  %v18769_v37 = vld [vmem:[#allocation138_spill] sm:$0xff]  ;;  %v18772_v8 = vld [vmem:[#allocation139_spill] sm:$0xff] }
 0x45f   : > { %v5102_v9 = vsel %vm18765_vm13, %v5099_v35, %v18759_v1  ;;  %v5220_v35 = vsel %vm5184_vm11, %v15506_v18, %v15289_v27  ;;  %vm18767_vm7 = vcmp.eq.s32.totalorder %v18708_v23, 17  ;;  %vm18770_vm8 = vcmp.eq.s32.totalorder %v18710_v58, 17  ;;  %v18774_v52 = vld [vmem:[#allocation84_spill] sm:$0xff]  ;;  %v18784_v27 = vld [vmem:[#allocation87_spill] sm:$0xff] }
 0x460   : > { %v5225_v18 = vsel %vm18767_vm7, %v15533_v62, %v15299_v17  ;;  %v5226_v12 = vsel %vm18770_vm8, %v18769_v37, %v18768_v61  ;;  %vm18773_vm1 = vcmp.eq.s32.totalorder %v18709_v14, 17  ;;  %v18775_v16 = vld [vmem:[#allocation140_spill] sm:$0xff]  ;;  %vm18776_vm13 = vcmp.eq.s32.totalorder %v18711_v3, 17  ;;  %v18778_v17 = vld [vmem:[#allocation85_spill] sm:$0xff] }
 0x461   : > { %v5227_v24 = vsel %vm18773_vm1, %v18772_v8, %v18771_v21  ;;  %v5228_v1 = vsel %vm18776_vm13, %v18775_v16, %v18774_v52  ;;  %v18777_v62 = vld [vmem:[#allocation68_spill] sm:$0xff]  ;;  %v18779_v61 = vld [vmem:[#allocation141_spill] sm:$0xff]  ;;  %vm18780_vm8 = vcmp.eq.s32.totalorder %v18718_v28, 17  ;;  %v18782_v21 = vld [vmem:[#allocation142_spill] sm:$0xff]  ;;  %vm18783_vm1 = vcmp.eq.s32.totalorder %v18720_v49, 17 }
 0x462   : > { %v5229_v37 = vsel %vm18780_vm8, %v18779_v61, %v18778_v17  ;;  %v5230_v8 = vsel %vm18783_vm1, %v18782_v21, %v18781_v6  ;;  %v18785_v52 = vld [vmem:[#allocation143_spill] sm:$0xff]  ;;  %vm18786_vm13 = vcmp.eq.s32.totalorder %v18719_v43, 17  ;;  %v18787_v3 = vld [vmem:[#allocation88_spill] sm:$0xff]  ;;  %vm18789_vm7 = vcmp.eq.s32.totalorder %v18721_v22, 17  ;;  %v18790_v17 = vld [vmem:[#allocation89_spill] sm:$0xff] }
 0x463   : > { %v5231_v16 = vsel %vm18786_vm13, %v18785_v52, %v18784_v27  ;;  %v18788_v14 = vld [vmem:[#allocation144_spill] sm:$0xff]  ;;  %vm5175_vm10 = vcmp.eq.s32.totalorder %v18746_v46, 16  ;;  %v18791_v6 = vld [vmem:[#allocation145_spill] sm:$0xff]  ;;  %vm18792_vm1 = vcmp.eq.s32.totalorder %v18724_v25, 17  ;;  %v18793_v21 = vld [vmem:[#allocation90_spill] sm:$0xff]  ;;  %vm18795_vm13 = vcmp.eq.s32.totalorder %v18726_v41, 17 }
 0x464   : > { %v5232_v58 = vsel %vm18789_vm7, %v18788_v14, %v18787_v3  ;;  %v5233_v61 = vsel %vm18792_vm1, %v18791_v6, %v18790_v17  ;;  %v18794_v27 = vld [vmem:[#allocation146_spill] sm:$0xff]  ;;  %v18796_v22 = vld [vmem:[#allocation91_spill] sm:$0xff]  ;;  %vm18798_vm7 = vcmp.eq.s32.totalorder %v18725_v51, 17  ;;  %v18799_v43 = vld [vmem:[#allocation92_spill] sm:$0xff]  ;;  %vm18800_vm11 = vcmp.eq.s32.totalorder %v18550_v0, 17 }
 0x465   : > { %v5234_v52 = vsel %vm18795_vm13, %v18794_v27, %v18793_v21  ;;  %v18797_v3 = vld [vmem:[#allocation147_spill] sm:$0xff]  ;;  %v5236_v49 = vsel %vm18800_vm11, %v15595_v59, %v18799_v43  ;;  %v18801_v17 = vld [vmem:[#allocation93_spill] sm:$0xff]  ;;  %v18802_v6 = vld [vmem:[#allocation148_spill] sm:$0xff]  ;;  %vm18803_vm1 = vcmp.eq.s32.totalorder %v18553_v38, 17  ;;  %vm18806_vm13 = vcmp.eq.s32.totalorder %v18729_v60, 17 }
 0x466   : > { %v5235_v14 = vsel %vm18798_vm7, %v18797_v3, %v18796_v22  ;;  %v5237_v41 = vsel %vm18803_vm1, %v18802_v6, %v18801_v17  ;;  %v18804_v21 = vld [vmem:[#allocation94_spill] sm:$0xff]  ;;  %v18805_v27 = vld [vmem:[#allocation149_spill] sm:$0xff]  ;;  %v18807_v22 = vld [vmem:[#allocation95_spill] sm:$0xff]  ;;  %vm18809_vm7 = vcmp.eq.s32.totalorder %v14473_v4, 17  ;;  %vm18811_vm11 = vcmp.eq.s32.totalorder %v18730_v42, 17 }
 0x467   : > { %v5238_v51 = vsel %vm18806_vm13, %v18805_v27, %v18804_v21  ;;  %v18808_v3 = vld [vmem:[#allocation150_spill] sm:$0xff]  ;;  %v18810_v59 = vld [vmem:[#allocation96_spill] sm:$0xff]  ;;  %v18812_v25 = vld [vmem:[#allocation97_spill] sm:$0xff]  ;;  %vm18813_vm8 = vcmp.eq.s32.totalorder %v18737_v55, 17  ;;  %vm18815_vm1 = vcmp.eq.s32.totalorder %v18738_v57, 17  ;;  %vm18817_vm13 = vcmp.eq.s32.totalorder %v18739_v15, 17 }
 0x468   : > { %v5239_v0 = vsel %vm18809_vm7, %v18808_v3, %v18807_v22  ;;  %v5240_v43 = vsel %vm18811_vm11, %v15619_v63, %v18810_v59  ;;  %v5241_v38 = vsel %vm18813_vm8, %v5086_v56, %v18812_v25  ;;  %v18814_v17 = vld [vmem:[#allocation98_spill] sm:$0xff]  ;;  %v18816_v60 = vld [vmem:[#allocation101_spill] sm:$0xff]  ;;  %vm18819_vm7 = vcmp.eq.s32.totalorder %v18777_v62, 17  ;;  %v18820_v3 = vld [vmem:[#allocation103_spill] sm:$0xff] }
 0x469   : > { %v5242_v6 = vsel %vm18815_vm1, %v5088_v19, %v18814_v17  ;;  %v5245_v21 = vsel %vm18817_vm13, %v5094_v7, %v18816_v60  ;;  %v18818_v27 = vld [vmem:[#allocation102_spill] sm:$0xff]  ;;  %vm18821_vm14 = vcmp.eq.s32.totalorder %v18746_v46, 17  ;;  %v18822_v59 = vld [vmem:[#allocation104_spill] sm:$0xff]  ;;  %vm18823_vm11 = vcmp.eq.s32.totalorder %v18748_v10, 17  ;;  %v18824_v25 = vld [vmem:[#allocation105_spill] sm:$0xff] }
 0x46a   : > { %v5246_v22 = vsel %vm18819_vm7, %v5096_v33, %v18818_v27  ;;  %v5247_v63 = vsel %vm18821_vm14, %v5098_v53, %v18820_v3  ;;  %v5248_v56 = vsel %vm18823_vm11, %v5100_v34, %v18822_v59  ;;  %vm18825_vm8 = vcmp.eq.s32.totalorder %v18747_v45, 17  ;;  %v18827_v7 = vld [vmem:[#allocation99_spill] sm:$0xff]  ;;  %v18829_v17 = vld [vmem:[#allocation100_spill] sm:$0xff]  ;;  %v18831_v27 = vld [vmem:[#allocation134_spill] sm:$0xff] }
 0x46b   : > { %v5249_v19 = vsel %vm18825_vm8, %v5102_v9, %v18824_v25  ;;  %vm18826_vm1 = vcmp.eq.s32.totalorder %v18749_v48, 17  ;;  %vm18828_vm13 = vcmp.eq.s32.totalorder %v18752_v13, 17  ;;  %vm18830_vm14 = vcmp.eq.s32.totalorder %v18753_v31, 17  ;;  %v18833_v9 = vld [vmem:[#allocation106_spill] sm:$0xff]  ;;  %v18927_v28 = vld [vmem:[#allocation79_spill] sm:$0xff] }
 0x46c   : > { %v5250_v60 = vsel %vm18826_vm1, %v15638_v5, %v15132_v40  ;;  %v5243_v33 = vsel %vm18828_vm13, %v15631_v36, %v18827_v7  ;;  %v5244_v53 = vsel %vm18830_vm14, %v5092_v2, %v18829_v17  ;;  %vm18832_vm7 = vcmp.eq.s32.totalorder %v14099_v47, 16  ;;  %v18835_v40 = vld [vmem:[#allocation107_spill] sm:$0xff]  ;;  %v18837_v36 = vld [vmem:[#allocation108_spill] sm:$0xff]  ;;  %v18839_v2 = vld [vmem:[#allocation109_spill] sm:$0xff] }
 0x46d   : > { %v15797_v34 = vsel %vm18832_vm7, %v18831_v27, %v5218_v32  ;;  %vm18834_vm11 = vcmp.eq.s32.totalorder %v14093_v11, 16  ;;  %vm18836_vm8 = vcmp.eq.s32.totalorder %v14115_v26, 16  ;;  %vm18838_vm1 = vcmp.eq.s32.totalorder %v18701_v30, 16  ;;  %v18841_v25 = vld [vmem:[#allocation110_spill] sm:$0xff]  ;;  %v18843_v7 = vld [vmem:[#allocation111_spill] sm:$0xff]  ;;  %v18845_v17 = vld [vmem:[#allocation112_spill] sm:$0xff] }
 0x46e   : > { %v15802_v3 = vsel %vm18834_vm11, %v18833_v9, %v5219_v50  ;;  %v15807_v5 = vsel %vm18836_vm8, %v18835_v40, %v5220_v35  ;;  %v15812_v59 = vsel %vm18838_vm1, %v18837_v36, %v5222_v20  ;;  %vm18840_vm13 = vcmp.eq.s32.totalorder %v18700_v44, 16  ;;  %v18847_v9 = vld [vmem:[#allocation113_spill] sm:$0xff]  ;;  %v18848_v40 = vld [vmem:[#allocation14_spill] sm:$0xff]  ;;  %v18925_v27 = vld [vmem:[#allocation80_spill] sm:$0xff] }
 0x46f   : > { %v15817_v32 = vsel %vm18840_vm13, %v18839_v2, %v5223_v39  ;;  %vm18842_vm14 = vcmp.eq.s32.totalorder %v18702_v29, 16  ;;  %vm18844_vm7 = vcmp.eq.s32.totalorder %v18708_v23, 16  ;;  %v15832_v20 = vsel %vm5154_vm4, %v18845_v17, %v5226_v12  ;;  %v18850_v36 = vld [vmem:[#allocation114_spill] sm:$0xff]  ;;  %v18856_v17 = vld [vmem:[#allocation117_spill] sm:$0xff] }
 0x470   : > { %v15822_v50 = vsel %vm18842_vm14, %v18841_v25, %v5224_v54  ;;  %v15827_v35 = vsel %vm18844_vm7, %v18843_v7, %v5225_v18  ;;  %vm18849_vm11 = vcmp.eq.s32.totalorder %v18848_v40, 16  ;;  %v18851_v2 = vld [vmem:[#allocation50_spill] sm:$0xff]  ;;  %v18853_v25 = vld [vmem:[#allocation115_spill] sm:$0xff]  ;;  %v18854_v7 = vld [vmem:[#allocation116_spill] sm:$0xff]  ;;  %vm18877_vm4 = vcmp.eq.s32.totalorder %v18730_v42, 16 }
 0x471   : > { %v15837_v39 = vsel %vm18849_vm11, %v18847_v9, %v5227_v24  ;;  %vm18852_vm8 = vcmp.eq.s32.totalorder %v18851_v2, 16  ;;  %v15847_v18 = vsel %vm5157_vm2, %v18853_v25, %v5229_v37  ;;  %v15852_v12 = vsel %vm5158_vm5, %v18854_v7, %v5230_v8  ;;  %v18858_v9 = vld [vmem:[#allocation118_spill] sm:$0xff]  ;;  %v18862_v25 = vld [vmem:[#allocation120_spill] sm:$0xff]  ;;  %v18864_v7 = vld [vmem:[#allocation121_spill] sm:$0xff] }
 0x472   : > { %v15842_v54 = vsel %vm18852_vm8, %v18850_v36, %v5228_v1  ;;  %v15857_v24 = vsel %vm5159_vm6, %v18856_v17, %v5231_v16  ;;  %v15862_v1 = vsel %vm5160_vm9, %v18858_v9, %v5232_v58  ;;  %v18860_v36 = vld [vmem:[#allocation119_spill] sm:$0xff]  ;;  %v15872_v8 = vsel %vm5162_vm3, %v18862_v25, %v5234_v52  ;;  %v18866_v17 = vld [vmem:[#allocation122_spill] sm:$0xff]  ;;  %v18869_v40 = vld [vmem:[#allocation57_spill] sm:$0xff] }
 0x473   : > { %v15867_v37 = vsel %vm5161_vm0, %v18860_v36, %v5233_v61  ;;  %v15877_v16 = vsel %vm5163_vm15, %v18864_v7, %v5235_v14  ;;  %v15882_v58 = vsel %vm5164_vm12, %v18866_v17, %v5236_v49  ;;  %v18868_v9 = vld [vmem:[#allocation123_spill] sm:$0xff]  ;;  %vm18870_vm2 = vcmp.eq.s32.totalorder %v18869_v40, 16  ;;  %v18871_v36 = vld [vmem:[#allocation124_spill] sm:$0xff]  ;;  %v18874_v25 = vld [vmem:[#allocation125_spill] sm:$0xff] }
 0x474   : > { %v15887_v61 = vsel %vm18870_vm2, %v18868_v9, %v5237_v41  ;;  %v18872_v2 = vld [vmem:[#allocation60_spill] sm:$0xff]  ;;  %vm18875_vm9 = vcmp.eq.s32.totalorder %v14473_v4, 16  ;;  %v18876_v7 = vld [vmem:[#allocation126_spill] sm:$0xff]  ;;  %v18878_v17 = vld [vmem:[#allocation127_spill] sm:$0xff]  ;;  %vm18879_vm6 = vcmp.eq.s32.totalorder %v18737_v55, 16  ;;  %vm18881_vm0 = vcmp.eq.s32.totalorder %v18738_v57, 16 }
 0x475   : > { %vm18873_vm5 = vcmp.eq.s32.totalorder %v18872_v2, 16  ;;  %v15897_v14 = vsel %vm18875_vm9, %v18874_v25, %v5239_v0  ;;  %v15902_v49 = vsel %vm18877_vm4, %v18876_v7, %v5240_v43  ;;  %v15907_v41 = vsel %vm18879_vm6, %v18878_v17, %v5241_v38  ;;  %v18880_v9 = vld [vmem:[#allocation128_spill] sm:$0xff]  ;;  %v18886_v7 = vld [vmem:[#allocation133_spill] sm:$0xff]  ;;  %v18887_v17 = vld [vmem:[#allocation135_spill] sm:$0xff] }
 0x476   : > { %v15892_v52 = vsel %vm18873_vm5, %v18871_v36, %v5238_v51  ;;  %v15912_v51 = vsel %vm18881_vm0, %v18880_v9, %v5242_v6  ;;  %v18882_v36 = vld [vmem:[#allocation131_spill] sm:$0xff]  ;;  %vm18883_vm15 = vcmp.eq.s32.totalorder %v18739_v15, 16  ;;  %v18884_v25 = vld [vmem:[#allocation132_spill] sm:$0xff]  ;;  %vm18885_vm3 = vcmp.eq.s32.totalorder %v18777_v62, 16  ;;  %v18934_v30 = vld [vmem:[#allocation81_spill] sm:$0xff] }
 0x477   : > { %v15917_v0 = vsel %vm18883_vm15, %v18882_v36, %v5245_v21  ;;  %v15922_v43 = vsel %vm18885_vm3, %v18884_v25, %v5246_v22  ;;  %v15927_v38 = vsel %vm5175_vm10, %v18886_v7, %v5247_v63  ;;  %vm18888_vm12 = vcmp.eq.s32.totalorder %v18748_v10, 16  ;;  %v18889_v9 = vld [vmem:[#allocation136_spill] sm:$0xff]  ;;  %v18891_v36 = vld [vmem:[#allocation137_spill] sm:$0xff]  ;;  %v18895_v7 = vld [vmem:[#allocation130_spill] sm:$0xff] }
 0x478   : > { %v15932_v6 = vsel %vm18888_vm12, %v18887_v17, %v5248_v56  ;;  %vm18890_vm1 = vcmp.eq.s32.totalorder %v18747_v45, 16  ;;  %vm18892_vm13 = vcmp.eq.s32.totalorder %v18749_v48, 16  ;;  %v18893_v25 = vld [vmem:[#allocation129_spill] sm:$0xff]  ;;  %vm18894_vm14 = vcmp.eq.s32.totalorder %v18752_v13, 16  ;;  %v18897_v10 = vld [vmem:[#allocation8_spill] sm:$0xff] }
 0x479   : > { %v15937_v21 = vsel %vm18890_vm1, %v18889_v9, %v5249_v19  ;;  %v15942_v22 = vsel %vm18892_vm13, %v18891_v36, %v5250_v60  ;;  %v15947_v63 = vsel %vm18894_vm14, %v18893_v25, %v5243_v33  ;;  %vm18896_vm10 = vcmp.eq.s32.totalorder %v18753_v31, 16 }
 0x47a   : > { %v15952_v56 = vsel %vm18896_vm10, %v18895_v7, %v5244_v53  ;;  %v5300_v17 = vrot.slane %v15797_v34, 7  ;;  %v5334_v19 = vrot.slane %v15797_v34, 5  ;;  %v5343_v48 = vrot.slane %v15817_v32, 5 }
 0x47b   : > { %v5345_v60 = vrot.slane %v15822_v50, 5  ;;  %v5347_v36 = vrot.slane %v15827_v35, 5  ;;  %vm5185_vm7 = vcmp.eq.s32.totalorder %v18897_v10, 17  ;;  %v5341_v33 = vrot.slane %v15812_v59, 5 }
 0x47c   : > { %v18231_v25 = vrot.slane %v15832_v20, 5  ;;  %v18235_v53 = vrot.slane %v15837_v39, 5  ;;  %v18234_v7 = vrot.slane %v15842_v54, 5  ;;  %vm18898_vm11 = vcmask 1042432  }
 0x47d   : > { %v15966_v34 = vsel %vm18898_vm11, %v5343_v48, %v5345_v60  ;;  %v18237_v32 = vrot.slane %v15852_v12, 5  ;;  %vm18899_vm8 = vmmov %vm18898_vm11  ;;  %v18239_v62 = vrot.slane %v15862_v1, 5  ;;  %v18901_v50 = vrot.slane %v15847_v18, 5 }
 0x47e   : > { %v15974_v35 = vsel %vm18899_vm8, %v5347_v36, %v18231_v25  ;;  %vm18900_vm2 = vmmov %vm18899_vm8  ;;  %v18241_v25 = vrot.slane %v15872_v8, 5  ;;  %v18243_v15 = vrot.slane %v15882_v58, 5  ;;  %v18244_v57 = vrot.slane %v15892_v52, 5 }
 0x47f   : > { %v15981_v45 = vsel %vm18900_vm2, %v18235_v53, %v18234_v7  ;;  %vm18902_vm5 = vmmov %vm18900_vm2  ;;  %v18903_v7 = vrot.slane %v15857_v24, 5  ;;  %v18907_v13 = vrot.slane %v15877_v16, 5  ;;  %v18249_v55 = vrot.slane %v15952_v56, 5 }
 0x480   : > { %v15990_v46 = vsel %vm18902_vm5, %v18901_v50, %v18237_v32  ;;  %vm18904_vm9 = vmmov %vm18900_vm2  ;;  %v18905_v32 = vrot.slane %v15867_v37, 5  ;;  %v18910_v50 = vrot.slane %v15887_v61, 5  ;;  %v18252_v2 = vrot.slane %v15922_v43, 5 }
 0x481   : > { %v16000_v53 = vsel %vm18904_vm9, %v18903_v7, %v18239_v62  ;;  %vm18906_vm4 = vmmov %vm18900_vm2  ;;  %v18247_v62 = vrot.slane %v15902_v49, 5  ;;  %v18919_v4 = vrot.slane %v15947_v63, 5  ;;  %vm5149_vm1 = vcmp.eq.s32.totalorder %v18897_v10, 16 }
 0x482   : > { %v16010_v31 = vsel %vm18906_vm4, %v18905_v32, %v18241_v25  ;;  %vm18908_vm6 = vmmov %vm18900_vm2  ;;  %v18248_v32 = vrot.slane %v15912_v51, 5  ;;  %v18926_v40 = vrot.slane %v18925_v27, 6  ;;  %vm18929_vm14 = vcmask 1041408  }
 0x483   : > { %v16017_v7 = vsel %vm18908_vm6, %v18907_v13, %v18243_v15  ;;  %vm18911_vm0 = vmmov %vm18900_vm2  ;;  %v18913_v13 = vrot.slane %v15897_v14, 5  ;;  %v18930_v9 = vrot.slane %v15932_v6, 5  ;;  %v18931_v29 = vrot.slane %v15927_v38, 5 }
 0x484   : > { %18909 = vst [vmem:[#allocation82_spill] sm:$0xff] %v16017_v7  ;;  %v16026_v42 = vsel %vm18911_vm0, %v18910_v50, %v18244_v57  ;;  %vm18914_vm15 = vmmov %vm18911_vm0  ;;  %v18916_v57 = vrot.slane %v15907_v41, 5  ;;  %v18922_v50 = vrot.slane %v15917_v0, 5  ;;  %vm18937_vm11 = vcmask 1045504  }
 0x485   : > { %18912 = vst [vmem:[#allocation138_spill] sm:$0xff] %v16026_v42  ;;  %v16036_v15 = vsel %vm18914_vm15, %v18913_v13, %v18247_v62  ;;  %vm18917_vm3 = vmmov %vm18911_vm0  ;;  %v5337_v62 = vrot.slane %v15807_v5, 5  ;;  %v5296_v44 = vrot.slane %v15812_v59, 1  ;;  %vm18948_vm6 = vcmask 1046528  }
 0x486   : > { %18915 = vst [vmem:[#allocation83_spill] sm:$0xff] %v16036_v15  ;;  %v16046_v25 = vsel %vm18917_vm3, %v18916_v57, %v18248_v32  ;;  %vm18920_vm12 = vmmov %vm18911_vm0  ;;  %v6163_v10 = vrot.slane %v16000_v53, 2 }
 0x487   : > { %18918 = vst [vmem:[#allocation139_spill] sm:$0xff] %v16046_v25  ;;  %v16053_v13 = vsel %vm18920_vm12, %v18919_v4, %v18249_v55  ;;  %vm18923_vm13 = vmmov %vm18911_vm0  ;;  %v18928_v4 = vrot.slane %v18927_v28, 6  ;;  %v18938_v28 = vrot.slane %v15942_v22, 5 }
 0x488   : > { %18921 = vst [vmem:[#allocation84_spill] sm:$0xff] %v16053_v13  ;;  %v16063_v57 = vsel %vm18923_vm13, %v18922_v50, %v18252_v2  ;;  %vm18932_vm10 = vmmov %vm18911_vm0  ;;  %v18935_v50 = vrot.slane %v18934_v30, 2  ;;  %v18936_v2 = vrot.slane %v18925_v27, 2  ;;  %v18942_v30 = vrot.slane %v15802_v3, 5 }
 0x489   : > { %18924 = vst [vmem:[#allocation140_spill] sm:$0xff] %v16063_v57  ;;  %v4936_v55 = vsel %vm18929_vm14, %v18928_v4, %v18926_v40  ;;  %v16077_v23 = vsel %vm18932_vm10, %v18931_v29, %v18930_v9  ;;  %v18939_v40 = vrot.slane %v15937_v21, 5  ;;  %vm18940_vm8 = vmmov %vm18911_vm0  ;;  %v5293_v9 = vrot.slane %v15807_v5, 1 }
 0x48a   : > { %18933 = vst [vmem:[#allocation85_spill] sm:$0xff] %v16077_v23  ;;  %v5046_v32 = vsel %vm18937_vm11, %v18936_v2, %v18935_v50  ;;  %vm18943_vm2 = vmmov %vm18911_vm0  ;;  %vm18960_vm11 = vcmask 31744  }
 0x48b   : > { %v16090_v4 = vsel %vm18940_vm8, %v18939_v40, %v18938_v28  ;;  %v5221_v29 = vsel %vm5185_vm7, %v5046_v32, %v18925_v27  ;;  %v16099_v26 = vsel %vm18943_vm2, %v5334_v19, %v18942_v30  ;;  %vm18944_vm5 = vmmov %vm18929_vm14 }
 0x48c   : > { %18941 = vst [vmem:[#allocation141_spill] sm:$0xff] %v16090_v4  ;;  %v5257_v2 = vsel %vm5149_vm1, %v4936_v55, %v5221_v29  ;;  %v5414_v59 = vsel %vm18944_vm5, %v5296_v44, %v5300_v17  ;;  %vm18945_vm9 = vmmov %vm18911_vm0  ;;  %v5424_v5 = vrot.slane %v16099_v26, 1  ;;  %vm18965_vm5 = vcmask 1043456  }
 0x48d   : > { %v16103_v50 = vsel %vm18945_vm9, %v5341_v33, %v5343_v48  ;;  %v5294_v47 = vrot.slane %v5257_v2, 1  ;;  %v5339_v28 = vrot.slane %v5257_v2, 5  ;;  %vm18946_vm4 = vmmov %vm18911_vm0  ;;  %v18957_v2 = vrot.slane %v15837_v39, 5  ;;  %v18964_v39 = vld [vmem:[#allocation75_spill] sm:$0xff] }
 0x48e   : > { %v16106_v40 = vsel %vm18946_vm4, %v5414_v59, %v5334_v19  ;;  %vm18947_vm7 = vmmov %vm18911_vm0  ;;  %v18952_v19 = vrot.slane %v15802_v3, 5 }
 0x48f   : > { %v5422_v27 = vrot.slane %v16106_v40, 1  ;;  %v16111_v32 = vsel %vm18947_vm7, %v5345_v60, %v5347_v36  ;;  %v16114_v30 = vsel %vm18948_vm6, %v5293_v9, %v5294_v47  ;;  %vm18949_vm0 = vmmov %vm18948_vm6 }
 0x490   : > { %v16117_v55 = vsel %vm18949_vm0, %v5294_v47, %v5296_v44  ;;  %vm18950_vm15 = vmmov %vm18943_vm2  ;;  %v5419_v60 = vrot.slane %v16114_v30, 1 }
 0x491   : > { %v16120_v48 = vsel %vm18950_vm15, %v5337_v62, %v5339_v28  ;;  %vm18951_vm3 = vmmov %vm18943_vm2  ;;  %v5420_v36 = vrot.slane %v16117_v55, 1 }
 0x492   : > { %v16123_v17 = vsel %vm18951_vm3, %v5339_v28, %v5341_v33  ;;  %vm18953_vm12 = vmmov %vm18943_vm2  ;;  %v18958_v33 = vrot.slane %v15832_v20, 5  ;;  %v5428_v3 = vrot.slane %v16120_v48, 1  ;;  %v18962_v28 = vrot.slane %v15847_v18, 5 }
 0x493   : > { %v16128_v29 = vsel %vm18953_vm12, %v18952_v19, %v5337_v62  ;;  %vm18954_vm1 = vmmov %vm18949_vm0  ;;  %v18963_v19 = vrot.slane %v15842_v54, 5  ;;  %v18967_v20 = vrot.slane %v15857_v24, 5  ;;  %v18971_v18 = vrot.slane %v15862_v1, 5 }
 0x494   : > { %v5421_v9 = vsel %vm18954_vm1, %v5419_v60, %v5420_v36  ;;  %vm18955_vm13 = vmmov %vm18949_vm0  ;;  %v5426_v62 = vrot.slane %v16128_v29, 1  ;;  %v18968_v60 = vrot.slane %v15852_v12, 5  ;;  %v18975_v24 = vrot.slane %v15872_v8, 5 }
 0x495   : > { %v5423_v47 = vsel %vm18955_vm13, %v5420_v36, %v5422_v27  ;;  %vm18956_vm14 = vmmov %vm18949_vm0  ;;  %11408 = vmatprep.mubr.msk.f32.mxu1 %vm18960_vm11, %v5421_v9  ;;  %v18970_v9 = vrot.slane %v15867_v37, 5  ;;  %v5432_v1 = vrot.slane %v16103_v50, 1  ;;  %v18985_v8 = vrot.slane %v15897_v14, 5 }
 0x496   : > { %v5425_v44 = vsel %vm18956_vm14, %v5422_v27, %v5424_v5  ;;  %vm18959_vm10 = vmmov %vm18943_vm2  ;;  %v16151_v27 = vsel %vm18943_vm2, %v18963_v19, %v18962_v28 }
 0x497   : > { %v16140_v59 = vsel %vm18959_vm10, %v18958_v33, %v18957_v2  ;;  %vm18961_vm8 = vmmov %vm18960_vm11  ;;  %v5430_v2 = vrot.slane %v16123_v17, 1  ;;  %v18981_v33 = vrot.slane %v15887_v61, 5  ;;  %v18991_v61 = vrot.slane %v15902_v49, 5 }
 0x498   : > { %11409 = vmatmul.mubr.msk.f32.vlgmr.msra.gmra.mrb[0].mxu1 %vm18961_vm8, %v5423_v47  ;;  %vm18966_vm9 = vmmov %vm18961_vm8  ;;  %v19001_v49 = vrot.slane %v15917_v0, 5 }
 0x499   : > { %11463 = vmatpush3.msk.msra.mxu1 %vm18965_vm5, %v18964_v39  ;;  %11411 = vmatprep.mubr.msk.f32.mxu1 %vm18966_vm9, %v5425_v44  ;;  %vm18969_vm4 = vmmov %vm18943_vm2  ;;  %v18974_v44 = vrot.slane %v15877_v16, 5  ;;  %v18986_v16 = vrot.slane %v15892_v52, 5  ;;  %v5434_v39 = vrot.slane %v15966_v34, 1  ;;  %v5436_v52 = vrot.slane %v16111_v32, 1 }
 0x49a   : > { %v16161_v36 = vsel %vm18969_vm4, %v18968_v60, %v18967_v20  ;;  %vm18972_vm7 = vmmov %vm18943_vm2  ;;  %v18990_v20 = vrot.slane %v15907_v41, 5  ;;  %v18996_v60 = vrot.slane %v15947_v63, 5  ;;  %v19002_v41 = vrot.slane %v15952_v56, 5 }
 0x49b   : > { %v16168_v54 = vsel %vm18972_vm7, %v18971_v18, %v18970_v9  ;;  %vm18973_vm6 = vmmov %vm18949_vm0  ;;  %v18997_v9 = vrot.slane %v15912_v51, 5  ;;  %v19006_v63 = vrot.slane %v15927_v38, 5  ;;  %v19007_v51 = vrot.slane %v15922_v43, 5 }
 0x49c   : > { %v5427_v47 = vsel %vm18973_vm6, %v5424_v5, %v5426_v62  ;;  %vm18976_vm0 = vmmov %vm18943_vm2  ;;  %v18982_v5 = vrot.slane %v15882_v58, 5  ;;  %v5440_v56 = vrot.slane %v16140_v59, 1  ;;  %v5442_v38 = vrot.slane %v15981_v45, 1 }
 0x49d   : > { %v16177_v12 = vsel %vm18976_vm0, %v18975_v24, %v18974_v44  ;;  %vm18978_vm15 = vmmov %vm18961_vm8  ;;  %v19012_v24 = vrot.slane %v15937_v21, 5  ;;  %v6165_v11 = vrot.slane %v16168_v54, 2 }
 0x49e   : > { %18977 = vst [vmem:[#allocation86_spill] sm:$0xff] %v16177_v12  ;;  %11412 = vmatmul.mubr.msk.f32.gmra.mrb[2].mxu1 %vm18978_vm15, %v5427_v47  ;;  %vm18979_vm3 = vmmov %vm18954_vm1 }
 0x49f   : > { %v5429_v37 = vsel %vm18979_vm3, %v5426_v62, %v5428_v3  ;;  %vm18980_vm12 = vmmov %vm18961_vm8 }
 0x4a0   : > { %11414 = vmatprep.mubr.msk.f32.mxu1 %vm18980_vm12, %v5429_v37  ;;  %vm18983_vm1 = vmmov %vm18976_vm0  ;;  %v19013_v37 = vrot.slane %v15932_v6, 5  ;;  %v5444_v6 = vrot.slane %v16151_v27, 1 }
 0x4a1   : > { %v16188_v28 = vsel %vm18983_vm1, %v18982_v5, %v18981_v33  ;;  %vm18987_vm13 = vmmov %vm18976_vm0  ;;  %v12572_v33 = vld [vmem:[%s17986_s2] sm:$0xff]  }
 0x4a2   : > { %18984 = vst [vmem:[#allocation142_spill] sm:$0xff] %v16188_v28  ;;  %v16195_v19 = vsel %vm18987_vm13, %v18986_v16, %v18985_v8  ;;  %vm18989_vm14 = vmmov %vm18979_vm3  ;;  %v16249_v5 = vunpack.c.h.bf16 %v12572_v33  ;;  %v5462_v33 = vrot.slane %v16026_v42, 1 }
 0x4a3   : > { %18988 = vst [vmem:[#allocation87_spill] sm:$0xff] %v16195_v19  ;;  %v5431_v62 = vsel %vm18989_vm14, %v5428_v3, %v5430_v2  ;;  %vm18992_vm10 = vmmov %vm18976_vm0 }
 0x4a4   : > { %v16204_v58 = vsel %vm18992_vm10, %v18991_v61, %v18990_v20  ;;  %vm18994_vm11 = vmmov %vm18961_vm8  ;;  %vm19021_vm10 = vcmask 1043456   ;;  %v5448_v20 = vrot.slane %v16161_v36, 1 }
 0x4a5   : > { %18993 = vst [vmem:[#allocation143_spill] sm:$0xff] %v16204_v58  ;;  %11415 = vmatmul.mubr.msk.f32.gmra.mrb[4].mxu1 %vm18994_vm11, %v5431_v62  ;;  %vm18995_vm8 = vmmov %vm18979_vm3  ;;  %11518 = vmatprep.subr.msk.mxu1 %vm19021_vm10, %v16249_v5  ;;  %v5446_v62 = vrot.slane %v15990_v46, 1 }
 0x4a6   : > { %v5433_v14 = vsel %vm18995_vm8, %v5430_v2, %v5432_v1  ;;  %vm18998_vm2 = vmmov %vm18976_vm0  ;;  %v5438_v2 = vrot.slane %v15974_v35, 1 }
 0x4a7   : > { %v16214_v3 = vsel %vm18998_vm2, %v18997_v9, %v18996_v60  ;;  %vm19000_vm5 = vmmov %vm18966_vm9  ;;  %v5452_v60 = vrot.slane %v16168_v54, 1 }
 0x4a8   : > { %18999 = vst [vmem:[#allocation88_spill] sm:$0xff] %v16214_v3  ;;  %11417 = vmatprep.mubr.msk.f32.mxu1 %vm19000_vm5, %v5433_v14  ;;  %vm19003_vm9 = vmmov %vm18976_vm0  ;;  %v5450_v14 = vrot.slane %v16000_v53, 1 }
 0x4a9   : > { %v16222_v18 = vsel %vm19003_vm9, %v19002_v41, %v19001_v49  ;;  %vm19005_vm4 = vmmov %vm18979_vm3  ;;  %v5454_v49 = vrot.slane %v16010_v31, 1 }
 0x4aa   : > { %19004 = vst [vmem:[#allocation144_spill] sm:$0xff] %v16222_v18  ;;  %v5435_v47 = vsel %vm19005_vm4, %v5432_v1, %v5434_v39  ;;  %vm19008_vm7 = vmmov %vm18976_vm0 }
 0x4ab   : > { %v16231_v44 = vsel %vm19008_vm7, %v19007_v51, %v19006_v63  ;;  %vm19010_vm6 = vmmov %vm19000_vm5  ;;  %v5458_v63 = vrot.slane %v16017_v7, 1  ;;  %v5408_v51 = vrot.slane %v15942_v22, 1 }
 0x4ac   : > { %19009 = vst [vmem:[#allocation89_spill] sm:$0xff] %v16231_v44  ;;  %11418 = vmatmul.mubr.msk.f32.gmra.mrb[6].mxu1 %vm19010_vm6, %v5435_v47  ;;  %vm19011_vm0 = vmmov %vm18979_vm3  ;;  %v5456_v47 = vrot.slane %v16177_v12, 1 }
 0x4ad   : > { %v5437_v0 = vsel %vm19011_vm0, %v5434_v39, %v5436_v52  ;;  %vm19014_vm15 = vmmov %vm18983_vm1  ;;  %v5451_v9 = vsel %vm19011_vm0, %v5448_v20, %v5450_v14 }
 0x4ae   : > { %v16241_v1 = vsel %vm19014_vm15, %v19013_v37, %v19012_v24  ;;  %vm19016_vm3 = vmmov %vm19000_vm5  ;;  %v19036_v24 = vld [vmem:[#allocation78_spill] sm:$0xff] }
 0x4af   : > { %19015 = vst [vmem:[#allocation145_spill] sm:$0xff] %v16241_v1  ;;  %11420 = vmatprep.mubr.msk.f32.mxu1 %vm19016_vm3, %v5437_v0  ;;  %vm19017_vm12 = vmmov %vm19011_vm0  ;;  %v18263_v37 = vrot.slane %v19036_v24, 5 }
 0x4b0   : > { %v5439_v43 = vsel %vm19017_vm12, %v5436_v52, %v5438_v2  ;;  %vm19018_vm1 = vmmov %vm19016_vm3 }
 0x4b1   : > { %11421 = vmatmul.mubr.msk.f32.gmra.mrb[8].mxu1 %vm19018_vm1, %v5439_v43  ;;  %vm19019_vm13 = vmmov %vm19011_vm0  ;;  %v5407_v43 = vrot.slane %v15937_v21, 1 }
 0x4b2   : > { %v5441_v8 = vsel %vm19019_vm13, %v5438_v2, %v5440_v56  ;;  %vm19020_vm14 = vmmov %vm19018_vm1 }
 0x4b3   : > { %11423 = vmatprep.mubr.msk.f32.mxu1 %vm19020_vm14, %v5441_v8  ;;  %vm19022_vm11 = vmmov %vm19011_vm0 }
 0x4b4   : > { %v5443_v16 = vsel %vm19022_vm11, %v5440_v56, %v5442_v38  ;;  %vm19023_vm8 = vmmov %vm19018_vm1  ;;  %v5460_v56 = vrot.slane %v16188_v28, 1 }
 0x4b5   : > { %11424 = vmatmul.mubr.msk.f32.gmra.mrb[10].mxu1 %vm19023_vm8, %v5443_v16  ;;  %vm19024_vm2 = vmmov %vm19011_vm0 }
 0x4b6   : > { %v5445_v39 = vsel %vm19024_vm2, %v5442_v38, %v5444_v6  ;;  %vm19025_vm5 = vmmov %vm19018_vm1 }
 0x4b7   : > { %11426 = vmatprep.mubr.msk.f32.mxu1 %vm19025_vm5, %v5445_v39  ;;  %vm19026_vm9 = vmmov %vm19011_vm0  ;;  %v5466_v39 = vrot.slane %v16036_v15, 1 }
 0x4b8   : > { %v5447_v61 = vsel %vm19026_vm9, %v5444_v6, %v5446_v62  ;;  %vm19027_vm4 = vmmov %vm19018_vm1  ;;  %v5464_v6 = vrot.slane %v16195_v19, 1 }
 0x4b9   : > { %11427 = vmatmul.mubr.msk.f32.gmra.mrb[12].mxu1 %vm19027_vm4, %v5447_v61  ;;  %vm19028_vm7 = vmmov %vm19011_vm0  ;;  %v5468_v61 = vrot.slane %v16204_v58, 1 }
 0x4ba   : > { %v5449_v52 = vsel %vm19028_vm7, %v5446_v62, %v5448_v20  ;;  %vm19029_vm6 = vmmov %vm19018_vm1  ;;  %v5465_v20 = vsel %vm19011_vm0, %v5462_v33, %v5464_v6 }
 0x4bb   : > { %11429 = vmatprep.mubr.msk.f32.mxu1 %vm19029_vm6, %v5449_v52  ;;  %vm19030_vm15 = vmmov %vm19018_vm1  ;;  %v5470_v52 = vrot.slane %v16046_v25, 1 }
 0x4bc   : > { %vm19031_vm3 = vmmov %vm19011_vm0 }
 0x4bd   : > { %11430 = vmatmul.mubr.msk.f32.gmra.mrb[14].mxu1 %vm19030_vm15, %v5451_v9  ;;  %v5453_v41 = vsel %vm19031_vm3, %v5450_v14, %v5452_v60  ;;  %vm19032_vm12 = vmmov %vm19018_vm1  ;;  %v5472_v9 = vrot.slane %v16214_v3, 1 }
 0x4be   : > { %11432 = vmatprep.mubr.msk.f32.mxu1 %vm19032_vm12, %v5453_v41  ;;  %vm19033_vm1 = vmmov %vm19011_vm0  ;;  %v5474_v41 = vrot.slane %v16053_v13, 1 }
 0x4bf   : > { %v5455_v2 = vsel %vm19033_vm1, %v5452_v60, %v5454_v49  ;;  %vm19034_vm13 = vmmov %vm19027_vm4 }
 0x4c0   : > { %vm19035_vm14 = vmmov %vm19011_vm0 }
 0x4c1   : > { %11433 = vmatmul.mubr.msk.f32.gmra.mrb[16].mxu1 %vm19034_vm13, %v5455_v2  ;;  %v5457_v0 = vsel %vm19035_vm14, %v5454_v49, %v5456_v47  ;;  %vm19037_vm10 = vmmov %vm19027_vm4  ;;  %v5476_v2 = vrot.slane %v16222_v18, 1 }
 0x4c2   : > { %11435 = vmatprep.mubr.msk.f32.mxu1 %vm19037_vm10, %v5457_v0  ;;  %vm19038_vm11 = vmmov %vm19011_vm0  ;;  %v5478_v0 = vrot.slane %v16063_v57, 1 }
 0x4c3   : > { %v5459_v38 = vsel %vm19038_vm11, %v5456_v47, %v5458_v63  ;;  %vm19039_vm8 = vmmov %vm19027_vm4 }
 0x4c4   : > { %vm19040_vm2 = vmmov %vm19011_vm0 }
 0x4c5   : > { %11436 = vmatmul.mubr.msk.f32.gmra.mrb[18].mxu1 %vm19039_vm8, %v5459_v38  ;;  %v5461_v8 = vsel %vm19040_vm2, %v5458_v63, %v5460_v56  ;;  %vm19041_vm5 = vmmov %vm19011_vm0  ;;  %v19057_v38 = vld [vmem:[#allocation76_spill] sm:$0xff] }
 0x4c6   : > { %v5409_v16 = vsel %vm19041_vm5, %v5407_v43, %v5408_v51  ;;  %vm19042_vm9 = vmmov %vm19027_vm4  ;;  %vm19043_vm4 = vcmask 1041408   ;;  %v5480_v43 = vrot.slane %v16231_v44, 1 }
 0x4c7   : > { %11438 = vmatprep.mubr.msk.f32.mxu1 %vm19042_vm9, %v5461_v8  ;;  %v16296_v21 = vsel %vm19043_vm4, %v18263_v37, %v5409_v16  ;;  %vm19044_vm7 = vmmov %vm19011_vm0  ;;  %v19060_v16 = vld [vmem:[#allocation77_spill] sm:$0xff]  ;;  %v6161_v37 = vrot.slane %v16161_v36, 2 }
 0x4c8   : > { %v5463_v62 = vsel %vm19044_vm7, %v5460_v56, %v5462_v33  ;;  %vm19045_vm15 = vmmov %vm19029_vm6  ;;  %v5399_v33 = vrot.slane %v19057_v38, 5 }
 0x4c9   : > { %11439 = vmatmul.mubr.msk.f32.gmra.mrb[20].mxu1 %vm19029_vm6, %v5463_v62  ;;  %vm19046_vm3 = vmmov %vm19011_vm0  ;;  %v18262_v62 = vrot.slane %v19060_v16, 5 }
 0x4ca   : > { %11441 = vmatprep.mubr.msk.f32.mxu1 %vm19045_vm15, %v5465_v20  ;;  %v5467_v14 = vsel %vm19046_vm3, %v5464_v6, %v5466_v39  ;;  %vm19047_vm12 = vmmov %vm19029_vm6  ;;  %v5482_v6 = vrot.slane %v16077_v23, 1  ;;  %v5484_v20 = vrot.slane %v16241_v1, 1  ;;  %vm19064_vm3 = vcmask 1042432  }
 0x4cb   : > { %vm19048_vm1 = vmmov %vm19011_vm0 }
 0x4cc   : > { %v5469_v60 = vsel %vm19048_vm1, %v5466_v39, %v5468_v61  ;;  %vm19049_vm13 = vmmov %vm19029_vm6  ;;  %v5481_v39 = vsel %vm19011_vm0, %v5478_v0, %v5480_v43 }
 0x4cd   : > { %11442 = vmatmul.mubr.msk.f32.gmra.mrb[22].mxu1 %vm19047_vm12, %v5467_v14  ;;  %vm19050_vm14 = vmmov %vm19011_vm0 }
 0x4ce   : > { %11444 = vmatprep.mubr.msk.f32.mxu1 %vm19049_vm13, %v5469_v60  ;;  %v5471_v49 = vsel %vm19050_vm14, %v5468_v61, %v5470_v52  ;;  %vm19051_vm10 = vmmov %vm19029_vm6  ;;  %v19063_v61 = vrot.slane %v15942_v22, 5  ;;  %v5486_v60 = vrot.slane %v16090_v4, 1 }
 0x4cf   : > { %vm19052_vm11 = vmmov %vm19011_vm0 }
 0x4d0   : > { %v5473_v47 = vsel %vm19052_vm11, %v5470_v52, %v5472_v9  ;;  %vm19053_vm8 = vmmov %vm19029_vm6  ;;  %v16333_v14 = vsel %vm19064_vm3, %v19063_v61, %v5399_v33 }
 0x4d1   : > { %11445 = vmatmul.mubr.msk.f32.gmra.mrb[24].mxu1 %vm19051_vm10, %v5471_v49  ;;  %vm19054_vm2 = vmmov %vm19011_vm0 }
 0x4d2   : > { %11447 = vmatprep.mubr.msk.f32.mxu1 %vm19053_vm8, %v5473_v47  ;;  %v5475_v63 = vsel %vm19054_vm2, %v5472_v9, %v5474_v41  ;;  %vm19055_vm5 = vmmov %vm19029_vm6 }
 0x4d3   : > { %vm19056_vm9 = vmmov %vm19011_vm0 }
 0x4d4   : > { %v5477_v56 = vsel %vm19056_vm9, %v5474_v41, %v5476_v2  ;;  %vm19058_vm4 = vmmov %vm19055_vm5  ;;  %v5488_v41 = vrot.slane %v16333_v14, 1 }
 0x4d5   : > { %11448 = vmatmul.mubr.msk.f32.gmra.mrb[26].mxu1 %vm19055_vm5, %v5475_v63  ;;  %vm19059_vm7 = vmmov %vm19011_vm0 }
 0x4d6   : > { %11450 = vmatprep.mubr.msk.f32.mxu1 %vm19058_vm4, %v5477_v56  ;;  %v5479_v8 = vsel %vm19059_vm7, %v5476_v2, %v5478_v0  ;;  %vm19061_vm6 = vmmov %vm19058_vm4  ;;  %v6566_v56 = vrot.slane %v16249_v5, 4 }
 0x4d7   : > { %vm19062_vm15 = vmmov %vm19058_vm4 }
 0x4d8   : > { %vm19065_vm12 = vmmov %vm19011_vm0 }
 0x4d9   : > { %11451 = vmatmul.mubr.msk.f32.gmra.mrb[28].mxu1 %vm19061_vm6, %v5479_v8  ;;  %v5483_v52 = vsel %vm19065_vm12, %v5480_v43, %v5482_v6  ;;  %vm19066_vm1 = vmmov %vm19064_vm3  ;;  %v5410_v43 = vrot.slane %v19057_v38, 1 }
 0x4da   : > { %11453 = vmatprep.mubr.msk.f32.mxu1 %vm19062_vm15, %v5481_v39  ;;  %v16340_v9 = vsel %vm19066_vm1, %v5399_v33, %v18262_v62  ;;  %vm19068_vm13 = vmmov %vm19058_vm4  ;;  %v18261_v33 = vrot.slane %v16296_v21, 4  ;;  %v6159_v62 = vrot.slane %v15990_v46, 2 }
 0x4db   : > { %19067 = vst [vmem:[#allocation90_spill] sm:$0xff] %v16340_v9  ;;  %vm19069_vm14 = vmmov %vm19011_vm0  ;;  %v5490_v2 = vrot.slane %v16340_v9, 1 }
 0x4dc   : > { %v5485_v49 = vsel %vm19069_vm14, %v5482_v6, %v5484_v20  ;;  %vm19070_vm10 = vmmov %vm19058_vm4 }
 0x4dd   : > { %11454 = vmatmul.mubr.msk.f32.gmra.mrb[30].mxu1 %vm19068_vm13, %v5483_v52  ;;  %vm19071_vm11 = vmmov %vm19011_vm0 }
 0x4de   : > { %11456 = vmatprep.mubr.msk.f32.mxu1 %vm19070_vm10, %v5485_v49  ;;  %v5487_v47 = vsel %vm19071_vm11, %v5484_v20, %v5486_v60  ;;  %vm19072_vm8 = vmmov %vm19058_vm4  ;;  %v6132_v49 = vrot.slane %v16114_v30, 2 }
 0x4df   : > { %vm19073_vm2 = vmmov %vm19011_vm0 }
 0x4e0   : > { %v5489_v63 = vsel %vm19073_vm2, %v5486_v60, %v5488_v41  ;;  %vm19074_vm5 = vmmov %vm19058_vm4 }
 0x4e1   : > { %11457 = vmatmul.mubr.msk.f32.gmra.mrb[32].mxu1 %vm19072_vm8, %v5487_v47  ;;  %vm19075_vm9 = vmmov %vm19011_vm0  ;;  %vm19078_vm0 = vcmask 1043456   ;;  %v6135_v47 = vrot.slane %v16106_v40, 2 }
 0x4e2   : > { %11459 = vmatprep.mubr.msk.f32.mxu1 %vm19074_vm5, %v5489_v63  ;;  %v5491_v0 = vsel %vm19075_vm9, %v5488_v41, %v5490_v2  ;;  %vm19076_vm7 = vmmov %vm19058_vm4  ;;  %v6133_v41 = vrot.slane %v16117_v55, 2  ;;  %v16467_v2 = vld [vmem:[%s17986_s2 + $0x8] sm:$0xff]  }
 0x4e3   : > { %vm19077_vm6 = vmmov %vm19058_vm4 }
 0x4e4   : > { %vm19079_vm15 = vmmov %vm19058_vm4 }
 0x4e5   : > { %11460 = vmatmul.mubr.msk.f32.gmra.mrb[34].mxu1 %vm19058_vm4, %v5491_v0  ;;  %vm19080_vm3 = vmmov %vm19078_vm0  ;;  %v6137_v0 = vrot.slane %v16099_v26, 2 }
 0x4e6   : > { %11464 = vmatprep.mubr.msk.f32.mxu1 %vm19076_vm7, %v16114_v30  ;;  %vm19081_vm12 = vmmov %vm19073_vm2  ;;  %v16475_v30 = vunpack.c.l.bf16 %v16467_v2 }
 0x4e7   : > { %v16370_v8 = vsel %vm19081_vm12, %v5408_v51, %v5410_v43  ;;  %vm19083_vm1 = vmmov %vm19058_vm4 }
 0x4e8   : > { %19082 = vst [vmem:[#allocation146_spill] sm:$0xff] %v16370_v8  ;;  %v18260_v6 = vrot.slane %v16370_v8, 4  ;;  %vm19084_vm13 = vmmov %vm19083_vm1  ;;  %v18259_v51 = vrot.slane %v16370_v8, 5  ;;  %v18258_v61 = vrot.slane %v16370_v8, 6  ;;  %v6171_v8 = vrot.slane %v16017_v7, 2 }
 0x4e9   : > { %11465 = vmatmul.mubr.msk.f32.vlgmr.msra.gmra.mrb[0].mxu1 %vm19077_vm6, %v16117_v55  ;;  %vm19085_vm14 = vmmov %vm19078_vm0 }
 0x4ea   : > { %11519 = vmatpush3.msk.msra.mxu1 %vm19078_vm0, %v16249_v5  ;;  %11467 = vmatprep.mubr.msk.f32.mxu1 %vm19079_vm15, %v16106_v40  ;;  %v16382_v38 = vsel %vm19085_vm14, %v18261_v33, %v18260_v6  ;;  %vm19087_vm10 = vmmov %vm19083_vm1  ;;  %v6145_v5 = vrot.slane %v16103_v50, 2  ;;  %v6155_v6 = vrot.slane %v15981_v45, 2  ;;  %v6157_v33 = vrot.slane %v16151_v27, 2 }
 0x4eb   : > { %11574 = vmatprep.subr.msk.mxu1 %vm19080_vm3, %v6566_v56  ;;  %19086 = vst [vmem:[#allocation91_spill] sm:$0xff] %v16382_v38  ;;  %vm19088_vm11 = vmmov %vm19083_vm1  ;;  %v6173_v38 = vrot.slane %v16188_v28, 2 }
 0x4ec   : > { %vm19089_vm8 = vmmov %vm19083_vm1 }
 0x4ed   : > { %11468 = vmatmul.mubr.msk.f32.gmra.mrb[2].mxu1 %vm19083_vm1, %v16099_v26  ;;  %vm19090_vm2 = vmmov %vm19083_vm1 }
 0x4ee   : > { %11470 = vmatprep.mubr.msk.f32.mxu1 %vm19084_vm13, %v16128_v29  ;;  %vm19091_vm5 = vmmov %vm19083_vm1 }
 0x4ef   : > { %vm19092_vm9 = vmmov %vm19083_vm1 }
 0x4f0   : > { %vm19093_vm4 = vmmov %vm19078_vm0  ;;  %vm19097_vm0 = vcmask 1042432  }
 0x4f1   : > { %11471 = vmatmul.mubr.msk.f32.gmra.mrb[4].mxu1 %vm19087_vm10, %v16120_v48  ;;  %v16397_v22 = vsel %vm19093_vm4, %v5410_v43, 0.0  ;;  %vm19095_vm7 = vmmov %vm19083_vm1  ;;  %v6139_v43 = vrot.slane %v16128_v29, 2 }
 0x4f2   : > { %11473 = vmatprep.mubr.msk.f32.mxu1 %vm19088_vm11, %v16123_v17  ;;  %19094 = vst [vmem:[#allocation147_spill] sm:$0xff] %v16397_v22  ;;  %v8076_v39 = vrot.slane %v16397_v22, 5  ;;  %vm19096_vm6 = vmmov %vm19083_vm1  ;;  %v8505_v52 = vrot.slane %v16397_v22, 6  ;;  %v6175_v22 = vrot.slane %v16026_v42, 2 }
 0x4f3   : > { %vm19099_vm15 = vmmov %vm19083_vm1 }
 0x4f4   : > { %v16408_v20 = vsel %vm19097_vm0, %v18259_v51, %v8076_v39  ;;  %vm19100_vm3 = vmmov %vm19083_vm1  ;;  %v6153_v51 = vrot.slane %v16140_v59, 2 }
 0x4f5   : > { %11474 = vmatmul.mubr.msk.f32.gmra.mrb[6].mxu1 %vm19089_vm8, %v16103_v50  ;;  %19098 = vst [vmem:[#allocation92_spill] sm:$0xff] %v16408_v20  ;;  %vm19101_vm12 = vmmov %vm19083_vm1  ;;  %v6169_v20 = vrot.slane %v16177_v12, 2 }
 0x4f6   : > { %11476 = vmatprep.mubr.msk.f32.mxu1 %vm19090_vm2, %v15966_v34  ;;  %vm19102_vm13 = vmmov %vm19083_vm1  ;;  %vm19107_vm2 = vcmask 1041408  }
 0x4f7   : > { %vm19103_vm14 = vmmov %vm19083_vm1  ;;  %v16433_v60 = vsel %vm19107_vm2, %v18258_v61, %v8505_v52  ;;  %v6141_v52 = vrot.slane %v16120_v48, 2  ;;  %v6151_v61 = vrot.slane %v15974_v35, 2 }
 0x4f8   : > { %vm19104_vm10 = vmmov %vm19083_vm1  ;;  %19108 = vst [vmem:[#allocation93_spill] sm:$0xff] %v16433_v60  ;;  %v6167_v60 = vrot.slane %v16010_v31, 2 }
 0x4f9   : > { %11477 = vmatmul.mubr.msk.f32.gmra.mrb[8].mxu1 %vm19091_vm5, %v16111_v32  ;;  %vm19105_vm11 = vmmov %vm19083_vm1 }
 0x4fa   : > { %11479 = vmatprep.mubr.msk.f32.mxu1 %vm19092_vm9, %v15974_v35  ;;  %vm19106_vm8 = vmmov %vm19083_vm1 }
 0x4fb   : > { %vm19109_vm5 = vmmov %vm19083_vm1 }
 0x4fc   : > { %vm19110_vm9 = vmmov %vm19083_vm1 }
 0x4fd   : > { %11480 = vmatmul.mubr.msk.f32.gmra.mrb[10].mxu1 %vm19095_vm7, %v16140_v59  ;;  %vm19111_vm4 = vmmov %vm19083_vm1 }
 0x4fe   : > { %11482 = vmatprep.mubr.msk.f32.mxu1 %vm19096_vm6, %v15981_v45  ;;  %vm19112_vm7 = vmmov %vm19083_vm1 }
 0x4ff   : > { %vm19113_vm6 = vmmov %vm19083_vm1 }
 0x500   : > { %vm19114_vm0 = vmmov %vm19083_vm1 }
 0x501   : > { %11483 = vmatmul.mubr.msk.f32.gmra.mrb[12].mxu1 %vm19099_vm15, %v16151_v27  ;;  %vm19115_vm15 = vmmov %vm19114_vm0 }
 0x502   : > { %11485 = vmatprep.mubr.msk.f32.mxu1 %vm19100_vm3, %v15990_v46  ;;  %vm19116_vm3 = vmmov %vm19114_vm0 }
 0x503   : > { %vm19124_vm2 = vmmov %vm19114_vm0 }
 0x505   : > { %11486 = vmatmul.mubr.msk.f32.gmra.mrb[14].mxu1 %vm19101_vm12, %v16161_v36  ;;  %vm19117_vm12 = vmmov %vm19114_vm0 }
 0x506   : > { %11488 = vmatprep.mubr.msk.f32.mxu1 %vm19083_vm1, %v16000_v53  ;;  %vm19118_vm1 = vmmov %vm19114_vm0 }
 0x509   : > { %11489 = vmatmul.mubr.msk.f32.gmra.mrb[16].mxu1 %vm19102_vm13, %v16168_v54  ;;  %vm19119_vm13 = vmmov %vm19114_vm0 }
 0x50a   : > { %11491 = vmatprep.mubr.msk.f32.mxu1 %vm19103_vm14, %v16010_v31  ;;  %vm19120_vm14 = vmmov %vm19114_vm0 }
 0x50d   : > { %11492 = vmatmul.mubr.msk.f32.gmra.mrb[18].mxu1 %vm19104_vm10, %v16177_v12  ;;  %vm19121_vm10 = vmmov %vm19114_vm0  ;;  %v6187_v12 = vrot.slane %v16053_v13, 2 }
 0x50e   : > { %11494 = vmatprep.mubr.msk.f32.mxu1 %vm19105_vm11, %v16017_v7  ;;  %vm19122_vm11 = vmmov %vm19114_vm0  ;;  %v6177_v7 = vrot.slane %v16195_v19, 2 }
 0x511   : > { %11495 = vmatmul.mubr.msk.f32.gmra.mrb[20].mxu1 %vm19106_vm8, %v16188_v28  ;;  %vm19123_vm8 = vcmask 1045504   ;;  %v6179_v28 = vrot.slane %v16036_v15, 2 }
 0x512   : > { %11497 = vmatprep.mubr.msk.f32.mxu1 %vm19109_vm5, %v16026_v42  ;;  %v6134_v63 = vsel %vm19123_vm8, %v6132_v49, %v6133_v41  ;;  %vm19125_vm5 = vmmov %vm19123_vm8  ;;  %v6181_v42 = vrot.slane %v16204_v58, 2 }
 0x513   : > { %v6136_v55 = vsel %vm19125_vm5, %v6133_v41, %v6135_v47  ;;  %v6143_v41 = vrot.slane %v16123_v17, 2 }
 0x515   : > { %11498 = vmatmul.mubr.msk.f32.gmra.mrb[22].mxu1 %vm19110_vm9, %v16195_v19  ;;  %vm19126_vm9 = vmmov %vm19114_vm0  ;;  %v6183_v19 = vrot.slane %v16046_v25, 2 }
 0x516   : > { %11500 = vmatprep.mubr.msk.f32.mxu1 %vm19111_vm4, %v16036_v15  ;;  %vm19127_vm4 = vmmov %vm19125_vm5  ;;  %v6185_v15 = vrot.slane %v16214_v3, 2 }
 0x517   : > { %v16481_v39 = vsel %vm19127_vm4, %v6135_v47, %v6137_v0  ;;  %vm19138_vm8 = vmmov %vm19127_vm4 }
 0x518   : > { %vm19140_vm5 = vmmov %vm19127_vm4 }
 0x519   : > { %11501 = vmatmul.mubr.msk.f32.gmra.mrb[24].mxu1 %vm19112_vm7, %v16204_v58  ;;  %vm19128_vm7 = vcmask 1043456  }
 0x51a   : > { %11503 = vmatprep.mubr.msk.f32.mxu1 %vm19113_vm6, %v16046_v25  ;;  %vm19129_vm6 = vmmov %vm19114_vm0 }
 0x51d   : > { %11504 = vmatmul.mubr.msk.f32.gmra.mrb[26].mxu1 %vm19114_vm0, %v16214_v3  ;;  %vm19130_vm0 = vmmov %vm19128_vm7 }
 0x51e   : > { %11506 = vmatprep.mubr.msk.f32.mxu1 %vm19115_vm15, %v16053_v13  ;;  %vm19131_vm15 = vmmov %vm19127_vm4 }
 0x51f   : > { %v16492_v49 = vsel %vm19131_vm15, %v6137_v0, %v6139_v43  ;;  %vm19145_vm15 = vmmov %vm19127_vm4 }
 0x521   : > { %11507 = vmatmul.mubr.msk.f32.gmra.mrb[28].mxu1 %vm19116_vm3, %v16222_v18  ;;  %vm19132_vm3 = vmmov %vm19118_vm1 }
 0x522   : > { %11509 = vmatprep.mubr.msk.f32.mxu1 %vm19117_vm12, %v16063_v57  ;;  %vm19133_vm12 = vmmov %vm19127_vm4 }
 0x523   : > { %v16498_v47 = vsel %vm19133_vm12, %v6139_v43, %v6141_v52  ;;  %vm19147_vm12 = vmmov %vm19127_vm4 }
 0x525   : > { %11510 = vmatmul.mubr.msk.f32.gmra.mrb[30].mxu1 %vm19118_vm1, %v16231_v44 }
 0x526   : > { %11512 = vmatprep.mubr.msk.f32.mxu1 %vm19119_vm13, %v16077_v23  ;;  %vm19134_vm13 = vmmov %vm19127_vm4 }
 0x529   : > { %11513 = vmatmul.mubr.msk.f32.gmra.mrb[32].mxu1 %vm19120_vm14, %v16241_v1  ;;  %vm19135_vm14 = vmmov %vm19118_vm1 }
 0x52a   : > { %11515 = vmatprep.mubr.msk.f32.mxu1 %vm19121_vm10, %v16090_v4  ;;  %vm19136_vm10 = vmmov %vm19127_vm4 }
 0x52b   : > { %v16510_v0 = vsel %vm19136_vm10, %v6143_v41, %v6145_v5  ;;  %vm19151_vm10 = vmmov %vm19127_vm4 }
 0x52d   : > { %11516 = vmatmul.mubr.msk.f32.gmra.mrb[34].mxu1 %vm19122_vm11, %v16333_v14  ;;  %vm19137_vm11 = vmmov %vm19118_vm1 }
 0x52e   : > { %11520 = vmatprep.mubr.msk.f32.mxu1 %vm19124_vm2, %v6134_v63  ;;  %v6147_v63 = vrot.slane %v15966_v34, 2  ;;  %vm19139_vm2 = vmmov %vm19118_vm1 }
 0x530   : > { %v16516_v43 = vsel %vm19138_vm8, %v6145_v5, %v6147_v63  ;;  %vm19153_vm8 = vmmov %vm19127_vm4 }
 0x531   : > { %11521 = vmatmul.mubr.msk.f32.vlgmr.msra.gmra.mrb[0].mxu1 %vm19126_vm9, %v6136_v55  ;;  %v6149_v55 = vrot.slane %v16111_v32, 2  ;;  %vm19141_vm9 = vmmov %vm19118_vm1 }
 0x532   : > { %11575 = vmatpush3.msk.msra.mxu1 %vm19128_vm7, %v6566_v56  ;;  %11523 = vmatprep.mubr.msk.f32.mxu1 %vm19129_vm6, %v16481_v39  ;;  %v16504_v56 = vsel %vm19134_vm13, %v6141_v52, %v6143_v41  ;;  %vm19142_vm7 = vmmov %vm19118_vm1 }
 0x533   : > { %11630 = vmatprep.subr.msk.mxu1 %vm19130_vm0, %v16475_v30  ;;  %v16522_v52 = vsel %vm19140_vm5, %v6147_v63, %v6149_v55  ;;  %v16528_v41 = vsel %vm19127_vm4, %v6149_v55, %v6151_v61  ;;  %vm19143_vm6 = vmmov %vm19127_vm4  ;;  %v16540_v63 = vsel %vm19145_vm15, %v6153_v51, %v6155_v6  ;;  %v16546_v55 = vsel %vm19147_vm12, %v6155_v6, %v6157_v33 }
 0x534   : > { %v16534_v5 = vsel %vm19143_vm6, %v6151_v61, %v6153_v51  ;;  %vm19144_vm0 = vmmov %vm19118_vm1  ;;  %v16558_v51 = vsel %vm19151_vm10, %v6159_v62, %v6161_v37  ;;  %v16564_v6 = vsel %vm19153_vm8, %v6161_v37, %v6163_v10 }
 0x535   : > { %11524 = vmatmul.mubr.msk.f32.gmra.mrb[2].mxu1 %vm19132_vm3, %v16492_v49  ;;  %vm19146_vm3 = vmmov %vm19144_vm0 }
 0x536   : > { %11526 = vmatprep.mubr.msk.f32.mxu1 %vm19118_vm1, %v16498_v47  ;;  %vm19148_vm1 = vmmov %vm19144_vm0 }
 0x537   : > { %vm19149_vm13 = vmmov %vm19127_vm4 }
 0x538   : > { %v16552_v61 = vsel %vm19149_vm13, %v6157_v33, %v6159_v62  ;;  %vm19155_vm5 = vmmov %vm19127_vm4  ;;  %v16576_v62 = vsel %vm19127_vm4, %v6165_v11, %v6167_v60 }
 0x539   : > { %11527 = vmatmul.mubr.msk.f32.gmra.mrb[4].mxu1 %vm19135_vm14, %v16504_v56  ;;  %vm19150_vm14 = vmmov %vm19144_vm0  ;;  %v16570_v33 = vsel %vm19155_vm5, %v6163_v10, %v6165_v11 }
 0x53a   : > { %11529 = vmatprep.mubr.msk.f32.mxu1 %vm19137_vm11, %v16510_v0  ;;  %vm19152_vm11 = vmmov %vm19144_vm0 }
 0x53b   : > { %vm19158_vm6 = vmmov %vm19127_vm4 }
 0x53c   : > { %v16582_v37 = vsel %vm19158_vm6, %v6167_v60, %v6169_v20  ;;  %vm19159_vm15 = vmmov %vm19127_vm4 }
 0x53d   : > { %11530 = vmatmul.mubr.msk.f32.gmra.mrb[6].mxu1 %vm19139_vm2, %v16516_v43  ;;  %vm19154_vm2 = vmmov %vm19144_vm0  ;;  %v16588_v10 = vsel %vm19159_vm15, %v6169_v20, %v6171_v8 }
 0x53e   : > { %11532 = vmatprep.mubr.msk.f32.mxu1 %vm19141_vm9, %v16522_v52  ;;  %vm19156_vm9 = vmmov %vm19144_vm0 }
 0x53f   : > { %vm19161_vm12 = vmmov %vm19127_vm4 }
 0x540   : > { %v16594_v11 = vsel %vm19161_vm12, %v6171_v8, %v6173_v38  ;;  %vm19163_vm13 = vmmov %vm19127_vm4 }
 0x541   : > { %11533 = vmatmul.mubr.msk.f32.gmra.mrb[8].mxu1 %vm19142_vm7, %v16528_v41  ;;  %vm19157_vm7 = vmmov %vm19144_vm0  ;;  %v16600_v60 = vsel %vm19163_vm13, %v6173_v38, %v6175_v22 }
 0x542   : > { %11535 = vmatprep.mubr.msk.f32.mxu1 %vm19144_vm0, %v16534_v5  ;;  %vm19165_vm10 = vmmov %vm19127_vm4 }
 0x543   : > { %v16606_v20 = vsel %vm19165_vm10, %v6175_v22, %v6177_v7  ;;  %vm19167_vm8 = vmmov %vm19127_vm4  ;;  %v6184_v22 = vsel %vm19127_vm4, %v6181_v42, %v6183_v19 }
 0x544   : > { %v6180_v8 = vsel %vm19167_vm8, %v6177_v7, %v6179_v28  ;;  %vm19169_vm5 = vmmov %vm19127_vm4  ;;  %v6189_v7 = vrot.slane %v16222_v18, 2 }
 0x545   : > { %11536 = vmatmul.mubr.msk.f32.gmra.mrb[10].mxu1 %vm19146_vm3, %v16540_v63  ;;  %vm19160_vm3 = vmmov %vm19144_vm0  ;;  %v6182_v38 = vsel %vm19169_vm5, %v6179_v28, %v6181_v42  ;;  %v6191_v28 = vrot.slane %v16063_v57, 2  ;;  %v6193_v42 = vrot.slane %v16231_v44, 2 }
 0x546   : > { %11538 = vmatprep.mubr.msk.f32.mxu1 %vm19148_vm1, %v16546_v55  ;;  %vm19162_vm1 = vmmov %vm19144_vm0 }
 0x547   : > { %vm19172_vm6 = vmmov %vm19127_vm4 }
 0x548   : > { %v6186_v58 = vsel %vm19172_vm6, %v6183_v19, %v6185_v15  ;;  %vm19173_vm15 = vmmov %vm19127_vm4  ;;  %v6195_v19 = vrot.slane %v16077_v23, 2 }
 0x549   : > { %11539 = vmatmul.mubr.msk.f32.gmra.mrb[12].mxu1 %vm19150_vm14, %v16552_v61  ;;  %vm19164_vm14 = vmmov %vm19144_vm0  ;;  %v6188_v25 = vsel %vm19173_vm15, %v6185_v15, %v6187_v12  ;;  %v6197_v15 = vrot.slane %v16241_v1, 2 }
 0x54a   : > { %11541 = vmatprep.mubr.msk.f32.mxu1 %vm19152_vm11, %v16558_v51  ;;  %vm19166_vm11 = vmmov %vm19144_vm0 }
 0x54b   : > { %vm19175_vm12 = vmmov %vm19127_vm4 }
 0x54c   : > { %v6190_v3 = vsel %vm19175_vm12, %v6187_v12, %v6189_v7  ;;  %vm19177_vm13 = vmmov %vm19127_vm4  ;;  %v6199_v12 = vrot.slane %v16090_v4, 2 }
 0x54d   : > { %11542 = vmatmul.mubr.msk.f32.gmra.mrb[14].mxu1 %vm19154_vm2, %v16564_v6  ;;  %vm19168_vm2 = vmmov %vm19144_vm0  ;;  %v6192_v13 = vsel %vm19177_vm13, %v6189_v7, %v6191_v28  ;;  %v6201_v7 = vrot.slane %v16333_v14, 2  ;;  %vm19191_vm13 = vcmask 1043456  }
 0x54e   : > { %11544 = vmatprep.mubr.msk.f32.mxu1 %vm19156_vm9, %v16570_v33  ;;  %vm19170_vm9 = vmmov %vm19144_vm0  ;;  %v6200_v23 = vsel %vm19127_vm4, %v6197_v15, %v6199_v12 }
 0x54f   : > { %vm19179_vm10 = vmmov %vm19127_vm4 }
 0x550   : > { %v6194_v18 = vsel %vm19179_vm10, %v6191_v28, %v6193_v42  ;;  %vm19181_vm8 = vmmov %vm19127_vm4  ;;  %v6203_v28 = vrot.slane %v16340_v9, 2 }
 0x551   : > { %11545 = vmatmul.mubr.msk.f32.gmra.mrb[16].mxu1 %vm19157_vm7, %v16576_v62  ;;  %vm19171_vm7 = vmmov %vm19144_vm0  ;;  %v6196_v57 = vsel %vm19181_vm8, %v6193_v42, %v6195_v19 }
 0x552   : > { %11547 = vmatprep.mubr.msk.f32.mxu1 %vm19144_vm0, %v16582_v37  ;;  %vm19183_vm5 = vmmov %vm19127_vm4 }
 0x553   : > { %v6198_v44 = vsel %vm19183_vm5, %v6195_v19, %v6197_v15  ;;  %vm19186_vm6 = vmmov %vm19127_vm4  ;;  %v7356_v19 = vrot.slane %v16475_v30, 4 }
 0x554   : > { %v6202_v1 = vsel %vm19186_vm6, %v6199_v12, %v6201_v7  ;;  %vm19187_vm15 = vmmov %vm19127_vm4  ;;  %v6885_v12 = vrot.slane %v16010_v31, 3 }
 0x555   : > { %11548 = vmatmul.mubr.msk.f32.gmra.mrb[18].mxu1 %vm19160_vm3, %v16588_v10  ;;  %vm19174_vm3 = vmmov %vm19144_vm0  ;;  %v6204_v42 = vsel %vm19187_vm15, %v6201_v7, %v6203_v28 }
 0x556   : > { %11550 = vmatprep.mubr.msk.f32.mxu1 %vm19162_vm1, %v16594_v11  ;;  %vm19176_vm1 = vmmov %vm19144_vm0 }
 0x557   : > { %vm19189_vm12 = vmmov %vm19144_vm0 }
 0x558   : > { %vm19193_vm10 = vmmov %vm19191_vm13 }
 0x559   : > { %11551 = vmatmul.mubr.msk.f32.gmra.mrb[20].mxu1 %vm19164_vm14, %v16600_v60  ;;  %vm19178_vm14 = vmmov %vm19144_vm0 }
 0x55a   : > { %11553 = vmatprep.mubr.msk.f32.mxu1 %vm19166_vm11, %v16606_v20  ;;  %vm19180_vm11 = vmmov %vm19144_vm0 }
 0x55b   : > { %vm19195_vm8 = vmmov %vm19144_vm0 }
 0x55c   : > { %vm19197_vm5 = vmmov %vm19144_vm0 }
 0x55d   : > { %11554 = vmatmul.mubr.msk.f32.gmra.mrb[22].mxu1 %vm19168_vm2, %v6180_v8  ;;  %vm19182_vm2 = vmmov %vm19144_vm0 }
 0x55e   : > { %11556 = vmatprep.mubr.msk.f32.mxu1 %vm19170_vm9, %v6182_v38  ;;  %vm19184_vm9 = vmmov %vm19144_vm0 }
 0x55f   : > { %vm19199_vm4 = vmmov %vm19144_vm0 }
 0x560   : > { %vm19201_vm6 = vmmov %vm19144_vm0 }
 0x561   : > { %11557 = vmatmul.mubr.msk.f32.gmra.mrb[24].mxu1 %vm19171_vm7, %v6184_v22  ;;  %vm19185_vm7 = vmmov %vm19144_vm0 }
 0x562   : > { %11559 = vmatprep.mubr.msk.f32.mxu1 %vm19144_vm0, %v6186_v58  ;;  %vm19202_vm15 = vmmov %vm19144_vm0 }
 0x565   : > { %11560 = vmatmul.mubr.msk.f32.gmra.mrb[26].mxu1 %vm19174_vm3, %v6188_v25  ;;  %vm19188_vm3 = vmmov %vm19144_vm0 }
 0x566   : > { %11562 = vmatprep.mubr.msk.f32.mxu1 %vm19176_vm1, %v6190_v3  ;;  %vm19190_vm1 = vmmov %vm19144_vm0 }
 0x569   : > { %11563 = vmatmul.mubr.msk.f32.gmra.mrb[28].mxu1 %vm19178_vm14, %v6192_v13  ;;  %vm19192_vm14 = vmmov %vm19144_vm0 }
 0x56a   : > { %11565 = vmatprep.mubr.msk.f32.mxu1 %vm19180_vm11, %v6194_v18  ;;  %vm19194_vm11 = vmmov %vm19144_vm0 }
 0x56d   : > { %11566 = vmatmul.mubr.msk.f32.gmra.mrb[30].mxu1 %vm19182_vm2, %v6196_v57  ;;  %vm19196_vm2 = vmmov %vm19144_vm0 }
 0x56e   : > { %11568 = vmatprep.mubr.msk.f32.mxu1 %vm19184_vm9, %v6198_v44  ;;  %vm19198_vm9 = vmmov %vm19144_vm0 }
 0x571   : > { %11569 = vmatmul.mubr.msk.f32.gmra.mrb[32].mxu1 %vm19185_vm7, %v6200_v23  ;;  %vm19200_vm7 = vmmov %vm19144_vm0 }
 0x572   : > { %11571 = vmatprep.mubr.msk.f32.mxu1 %vm19144_vm0, %v6202_v1 }
 0x575   : > { %11572 = vmatmul.mubr.msk.f32.gmra.mrb[34].mxu1 %vm19188_vm3, %v6204_v42  ;;  %vm19203_vm3 = vmmov %vm19144_vm0 }
 0x576   : > { %11576 = vmatprep.mubr.msk.f32.mxu1 %vm19189_vm12, %v16481_v39  ;;  %vm19204_vm12 = vmmov %vm19144_vm0  ;;  %v19221_v39 = vrot.slane %v19060_v16, 5 }
 0x579   : > { %11577 = vmatmul.mubr.msk.f32.vlgmr.msra.gmra.mrb[0].mxu1 %vm19190_vm1, %v16492_v49  ;;  %vm19205_vm1 = vmmov %vm19144_vm0 }
 0x57a   : > { %11631 = vmatpush3.msk.msra.mxu1 %vm19191_vm13, %v16475_v30  ;;  %11579 = vmatprep.mubr.msk.f32.mxu1 %vm19192_vm14, %v16498_v47  ;;  %vm19206_vm13 = vmmov %vm19144_vm0  ;;  %v19220_v30 = vrot.slane %v19036_v24, 5  ;;  %v16727_v24 = vunpack.c.h.bf16 %v16467_v2  ;;  %v6861_v47 = vrot.slane %v16123_v17, 3 }
 0x57b   : > { %11686 = vmatprep.subr.msk.mxu1 %vm19193_vm10, %v7356_v19  ;;  %vm19207_vm14 = vmmov %vm19144_vm0 }
 0x57c   : > { %vm19208_vm10 = vmmov %vm19144_vm0 }
 0x57d   : > { %11580 = vmatmul.mubr.msk.f32.gmra.mrb[2].mxu1 %vm19194_vm11, %v16504_v56  ;;  %vm19209_vm11 = vmmov %vm19144_vm0 }
 0x57e   : > { %11582 = vmatprep.mubr.msk.f32.mxu1 %vm19195_vm8, %v16510_v0  ;;  %vm19210_vm8 = vmmov %vm19144_vm0  ;;  %v6863_v0 = vrot.slane %v16103_v50, 3 }
 0x581   : > { %11583 = vmatmul.mubr.msk.f32.gmra.mrb[4].mxu1 %vm19196_vm2, %v16516_v43  ;;  %vm19211_vm2 = vmmov %vm19144_vm0  ;;  %v6865_v43 = vrot.slane %v15966_v34, 3 }
 0x582   : > { %11585 = vmatprep.mubr.msk.f32.mxu1 %vm19197_vm5, %v16522_v52  ;;  %vm19212_vm5 = vmmov %vm19144_vm0 }
 0x585   : > { %11586 = vmatmul.mubr.msk.f32.gmra.mrb[6].mxu1 %vm19198_vm9, %v16528_v41  ;;  %vm19213_vm9 = vmmov %vm19144_vm0  ;;  %v6867_v41 = vrot.slane %v16111_v32, 3 }
 0x586   : > { %11588 = vmatprep.mubr.msk.f32.mxu1 %vm19199_vm4, %v16534_v5  ;;  %vm19214_vm4 = vmmov %vm19144_vm0 }
 0x589   : > { %11589 = vmatmul.mubr.msk.f32.gmra.mrb[8].mxu1 %vm19200_vm7, %v16540_v63  ;;  %vm19215_vm7 = vmmov %vm19144_vm0  ;;  %v6869_v63 = vrot.slane %v15974_v35, 3 }
 0x58a   : > { %11591 = vmatprep.mubr.msk.f32.mxu1 %vm19201_vm6, %v16546_v55  ;;  %vm19216_vm6 = vmmov %vm19144_vm0 }
 0x58d   : > { %11592 = vmatmul.mubr.msk.f32.gmra.mrb[10].mxu1 %vm19144_vm0, %v16552_v61  ;;  %v6871_v61 = vrot.slane %v16140_v59, 3 }
 0x58e   : > { %11594 = vmatprep.mubr.msk.f32.mxu1 %vm19202_vm15, %v16558_v51  ;;  %vm19217_vm15 = vmmov %vm19144_vm0 }
 0x591   : > { %11595 = vmatmul.mubr.msk.f32.gmra.mrb[12].mxu1 %vm19203_vm3, %v16564_v6  ;;  %vm19218_vm3 = vmmov %vm19144_vm0  ;;  %v6873_v6 = vrot.slane %v15981_v45, 3 }
 0x592   : > { %11597 = vmatprep.mubr.msk.f32.mxu1 %vm19204_vm12, %v16570_v33  ;;  %vm19219_vm12 = vmmov %vm19144_vm0 }
 0x595   : > { %11598 = vmatmul.mubr.msk.f32.gmra.mrb[14].mxu1 %vm19205_vm1, %v16576_v62  ;;  %vm19222_vm1 = vcmask 1042432   ;;  %v6875_v62 = vrot.slane %v16151_v27, 3 }
 0x596   : > { %11600 = vmatprep.mubr.msk.f32.mxu1 %vm19206_vm13, %v16582_v37  ;;  %v16709_v49 = vsel %vm19222_vm1, %v19221_v39, %v19220_v30  ;;  %vm19223_vm13 = vmmov %vm19144_vm0  ;;  %v19262_v30 = vld [vmem:[#allocation82_spill] sm:$0xff] }
 0x597   : > { %v6889_v39 = vrot.slane %v19262_v30, 3 }
 0x599   : > { %11601 = vmatmul.mubr.msk.f32.gmra.mrb[16].mxu1 %vm19207_vm14, %v16588_v10  ;;  %vm19224_vm14 = vmmov %vm19144_vm0  ;;  %v6877_v10 = vrot.slane %v15990_v46, 3 }
 0x59a   : > { %11603 = vmatprep.mubr.msk.f32.mxu1 %vm19208_vm10, %v16594_v11  ;;  %vm19225_vm10 = vmmov %vm19144_vm0 }
 0x59d   : > { %11604 = vmatmul.mubr.msk.f32.gmra.mrb[18].mxu1 %vm19209_vm11, %v16600_v60  ;;  %vm19226_vm11 = vcmask 1045504   ;;  %v6879_v60 = vrot.slane %v16161_v36, 3 }
 0x59e   : > { %11606 = vmatprep.mubr.msk.f32.mxu1 %vm19210_vm8, %v16606_v20  ;;  %vm19227_vm8 = vmmov %vm19144_vm0 }
 0x5a1   : > { %11607 = vmatmul.mubr.msk.f32.gmra.mrb[20].mxu1 %vm19211_vm2, %v6180_v8  ;;  %vm19228_vm2 = vmmov %vm19226_vm11  ;;  %v6881_v8 = vrot.slane %v16000_v53, 3 }
 0x5a2   : > { %11609 = vmatprep.mubr.msk.f32.mxu1 %vm19212_vm5, %v6182_v38  ;;  %vm19229_vm5 = vmmov %vm19144_vm0 }
 0x5a5   : > { %11610 = vmatmul.mubr.msk.f32.gmra.mrb[22].mxu1 %vm19213_vm9, %v6184_v22  ;;  %vm19230_vm9 = vcmask 1044480   ;;  %v6883_v22 = vrot.slane %v16168_v54, 3 }
 0x5a6   : > { %11612 = vmatprep.mubr.msk.f32.mxu1 %vm19214_vm4, %v6186_v58  ;;  %v6854_v58 = vrot.slane %v16106_v40, 3  ;;  %vm19231_vm4 = vmmov %vm19144_vm0 }
 0x5a9   : > { %11613 = vmatmul.mubr.msk.f32.gmra.mrb[24].mxu1 %vm19215_vm7, %v6188_v25  ;;  %v6562_v25 = vrot.slane %v16709_v49, 2  ;;  %vm19232_vm7 = vmmov %vm19230_vm9 }
 0x5aa   : > { %11615 = vmatprep.mubr.msk.f32.mxu1 %vm19216_vm6, %v6190_v3  ;;  %v6855_v3 = vrot.slane %v16099_v26, 3  ;;  %vm19233_vm6 = vmmov %vm19144_vm0 }
 0x5ad   : > { %11616 = vmatmul.mubr.msk.f32.gmra.mrb[26].mxu1 %vm19144_vm0, %v6192_v13  ;;  %v6564_v13 = vrot.slane %v16296_v21, 2  ;;  %vm19234_vm0 = vmmov %vm19232_vm7 }
 0x5ae   : > { %11618 = vmatprep.mubr.msk.f32.mxu1 %vm19217_vm15, %v6194_v18  ;;  %vm19235_vm15 = vcmask 1043456   ;;  %vm19237_vm1 = vmmov %vm19234_vm0  ;;  %v6874_v37 = vsel %vm19234_vm0, %v6871_v61, %v6873_v6 }
 0x5af   : > { %v6565_v18 = vsel %vm19228_vm2, %v6562_v25, %v6564_v13  ;;  %vm19243_vm2 = vmmov %vm19234_vm0  ;;  %v19264_v13 = vld [vmem:[#allocation142_spill] sm:$0xff] }
 0x5b0   : > { %v6868_v55 = vsel %vm19243_vm2, %v6865_v43, %v6867_v41  ;;  %vm19258_vm2 = vmmov %vm19234_vm0 }
 0x5b1   : > { %11619 = vmatmul.mubr.msk.f32.gmra.mrb[28].mxu1 %vm19218_vm3, %v6196_v57  ;;  %v6563_v57 = vsel %vm19226_vm11, %v6203_v28, %v6562_v25  ;;  %vm19241_vm11 = vmmov %vm19234_vm0  ;;  %v6884_v7 = vsel %vm19258_vm2, %v6881_v8, %v6883_v22  ;;  %v19259_v28 = vld [vmem:[#allocation86_spill] sm:$0xff] }
 0x5b2   : > { %11621 = vmatprep.mubr.msk.f32.mxu1 %vm19219_vm12, %v6198_v44  ;;  %v6856_v44 = vsel %vm19230_vm9, %v6854_v58, %v6855_v3  ;;  %vm19236_vm12 = vmmov %vm19235_vm15  ;;  %v6866_v5 = vsel %vm19241_vm11, %v6863_v0, %v6865_v43 }
 0x5b3   : > { %vm19245_vm9 = vmmov %vm19234_vm0 }
 0x5b4   : > { %v6870_v51 = vsel %vm19245_vm9, %v6867_v41, %v6869_v63  ;;  %vm19256_vm11 = vmmov %vm19234_vm0  ;;  %v19278_v41 = vld [vmem:[#allocation139_spill] sm:$0xff] }
 0x5b5   : > { %11622 = vmatmul.mubr.msk.f32.gmra.mrb[30].mxu1 %vm19223_vm13, %v6200_v23  ;;  %v6857_v23 = vrot.slane %v16128_v29, 3  ;;  %vm19238_vm13 = vmmov %vm19218_vm3  ;;  %v6882_v15 = vsel %vm19256_vm11, %v6879_v60, %v6881_v8 }
 0x5b6   : > { %11624 = vmatprep.mubr.msk.f32.mxu1 %vm19224_vm14, %v6202_v1  ;;  %v6859_v1 = vrot.slane %v16120_v48, 3  ;;  %vm19239_vm14 = vmmov %vm19234_vm0 }
 0x5b7   : > { %v6858_v16 = vsel %vm19232_vm7, %v6855_v3, %v6857_v23  ;;  %v6864_v52 = vsel %vm19239_vm14, %v6861_v47, %v6863_v0  ;;  %vm19247_vm7 = vmmov %vm19234_vm0  ;;  %v19266_v3 = vld [vmem:[#allocation138_spill] sm:$0xff] }
 0x5b8   : > { %v6860_v56 = vsel %vm19234_vm0, %v6857_v23, %v6859_v1  ;;  %v6862_v2 = vsel %vm19237_vm1, %v6859_v1, %v6861_v47  ;;  %v6872_v33 = vsel %vm19247_vm7, %v6869_v63, %v6871_v61  ;;  %vm19252_vm1 = vmmov %vm19234_vm0  ;;  %v19272_v47 = vld [vmem:[#allocation83_spill] sm:$0xff] }
 0x5b9   : > { %11625 = vmatmul.mubr.msk.f32.gmra.mrb[32].mxu1 %vm19225_vm10, %v6204_v42  ;;  %vm19240_vm10 = vmmov %vm19218_vm3  ;;  %v6878_v20 = vsel %vm19252_vm1, %v6875_v62, %v6877_v10  ;;  %v6887_v42 = vrot.slane %v19259_v28, 3 }
 0x5ba   : > { %11627 = vmatprep.mubr.msk.f32.mxu1 %vm19227_vm8, %v6563_v57  ;;  %vm19242_vm8 = vmmov %vm19218_vm3  ;;  %v6891_v57 = vrot.slane %v19264_v13, 3 }
 0x5bb   : > { %vm19254_vm14 = vmmov %vm19234_vm0  ;;  %v6890_v58 = vsel %vm19234_vm0, %v6887_v42, %v6889_v39 }
 0x5bc   : > { %v6880_v38 = vsel %vm19254_vm14, %v6877_v10, %v6879_v60  ;;  %vm19261_vm9 = vmmov %vm19234_vm0  ;;  %v19288_v60 = vld [vmem:[#allocation140_spill] sm:$0xff] }
 0x5bd   : > { %11628 = vmatmul.mubr.msk.f32.gmra.mrb[34].mxu1 %vm19229_vm5, %v6565_v18  ;;  %vm19244_vm5 = vmmov %vm19218_vm3  ;;  %v6893_v18 = vrot.slane %v19266_v3, 3 }
 0x5be   : > { %11632 = vmatprep.mubr.msk.f32.mxu1 %vm19231_vm4, %v6856_v44  ;;  %vm19246_vm4 = vmmov %vm19218_vm3  ;;  %v19269_v44 = vld [vmem:[#allocation87_spill] sm:$0xff] }
 0x5bf   : > { %vm19263_vm7 = vmmov %vm19234_vm0  ;;  %v6895_v1 = vrot.slane %v19269_v44, 3 }
 0x5c0   : > { %v6888_v25 = vsel %vm19263_vm7, %v6885_v12, %v6887_v42  ;;  %vm19271_vm1 = vmmov %vm19234_vm0 }
 0x5c1   : > { %11633 = vmatmul.mubr.msk.f32.vlgmr.msra.gmra.mrb[0].mxu1 %vm19233_vm6, %v6858_v16  ;;  %vm19248_vm6 = vmmov %vm19218_vm3  ;;  %v6894_v16 = vsel %vm19271_vm1, %v6891_v57, %v6893_v18 }
 0x5c2   : > { %11687 = vmatpush3.msk.msra.mxu1 %vm19235_vm15, %v7356_v19  ;;  %11635 = vmatprep.mubr.msk.f32.mxu1 %vm19218_vm3, %v6860_v56  ;;  %vm19249_vm15 = vmmov %vm19218_vm3  ;;  %v6886_v19 = vsel %vm19261_vm9, %v6883_v22, %v6885_v12  ;;  %v6897_v56 = vrot.slane %v19272_v47, 3  ;;  %v19294_v12 = vld [vmem:[#allocation85_spill] sm:$0xff] }
 0x5c3   : > { %11742 = vmatprep.subr.msk.mxu1 %vm19236_vm12, %v16727_v24  ;;  %vm19250_vm3 = vmmov %vm19234_vm0 }
 0x5c4   : > { %v6876_v11 = vsel %vm19250_vm3, %v6873_v6, %v6875_v62  ;;  %vm19251_vm12 = vmmov %vm19246_vm4  ;;  %v19284_v6 = vld [vmem:[#allocation84_spill] sm:$0xff] }
 0x5c5   : > { %11636 = vmatmul.mubr.msk.f32.gmra.mrb[2].mxu1 %vm19238_vm13, %v6862_v2  ;;  %vm19253_vm13 = vmmov %vm19246_vm4  ;;  %v19275_v2 = vld [vmem:[#allocation143_spill] sm:$0xff] }
 0x5c6   : > { %11638 = vmatprep.mubr.msk.f32.mxu1 %vm19240_vm10, %v6864_v52  ;;  %vm19255_vm10 = vmmov %vm19246_vm4  ;;  %v6899_v43 = vrot.slane %v19275_v2, 3 }
 0x5c7   : > { %vm19268_vm3 = vmmov %vm19234_vm0 }
 0x5c8   : > { %v6892_v23 = vsel %vm19268_vm3, %v6889_v39, %v6891_v57  ;;  %vm19274_vm14 = vmmov %vm19234_vm0  ;;  %v6917_v57 = vrot.slane %v16090_v4, 3 }
 0x5c9   : > { %11639 = vmatmul.mubr.msk.f32.gmra.mrb[4].mxu1 %vm19242_vm8, %v6866_v5  ;;  %vm19257_vm8 = vmmov %vm19246_vm4  ;;  %v6896_v0 = vsel %vm19274_vm14, %v6893_v18, %v6895_v1  ;;  %v6901_v5 = vrot.slane %v19278_v41, 3  ;;  %v6919_v18 = vrot.slane %v16333_v14, 3 }
 0x5ca   : > { %11641 = vmatprep.mubr.msk.f32.mxu1 %vm19244_vm5, %v6868_v55  ;;  %vm19260_vm5 = vmmov %vm19246_vm4  ;;  %v19281_v55 = vld [vmem:[#allocation88_spill] sm:$0xff] }
 0x5cb   : > { %vm19277_vm11 = vmmov %vm19234_vm0  ;;  %v6903_v61 = vrot.slane %v19281_v55, 3 }
 0x5cc   : > { %v6898_v52 = vsel %vm19277_vm11, %v6895_v1, %v6897_v56  ;;  %vm19280_vm2 = vmmov %vm19234_vm0  ;;  %v6921_v1 = vrot.slane %v16340_v9, 3 }
 0x5cd   : > { %11642 = vmatmul.mubr.msk.f32.gmra.mrb[6].mxu1 %vm19246_vm4, %v6870_v51  ;;  %v6900_v63 = vsel %vm19280_vm2, %v6897_v56, %v6899_v43  ;;  %vm19283_vm9 = vmmov %vm19234_vm0  ;;  %v6923_v56 = vrot.slane %v16709_v49, 3 }
 0x5ce   : > { %11644 = vmatprep.mubr.msk.f32.mxu1 %vm19248_vm6, %v6872_v33  ;;  %vm19265_vm6 = vmmov %vm19246_vm4  ;;  %v6902_v51 = vsel %vm19283_vm9, %v6899_v43, %v6901_v5  ;;  %v6905_v33 = vrot.slane %v19284_v6, 3  ;;  %v6925_v43 = vrot.slane %v16296_v21, 3 }
 0x5cf   : > { %vm19285_vm7 = vmmov %vm19234_vm0 }
 0x5d0   : > { %v6904_v62 = vsel %vm19285_vm7, %v6901_v5, %v6903_v61  ;;  %vm19290_vm3 = vmmov %vm19234_vm0  ;;  %v7283_v5 = vrot.slane %v16106_v40, 4 }
 0x5d1   : > { %11645 = vmatmul.mubr.msk.f32.gmra.mrb[8].mxu1 %vm19249_vm15, %v6874_v37  ;;  %vm19267_vm15 = vmmov %vm19246_vm4  ;;  %v19286_v37 = vld [vmem:[#allocation144_spill] sm:$0xff] }
 0x5d2   : > { %11647 = vmatprep.mubr.msk.f32.mxu1 %vm19251_vm12, %v6876_v11  ;;  %vm19270_vm12 = vmmov %vm19246_vm4  ;;  %v6907_v10 = vrot.slane %v19286_v37, 3  ;;  %v6906_v11 = vsel %vm19234_vm0, %v6903_v61, %v6905_v33 }
 0x5d3   : > { %vm19293_vm1 = vmmov %vm19234_vm0 }
 0x5d4   : > { %v6908_v8 = vsel %vm19290_vm3, %v6905_v33, %v6907_v10  ;;  %vm19296_vm14 = vmmov %vm19234_vm0 }
 0x5d5   : > { %11648 = vmatmul.mubr.msk.f32.gmra.mrb[10].mxu1 %vm19253_vm13, %v6878_v20  ;;  %vm19273_vm13 = vmmov %vm19246_vm4  ;;  %v6909_v20 = vrot.slane %v19288_v60, 3 }
 0x5d6   : > { %11650 = vmatprep.mubr.msk.f32.mxu1 %vm19255_vm10, %v6880_v38  ;;  %vm19276_vm10 = vmmov %vm19246_vm4  ;;  %v19291_v38 = vld [vmem:[#allocation89_spill] sm:$0xff] }
 0x5d7   : > { %v6911_v22 = vrot.slane %v19291_v38, 3  ;;  %vm19299_vm11 = vmmov %vm19234_vm0 }
 0x5d8   : > { %vm19301_vm2 = vmmov %vm19234_vm0 }
 0x5d9   : > { %11651 = vmatmul.mubr.msk.f32.gmra.mrb[12].mxu1 %vm19257_vm8, %v6882_v15  ;;  %vm19279_vm8 = vmmov %vm19246_vm4  ;;  %v6910_v15 = vsel %vm19293_vm1, %v6907_v10, %v6909_v20  ;;  %v6912_v42 = vsel %vm19296_vm14, %v6909_v20, %v6911_v22  ;;  %vm19311_vm14 = vcmask 1043456   ;;  %v18300_v10 = vrot.slane %v16727_v24, 4 }
 0x5da   : > { %11653 = vmatprep.mubr.msk.f32.mxu1 %vm19260_vm5, %v6884_v7  ;;  %vm19282_vm5 = vmmov %vm19246_vm4  ;;  %v6913_v7 = vrot.slane %v19294_v12, 3  ;;  %v7292_v20 = vrot.slane %v16103_v50, 4 }
 0x5db   : > { %vm19303_vm9 = vmmov %vm19234_vm0 }
 0x5dc   : > { %vm19304_vm7 = vmmov %vm19234_vm0 }
 0x5dd   : > { %11654 = vmatmul.mubr.msk.f32.gmra.mrb[14].mxu1 %vm19246_vm4, %v6886_v19  ;;  %v19297_v19 = vld [vmem:[#allocation145_spill] sm:$0xff]  ;;  %vm19307_vm3 = vmmov %vm19234_vm0 }
 0x5de   : > { %11656 = vmatprep.mubr.msk.f32.mxu1 %vm19265_vm6, %v6888_v25  ;;  %vm19287_vm6 = vmmov %vm19246_vm4  ;;  %v6915_v39 = vrot.slane %v19297_v19, 3  ;;  %v6914_v25 = vsel %vm19299_vm11, %v6911_v22, %v6913_v7  ;;  %v7294_v22 = vrot.slane %v15966_v34, 4 }
 0x5df   : > { %vm19309_vm1 = vmmov %vm19234_vm0 }
 0x5e0   : > { %v6926_v61 = vsel %vm19309_vm1, %v6923_v56, %v6925_v43  ;;  %vm19313_vm11 = vmmov %vm19311_vm14  ;;  %v7308_v43 = vrot.slane %v16161_v36, 4 }
 0x5e1   : > { %11657 = vmatmul.mubr.msk.f32.gmra.mrb[16].mxu1 %vm19267_vm15, %v6890_v58  ;;  %vm19289_vm15 = vmmov %vm19246_vm4  ;;  %v6916_v58 = vsel %vm19301_vm2, %v6913_v7, %v6915_v39  ;;  %v7296_v7 = vrot.slane %v16111_v32, 4 }
 0x5e2   : > { %11659 = vmatprep.mubr.msk.f32.mxu1 %vm19270_vm12, %v6892_v23  ;;  %vm19292_vm12 = vmmov %vm19246_vm4  ;;  %v6918_v23 = vsel %vm19303_vm9, %v6915_v39, %v6917_v57  ;;  %v7298_v39 = vrot.slane %v15974_v35, 4 }
 0x5e3   : > { %vm19315_vm2 = vmmov %vm19313_vm11 }
 0x5e4   : > { %vm19317_vm9 = vmmov %vm19246_vm4 }
 0x5e5   : > { %11660 = vmatmul.mubr.msk.f32.gmra.mrb[18].mxu1 %vm19273_vm13, %v6894_v16  ;;  %vm19295_vm13 = vmmov %vm19246_vm4  ;;  %v6920_v16 = vsel %vm19304_vm7, %v6917_v57, %v6919_v18  ;;  %v7300_v57 = vrot.slane %v16140_v59, 4 }
 0x5e6   : > { %11662 = vmatprep.mubr.msk.f32.mxu1 %vm19276_vm10, %v6896_v0  ;;  %vm19298_vm10 = vmmov %vm19246_vm4  ;;  %v6922_v0 = vsel %vm19234_vm0, %v6919_v18, %v6921_v1  ;;  %v7302_v18 = vrot.slane %v15981_v45, 4 }
 0x5e7   : > { %vm19319_vm7 = vmmov %vm19315_vm2 }
 0x5e8   : > { %vm19320_vm0 = vmmov %vm19315_vm2 }
 0x5e9   : > { %11663 = vmatmul.mubr.msk.f32.gmra.mrb[20].mxu1 %vm19279_vm8, %v6898_v52  ;;  %vm19300_vm8 = vmmov %vm19246_vm4  ;;  %v6924_v52 = vsel %vm19307_vm3, %v6921_v1, %v6923_v56  ;;  %v7304_v1 = vrot.slane %v16151_v27, 4  ;;  %v7306_v56 = vrot.slane %v15990_v46, 4 }
 0x5ea   : > { %11665 = vmatprep.mubr.msk.f32.mxu1 %vm19282_vm5, %v6900_v63  ;;  %vm19302_vm5 = vmmov %vm19246_vm4  ;;  %v7284_v63 = vrot.slane %v16099_v26, 4  ;;  %v7290_v26 = vrot.slane %v16123_v17, 4 }
 0x5eb   : > { %vm19322_vm3 = vmmov %vm19320_vm0 }
 0x5ec   : > { %v7285_v33 = vsel %vm19311_vm14, %v7283_v5, %v7284_v63  ;;  %vm19324_vm1 = vmmov %vm19320_vm0  ;;  %v7310_v5 = vrot.slane %v16000_v53, 4 }
 0x5ed   : > { %11666 = vmatmul.mubr.msk.f32.gmra.mrb[22].mxu1 %vm19246_vm4, %v6902_v51  ;;  %v7286_v51 = vrot.slane %v16128_v29, 4  ;;  %vm19326_vm14 = vmmov %vm19320_vm0 }
 0x5ee   : > { %11668 = vmatprep.mubr.msk.f32.mxu1 %vm19287_vm6, %v6904_v62  ;;  %vm19305_vm6 = vmmov %vm19246_vm4  ;;  %v7288_v62 = vrot.slane %v16120_v48, 4 }
 0x5ef   : > { %v7287_v40 = vsel %vm19313_vm11, %v7284_v63, %v7286_v51  ;;  %vm19328_vm11 = vmmov %vm19320_vm0  ;;  %v16911_v63 = vsel %vm19320_vm0, %v7306_v56, %v7308_v43 }
 0x5f1   : > { %11669 = vmatmul.mubr.msk.f32.gmra.mrb[24].mxu1 %vm19289_vm15, %v6906_v11  ;;  %vm19306_vm15 = vmmov %vm19246_vm4  ;;  %v16846_v11 = vsel %vm19315_vm2, %v7286_v51, %v7288_v62 }
 0x5f2   : > { %11671 = vmatprep.mubr.msk.f32.mxu1 %vm19292_vm12, %v6908_v8  ;;  %vm19308_vm12 = vmmov %vm19246_vm4  ;;  %v16857_v8 = vsel %vm19319_vm7, %v7288_v62, %v7290_v26 }
 0x5f3   : > { %vm19334_vm7 = vmmov %vm19320_vm0 }
 0x5f5   : > { %11672 = vmatmul.mubr.msk.f32.gmra.mrb[26].mxu1 %vm19295_vm13, %v6910_v15  ;;  %vm19310_vm13 = vmmov %vm19246_vm4  ;;  %v16863_v15 = vsel %vm19320_vm0, %v7290_v26, %v7292_v20 }
 0x5f6   : > { %11674 = vmatprep.mubr.msk.f32.mxu1 %vm19298_vm10, %v6912_v42  ;;  %vm19312_vm10 = vmmov %vm19246_vm4  ;;  %v16869_v42 = vsel %vm19322_vm3, %v7292_v20, %v7294_v22  ;;  %v7318_v20 = vrot.slane %v19262_v30, 4 }
 0x5f7   : > { %vm19337_vm3 = vmmov %vm19320_vm0 }
 0x5f8   : > { %v16917_v51 = vsel %vm19337_vm3, %v7308_v43, %v7310_v5  ;;  %v7326_v43 = vrot.slane %v19272_v47, 4  ;;  %vm19351_vm3 = vmmov %vm19320_vm0 }
 0x5f9   : > { %11675 = vmatmul.mubr.msk.f32.gmra.mrb[28].mxu1 %vm19300_vm8, %v6914_v25  ;;  %vm19314_vm8 = vmmov %vm19246_vm4  ;;  %v16875_v25 = vsel %vm19324_vm1, %v7294_v22, %v7296_v7 }
 0x5fa   : > { %11677 = vmatprep.mubr.msk.f32.mxu1 %vm19302_vm5, %v6916_v58  ;;  %vm19316_vm5 = vmmov %vm19315_vm2  ;;  %v16881_v58 = vsel %vm19326_vm14, %v7296_v7, %v7298_v39  ;;  %v7320_v7 = vrot.slane %v19264_v13, 4 }
 0x5fb   : > { %vm19339_vm1 = vmmov %vm19320_vm0 }
 0x5fc   : > { %vm19341_vm14 = vmmov %vm19320_vm0 }
 0x5fd   : > { %11678 = vmatmul.mubr.msk.f32.gmra.mrb[30].mxu1 %vm19246_vm4, %v6918_v23  ;;  %vm19318_vm4 = vmmov %vm19315_vm2  ;;  %v16887_v23 = vsel %vm19328_vm11, %v7298_v39, %v7300_v57 }
 0x5fe   : > { %11680 = vmatprep.mubr.msk.f32.mxu1 %vm19305_vm6, %v6920_v16  ;;  %vm19330_vm2 = vmmov %vm19320_vm0 }
 0x5ff   : > { %v16893_v16 = vsel %vm19330_vm2, %v7300_v57, %v7302_v18  ;;  %vm19343_vm11 = vmmov %vm19320_vm0  ;;  %v7322_v57 = vrot.slane %v19266_v3, 4 }
 0x600   : > { %vm19345_vm2 = vmmov %vm19320_vm0 }
 0x601   : > { %11681 = vmatmul.mubr.msk.f32.gmra.mrb[32].mxu1 %vm19306_vm15, %v6922_v0  ;;  %vm19321_vm15 = vmmov %vm19305_vm6 }
 0x602   : > { %11683 = vmatprep.mubr.msk.f32.mxu1 %vm19308_vm12, %v6924_v52  ;;  %vm19323_vm12 = vmmov %vm19305_vm6  ;;  %v16905_v52 = vsel %vm19334_vm7, %v7304_v1, %v7306_v56 }
 0x603   : > { %vm19348_vm7 = vmmov %vm19320_vm0 }
 0x604   : > { %v16953_v56 = vsel %vm19348_vm7, %v7320_v7, %v7322_v57  ;;  %vm19362_vm7 = vmmov %vm19320_vm0 }
 0x605   : > { %11684 = vmatmul.mubr.msk.f32.gmra.mrb[34].mxu1 %vm19310_vm13, %v6926_v61  ;;  %vm19325_vm13 = vmmov %vm19305_vm6  ;;  %v7312_v61 = vrot.slane %v16168_v54, 4 }
 0x606   : > { %11688 = vmatprep.mubr.msk.f32.mxu1 %vm19312_vm10, %v7285_v33  ;;  %vm19327_vm10 = vmmov %vm19305_vm6  ;;  %v7314_v33 = vrot.slane %v16010_v31, 4 }
 0x607   : > { %v16923_v62 = vsel %vm19339_vm1, %v7310_v5, %v7312_v61  ;;  %vm19353_vm1 = vmmov %vm19320_vm0 }
 0x608   : > { %v16929_v26 = vsel %vm19341_vm14, %v7312_v61, %v7314_v33  ;;  %v7328_v61 = vrot.slane %v19275_v2, 4  ;;  %vm19355_vm14 = vmmov %vm19320_vm0  ;;  %v7338_v2 = vrot.slane %v19288_v60, 4 }
 0x609   : > { %11689 = vmatmul.mubr.msk.f32.vlgmr.msra.gmra.mrb[0].mxu1 %vm19314_vm8, %v7287_v40  ;;  %vm19329_vm8 = vmmov %vm19305_vm6  ;;  %v7316_v40 = vrot.slane %v19259_v28, 4 }
 0x60a   : > { %11743 = vmatpush3.msk.msra.mxu1 %vm19316_vm5, %v16727_v24  ;;  %11691 = vmatprep.mubr.msk.f32.mxu1 %vm19317_vm9, %v16846_v11  ;;  %vm19331_vm5 = vmmov %vm19305_vm6 }
 0x60b   : > { %11798 = vmatprep.subr.msk.mxu1 %vm19318_vm4, %v18300_v10  ;;  %vm19332_vm9 = vmmov %vm19320_vm0  ;;  %v16935_v22 = vsel %vm19343_vm11, %v7314_v33, %v7316_v40  ;;  %v16941_v39 = vsel %vm19345_vm2, %v7316_v40, %v7318_v20  ;;  %v7330_v40 = vrot.slane %v19278_v41, 4  ;;  %v7334_v10 = vrot.slane %v19284_v6, 4 }
 0x60c   : > { %v16899_v0 = vsel %vm19332_vm9, %v7302_v18, %v7304_v1  ;;  %vm19333_vm4 = vmmov %vm19331_vm5  ;;  %v7324_v1 = vrot.slane %v19269_v44, 4  ;;  %v7336_v41 = vrot.slane %v19286_v37, 4 }
 0x60d   : > { %11692 = vmatmul.mubr.msk.f32.gmra.mrb[2].mxu1 %vm19305_vm6, %v16857_v8  ;;  %vm19335_vm6 = vmmov %vm19333_vm4 }
 0x60e   : > { %11694 = vmatprep.mubr.msk.f32.mxu1 %vm19321_vm15, %v16863_v15  ;;  %vm19336_vm15 = vmmov %vm19333_vm4  ;;  %v16959_v5 = vsel %vm19320_vm0, %v7322_v57, %v7324_v1  ;;  %v16965_v33 = vsel %vm19351_vm3, %v7324_v1, %v7326_v43  ;;  %v7331_v57 = vsel %vm19355_vm14, %v7328_v61, %v7330_v40  ;;  %v7339_v6 = vsel %vm19362_vm7, %v7336_v41, %v7338_v2 }
 0x60f   : > { %vm19347_vm9 = vmmov %vm19320_vm0 }
 0x610   : > { %v16947_v18 = vsel %vm19347_vm9, %v7318_v20, %v7320_v7  ;;  %v16971_v20 = vsel %vm19353_vm1, %v7326_v43, %v7328_v61  ;;  %v7332_v7 = vrot.slane %v19281_v55, 4  ;;  %vm19357_vm11 = vmmov %vm19320_vm0  ;;  %v7340_v61 = vrot.slane %v19291_v38, 4 }
 0x611   : > { %11695 = vmatmul.mubr.msk.f32.gmra.mrb[4].mxu1 %vm19323_vm12, %v16869_v42  ;;  %vm19338_vm12 = vmmov %vm19333_vm4 }
 0x612   : > { %11697 = vmatprep.mubr.msk.f32.mxu1 %vm19325_vm13, %v16875_v25  ;;  %vm19340_vm13 = vmmov %vm19333_vm4  ;;  %v7333_v1 = vsel %vm19357_vm11, %v7330_v40, %v7332_v7  ;;  %v7342_v40 = vrot.slane %v19294_v12, 4  ;;  %v7341_v37 = vsel %vm19320_vm0, %v7338_v2, %v7340_v61  ;;  %v7350_v2 = vrot.slane %v16340_v9, 4 }
 0x613   : > { %vm19359_vm2 = vmmov %vm19320_vm0 }
 0x614   : > { %v7335_v43 = vsel %vm19359_vm2, %v7332_v7, %v7334_v10  ;;  %vm19361_vm9 = vmmov %vm19320_vm0  ;;  %v7344_v7 = vrot.slane %v19297_v19, 4 }
 0x615   : > { %11698 = vmatmul.mubr.msk.f32.gmra.mrb[6].mxu1 %vm19327_vm10, %v16881_v58  ;;  %vm19342_vm10 = vmmov %vm19333_vm4  ;;  %v7337_v55 = vsel %vm19361_vm9, %v7334_v10, %v7336_v41  ;;  %v7346_v10 = vrot.slane %v16090_v4, 4  ;;  %v7348_v41 = vrot.slane %v16333_v14, 4 }
 0x616   : > { %11700 = vmatprep.mubr.msk.f32.mxu1 %vm19329_vm8, %v16887_v23  ;;  %vm19344_vm8 = vmmov %vm19333_vm4 }
 0x617   : > { %vm19365_vm3 = vmmov %vm19320_vm0 }
 0x618   : > { %v7343_v60 = vsel %vm19365_vm3, %v7340_v61, %v7342_v40  ;;  %vm19367_vm1 = vmmov %vm19320_vm0  ;;  %v7352_v61 = vrot.slane %v16709_v49, 4 }
 0x619   : > { %11701 = vmatmul.mubr.msk.f32.gmra.mrb[8].mxu1 %vm19331_vm5, %v16893_v16  ;;  %vm19346_vm5 = vmmov %vm19333_vm4  ;;  %v7345_v38 = vsel %vm19367_vm1, %v7342_v40, %v7344_v7 }
 0x61a   : > { %11703 = vmatprep.mubr.msk.f32.mxu1 %vm19333_vm4, %v16899_v0  ;;  %vm19369_vm14 = vmmov %vm19320_vm0 }
 0x61b   : > { %v7347_v12 = vsel %vm19369_vm14, %v7344_v7, %v7346_v10  ;;  %vm19371_vm11 = vmmov %vm19320_vm0  ;;  %v19376_v7 = vrot.slane %v16296_v21, 4 }
 0x61c   : > { %v7349_v19 = vsel %vm19371_vm11, %v7346_v10, %v7348_v41  ;;  %vm19373_vm2 = vmmov %vm19320_vm0  ;;  %v294_v10 = vld [vmem:[%s17986_s2 + $0x10] sm:$0x3] }
 0x61d   : > { %11704 = vmatmul.mubr.msk.f32.gmra.mrb[10].mxu1 %vm19335_vm6, %v16905_v52  ;;  %vm19349_vm6 = vmmov %vm19333_vm4  ;;  %v7351_v4 = vsel %vm19373_vm2, %v7348_v41, %v7350_v2  ;;  %v299_v41 = vunpack.c.l.bf16 %v294_v10 }
 0x61e   : > { %11706 = vmatprep.mubr.msk.f32.mxu1 %vm19336_vm15, %v16911_v63  ;;  %vm19350_vm15 = vmmov %vm19333_vm4 }
 0x61f   : > { %vm19375_vm9 = vmmov %vm19320_vm0 }
 0x620   : > { %v7353_v40 = vsel %vm19375_vm9, %v7350_v2, %v7352_v61  ;;  %vm19377_vm7 = vmmov %vm19320_vm0  ;;  %v19381_v2 = vrot.slane %v16727_v24, 4  ;;  %v19412_v24 = vld [vmem:[#allocation147_spill] sm:$0xff] }
 0x621   : > { %11707 = vmatmul.mubr.msk.f32.gmra.mrb[12].mxu1 %vm19338_vm12, %v16917_v51  ;;  %vm19352_vm12 = vmmov %vm19333_vm4  ;;  %v7355_v9 = vsel %vm19377_vm7, %v7352_v61, %v19376_v7  ;;  %v8034_v61 = vrot.slane %v19259_v28, 5  ;;  %v8036_v7 = vrot.slane %v19262_v30, 5 }
 0x622   : > { %11709 = vmatprep.mubr.msk.f32.mxu1 %vm19340_vm13, %v16923_v62  ;;  %vm19354_vm13 = vmmov %vm19333_vm4 }
 0x623   : > { %vm19379_vm0 = vmmov %vm19333_vm4 }
 0x624   : > { %vm19382_vm3 = vmmov %vm19367_vm1 }
 0x625   : > { %11710 = vmatmul.mubr.msk.f32.gmra.mrb[14].mxu1 %vm19342_vm10, %v16929_v26  ;;  %vm19356_vm10 = vmmov %vm19333_vm4 }
 0x626   : > { %11712 = vmatprep.mubr.msk.f32.mxu1 %vm19344_vm8, %v16935_v22  ;;  %vm19358_vm8 = vmmov %vm19333_vm4 }
 0x627   : > { %vm19385_vm14 = vmmov %vm19379_vm0 }
 0x628   : > { %vm19387_vm11 = vmmov %vm19379_vm0 }
 0x629   : > { %11713 = vmatmul.mubr.msk.f32.gmra.mrb[16].mxu1 %vm19346_vm5, %v16941_v39  ;;  %vm19360_vm5 = vmmov %vm19333_vm4 }
 0x62a   : > { %11715 = vmatprep.mubr.msk.f32.mxu1 %vm19333_vm4, %v16947_v18  ;;  %vm19389_vm2 = vmmov %vm19379_vm0 }
 0x62b   : > { %vm19391_vm9 = vmmov %vm19379_vm0 }
 0x62c   : > { %vm19393_vm7 = vmmov %vm19379_vm0 }
 0x62d   : > { %11716 = vmatmul.mubr.msk.f32.gmra.mrb[18].mxu1 %vm19349_vm6, %v16953_v56  ;;  %vm19363_vm6 = vmmov %vm19333_vm4 }
 0x62e   : > { %11718 = vmatprep.mubr.msk.f32.mxu1 %vm19350_vm15, %v16959_v5  ;;  %vm19364_vm15 = vmmov %vm19333_vm4 }
 0x631   : > { %11719 = vmatmul.mubr.msk.f32.gmra.mrb[20].mxu1 %vm19352_vm12, %v16965_v33  ;;  %vm19366_vm12 = vmmov %vm19333_vm4 }
 0x632   : > { %11721 = vmatprep.mubr.msk.f32.mxu1 %vm19354_vm13, %v16971_v20  ;;  %vm19368_vm13 = vmmov %vm19333_vm4 }
 0x635   : > { %11722 = vmatmul.mubr.msk.f32.gmra.mrb[22].mxu1 %vm19356_vm10, %v7331_v57  ;;  %vm19370_vm10 = vmmov %vm19333_vm4 }
 0x636   : > { %11724 = vmatprep.mubr.msk.f32.mxu1 %vm19358_vm8, %v7333_v1  ;;  %vm19372_vm8 = vmmov %vm19333_vm4 }
 0x639   : > { %11725 = vmatmul.mubr.msk.f32.gmra.mrb[24].mxu1 %vm19360_vm5, %v7335_v43  ;;  %vm19374_vm5 = vmmov %vm19333_vm4 }
 0x63a   : > { %11727 = vmatprep.mubr.msk.f32.mxu1 %vm19333_vm4, %v7337_v55 }
 0x63d   : > { %11728 = vmatmul.mubr.msk.f32.gmra.mrb[26].mxu1 %vm19363_vm6, %v7339_v6  ;;  %vm19378_vm6 = vmmov %vm19333_vm4 }
 0x63e   : > { %11730 = vmatprep.mubr.msk.f32.mxu1 %vm19364_vm15, %v7341_v37  ;;  %vm19380_vm15 = vmmov %vm19379_vm0 }
 0x641   : > { %11731 = vmatmul.mubr.msk.f32.gmra.mrb[28].mxu1 %vm19366_vm12, %v7343_v60  ;;  %vm19383_vm12 = vmmov %vm19379_vm0 }
 0x642   : > { %11733 = vmatprep.mubr.msk.f32.mxu1 %vm19368_vm13, %v7345_v38  ;;  %vm19384_vm13 = vmmov %vm19379_vm0 }
 0x645   : > { %11734 = vmatmul.mubr.msk.f32.gmra.mrb[30].mxu1 %vm19370_vm10, %v7347_v12  ;;  %vm19386_vm10 = vmmov %vm19379_vm0 }
 0x646   : > { %11736 = vmatprep.mubr.msk.f32.mxu1 %vm19372_vm8, %v7349_v19  ;;  %vm19388_vm8 = vmmov %vm19379_vm0 }
 0x649   : > { %11737 = vmatmul.mubr.msk.f32.gmra.mrb[32].mxu1 %vm19374_vm5, %v7351_v4  ;;  %vm19390_vm5 = vmmov %vm19379_vm0 }
 0x64a   : > { %11739 = vmatprep.mubr.msk.f32.mxu1 %vm19333_vm4, %v7353_v40  ;;  %vm19392_vm4 = vmmov %vm19379_vm0 }
 0x64d   : > { %11740 = vmatmul.mubr.msk.f32.gmra.mrb[34].mxu1 %vm19378_vm6, %v7355_v9  ;;  %vm19394_vm6 = vmmov %vm19379_vm0 }
 0x64e   : > { %11744 = vmatprep.mubr.msk.f32.mxu1 %vm19379_vm0, %v16846_v11  ;;  %v7715_v11 = vrot.slane %v19412_v24, 4  ;;  %v8040_v24 = vrot.slane %v19266_v3, 5 }
 0x651   : > { %11745 = vmatmul.mubr.msk.f32.vlgmr.msra.gmra.mrb[0].mxu1 %vm19380_vm15, %v16857_v8  ;;  %vm19395_vm15 = vmmov %vm19379_vm0  ;;  %v8010_v8 = vrot.slane %v16103_v50, 5 }
 0x652   : > { %11799 = vmatpush3.msk.msra.mxu1 %vm19382_vm3, %v19381_v2  ;;  %11747 = vmatprep.mubr.msk.f32.mxu1 %vm19383_vm12, %v16863_v15  ;;  %vm19396_vm3 = vmmov %vm19379_vm0  ;;  %v8012_v15 = vrot.slane %v15966_v34, 5 }
 0x653   : > { %11854 = vmatprep.subr.msk.mxu1 %vm19367_vm1, %v299_v41  ;;  %vm19397_vm12 = vmmov %vm19379_vm0 }
 0x654   : > { %vm19398_vm1 = vmmov %vm19379_vm0 }
 0x655   : > { %11748 = vmatmul.mubr.msk.f32.gmra.mrb[2].mxu1 %vm19384_vm13, %v16869_v42  ;;  %vm19399_vm13 = vmmov %vm19379_vm0 }
 0x656   : > { %11750 = vmatprep.mubr.msk.f32.mxu1 %vm19385_vm14, %v16875_v25  ;;  %vm19400_vm14 = vmmov %vm19379_vm0  ;;  %v8014_v25 = vrot.slane %v16111_v32, 5 }
 0x659   : > { %11751 = vmatmul.mubr.msk.f32.gmra.mrb[4].mxu1 %vm19386_vm10, %v16881_v58  ;;  %vm19401_vm10 = vmmov %vm19379_vm0 }
 0x65a   : > { %11753 = vmatprep.mubr.msk.f32.mxu1 %vm19387_vm11, %v16887_v23  ;;  %vm19402_vm11 = vmmov %vm19379_vm0  ;;  %v8016_v23 = vrot.slane %v15974_v35, 5 }
 0x65d   : > { %11754 = vmatmul.mubr.msk.f32.gmra.mrb[6].mxu1 %vm19388_vm8, %v16893_v16  ;;  %vm19403_vm8 = vmmov %vm19379_vm0 }
 0x65e   : > { %11756 = vmatprep.mubr.msk.f32.mxu1 %vm19389_vm2, %v16899_v0  ;;  %vm19404_vm2 = vmmov %vm19379_vm0  ;;  %v8018_v0 = vrot.slane %v16140_v59, 5 }
 0x661   : > { %11757 = vmatmul.mubr.msk.f32.gmra.mrb[8].mxu1 %vm19390_vm5, %v16905_v52  ;;  %vm19405_vm5 = vmmov %vm19379_vm0 }
 0x662   : > { %11759 = vmatprep.mubr.msk.f32.mxu1 %vm19391_vm9, %v16911_v63  ;;  %vm19406_vm9 = vmmov %vm19379_vm0  ;;  %v8020_v63 = vrot.slane %v15981_v45, 5 }
 0x665   : > { %11760 = vmatmul.mubr.msk.f32.gmra.mrb[10].mxu1 %vm19392_vm4, %v16917_v51  ;;  %vm19407_vm4 = vmmov %vm19379_vm0 }
 0x666   : > { %11762 = vmatprep.mubr.msk.f32.mxu1 %vm19393_vm7, %v16923_v62  ;;  %vm19408_vm7 = vmmov %vm19379_vm0  ;;  %v8022_v62 = vrot.slane %v16151_v27, 5 }
 0x669   : > { %11763 = vmatmul.mubr.msk.f32.gmra.mrb[12].mxu1 %vm19394_vm6, %v16929_v26  ;;  %vm19409_vm6 = vmmov %vm19379_vm0 }
 0x66a   : > { %11765 = vmatprep.mubr.msk.f32.mxu1 %vm19379_vm0, %v16935_v22  ;;  %v8024_v22 = vrot.slane %v15990_v46, 5 }
 0x66d   : > { %11766 = vmatmul.mubr.msk.f32.gmra.mrb[14].mxu1 %vm19395_vm15, %v16941_v39  ;;  %vm19410_vm15 = vmmov %vm19379_vm0 }
 0x66e   : > { %11768 = vmatprep.mubr.msk.f32.mxu1 %vm19396_vm3, %v16947_v18  ;;  %vm19411_vm3 = vmmov %vm19379_vm0  ;;  %v8026_v18 = vrot.slane %v16161_v36, 5 }
 0x671   : > { %11769 = vmatmul.mubr.msk.f32.gmra.mrb[16].mxu1 %vm19397_vm12, %v16953_v56  ;;  %vm19413_vm12 = vmmov %vm19379_vm0 }
 0x672   : > { %11771 = vmatprep.mubr.msk.f32.mxu1 %vm19398_vm1, %v16959_v5  ;;  %vm19415_vm1 = vmmov %vm19379_vm0  ;;  %v8028_v5 = vrot.slane %v16000_v53, 5 }
 0x675   : > { %11772 = vmatmul.mubr.msk.f32.gmra.mrb[18].mxu1 %vm19399_vm13, %v16965_v33  ;;  %vm19418_vm13 = vcmask 1043456  }
 0x676   : > { %11774 = vmatprep.mubr.msk.f32.mxu1 %vm19400_vm14, %v16971_v20  ;;  %vm19419_vm14 = vmmov %vm19379_vm0  ;;  %v8030_v20 = vrot.slane %v16168_v54, 5 }
 0x679   : > { %11775 = vmatmul.mubr.msk.f32.gmra.mrb[20].mxu1 %vm19401_vm10, %v7331_v57  ;;  %vm19420_vm10 = vcmask 1042432  }
 0x67a   : > { %11777 = vmatprep.mubr.msk.f32.mxu1 %vm19402_vm11, %v7333_v1  ;;  %vm19421_vm11 = vmmov %vm19379_vm0  ;;  %v8032_v1 = vrot.slane %v16010_v31, 5 }
 0x67d   : > { %11778 = vmatmul.mubr.msk.f32.gmra.mrb[22].mxu1 %vm19403_vm8, %v7335_v43  ;;  %vm19422_vm8 = vmmov %vm19420_vm10 }
 0x67e   : > { %11780 = vmatprep.mubr.msk.f32.mxu1 %vm19404_vm2, %v7337_v55  ;;  %v8005_v55 = vrot.slane %v16128_v29, 5  ;;  %vm19423_vm2 = vmmov %vm19379_vm0 }
 0x681   : > { %11781 = vmatmul.mubr.msk.f32.gmra.mrb[24].mxu1 %vm19405_vm5, %v7339_v6  ;;  %v8006_v6 = vrot.slane %v16120_v48, 5  ;;  %vm19424_vm5 = vmmov %vm19422_vm8 }
 0x682   : > { %11783 = vmatprep.mubr.msk.f32.mxu1 %vm19406_vm9, %v7341_v37  ;;  %v19414_v37 = vld [vmem:[#allocation91_spill] sm:$0xff]  ;;  %vm19425_vm9 = vmmov %vm19418_vm13 }
 0x685   : > { %11784 = vmatmul.mubr.msk.f32.gmra.mrb[26].mxu1 %vm19407_vm4, %v7343_v60  ;;  %v19416_v60 = vld [vmem:[#allocation146_spill] sm:$0xff]  ;;  %vm19426_vm4 = vmmov %vm19379_vm0 }
 0x686   : > { %11786 = vmatprep.mubr.msk.f32.mxu1 %vm19408_vm7, %v7345_v38  ;;  %v19417_v38 = vrot.slane %v19416_v60, 4  ;;  %vm19427_vm7 = vmmov %vm19424_vm5 }
 0x687   : > { %v8013_v58 = vsel %vm19427_vm7, %v8010_v8, %v8012_v15 }
 0x689   : > { %11787 = vmatmul.mubr.msk.f32.gmra.mrb[28].mxu1 %vm19409_vm6, %v7347_v12  ;;  %v7716_v12 = vsel %vm19418_vm13, %v19417_v38, %v7715_v11  ;;  %vm19428_vm6 = vmmov %vm19379_vm0 }
 0x68a   : > { %11789 = vmatprep.mubr.msk.f32.mxu1 %vm19379_vm0, %v7349_v19  ;;  %v8008_v19 = vrot.slane %v16123_v17, 5  ;;  %vm19429_vm0 = vmmov %vm19424_vm5 }
 0x68b   : > { %v8015_v16 = vsel %vm19429_vm0, %v8012_v15, %v8014_v25  ;;  %vm19434_vm13 = vmmov %vm19423_vm2  ;;  %v8031_v43 = vsel %vm19429_vm0, %v8028_v5, %v8030_v20 }
 0x68c   : > { %v8011_v42 = vsel %vm19424_vm5, %v8008_v19, %v8010_v8  ;;  %vm19440_vm5 = vmmov %vm19426_vm4  ;;  %v19458_v8 = vld [vmem:[#allocation139_spill] sm:$0xff] }
 0x68d   : > { %11790 = vmatmul.mubr.msk.f32.gmra.mrb[30].mxu1 %vm19410_vm15, %v7351_v4  ;;  %v8007_v4 = vsel %vm19420_vm10, %v8005_v55, %v8006_v6  ;;  %vm19430_vm15 = vmmov %vm19415_vm1  ;;  %v8042_v55 = vrot.slane %v19269_v44, 5 }
 0x68e   : > { %11792 = vmatprep.mubr.msk.f32.mxu1 %vm19411_vm3, %v7353_v40  ;;  %vm19431_vm3 = vmmov %vm19429_vm0 }
 0x68f   : > { %v8017_v52 = vsel %vm19431_vm3, %v8014_v25, %v8016_v23  ;;  %vm19436_vm10 = vmmov %vm19423_vm2 }
 0x690   : > { %vm19442_vm7 = vmmov %vm19429_vm0 }
 0x691   : > { %11793 = vmatmul.mubr.msk.f32.gmra.mrb[32].mxu1 %vm19413_vm12, %v7355_v9  ;;  %v8009_v9 = vsel %vm19422_vm8, %v8006_v6, %v8008_v19  ;;  %vm19432_vm12 = vmmov %vm19415_vm1  ;;  %v8029_v57 = vsel %vm19442_vm7, %v8026_v18, %v8028_v5  ;;  %v19475_v5 = vld [vmem:[#allocation85_spill] sm:$0xff] }
 0x692   : > { %11795 = vmatprep.mubr.msk.f32.mxu1 %vm19415_vm1, %v19414_v37  ;;  %vm19433_vm1 = vmmov %vm19429_vm0  ;;  %v8044_v37 = vrot.slane %v19272_v47, 5 }
 0x693   : > { %v8019_v51 = vsel %vm19433_vm1, %v8016_v23, %v8018_v0  ;;  %vm19438_vm8 = vmmov %vm19423_vm2  ;;  %v19463_v23 = vld [vmem:[#allocation84_spill] sm:$0xff] }
 0x694   : > { %vm19445_vm3 = vmmov %vm19429_vm0 }
 0x695   : > { %11796 = vmatmul.mubr.msk.f32.gmra.mrb[34].mxu1 %vm19419_vm14, %v7716_v12  ;;  %vm19435_vm14 = vmmov %vm19429_vm0  ;;  %v8033_v40 = vsel %vm19445_vm3, %v8030_v20, %v8032_v1  ;;  %v19456_v12 = vld [vmem:[#allocation143_spill] sm:$0xff] }
 0x696   : > { %11800 = vmatprep.mubr.msk.f32.mxu1 %vm19421_vm11, %v8007_v4  ;;  %v8021_v26 = vsel %vm19435_vm14, %v8018_v0, %v8020_v63  ;;  %vm19437_vm11 = vmmov %vm19429_vm0  ;;  %v8046_v19 = vrot.slane %v19456_v12, 5 }
 0x697   : > { %v8023_v39 = vsel %vm19437_vm11, %v8020_v63, %v8022_v62  ;;  %vm19447_vm1 = vmmov %vm19429_vm0 }
 0x698   : > { %v8035_v10 = vsel %vm19447_vm1, %v8032_v1, %v8034_v61  ;;  %vm19449_vm14 = vmmov %vm19429_vm0  ;;  %v8047_v15 = vsel %vm19429_vm0, %v8044_v37, %v8046_v19 }
 0x699   : > { %11801 = vmatmul.mubr.msk.f32.vlgmr.msra.gmra.mrb[0].mxu1 %vm19423_vm2, %v8009_v9  ;;  %vm19439_vm2 = vmmov %vm19429_vm0  ;;  %v8037_v2 = vsel %vm19449_vm14, %v8034_v61, %v8036_v7  ;;  %v8048_v9 = vrot.slane %v19458_v8, 5  ;;  %v19480_v61 = vld [vmem:[#allocation141_spill] sm:$0xff] }
 0x69a   : > { %11855 = vmatpush3.msk.msra.mxu1 %vm19425_vm9, %v299_v41  ;;  %11803 = vmatprep.mubr.msk.f32.mxu1 %vm19426_vm4, %v8011_v42  ;;  %v8025_v56 = vsel %vm19439_vm2, %v8022_v62, %v8024_v22  ;;  %vm19441_vm9 = vmmov %vm19429_vm0  ;;  %v8038_v41 = vrot.slane %v19264_v13, 5  ;;  %v19460_v42 = vld [vmem:[#allocation88_spill] sm:$0xff] }
 0x69b   : > { %v8027_v33 = vsel %vm19441_vm9, %v8024_v22, %v8026_v18  ;;  %vm19451_vm11 = vmmov %vm19429_vm0  ;;  %v8050_v25 = vrot.slane %v19460_v42, 5  ;;  %v19469_v62 = vld [vmem:[#allocation140_spill] sm:$0xff] }
 0x69c   : > { %v8039_v11 = vsel %vm19451_vm11, %v8036_v7, %v8038_v41  ;;  %vm19453_vm2 = vmmov %vm19429_vm0 }
 0x69d   : > { %11804 = vmatmul.mubr.msk.f32.gmra.mrb[2].mxu1 %vm19428_vm6, %v8013_v58  ;;  %vm19443_vm6 = vmmov %vm19426_vm4  ;;  %v8041_v6 = vsel %vm19453_vm2, %v8038_v41, %v8040_v24 }
 0x69e   : > { %11806 = vmatprep.mubr.msk.f32.mxu1 %vm19430_vm15, %v8015_v16  ;;  %vm19444_vm15 = vmmov %vm19426_vm4  ;;  %v8052_v16 = vrot.slane %v19463_v23, 5 }
 0x69f   : > { %vm19455_vm9 = vmmov %vm19429_vm0 }
 0x6a0   : > { %v8043_v38 = vsel %vm19455_vm9, %v8040_v24, %v8042_v55  ;;  %vm19457_vm7 = vmmov %vm19429_vm0 }
 0x6a1   : > { %11807 = vmatmul.mubr.msk.f32.gmra.mrb[4].mxu1 %vm19432_vm12, %v8017_v52  ;;  %vm19446_vm12 = vmmov %vm19426_vm4  ;;  %v8045_v4 = vsel %vm19457_vm7, %v8042_v55, %v8044_v37  ;;  %v19466_v52 = vld [vmem:[#allocation144_spill] sm:$0xff]  ;;  %v8070_v55 = vrot.slane %v16709_v49, 5  ;;  %v8072_v37 = vrot.slane %v16296_v21, 5 }
 0x6a2   : > { %11809 = vmatprep.mubr.msk.f32.mxu1 %vm19434_vm13, %v8019_v51  ;;  %vm19448_vm13 = vmmov %vm19426_vm4  ;;  %v8054_v63 = vrot.slane %v19466_v52, 5 }
 0x6a3   : > { %vm19462_vm3 = vmmov %vm19429_vm0 }
 0x6a4   : > { %v8049_v58 = vsel %vm19462_vm3, %v8046_v19, %v8048_v9  ;;  %vm19465_vm1 = vmmov %vm19429_vm0 }
 0x6a5   : > { %11810 = vmatmul.mubr.msk.f32.gmra.mrb[6].mxu1 %vm19436_vm10, %v8021_v26  ;;  %vm19450_vm10 = vmmov %vm19426_vm4  ;;  %v8051_v0 = vsel %vm19465_vm1, %v8048_v9, %v8050_v25  ;;  %v8056_v26 = vrot.slane %v19469_v62, 5 }
 0x6a6   : > { %11812 = vmatprep.mubr.msk.f32.mxu1 %vm19438_vm8, %v8023_v39  ;;  %vm19452_vm8 = vmmov %vm19426_vm4  ;;  %v19472_v39 = vld [vmem:[#allocation89_spill] sm:$0xff] }
 0x6a7   : > { %vm19468_vm14 = vmmov %vm19429_vm0  ;;  %v8058_v18 = vrot.slane %v19472_v39, 5 }
 0x6a8   : > { %v8053_v51 = vsel %vm19468_vm14, %v8050_v25, %v8052_v16  ;;  %vm19471_vm11 = vmmov %vm19429_vm0  ;;  %v8435_v25 = vrot.slane %v16120_v48, 6 }
 0x6a9   : > { %11813 = vmatmul.mubr.msk.f32.gmra.mrb[8].mxu1 %vm19440_vm5, %v8025_v56  ;;  %vm19454_vm5 = vmmov %vm19426_vm4  ;;  %v8055_v22 = vsel %vm19471_vm11, %v8052_v16, %v8054_v63  ;;  %v19496_v16 = vld [vmem:[#allocation92_spill] sm:$0xff] }
 0x6aa   : > { %11815 = vmatprep.mubr.msk.f32.mxu1 %vm19426_vm4, %v8027_v33  ;;  %vm19474_vm2 = vmmov %vm19429_vm0  ;;  %v8060_v33 = vrot.slane %v19475_v5, 5 }
 0x6ab   : > { %v8057_v56 = vsel %vm19474_vm2, %v8054_v63, %v8056_v26  ;;  %vm19477_vm9 = vmmov %vm19429_vm0  ;;  %v8439_v63 = vrot.slane %v16103_v50, 6 }
 0x6ac   : > { %v8059_v20 = vsel %vm19477_vm9, %v8056_v26, %v8058_v18  ;;  %vm19479_vm7 = vmmov %vm19429_vm0  ;;  %v8441_v26 = vrot.slane %v15966_v34, 6 }
 0x6ad   : > { %11816 = vmatmul.mubr.msk.f32.gmra.mrb[10].mxu1 %vm19443_vm6, %v8029_v57  ;;  %vm19459_vm6 = vmmov %vm19426_vm4  ;;  %v19478_v57 = vld [vmem:[#allocation145_spill] sm:$0xff] }
 0x6ae   : > { %11818 = vmatprep.mubr.msk.f32.mxu1 %vm19444_vm15, %v8031_v43  ;;  %vm19461_vm15 = vmmov %vm19426_vm4  ;;  %v8062_v1 = vrot.slane %v19478_v57, 5  ;;  %v8061_v43 = vsel %vm19479_vm7, %v8058_v18, %v8060_v33  ;;  %v8447_v18 = vrot.slane %v16140_v59, 6 }
 0x6af   : > { %vm19483_vm3 = vmmov %vm19429_vm0 }
 0x6b0   : > { %v8063_v7 = vsel %vm19429_vm0, %v8060_v33, %v8062_v1  ;;  %vm19486_vm1 = vmmov %vm19429_vm0  ;;  %v8451_v33 = vrot.slane %v16151_v27, 6 }
 0x6b1   : > { %11819 = vmatmul.mubr.msk.f32.gmra.mrb[12].mxu1 %vm19446_vm12, %v8033_v40  ;;  %vm19464_vm12 = vmmov %vm19426_vm4  ;;  %v8064_v40 = vrot.slane %v19480_v61, 5 }
 0x6b2   : > { %11821 = vmatprep.mubr.msk.f32.mxu1 %vm19448_vm13, %v8035_v10  ;;  %vm19467_vm13 = vmmov %vm19426_vm4  ;;  %v8066_v10 = vrot.slane %v16333_v14, 5 }
 0x6b3   : > { %v8065_v41 = vsel %vm19483_vm3, %v8062_v1, %v8064_v40  ;;  %vm19488_vm14 = vmmov %vm19429_vm0  ;;  %v8455_v1 = vrot.slane %v16161_v36, 6 }
 0x6b4   : > { %vm19490_vm11 = vmmov %vm19429_vm0 }
 0x6b5   : > { %11822 = vmatmul.mubr.msk.f32.gmra.mrb[14].mxu1 %vm19450_vm10, %v8037_v2  ;;  %vm19470_vm10 = vmmov %vm19426_vm4  ;;  %v19484_v2 = vld [vmem:[#allocation90_spill] sm:$0xff] }
 0x6b6   : > { %11824 = vmatprep.mubr.msk.f32.mxu1 %vm19452_vm8, %v8039_v11  ;;  %vm19473_vm8 = vmmov %vm19426_vm4  ;;  %v8068_v24 = vrot.slane %v19484_v2, 5  ;;  %v8067_v11 = vsel %vm19486_vm1, %v8064_v40, %v8066_v10  ;;  %v8459_v40 = vrot.slane %v16168_v54, 6 }
 0x6b7   : > { %vm19492_vm2 = vmmov %vm19429_vm0 }
 0x6b8   : > { %v8073_v19 = vsel %vm19492_vm2, %v8070_v55, %v8072_v37  ;;  %vm19495_vm9 = vmmov %vm19429_vm0 }
 0x6b9   : > { %11825 = vmatmul.mubr.msk.f32.gmra.mrb[16].mxu1 %vm19454_vm5, %v8041_v6  ;;  %vm19476_vm5 = vmmov %vm19426_vm4  ;;  %v8069_v6 = vsel %vm19488_vm14, %v8066_v10, %v8068_v24  ;;  %v8463_v10 = vrot.slane %v19259_v28, 6 }
 0x6ba   : > { %11827 = vmatprep.mubr.msk.f32.mxu1 %vm19426_vm4, %v8043_v38  ;;  %v8071_v38 = vsel %vm19490_vm11, %v8068_v24, %v8070_v55  ;;  %vm19497_vm7 = vmmov %vm19426_vm4  ;;  %v8467_v24 = vrot.slane %v19264_v13, 6  ;;  %v8471_v55 = vrot.slane %v19269_v44, 6 }
 0x6bb   : > { %vm19499_vm0 = vmmov %vm19426_vm4 }
 0x6bc   : > { %vm19501_vm3 = vmmov %vm19499_vm0 }
 0x6bd   : > { %11828 = vmatmul.mubr.msk.f32.gmra.mrb[18].mxu1 %vm19459_vm6, %v8045_v4  ;;  %vm19481_vm6 = vmmov %vm19426_vm4  ;;  %v19494_v4 = vrot.slane %v19416_v60, 5 }
 0x6be   : > { %11830 = vmatprep.mubr.msk.f32.mxu1 %vm19461_vm15, %v8047_v15  ;;  %vm19482_vm15 = vmmov %vm19426_vm4  ;;  %v8434_v15 = vrot.slane %v16128_v29, 6  ;;  %v8443_v29 = vrot.slane %v16111_v32, 6 }
 0x6bf   : > { %v8075_v9 = vsel %vm19495_vm9, %v8072_v37, %v19494_v4  ;;  %vm19503_vm1 = vmmov %vm19499_vm0  ;;  %v8475_v37 = vrot.slane %v19456_v12, 6  ;;  %v8481_v4 = vrot.slane %v19463_v23, 6 }
 0x6c0   : > { %vm19505_vm14 = vmmov %vm19499_vm0 }
 0x6c1   : > { %11831 = vmatmul.mubr.msk.f32.gmra.mrb[20].mxu1 %vm19464_vm12, %v8049_v58  ;;  %vm19485_vm12 = vmmov %vm19426_vm4  ;;  %v8437_v58 = vrot.slane %v16123_v17, 6 }
 0x6c2   : > { %11833 = vmatprep.mubr.msk.f32.mxu1 %vm19467_vm13, %v8051_v0  ;;  %vm19487_vm13 = vmmov %vm19426_vm4 }
 0x6c3   : > { %vm19507_vm11 = vmmov %vm19499_vm0 }
 0x6c4   : > { %vm19509_vm2 = vmmov %vm19499_vm0 }
 0x6c5   : > { %11834 = vmatmul.mubr.msk.f32.gmra.mrb[22].mxu1 %vm19470_vm10, %v8053_v51  ;;  %vm19489_vm10 = vmmov %vm19426_vm4 }
 0x6c6   : > { %11836 = vmatprep.mubr.msk.f32.mxu1 %vm19473_vm8, %v8055_v22  ;;  %vm19491_vm8 = vmmov %vm19426_vm4  ;;  %v8445_v22 = vrot.slane %v15974_v35, 6 }
 0x6c7   : > { %vm19511_vm9 = vmmov %vm19499_vm0 }
 0x6c9   : > { %11837 = vmatmul.mubr.msk.f32.gmra.mrb[24].mxu1 %vm19476_vm5, %v8057_v56  ;;  %vm19493_vm5 = vmmov %vm19426_vm4  ;;  %v8449_v56 = vrot.slane %v15981_v45, 6 }
 0x6ca   : > { %11839 = vmatprep.mubr.msk.f32.mxu1 %vm19426_vm4, %v8059_v20  ;;  %v8453_v20 = vrot.slane %v15990_v46, 6 }
 0x6cd   : > { %11840 = vmatmul.mubr.msk.f32.gmra.mrb[26].mxu1 %vm19481_vm6, %v8061_v43  ;;  %vm19498_vm6 = vcmask 1041408   ;;  %v8457_v43 = vrot.slane %v16000_v53, 6 }
 0x6ce   : > { %11842 = vmatprep.mubr.msk.f32.mxu1 %vm19482_vm15, %v8063_v7  ;;  %v8436_v0 = vsel %vm19498_vm6, %v8434_v15, %v8435_v25  ;;  %vm19500_vm15 = vmmov %vm19498_vm6  ;;  %v8461_v7 = vrot.slane %v16010_v31, 6  ;;  %v8485_v15 = vrot.slane %v19469_v62, 6 }
 0x6cf   : > { %v8438_v51 = vsel %vm19500_vm15, %v8435_v25, %v8437_v58  ;;  %v8487_v25 = vrot.slane %v19472_v39, 6 }
 0x6d1   : > { %11843 = vmatmul.mubr.msk.f32.gmra.mrb[28].mxu1 %vm19485_vm12, %v8065_v41  ;;  %vm19502_vm12 = vmmov %vm19498_vm6  ;;  %v8465_v41 = vrot.slane %v19262_v30, 6 }
 0x6d2   : > { %11845 = vmatprep.mubr.msk.f32.mxu1 %vm19487_vm13, %v8067_v11  ;;  %v8440_v48 = vsel %vm19502_vm12, %v8437_v58, %v8439_v63  ;;  %vm19504_vm13 = vmmov %vm19498_vm6  ;;  %v8469_v11 = vrot.slane %v19266_v3, 6  ;;  %v8489_v58 = vrot.slane %v19475_v5, 6 }
 0x6d3   : > { %v8442_v17 = vsel %vm19504_vm13, %v8439_v63, %v8441_v26  ;;  %v8495_v63 = vrot.slane %v16333_v14, 6 }
 0x6d5   : > { %11846 = vmatmul.mubr.msk.f32.gmra.mrb[30].mxu1 %vm19489_vm10, %v8069_v6  ;;  %vm19506_vm10 = vmmov %vm19498_vm6  ;;  %v8473_v6 = vrot.slane %v19272_v47, 6 }
 0x6d6   : > { %11848 = vmatprep.mubr.msk.f32.mxu1 %vm19491_vm8, %v8071_v38  ;;  %v8444_v50 = vsel %vm19506_vm10, %v8441_v26, %v8443_v29  ;;  %vm19508_vm8 = vmmov %vm19498_vm6  ;;  %v8477_v38 = vrot.slane %v19458_v8, 6  ;;  %v8499_v26 = vrot.slane %v16709_v49, 6 }
 0x6d7   : > { %v8446_v34 = vsel %vm19508_vm8, %v8443_v29, %v8445_v22  ;;  %v19559_v29 = vrot.slane %v19416_v60, 6 }
 0x6d9   : > { %11849 = vmatmul.mubr.msk.f32.gmra.mrb[32].mxu1 %vm19493_vm5, %v8073_v19  ;;  %vm19510_vm5 = vmmov %vm19498_vm6  ;;  %v8479_v19 = vrot.slane %v19460_v42, 6 }
 0x6da   : > { %11851 = vmatprep.mubr.msk.f32.mxu1 %vm19426_vm4, %v8075_v9  ;;  %v8448_v32 = vsel %vm19510_vm5, %v8445_v22, %v8447_v18  ;;  %vm19512_vm4 = vmmov %vm19510_vm5  ;;  %v8483_v9 = vrot.slane %v19466_v52, 6  ;;  %v19564_v22 = vld [vmem:[#allocation6_spill] sm:$0xff] }
 0x6db   : > { %v8450_v35 = vsel %vm19512_vm4, %v8447_v18, %v8449_v56  ;;  %vm19514_vm6 = vmmov %vm19512_vm4  ;;  %v8466_v31 = vsel %vm19512_vm4, %v8463_v10, %v8465_v41  ;;  %v8482_v8 = vsel %vm19512_vm4, %v8479_v19, %v8481_v4 }
 0x6dc   : > { %v8452_v59 = vsel %vm19514_vm6, %v8449_v56, %v8451_v33  ;;  %vm19515_vm15 = vmmov %vm19512_vm4  ;;  %v19567_v56 = vld [vmem:[#allocation7_spill] sm:$0xff] }
 0x6dd   : > { %11852 = vmatmul.mubr.msk.f32.gmra.mrb[34].mxu1 %vm19497_vm7, %v19496_v16  ;;  %vm19513_vm7 = vmmov %vm19499_vm0  ;;  %v8454_v45 = vsel %vm19515_vm15, %v8451_v33, %v8453_v20  ;;  %v8491_v16 = vrot.slane %v19478_v57, 6 }
 0x6de   : > { %11856 = vmatprep.mubr.msk.f32.mxu1 %vm19499_vm0, %v8436_v0  ;;  %vm19517_vm12 = vmmov %vm19512_vm4  ;;  %v8493_v0 = vrot.slane %v19480_v61, 6 }
 0x6df   : > { %v8456_v27 = vsel %vm19517_vm12, %v8453_v20, %v8455_v1  ;;  %vm19519_vm13 = vmmov %vm19512_vm4 }
 0x6e0   : > { %v8458_v46 = vsel %vm19519_vm13, %v8455_v1, %v8457_v43  ;;  %vm19521_vm10 = vmmov %vm19512_vm4 }
 0x6e1   : > { %11857 = vmatmul.mubr.msk.f32.vlgmr.msra.gmra.mrb[0].mxu1 %vm19501_vm3, %v8438_v51  ;;  %vm19516_vm3 = vmmov %vm19499_vm0  ;;  %v8460_v36 = vsel %vm19521_vm10, %v8457_v43, %v8459_v40  ;;  %v8497_v51 = vrot.slane %v19484_v2, 6 }
 0x6e2   : > { %11859 = vmatprep.mubr.msk.f32.mxu1 %vm19503_vm1, %v8440_v48  ;;  %vm19518_vm1 = vmmov %vm19499_vm0  ;;  %v8501_v48 = vrot.slane %v16296_v21, 6 }
 0x6e3   : > { %vm19523_vm8 = vmmov %vm19512_vm4  ;;  %v8498_v61 = vsel %vm19512_vm4, %v8495_v63, %v8497_v51 }
 0x6e4   : > { %v8462_v53 = vsel %vm19523_vm8, %v8459_v40, %v8461_v7  ;;  %vm19525_vm5 = vmmov %vm19512_vm4 }
 0x6e5   : > { %11860 = vmatmul.mubr.msk.f32.gmra.mrb[2].mxu1 %vm19505_vm14, %v8442_v17  ;;  %vm19520_vm14 = vmmov %vm19499_vm0  ;;  %v8464_v54 = vsel %vm19525_vm5, %v8461_v7, %v8463_v10  ;;  %v19562_v17 = vld [vmem:[#allocation93_spill] sm:$0xff]  ;;  %v19576_v10 = vld [vmem:[#allocation10_spill] sm:$0xff] }
 0x6e6   : > { %11862 = vmatprep.mubr.msk.f32.mxu1 %vm19507_vm11, %v8444_v50  ;;  %vm19522_vm11 = vmmov %vm19499_vm0 }
 0x6e7   : > { %vm19528_vm6 = vmmov %vm19512_vm4 }
 0x6e8   : > { %v8468_v28 = vsel %vm19528_vm6, %v8465_v41, %v8467_v24  ;;  %vm19529_vm15 = vmmov %vm19512_vm4  ;;  %v19578_v41 = vld [vmem:[#allocation11_spill] sm:$0xff] }
 0x6e9   : > { %11863 = vmatmul.mubr.msk.f32.gmra.mrb[4].mxu1 %vm19509_vm2, %v8446_v34  ;;  %vm19524_vm2 = vmmov %vm19499_vm0  ;;  %v8470_v30 = vsel %vm19529_vm15, %v8467_v24, %v8469_v11 }
 0x6ea   : > { %11865 = vmatprep.mubr.msk.f32.mxu1 %vm19511_vm9, %v8448_v32  ;;  %vm19526_vm9 = vmmov %vm19499_vm0 }
 0x6eb   : > { %vm19531_vm12 = vmmov %vm19512_vm4 }
 0x6ec   : > { %v8472_v13 = vsel %vm19531_vm12, %v8469_v11, %v8471_v55  ;;  %vm19533_vm13 = vmmov %vm19512_vm4 }
 0x6ed   : > { %11866 = vmatmul.mubr.msk.f32.gmra.mrb[6].mxu1 %vm19513_vm7, %v8450_v35  ;;  %vm19527_vm7 = vmmov %vm19499_vm0  ;;  %v8474_v3 = vsel %vm19533_vm13, %v8471_v55, %v8473_v6 }
 0x6ee   : > { %11868 = vmatprep.mubr.msk.f32.mxu1 %vm19499_vm0, %v8452_v59  ;;  %vm19535_vm10 = vmmov %vm19512_vm4  ;;  %v19570_v59 = vld [vmem:[#allocation8_spill] sm:$0xff] }
 0x6ef   : > { %v8476_v44 = vsel %vm19535_vm10, %v8473_v6, %v8475_v37  ;;  %vm19537_vm8 = vmmov %vm19512_vm4  ;;  %v19581_v6 = vld [vmem:[#allocation12_spill] sm:$0xff] }
 0x6f0   : > { %v8478_v47 = vsel %vm19537_vm8, %v8475_v37, %v8477_v38  ;;  %vm19539_vm5 = vmmov %vm19512_vm4  ;;  %v19583_v37 = vld [vmem:[#allocation13_spill] sm:$0xff] }
 0x6f1   : > { %11869 = vmatmul.mubr.msk.f32.gmra.mrb[8].mxu1 %vm19516_vm3, %v8454_v45  ;;  %vm19530_vm3 = vmmov %vm19499_vm0  ;;  %v8480_v12 = vsel %vm19539_vm5, %v8477_v38, %v8479_v19  ;;  %v19572_v45 = vld [vmem:[#allocation9_spill] sm:$0xff] }
 0x6f2   : > { %11871 = vmatprep.mubr.msk.f32.mxu1 %vm19518_vm1, %v8456_v27  ;;  %vm19532_vm1 = vmmov %vm19499_vm0 }
 0x6f3   : > { %vm19542_vm6 = vmmov %vm19512_vm4 }
 0x6f4   : > { %v8484_v42 = vsel %vm19542_vm6, %v8481_v4, %v8483_v9  ;;  %vm19543_vm15 = vmmov %vm19512_vm4 }
 0x6f5   : > { %11872 = vmatmul.mubr.msk.f32.gmra.mrb[10].mxu1 %vm19520_vm14, %v8458_v46  ;;  %vm19534_vm14 = vmmov %vm19499_vm0  ;;  %v8486_v23 = vsel %vm19543_vm15, %v8483_v9, %v8485_v15  ;;  %v19587_v9 = vld [vmem:[#allocation14_spill] sm:$0xff] }
 0x6f6   : > { %11874 = vmatprep.mubr.msk.f32.mxu1 %vm19522_vm11, %v8460_v36  ;;  %vm19536_vm11 = vmmov %vm19499_vm0 }
 0x6f7   : > { %vm19545_vm12 = vmmov %vm19512_vm4 }
 0x6f8   : > { %v8488_v52 = vsel %vm19545_vm12, %v8485_v15, %v8487_v25  ;;  %vm19547_vm13 = vmmov %vm19512_vm4  ;;  %v19589_v15 = vld [vmem:[#allocation15_spill] sm:$0xff] }
 0x6f9   : > { %11875 = vmatmul.mubr.msk.f32.gmra.mrb[12].mxu1 %vm19524_vm2, %v8462_v53  ;;  %vm19538_vm2 = vmmov %vm19499_vm0  ;;  %v8490_v62 = vsel %vm19547_vm13, %v8487_v25, %v8489_v58 }
 0x6fa   : > { %11877 = vmatprep.mubr.msk.f32.mxu1 %vm19526_vm9, %v8464_v54  ;;  %vm19540_vm9 = vmmov %vm19499_vm0 }
 0x6fb   : > { %vm19549_vm10 = vmmov %vm19512_vm4 }
 0x6fc   : > { %v8492_v39 = vsel %vm19549_vm10, %v8489_v58, %v8491_v16  ;;  %vm19551_vm8 = vmmov %vm19512_vm4 }
 0x6fd   : > { %11878 = vmatmul.mubr.msk.f32.gmra.mrb[14].mxu1 %vm19527_vm7, %v8466_v31  ;;  %vm19541_vm7 = vmmov %vm19499_vm0  ;;  %v8494_v5 = vsel %vm19551_vm8, %v8491_v16, %v8493_v0 }
 0x6fe   : > { %11880 = vmatprep.mubr.msk.f32.mxu1 %vm19499_vm0, %v8468_v28  ;;  %vm19553_vm5 = vmmov %vm19512_vm4 }
 0x6ff   : > { %v8496_v57 = vsel %vm19553_vm5, %v8493_v0, %v8495_v63  ;;  %vm19556_vm6 = vmmov %vm19512_vm4  ;;  %vm19573_vm5 = vcmp.lt.s32.totalorder %v19572_v45, 16  ;;  %v19593_v0 = vld [vmem:[#allocation16_spill] sm:$0xff]  ;;  %v19595_v63 = vld [vmem:[#allocation50_spill] sm:$0xff] }
 0x700   : > { %v8500_v14 = vsel %vm19556_vm6, %v8497_v51, %v8499_v26  ;;  %vm19557_vm15 = vmmov %vm19512_vm4  ;;  %vm19579_vm6 = vcmp.lt.s32.totalorder %v19578_v41, 16 }
 0x701   : > { %11881 = vmatmul.mubr.msk.f32.gmra.mrb[16].mxu1 %vm19530_vm3, %v8470_v30  ;;  %vm19544_vm3 = vmmov %vm19499_vm0  ;;  %v8502_v2 = vsel %vm19557_vm15, %v8499_v26, %v8501_v48 }
 0x702   : > { %11883 = vmatprep.mubr.msk.f32.mxu1 %vm19532_vm1, %v8472_v13  ;;  %vm19546_vm1 = vmmov %vm19499_vm0 }
 0x703   : > { %vm19560_vm12 = vmmov %vm19512_vm4 }
 0x704   : > { %v8504_v49 = vsel %vm19560_vm12, %v8501_v48, %v19559_v29  ;;  %vm19563_vm13 = vmmov %vm19499_vm0  ;;  %vm19584_vm12 = vcmp.lt.s32.totalorder %v19583_v37, 16 }
 0x705   : > { %11884 = vmatmul.mubr.msk.f32.gmra.mrb[18].mxu1 %vm19534_vm14, %v8474_v3  ;;  %vm19548_vm14 = vmmov %vm19499_vm0 }
 0x706   : > { %11886 = vmatprep.mubr.msk.f32.mxu1 %vm19536_vm11, %v8476_v44  ;;  %vm19550_vm11 = vmmov %vm19499_vm0 }
 0x707   : > { %vm19566_vm10 = vmmov %vm19499_vm0 }
 0x708   : > { %vm19569_vm8 = vmmov %vm19499_vm0 }
 0x709   : > { %11887 = vmatmul.mubr.msk.f32.gmra.mrb[20].mxu1 %vm19538_vm2, %v8478_v47  ;;  %vm19552_vm2 = vmmov %vm19499_vm0 }
 0x70a   : > { %11889 = vmatprep.mubr.msk.f32.mxu1 %vm19540_vm9, %v8480_v12  ;;  %vm19554_vm9 = vmmov %vm19499_vm0 }
 0x70b   : > { %vm19575_vm4 = vmmov %vm19499_vm0 }
 0x70c   : > { %vm19580_vm15 = vmmov %vm19499_vm0 }
 0x70d   : > { %11890 = vmatmul.mubr.msk.f32.gmra.mrb[22].mxu1 %vm19541_vm7, %v8482_v8  ;;  %vm19555_vm7 = vmmov %vm19499_vm0 }
 0x70e   : > { %11892 = vmatprep.mubr.msk.f32.mxu1 %vm19499_vm0, %v8484_v42 }
 0x711   : > { %11893 = vmatmul.mubr.msk.f32.gmra.mrb[24].mxu1 %vm19544_vm3, %v8486_v23  ;;  %vm19558_vm3 = vmmov %vm19499_vm0 }
 0x712   : > { %11895 = vmatprep.mubr.msk.f32.mxu1 %vm19546_vm1, %v8488_v52  ;;  %vm19561_vm1 = vmmov %vm19499_vm0 }
 0x715   : > { %11896 = vmatmul.mubr.msk.f32.gmra.mrb[26].mxu1 %vm19548_vm14, %v8490_v62  ;;  %vm19565_vm14 = vcmp.lt.s32.totalorder %v19564_v22, 16 }
 0x716   : > { %11898 = vmatprep.mubr.msk.f32.mxu1 %vm19550_vm11, %v8492_v39  ;;  %vm19568_vm11 = vcmp.lt.s32.totalorder %v19567_v56, 16 }
 0x719   : > { %11899 = vmatmul.mubr.msk.f32.gmra.mrb[28].mxu1 %vm19552_vm2, %v8494_v5  ;;  %vm19571_vm2 = vcmp.lt.s32.totalorder %v19570_v59, 16 }
 0x71a   : > { %11901 = vmatprep.mubr.msk.f32.mxu1 %vm19554_vm9, %v8496_v57  ;;  %vm19574_vm9 = vmmov %vm19499_vm0 }
 0x71d   : > { %11902 = vmatmul.mubr.msk.f32.gmra.mrb[30].mxu1 %vm19555_vm7, %v8498_v61  ;;  %vm19577_vm7 = vcmp.lt.s32.totalorder %v19576_v10, 16 }
 0x71e   : > { %11904 = vmatprep.mubr.msk.f32.mxu1 %vm19499_vm0, %v8500_v14 }
 0x721   : > { %11905 = vmatmul.mubr.msk.f32.gmra.mrb[32].mxu1 %vm19558_vm3, %v8502_v2  ;;  %vm19582_vm3 = vcmp.lt.s32.totalorder %v19581_v6, 16  ;;  %v19599_v2 = vld [vmem:[#allocation51_spill] sm:$0xff] }
 0x722   : > { %11907 = vmatprep.mubr.msk.f32.mxu1 %vm19561_vm1, %v8504_v49  ;;  %vm19585_vm1 = vmmov %vm19499_vm0  ;;  %v19601_v49 = vld [vmem:[#allocation52_spill] sm:$0xff] }
 0x725   : > { %11908 = vmatmul.mubr.msk.f32.gmra.mrb[34].mxu1 %vm19563_vm13, %v19562_v17  ;;  %vm19586_vm13 = vmmov %vm19499_vm0 }
 0x7b4   : > { %v17302_v21 = vpop.f32.mrb[0].mxu1 }
 0x7b5   : > { %v8864_v50 = vsel %vm19565_vm14, %v17302_v21, 0.0  ;;  %v17307_v18 = vpop.f32.mrb[1].mxu1  ;;  %vm19588_vm14 = vcmp.lt.s32.totalorder %v19587_v9, 16 }
 0x7b6   : > { %v8900_v34 = vsel %vm19566_vm10, %v8864_v50, 0.0  ;;  %v8863_v60 = vsel %vm19568_vm11, %v17307_v18, 0.0  ;;  %vm19590_vm10 = vcmp.lt.s32.totalorder %v19589_v15, 16  ;;  %vm19591_vm11 = vmmov %vm19499_vm0 }
 0x7b7   : > { %v8899_v32 = vsel %vm19569_vm8, %v8863_v60, 0.0  ;;  %vm19592_vm8 = vmmov %vm19499_vm0 }
 0x7b8   : > { %v8901_v33 = vadd.f32 %v8900_v34, %v8899_v32  ;;  %v17314_v35 = vpop.f32.mrb[2].mxu1 }
 0x7b9   : > { %v17316_v20 = vpop.f32.mrb[3].mxu1  ;;  %v8866_v1 = vsel %vm19571_vm2, %v17314_v35, 0.0  ;;  %vm19594_vm2 = vcmp.lt.s32.totalorder %v19593_v0, 16 }
 0x7ba   : > { %v8865_v43 = vsel %vm19573_vm5, %v17316_v20, 0.0  ;;  %v8904_v7 = vsel %vm19575_vm4, %v8866_v1, 0.0  ;;  %vm19596_vm5 = vcmp.lt.s32.totalorder %v19595_v63, 16  ;;  %vm19598_vm4 = vmmov %vm19499_vm0 }
 0x7bb   : > { %v8902_v27 = vsel %vm19574_vm9, %v8865_v43, 0.0  ;;  %vm19597_vm9 = vmmov %vm19499_vm0  ;;  %v19604_v43 = vld [vmem:[#allocation53_spill] sm:$0xff] }
 0x7bc   : > { %v8903_v40 = vadd.f32 %v8902_v27, %v8901_v33  ;;  %v17325_v46 = vpop.f32.mrb[4].mxu1 }
 0x7bd   : > { %v17328_v36 = vpop.f32.mrb[5].mxu1  ;;  %v8868_v53 = vsel %vm19577_vm7, %v17325_v46, 0.0  ;;  %vm19600_vm7 = vcmp.lt.s32.totalorder %v19599_v2, 16 }
 0x7be   : > { %v8867_v54 = vsel %vm19579_vm6, %v17328_v36, 0.0  ;;  %v8905_v24 = vadd.f32 %v8904_v7, %v8903_v40  ;;  %v8908_v55 = vsel %vm19580_vm15, %v8868_v53, 0.0  ;;  %vm19602_vm6 = vcmp.lt.s32.totalorder %v19601_v49, 16  ;;  %vm19603_vm15 = vmmov %vm19499_vm0  ;;  %v19606_v40 = vld [vmem:[#allocation54_spill] sm:$0xff] }
 0x7bf   : > { %v8906_v31 = vsel %vm19499_vm0, %v8867_v54, 0.0 }
 0x7c0   : > { %v8907_v11 = vadd.f32 %v8906_v31, %v8905_v24  ;;  %v17337_v28 = vpop.f32.mrb[6].mxu1 }
 0x7c1   : > { %v17340_v30 = vpop.f32.mrb[7].mxu1  ;;  %v8870_v13 = vsel %vm19582_vm3, %v17337_v28, 0.0  ;;  %vm19605_vm3 = vcmp.lt.s32.totalorder %v19604_v43, 16 }
 0x7c2   : > { %v8869_v3 = vsel %vm19584_vm12, %v17340_v30, 0.0  ;;  %v8909_v38 = vadd.f32 %v8908_v55, %v8907_v11  ;;  %v8912_v4 = vsel %vm19586_vm13, %v8870_v13, 0.0  ;;  %vm19607_vm12 = vcmp.lt.s32.totalorder %v19606_v40, 16  ;;  %vm19609_vm13 = vmmov %vm19499_vm0  ;;  %v19610_v13 = vld [vmem:[#allocation55_spill] sm:$0xff] }
 0x7c3   : > { %v8910_v44 = vsel %vm19585_vm1, %v8869_v3, 0.0  ;;  %vm19608_vm1 = vmmov %vm19499_vm0 }
 0x7c4   : > { %v8911_v19 = vadd.f32 %v8910_v44, %v8909_v38  ;;  %v17349_v47 = vpop.f32.mrb[8].mxu1  ;;  %v19612_v38 = vld [vmem:[#allocation56_spill] sm:$0xff] }
 0x7c5   : > { %v17352_v12 = vpop.f32.mrb[9].mxu1  ;;  %v8872_v8 = vsel %vm19588_vm14, %v17349_v47, 0.0  ;;  %vm19611_vm14 = vcmp.lt.s32.totalorder %v19610_v13, 16 }
 0x7c6   : > { %v8871_v42 = vsel %vm19590_vm10, %v17352_v12, 0.0  ;;  %v8913_v25 = vadd.f32 %v8912_v4, %v8911_v19  ;;  %v8916_v16 = vsel %vm19592_vm8, %v8872_v8, 0.0  ;;  %vm19613_vm10 = vcmp.lt.s32.totalorder %v19612_v38, 16  ;;  %vm19615_vm8 = vmmov %vm19499_vm0 }
 0x7c7   : > { %v8914_v23 = vsel %vm19591_vm11, %v8871_v42, 0.0  ;;  %vm19614_vm11 = vmmov %vm19499_vm0 }
 0x7c8   : > { %v8915_v58 = vadd.f32 %v8914_v23, %v8913_v25  ;;  %v17361_v52 = vpop.f32.mrb[10].mxu1 }
 0x7c9   : > { %v17364_v62 = vpop.f32.mrb[11].mxu1  ;;  %v8874_v39 = vsel %vm19594_vm2, %v17361_v52, 0.0 }
 0x7ca   : > { %v8873_v5 = vsel %vm19596_vm5, %v17364_v62, 0.0  ;;  %v8917_v51 = vadd.f32 %v8916_v16, %v8915_v58  ;;  %v8920_v48 = vsel %vm19598_vm4, %v8874_v39, 0.0  ;;  %v19616_v58 = vld [vmem:[#allocation57_spill] sm:$0xff]  ;;  %v19618_v39 = vld [vmem:[#allocation58_spill] sm:$0xff]  ;;  %vm19621_vm4 = vmmov %vm19499_vm0 }
 0x7cb   : > { %v8918_v57 = vsel %vm19597_vm9, %v8873_v5, 0.0  ;;  %vm19617_vm2 = vcmp.lt.s32.totalorder %v19616_v58, 16  ;;  %vm19619_vm5 = vcmp.lt.s32.totalorder %v19618_v39, 16  ;;  %vm19620_vm9 = vmmov %vm19499_vm0  ;;  %v19652_v58 = vld [vmem:[#allocation70_spill] sm:$0xff] }
 0x7cc   : > { %v8919_v26 = vadd.f32 %v8918_v57, %v8917_v51  ;;  %v17373_v61 = vpop.f32.mrb[12].mxu1 }
 0x7cd   : > { %v17376_v14 = vpop.f32.mrb[13].mxu1  ;;  %v8876_v29 = vsel %vm19600_vm7, %v17373_v61, 0.0 }
 0x7ce   : > { %v8875_v17 = vsel %vm19602_vm6, %v17376_v14, 0.0  ;;  %v8921_v50 = vadd.f32 %v8920_v48, %v8919_v26  ;;  %v8924_v33 = vsel %vm19603_vm15, %v8876_v29, 0.0  ;;  %vm19626_vm15 = vmmov %vm19499_vm0 }
 0x7cf   : > { %v8922_v34 = vsel %vm19499_vm0, %v8875_v17, 0.0 }
 0x7d0   : > { %v8923_v60 = vadd.f32 %v8922_v34, %v8921_v50  ;;  %v17385_v32 = vpop.f32.mrb[14].mxu1  ;;  %v19622_v50 = vld [vmem:[#allocation59_spill] sm:$0xff] }
 0x7d1   : > { %v17388_v1 = vpop.f32.mrb[15].mxu1  ;;  %v8878_v27 = vsel %vm19605_vm3, %v17385_v32, 0.0  ;;  %vm19623_vm7 = vcmp.lt.s32.totalorder %v19622_v50, 16 }
 0x7d2   : > { %v8877_v7 = vsel %vm19607_vm12, %v17388_v1, 0.0  ;;  %v8925_v53 = vadd.f32 %v8924_v33, %v8923_v60  ;;  %v8928_v11 = vsel %vm19609_vm13, %v8878_v27, 0.0  ;;  %v19624_v60 = vld [vmem:[#allocation60_spill] sm:$0xff]  ;;  %vm19632_vm13 = vmmov %vm19499_vm0 }
 0x7d3   : > { %v8926_v54 = vsel %vm19608_vm1, %v8877_v7, 0.0  ;;  %vm19625_vm6 = vcmp.lt.s32.totalorder %v19624_v60, 16  ;;  %vm19631_vm1 = vmmov %vm19499_vm0 }
 0x7d4   : > { %v8927_v24 = vadd.f32 %v8926_v54, %v8925_v53  ;;  %v17397_v31 = vpop.f32.mrb[16].mxu1 }
 0x7d5   : > { %v17400_v55 = vpop.f32.mrb[17].mxu1  ;;  %v8880_v3 = vsel %vm19611_vm14, %v17397_v31, 0.0 }
 0x7d6   : > { %v8879_v44 = vsel %vm19613_vm10, %v17400_v55, 0.0  ;;  %v8929_v19 = vadd.f32 %v8928_v11, %v8927_v24  ;;  %v8932_v25 = vsel %vm19615_vm8, %v8880_v3, 0.0  ;;  %v19627_v3 = vld [vmem:[#allocation61_spill] sm:$0xff]  ;;  %vm19638_vm8 = vmmov %vm19499_vm0 }
 0x7d7   : > { %v8930_v4 = vsel %vm19614_vm11, %v8879_v44, 0.0  ;;  %vm19628_vm3 = vcmp.lt.s32.totalorder %v19627_v3, 16  ;;  %vm19637_vm11 = vmmov %vm19499_vm0 }
 0x7d8   : > { %v8931_v8 = vadd.f32 %v8930_v4, %v8929_v19  ;;  %v17409_v42 = vpop.f32.mrb[18].mxu1  ;;  %v19629_v19 = vld [vmem:[#allocation62_spill] sm:$0xff] }
 0x7d9   : > { %v17412_v23 = vpop.f32.mrb[19].mxu1  ;;  %v8882_v16 = vsel %vm19617_vm2, %v17409_v42, 0.0  ;;  %vm19630_vm12 = vcmp.lt.s32.totalorder %v19629_v19, 16 }
 0x7da   : > { %v8881_v5 = vsel %vm19619_vm5, %v17412_v23, 0.0  ;;  %v8933_v51 = vadd.f32 %v8932_v25, %v8931_v8  ;;  %v8936_v29 = vsel %vm19621_vm4, %v8882_v16, 0.0  ;;  %vm19644_vm4 = vmmov %vm19499_vm0 }
 0x7db   : > { %v8934_v57 = vsel %vm19620_vm9, %v8881_v5, 0.0  ;;  %vm19643_vm9 = vmmov %vm19499_vm0 }
 0x7dc   : > { %v8935_v26 = vadd.f32 %v8934_v57, %v8933_v51  ;;  %v17421_v48 = vpop.f32.mrb[20].mxu1 }
 0x7dd   : > { %v17424_v17 = vpop.f32.mrb[21].mxu1  ;;  %v8884_v34 = vsel %vm19623_vm7, %v17421_v48, 0.0 }
 0x7de   : > { %v8883_v33 = vsel %vm19625_vm6, %v17424_v17, 0.0  ;;  %v8937_v27 = vadd.f32 %v8936_v29, %v8935_v26  ;;  %v8940_v24 = vsel %vm19626_vm15, %v8884_v34, 0.0  ;;  %v19633_v26 = vld [vmem:[#allocation63_spill] sm:$0xff]  ;;  %v19635_v34 = vld [vmem:[#allocation64_spill] sm:$0xff]  ;;  %vm19649_vm15 = vmmov %vm19499_vm0 }
 0x7df   : > { %v8938_v7 = vsel %vm19499_vm0, %v8883_v33, 0.0  ;;  %vm19634_vm14 = vcmp.lt.s32.totalorder %v19633_v26, 16  ;;  %vm19636_vm10 = vcmp.lt.s32.totalorder %v19635_v34, 16  ;;  %v19641_v26 = vld [vmem:[#allocation66_spill] sm:$0xff] }
 0x7e0   : > { %v8939_v53 = vadd.f32 %v8938_v7, %v8937_v27  ;;  %v17433_v54 = vpop.f32.mrb[22].mxu1  ;;  %vm19642_vm5 = vcmp.lt.s32.totalorder %v19641_v26, 16 }
 0x7e1   : > { %v17436_v11 = vpop.f32.mrb[23].mxu1  ;;  %v8886_v44 = vsel %vm19628_vm3, %v17433_v54, 0.0 }
 0x7e2   : > { %v8885_v4 = vsel %vm19630_vm12, %v17436_v11, 0.0  ;;  %v8941_v8 = vadd.f32 %v8940_v24, %v8939_v53  ;;  %v8944_v51 = vsel %vm19632_vm13, %v8886_v44, 0.0  ;;  %v19639_v44 = vld [vmem:[#allocation65_spill] sm:$0xff]  ;;  %vm19653_vm12 = vcmp.lt.s32.totalorder %v19652_v58, 16  ;;  %vm19655_vm13 = vmmov %vm19499_vm0 }
 0x7e3   : > { %v8942_v25 = vsel %vm19631_vm1, %v8885_v4, 0.0  ;;  %vm19640_vm2 = vcmp.lt.s32.totalorder %v19639_v44, 16  ;;  %v19647_v44 = vld [vmem:[#allocation68_spill] sm:$0xff]  ;;  %vm19654_vm1 = vmmov %vm19499_vm0 }
 0x7e4   : > { %v8943_v16 = vadd.f32 %v8942_v25, %v8941_v8  ;;  %v17445_v5 = vpop.f32.mrb[24].mxu1  ;;  %vm19648_vm6 = vcmp.lt.s32.totalorder %v19647_v44, 16 }
 0x7e5   : > { %v17448_v57 = vpop.f32.mrb[25].mxu1  ;;  %v8888_v29 = vsel %vm19634_vm14, %v17445_v5, 0.0 }
 0x7e6   : > { %v8887_v33 = vsel %vm19636_vm10, %v17448_v57, 0.0  ;;  %v8945_v27 = vadd.f32 %v8944_v51, %v8943_v16  ;;  %v8948_v4 = vsel %vm19638_vm8, %v8888_v29, 0.0  ;;  %v19645_v29 = vld [vmem:[#allocation67_spill] sm:$0xff]  ;;  %vm19661_vm8 = vmmov %vm19499_vm0 }
 0x7e7   : > { %v8946_v7 = vsel %vm19637_vm11, %v8887_v33, 0.0  ;;  %vm19646_vm7 = vcmp.lt.s32.totalorder %v19645_v29, 16  ;;  %vm19660_vm11 = vmmov %vm19499_vm0 }
 0x7e8   : > { %v8947_v53 = vadd.f32 %v8946_v7, %v8945_v27  ;;  %v17457_v24 = vpop.f32.mrb[26].mxu1 }
 0x7e9   : > { %v17460_v8 = vpop.f32.mrb[27].mxu1  ;;  %v8890_v25 = vsel %vm19640_vm2, %v17457_v24, 0.0 }
 0x7ea   : > { %v8889_v3 = vsel %vm19642_vm5, %v17460_v8, 0.0  ;;  %v8949_v34 = vadd.f32 %v8948_v4, %v8947_v53  ;;  %v8952_v27 = vsel %vm19644_vm4, %v8890_v25, 0.0  ;;  %v19650_v25 = vld [vmem:[#allocation69_spill] sm:$0xff]  ;;  %vm19667_vm4 = vmmov %vm19499_vm0 }
 0x7eb   : > { %v8950_v16 = vsel %vm19643_vm9, %v8889_v3, 0.0  ;;  %vm19651_vm3 = vcmp.lt.s32.totalorder %v19650_v25, 16  ;;  %vm19666_vm9 = vmmov %vm19499_vm0 }
 0x7ec   : > { %v8951_v51 = vadd.f32 %v8950_v16, %v8949_v34  ;;  %v17469_v33 = vpop.f32.mrb[28].mxu1 }
 0x7ed   : > { %v17472_v7 = vpop.f32.mrb[29].mxu1  ;;  %v8892_v19 = vsel %vm19646_vm7, %v17469_v33, 0.0  ;;  %vm19668_vm7 = vcmp.lt.s32.totalorder %v19567_v56, 16 }
 0x7ee   : > { %v8891_v50 = vsel %vm19648_vm6, %v17472_v7, 0.0  ;;  %v8953_v26 = vadd.f32 %v8952_v27, %v8951_v51  ;;  %v8956_v34 = vsel %vm19649_vm15, %v8892_v19, 0.0  ;;  %v19656_v27 = vld [vmem:[#allocation71_spill] sm:$0xff]  ;;  %v19658_v19 = vld [vmem:[#allocation72_spill] sm:$0xff]  ;;  %vm19669_vm6 = vcmp.lt.s32.totalorder %v19564_v22, 16 }
 0x7ef   : > { %v8954_v53 = vsel %vm19499_vm0, %v8891_v50, 0.0  ;;  %vm19657_vm14 = vcmp.lt.s32.totalorder %v19656_v27, 16  ;;  %vm19659_vm10 = vcmp.lt.s32.totalorder %v19658_v19, 16  ;;  %vm19670_vm0 = vcmp.lt.s32.totalorder %v19572_v45, 16 }
 0x7f0   : > { %v8955_v4 = vadd.f32 %v8954_v53, %v8953_v26  ;;  %v17481_v3 = vpop.f32.mrb[30].mxu1  ;;  %vm19671_vm15 = vcmp.lt.s32.totalorder %v19570_v59, 16 }
 0x7f1   : > { %v8798_v16 = vpop.f32.mrb[31].mxu1  ;;  %v8894_v60 = vsel %vm19651_vm3, %v17481_v3, 0.0  ;;  %vm19672_vm3 = vcmp.lt.s32.totalorder %v19578_v41, 16 }
 0x7f2   : > { %v8893_v29 = vsel %vm19653_vm12, %v8798_v16, 0.0  ;;  %v8957_v39 = vadd.f32 %v8956_v34, %v8955_v4  ;;  %v8960_v50 = vsel %vm19655_vm13, %v8894_v60, 0.0  ;;  %vm19673_vm12 = vmmov %vm19654_vm1  ;;  %vm19674_vm13 = vcmp.lt.s32.totalorder %v19576_v10, 16 }
 0x7f3   : > { %v8958_v44 = vsel %vm19654_vm1, %v8893_v29, 0.0  ;;  %v19662_v29 = vld [vmem:[#allocation73_spill] sm:$0xff] }
 0x7f4   : > { %v8959_v13 = vadd.f32 %v8958_v44, %v8957_v39  ;;  %v11906_v51 = vpop.f32.mrb[32].mxu1  ;;  %vm19663_vm2 = vcmp.lt.s32.totalorder %v19662_v29, 16  ;;  %v19664_v44 = vld [vmem:[#allocation74_spill] sm:$0xff] }
 0x7f5   : > { %v8808_v26 = vpop.f32.mrb[33].mxu1  ;;  %v8896_v53 = vsel %vm19657_vm14, %v11906_v51, 0.0  ;;  %vm19665_vm5 = vcmp.lt.s32.totalorder %v19664_v44, 16  ;;  %vm19675_vm14 = vmmov %vm19654_vm1 }
 0x7f6   : > { %v8895_v38 = vsel %vm19659_vm10, %v8808_v26, 0.0  ;;  %v8961_v43 = vadd.f32 %v8960_v50, %v8959_v13  ;;  %v8964_v4 = vsel %vm19661_vm8, %v8896_v53, 0.0  ;;  %vm19676_vm10 = vcmp.lt.s32.totalorder %v19583_v37, 16 }
 0x7f7   : > { %v8962_v25 = vsel %vm19660_vm11, %v8895_v38, 0.0  ;;  %vm19677_vm11 = vmmov %vm19654_vm1  ;;  %vm19678_vm8 = vcmp.lt.s32.totalorder %v19581_v6, 16 }
 0x7f8   : > { %v8963_v40 = vadd.f32 %v8962_v25, %v8961_v43  ;;  %v11909_v58 = vpop.f32.mrb[34].mxu1 }
 0x7f9   : > { %v8818_v34 = vpop.f32.mrb[35].mxu1  ;;  %v8898_v39 = vsel %vm19663_vm2, %v11909_v58, 0.0  ;;  %vm19679_vm2 = vmmov %vm19654_vm1 }
 0x7fa   : > { %v8897_v60 = vsel %vm19665_vm5, %v8818_v34, 0.0  ;;  %v8965_v2 = vadd.f32 %v8964_v4, %v8963_v40  ;;  %v8968_v19 = vsel %vm19667_vm4, %v8898_v39, 0.0  ;;  %vm19680_vm5 = vcmp.lt.s32.totalorder %v19589_v15, 16 }
 0x7fb   : > { %v8966_v27 = vsel %vm19666_vm9, %v8897_v60, 0.0  ;;  %vm19681_vm9 = vmmov %vm19654_vm1  ;;  %vm19682_vm4 = vcmp.lt.s32.totalorder %v19587_v9, 16 }
 0x7fc   : > { %v8967_v49 = vadd.f32 %v8966_v27, %v8965_v2 }
 0x7fe   : > { %v8969_v13 = vadd.f32 %v8968_v19, %v8967_v49 }
 0x800   : > { %v8970_v50 = vrot.slane %v8969_v13, 4 }
 0x802   : > { %v8971_v38 = vadd.f32 %v8970_v50, %v8969_v13 }
 0x804   : > { %v8972_v43 = vrot.slane %v8971_v38, 2 }
 0x806   : > { %v8973_v25 = vadd.f32 %v8972_v43, %v8971_v38 }
 0x808   : > { %v8974_v0 = vrot.slane %v8973_v25, 1 }
 0x80a   : > { %v8975_v53 = vadd.f32 %v8974_v0, %v8973_v25 }
 0x80c   : > { %v8976_v63 = vmul.f32 0.00390625, %v8975_v53 }
 0x80e   : > { %v17504_v29 = vsub.f32 %v17307_v18, %v8976_v63  ;;  %v17507_v44 = vsub.f32 %v17302_v21, %v8976_v63  ;;  %v17510_v40 = vsub.f32 %v17316_v20, %v8976_v63  ;;  %v17513_v2 = vsub.f32 %v17314_v35, %v8976_v63 }
 0x80f   : > { %v17516_v49 = vsub.f32 %v17328_v36, %v8976_v63  ;;  %v17519_v27 = vsub.f32 %v17325_v46, %v8976_v63  ;;  %v17522_v0 = vsub.f32 %v17340_v30, %v8976_v63  ;;  %v17525_v18 = vsub.f32 %v17337_v28, %v8976_v63 }
 0x810   : > { %v17528_v21 = vsub.f32 %v17352_v12, %v8976_v63  ;;  %v17531_v20 = vsub.f32 %v17349_v47, %v8976_v63  ;;  %v17534_v35 = vsub.f32 %v17364_v62, %v8976_v63  ;;  %v17537_v36 = vsub.f32 %v17361_v52, %v8976_v63 }
 0x811   : > { %v17540_v46 = vsub.f32 %v17376_v14, %v8976_v63  ;;  %v17543_v30 = vsub.f32 %v17373_v61, %v8976_v63  ;;  %v17546_v28 = vsub.f32 %v17388_v1, %v8976_v63  ;;  %v17549_v12 = vsub.f32 %v17385_v32, %v8976_v63 }
 0x812   : > { %v17552_v47 = vsub.f32 %v17400_v55, %v8976_v63  ;;  %v17555_v62 = vsub.f32 %v17397_v31, %v8976_v63  ;;  %v17558_v52 = vsub.f32 %v17412_v23, %v8976_v63  ;;  %v17561_v14 = vsub.f32 %v17409_v42, %v8976_v63 }
 0x813   : > { %v17564_v61 = vsub.f32 %v17424_v17, %v8976_v63  ;;  %v17567_v1 = vsub.f32 %v17421_v48, %v8976_v63  ;;  %v17570_v32 = vsub.f32 %v17436_v11, %v8976_v63  ;;  %v17573_v55 = vsub.f32 %v17433_v54, %v8976_v63 }
 0x814   : > { %v17576_v31 = vsub.f32 %v17448_v57, %v8976_v63  ;;  %v17579_v23 = vsub.f32 %v17445_v5, %v8976_v63  ;;  %v17582_v42 = vsub.f32 %v17460_v8, %v8976_v63  ;;  %v17585_v17 = vsub.f32 %v17457_v24, %v8976_v63 }
 0x815   : > { %v17588_v48 = vsub.f32 %v17472_v7, %v8976_v63  ;;  %v17591_v11 = vsub.f32 %v17469_v33, %v8976_v63  ;;  %v17593_v54 = vsub.f32 %v8798_v16, %v8976_v63  ;;  %v17596_v57 = vsub.f32 %v17481_v3, %v8976_v63 }
 0x816   : > { %v17598_v19 = vsub.f32 %v8808_v26, %v8976_v63  ;;  %v17600_v5 = vsub.f32 %v11906_v51, %v8976_v63  ;;  %v17602_v8 = vsub.f32 %v8818_v34, %v8976_v63  ;;  %v17604_v4 = vsub.f32 %v11909_v58, %v8976_v63 }
 0x817   : > { %v9013_v24 = vsel %vm19668_vm7, %v17504_v29, 0.0  ;;  %v9014_v33 = vsel %vm19669_vm6, %v17507_v44, 0.0  ;;  %v9015_v7 = vsel %vm19670_vm0, %v17510_v40, 0.0  ;;  %v9016_v51 = vsel %vm19671_vm15, %v17513_v2, 0.0  ;;  %vm19683_vm7 = vmmov %vm19654_vm1 }
 0x818   : > { %v9049_v3 = vmul.f32 %v9013_v24, %v9013_v24  ;;  %v9050_v16 = vmul.f32 %v9014_v33, %v9014_v33  ;;  %v9051_v63 = vmul.f32 %v9015_v7, %v9015_v7  ;;  %v9017_v56 = vsel %vm19672_vm3, %v17516_v49, 0.0  ;;  %vm19686_vm0 = vmmov %vm19654_vm1 }
 0x819   : > { %v9052_v58 = vmul.f32 %v9016_v51, %v9016_v51  ;;  %v9018_v45 = vsel %vm19674_vm13, %v17519_v27, 0.0  ;;  %v9053_v39 = vmul.f32 %v9017_v56, %v9017_v56  ;;  %v9019_v59 = vsel %vm19676_vm10, %v17522_v0, 0.0  ;;  %v19684_v51 = vld [vmem:[#allocation50_spill] sm:$0xff]  ;;  %vm19689_vm3 = vmmov %vm19686_vm0 }
 0x81a   : > { %v9085_v26 = vsel %vm19673_vm12, %v9049_v3, 0.0  ;;  %v9086_v22 = vsel %vm19654_vm1, %v9050_v16, 0.0  ;;  %v9088_v60 = vsel %vm19675_vm14, %v9051_v63, 0.0  ;;  %v9054_v41 = vmul.f32 %v9018_v45, %v9018_v45  ;;  %vm19692_vm1 = vmmov %vm19686_vm0 }
 0x81b   : > { %v9087_v34 = vadd.f32 %v9086_v22, %v9085_v26  ;;  %v9090_v50 = vsel %vm19677_vm11, %v9052_v58, 0.0  ;;  %v9020_v38 = vsel %vm19678_vm8, %v17525_v18, 0.0  ;;  %v9055_v25 = vmul.f32 %v9019_v59, %v9019_v59  ;;  %v19687_v26 = vld [vmem:[#allocation16_spill] sm:$0xff]  ;;  %vm19695_vm14 = vmmov %vm19686_vm0 }
 0x81c   : > { %v9092_v10 = vsel %vm19679_vm2, %v9053_v39, 0.0  ;;  %v9021_v53 = vsel %vm19680_vm5, %v17528_v21, 0.0  ;;  %v9056_v33 = vmul.f32 %v9020_v38, %v9020_v38  ;;  %v9094_v37 = vsel %vm19681_vm9, %v9054_v41, 0.0  ;;  %v19690_v39 = vld [vmem:[#allocation52_spill] sm:$0xff]  ;;  %vm19698_vm11 = vmmov %vm19686_vm0 }
 0x81d   : > { %v9089_v13 = vadd.f32 %v9088_v60, %v9087_v34  ;;  %v9022_v7 = vsel %vm19682_vm4, %v17531_v20, 0.0  ;;  %v9057_v16 = vmul.f32 %v9021_v53, %v9021_v53  ;;  %v9096_v6 = vsel %vm19683_vm7, %v9055_v25, 0.0  ;;  %v19696_v53 = vld [vmem:[#allocation54_spill] sm:$0xff]  ;;  %vm19701_vm2 = vmmov %vm19686_vm0 }
 0x81e   : > { %vm19685_vm6 = vcmp.lt.s32.totalorder %v19684_v51, 16  ;;  %v9058_v58 = vmul.f32 %v9022_v7, %v9022_v7  ;;  %v9098_v15 = vsel %vm19686_vm0, %v9056_v33, 0.0  ;;  %vm19688_vm15 = vcmp.lt.s32.totalorder %v19687_v26, 16  ;;  %vm19704_vm9 = vmmov %vm19686_vm0 }
 0x81f   : > { %v9091_v43 = vadd.f32 %v9090_v50, %v9089_v13  ;;  %v9023_v63 = vsel %vm19685_vm6, %v17534_v35, 0.0  ;;  %v9024_v22 = vsel %vm19688_vm15, %v17537_v36, 0.0  ;;  %v9100_v9 = vsel %vm19689_vm3, %v9057_v16, 0.0  ;;  %v19693_v50 = vld [vmem:[#allocation51_spill] sm:$0xff]  ;;  %vm19707_vm7 = vmmov %vm19686_vm0 }
 0x820   : > { %v9059_v34 = vmul.f32 %v9023_v63, %v9023_v63  ;;  %vm19691_vm12 = vcmp.lt.s32.totalorder %v19690_v39, 16  ;;  %v9060_v13 = vmul.f32 %v9024_v22, %v9024_v22  ;;  %v9102_v41 = vsel %vm19692_vm1, %v9058_v58, 0.0  ;;  %vm19712_vm3 = vmmov %vm19686_vm0 }
 0x821   : > { %v9093_v24 = vadd.f32 %v9092_v10, %v9091_v43  ;;  %v9025_v60 = vsel %vm19691_vm12, %v17540_v46, 0.0  ;;  %vm19694_vm13 = vcmp.lt.s32.totalorder %v19693_v50, 16  ;;  %vm19697_vm10 = vcmp.lt.s32.totalorder %v19696_v53, 16  ;;  %vm19715_vm1 = vmmov %vm19686_vm0 }
 0x822   : > { %v9026_v38 = vsel %vm19694_vm13, %v17543_v30, 0.0  ;;  %v9061_v25 = vmul.f32 %v9025_v60, %v9025_v60  ;;  %v9104_v10 = vsel %vm19695_vm14, %v9059_v34, 0.0  ;;  %v9106_v7 = vsel %vm19698_vm11, %v9060_v13, 0.0  ;;  %vm19718_vm14 = vmmov %vm19686_vm0 }
 0x823   : > { %v9095_v3 = vadd.f32 %v9094_v37, %v9093_v24  ;;  %v9027_v24 = vsel %vm19697_vm10, %v17546_v28, 0.0  ;;  %v9062_v37 = vmul.f32 %v9026_v38, %v9026_v38  ;;  %vm19721_vm11 = vmmov %vm19686_vm0 }
 0x824   : > { %v9063_v51 = vmul.f32 %v9027_v24, %v9027_v24  ;;  %v9108_v63 = vsel %vm19701_vm2, %v9061_v25, 0.0  ;;  %vm19724_vm2 = vmmov %vm19686_vm0 }
 0x825   : > { %v9097_v56 = vadd.f32 %v9096_v6, %v9095_v3  ;;  %v19699_v3 = vld [vmem:[#allocation53_spill] sm:$0xff]  ;;  %v9110_v22 = vsel %vm19704_vm9, %v9062_v37, 0.0  ;;  %vm19727_vm9 = vmmov %vm19686_vm0 }
 0x826   : > { %vm19700_vm8 = vcmp.lt.s32.totalorder %v19699_v3, 16  ;;  %v9112_v60 = vsel %vm19707_vm7, %v9063_v51, 0.0  ;;  %vm19730_vm7 = vmmov %vm19686_vm0 }
 0x827   : > { %v9099_v45 = vadd.f32 %v9098_v15, %v9097_v56  ;;  %v9028_v16 = vsel %vm19700_vm8, %v17549_v12, 0.0  ;;  %v19702_v56 = vld [vmem:[#allocation56_spill] sm:$0xff] }
 0x828   : > { %vm19703_vm5 = vcmp.lt.s32.totalorder %v19702_v56, 16  ;;  %v9064_v26 = vmul.f32 %v9028_v16, %v9028_v16 }
 0x829   : > { %v9101_v59 = vadd.f32 %v9100_v9, %v9099_v45  ;;  %v9029_v58 = vsel %vm19703_vm5, %v17552_v47, 0.0  ;;  %v19705_v45 = vld [vmem:[#allocation55_spill] sm:$0xff] }
 0x82a   : > { %vm19706_vm4 = vcmp.lt.s32.totalorder %v19705_v45, 16  ;;  %v9065_v39 = vmul.f32 %v9029_v58, %v9029_v58  ;;  %v9114_v38 = vsel %vm19686_vm0, %v9064_v26, 0.0 }
 0x82b   : > { %v9103_v43 = vadd.f32 %v9102_v41, %v9101_v59  ;;  %v9030_v34 = vsel %vm19706_vm4, %v17555_v62, 0.0  ;;  %v19708_v59 = vld [vmem:[#allocation58_spill] sm:$0xff] }
 0x82c   : > { %vm19709_vm6 = vcmp.lt.s32.totalorder %v19708_v59, 16  ;;  %v9066_v50 = vmul.f32 %v9030_v34, %v9030_v34  ;;  %v9116_v24 = vsel %vm19712_vm3, %v9065_v39, 0.0  ;;  %vm19735_vm3 = vmmov %vm19686_vm0 }
 0x82d   : > { %v9105_v33 = vadd.f32 %v9104_v10, %v9103_v43  ;;  %v9031_v13 = vsel %vm19709_vm6, %v17558_v52, 0.0  ;;  %v19710_v43 = vld [vmem:[#allocation57_spill] sm:$0xff] }
 0x82e   : > { %vm19711_vm15 = vcmp.lt.s32.totalorder %v19710_v43, 16  ;;  %v9067_v53 = vmul.f32 %v9031_v13, %v9031_v13  ;;  %v9118_v16 = vsel %vm19715_vm1, %v9066_v50, 0.0  ;;  %vm19738_vm1 = vmmov %vm19686_vm0 }
 0x82f   : > { %v9107_v6 = vadd.f32 %v9106_v7, %v9105_v33  ;;  %v9032_v25 = vsel %vm19711_vm15, %v17561_v14, 0.0  ;;  %v19713_v33 = vld [vmem:[#allocation60_spill] sm:$0xff] }
 0x830   : > { %vm19714_vm12 = vcmp.lt.s32.totalorder %v19713_v33, 16  ;;  %v9068_v3 = vmul.f32 %v9032_v25, %v9032_v25  ;;  %v9120_v58 = vsel %vm19718_vm14, %v9067_v53, 0.0  ;;  %vm19741_vm14 = vmmov %vm19686_vm0 }
 0x831   : > { %v9109_v15 = vadd.f32 %v9108_v63, %v9107_v6  ;;  %v9033_v37 = vsel %vm19714_vm12, %v17564_v61, 0.0  ;;  %v19716_v6 = vld [vmem:[#allocation59_spill] sm:$0xff] }
 0x832   : > { %vm19717_vm13 = vcmp.lt.s32.totalorder %v19716_v6, 16  ;;  %v9069_v56 = vmul.f32 %v9033_v37, %v9033_v37  ;;  %v9122_v34 = vsel %vm19721_vm11, %v9068_v3, 0.0  ;;  %vm19744_vm11 = vmmov %vm19686_vm0 }
 0x833   : > { %v9111_v9 = vadd.f32 %v9110_v22, %v9109_v15  ;;  %v9034_v51 = vsel %vm19717_vm13, %v17567_v1, 0.0  ;;  %v19719_v15 = vld [vmem:[#allocation62_spill] sm:$0xff] }
 0x834   : > { %vm19720_vm10 = vcmp.lt.s32.totalorder %v19719_v15, 16  ;;  %v9070_v45 = vmul.f32 %v9034_v51, %v9034_v51  ;;  %v9124_v13 = vsel %vm19724_vm2, %v9069_v56, 0.0  ;;  %vm19747_vm2 = vmmov %vm19686_vm0 }
 0x835   : > { %v9113_v41 = vadd.f32 %v9112_v60, %v9111_v9  ;;  %v9035_v26 = vsel %vm19720_vm10, %v17570_v32, 0.0  ;;  %v19722_v9 = vld [vmem:[#allocation61_spill] sm:$0xff] }
 0x836   : > { %vm19723_vm8 = vcmp.lt.s32.totalorder %v19722_v9, 16  ;;  %v9071_v59 = vmul.f32 %v9035_v26, %v9035_v26  ;;  %v9126_v25 = vsel %vm19727_vm9, %v9070_v45, 0.0  ;;  %vm19750_vm9 = vmmov %vm19686_vm0 }
 0x837   : > { %v9115_v10 = vadd.f32 %v9114_v38, %v9113_v41  ;;  %v9036_v39 = vsel %vm19723_vm8, %v17573_v55, 0.0  ;;  %v19725_v41 = vld [vmem:[#allocation64_spill] sm:$0xff] }
 0x838   : > { %vm19726_vm5 = vcmp.lt.s32.totalorder %v19725_v41, 16  ;;  %v9072_v43 = vmul.f32 %v9036_v39, %v9036_v39  ;;  %v9128_v37 = vsel %vm19730_vm7, %v9071_v59, 0.0  ;;  %vm19753_vm7 = vmmov %vm19686_vm0 }
 0x839   : > { %v9117_v7 = vadd.f32 %v9116_v24, %v9115_v10  ;;  %v9037_v50 = vsel %vm19726_vm5, %v17576_v31, 0.0  ;;  %v19728_v10 = vld [vmem:[#allocation63_spill] sm:$0xff] }
 0x83a   : > { %vm19729_vm4 = vcmp.lt.s32.totalorder %v19728_v10, 16  ;;  %v9073_v33 = vmul.f32 %v9037_v50, %v9037_v50  ;;  %v9130_v51 = vsel %vm19686_vm0, %v9072_v43, 0.0 }
 0x83b   : > { %v9119_v63 = vadd.f32 %v9118_v16, %v9117_v7  ;;  %v9038_v53 = vsel %vm19729_vm4, %v17579_v23, 0.0  ;;  %v19731_v7 = vld [vmem:[#allocation66_spill] sm:$0xff] }
 0x83c   : > { %vm19732_vm6 = vcmp.lt.s32.totalorder %v19731_v7, 16  ;;  %v9074_v6 = vmul.f32 %v9038_v53, %v9038_v53  ;;  %v9132_v26 = vsel %vm19735_vm3, %v9073_v33, 0.0  ;;  %vm19758_vm3 = vmmov %vm19686_vm0 }
 0x83d   : > { %v9121_v22 = vadd.f32 %v9120_v58, %v9119_v63  ;;  %v9039_v3 = vsel %vm19732_vm6, %v17582_v42, 0.0  ;;  %v19733_v63 = vld [vmem:[#allocation65_spill] sm:$0xff] }
 0x83e   : > { %vm19734_vm15 = vcmp.lt.s32.totalorder %v19733_v63, 16  ;;  %v9075_v15 = vmul.f32 %v9039_v3, %v9039_v3  ;;  %v9134_v39 = vsel %vm19738_vm1, %v9074_v6, 0.0  ;;  %vm19760_vm1 = vmmov %vm19686_vm0 }
 0x83f   : > { %v9123_v60 = vadd.f32 %v9122_v34, %v9121_v22  ;;  %v9040_v56 = vsel %vm19734_vm15, %v17585_v17, 0.0  ;;  %v19736_v22 = vld [vmem:[#allocation68_spill] sm:$0xff] }
 0x840   : > { %vm19737_vm12 = vcmp.lt.s32.totalorder %v19736_v22, 16  ;;  %v9076_v9 = vmul.f32 %v9040_v56, %v9040_v56  ;;  %v9136_v50 = vsel %vm19741_vm14, %v9075_v15, 0.0  ;;  %vm19775_vm14 = vmmov %vm19686_vm0 }
 0x841   : > { %v9125_v38 = vadd.f32 %v9124_v13, %v9123_v60  ;;  %v9041_v45 = vsel %vm19737_vm12, %v17588_v48, 0.0  ;;  %v19739_v60 = vld [vmem:[#allocation67_spill] sm:$0xff]  ;;  %vm19759_vm12 = vmmov %vm19686_vm0 }
 0x842   : > { %vm19740_vm13 = vcmp.lt.s32.totalorder %v19739_v60, 16  ;;  %v9077_v41 = vmul.f32 %v9041_v45, %v9041_v45  ;;  %v9138_v53 = vsel %vm19744_vm11, %v9076_v9, 0.0  ;;  %vm19777_vm11 = vmmov %vm19686_vm0 }
 0x843   : > { %v9127_v24 = vadd.f32 %v9126_v25, %v9125_v38  ;;  %v9042_v59 = vsel %vm19740_vm13, %v17591_v11, 0.0  ;;  %v19742_v38 = vld [vmem:[#allocation70_spill] sm:$0xff]  ;;  %vm19761_vm13 = vmmov %vm19686_vm0 }
 0x844   : > { %vm19743_vm10 = vcmp.lt.s32.totalorder %v19742_v38, 16  ;;  %v9078_v10 = vmul.f32 %v9042_v59, %v9042_v59  ;;  %v9140_v3 = vsel %vm19747_vm2, %v9077_v41, 0.0  ;;  %vm19783_vm2 = vmmov %vm19686_vm0 }
 0x845   : > { %v9129_v16 = vadd.f32 %v9128_v37, %v9127_v24  ;;  %v9043_v43 = vsel %vm19743_vm10, %v17593_v54, 0.0  ;;  %v19745_v24 = vld [vmem:[#allocation69_spill] sm:$0xff]  ;;  %vm19776_vm10 = vmmov %vm19686_vm0 }
 0x846   : > { %vm19746_vm8 = vcmp.lt.s32.totalorder %v19745_v24, 16  ;;  %v9079_v7 = vmul.f32 %v9043_v43, %v9043_v43  ;;  %v9142_v56 = vsel %vm19750_vm9, %v9078_v10, 0.0  ;;  %vm19785_vm9 = vmmov %vm19686_vm0 }
 0x847   : > { %v9131_v58 = vadd.f32 %v9130_v51, %v9129_v16  ;;  %v9044_v33 = vsel %vm19746_vm8, %v17596_v57, 0.0  ;;  %v19748_v16 = vld [vmem:[#allocation72_spill] sm:$0xff]  ;;  %vm19778_vm8 = vmmov %vm19686_vm0 }
 0x848   : > { %vm19749_vm5 = vcmp.lt.s32.totalorder %v19748_v16, 16  ;;  %v9080_v63 = vmul.f32 %v9044_v33, %v9044_v33  ;;  %v9144_v45 = vsel %vm19753_vm7, %v9079_v7, 0.0  ;;  %vm19791_vm7 = vmmov %vm19686_vm0 }
 0x849   : > { %v9133_v34 = vadd.f32 %v9132_v26, %v9131_v58  ;;  %v9045_v6 = vsel %vm19749_vm5, %v17598_v19, 0.0  ;;  %v19751_v58 = vld [vmem:[#allocation71_spill] sm:$0xff]  ;;  %vm19784_vm5 = vmmov %vm19686_vm0 }
 0x84a   : > { %vm19752_vm4 = vcmp.lt.s32.totalorder %v19751_v58, 16  ;;  %v9081_v22 = vmul.f32 %v9045_v6, %v9045_v6  ;;  %v9146_v59 = vsel %vm19686_vm0, %v9080_v63, 0.0 }
 0x84b   : > { %v9135_v13 = vadd.f32 %v9134_v39, %v9133_v34  ;;  %v9046_v15 = vsel %vm19752_vm4, %v17600_v5, 0.0  ;;  %v19754_v34 = vld [vmem:[#allocation74_spill] sm:$0xff]  ;;  %vm19786_vm4 = vmmov %vm19686_vm0 }
 0x84c   : > { %vm19755_vm6 = vcmp.lt.s32.totalorder %v19754_v34, 16  ;;  %v9082_v60 = vmul.f32 %v9046_v15, %v9046_v15  ;;  %v9148_v43 = vsel %vm19758_vm3, %v9081_v22, 0.0  ;;  %v19762_v22 = vld [vmem:[#allocation5_spill] sm:$0xff]  ;;  %vm19798_vm3 = vmmov %vm19686_vm0 }
 0x84d   : > { %v9137_v25 = vadd.f32 %v9136_v50, %v9135_v13  ;;  %v9047_v9 = vsel %vm19755_vm6, %v17602_v8, 0.0  ;;  %v19756_v13 = vld [vmem:[#allocation73_spill] sm:$0xff]  ;;  %v9243_v34 = vsub.s32 3, %v19762_v22  ;;  %vm19792_vm6 = vmmov %vm19686_vm0 }
 0x84e   : > { %vm19757_vm15 = vcmp.lt.s32.totalorder %v19756_v13, 16  ;;  %v9083_v38 = vmul.f32 %v9047_v9, %v9047_v9 }
 0x84f   : > { %v9139_v37 = vadd.f32 %v9138_v53, %v9137_v25  ;;  %v9048_v41 = vsel %vm19757_vm15, %v17604_v4, 0.0  ;;  %v9150_v53 = vsel %vm19759_vm12, %v9082_v60, 0.0  ;;  %vm19793_vm15 = vmmov %vm19686_vm0 }
 0x850   : > { %v9084_v10 = vmul.f32 %v9048_v41, %v9048_v41  ;;  %v9152_v33 = vsel %vm19760_vm1, %v9083_v38, 0.0  ;;  %vm19799_vm12 = vmmov %vm19686_vm0 }
 0x851   : > { %v9141_v51 = vadd.f32 %v9140_v3, %v9139_v37  ;;  %vm19800_vm1 = vmmov %vm19686_vm0 }
 0x852   : > { %v9154_v7 = vsel %vm19761_vm13, %v9084_v10, 0.0  ;;  %vm19801_vm13 = vmmov %vm19686_vm0 }
 0x853   : > { %v9143_v26 = vadd.f32 %v9142_v56, %v9141_v51 }
 0x855   : > { %v9145_v39 = vadd.f32 %v9144_v45, %v9143_v26  ;;  %v9203_v45 = vsub.s32 2, %v19762_v22 }
 0x857   : > { %v9147_v50 = vadd.f32 %v9146_v59, %v9145_v39  ;;  %v12573_v39 = vld [vmem:[%s17987_s3] sm:$0xf] }
 0x858   : > { %v17755_v60 = vrot.slane %v12573_v39, %v9203_v45  ;;  %v17757_v59 = vrot.slane %v12573_v39, %v9243_v34 }
 0x859   : > { %v9149_v25 = vadd.f32 %v9148_v43, %v9147_v50 }
 0x85b   : > { %v9151_v24 = vadd.f32 %v9150_v53, %v9149_v25 }
 0x85d   : > { %v9153_v37 = vadd.f32 %v9152_v33, %v9151_v24 }
 0x85f   : > { %v9155_v3 = vadd.f32 %v9154_v7, %v9153_v37 }
 0x861   : > { %v9156_v16 = vrot.slane %v9155_v3, 4 }
 0x863   : > { %v9157_v6 = vadd.f32 %v9156_v16, %v9155_v3 }
 0x865   : > { %v9158_v51 = vrot.slane %v9157_v6, 2 }
 0x867   : > { %v9159_v63 = vadd.f32 %v9158_v51, %v9157_v6 }
 0x869   : > { %v9160_v56 = vrot.slane %v9159_v63, 1 }
 0x86b   : > { %v9161_v58 = vadd.f32 %v9160_v56, %v9159_v63 }
 0x86d   : > { %v9162_v15 = vmul.f32 0.003921569, %v9161_v58 }
 0x86f   : > { %v9163_v26 = vadd.f32 1e-05, %v9162_v15 }
 0x871   : > { %12570 = vrsqrt.f32 %v9163_v26 }
 0x87b   : > { %v12571_v9 = vpop.eup %12570 }
 0x87c   : > { %v9165_v13 = vmul.f32 %v12571_v9, %v17504_v29  ;;  %v9166_v41 = vmul.f32 %v12571_v9, %v17507_v44  ;;  %v9167_v50 = vmul.f32 %v12571_v9, %v17510_v40  ;;  %v9168_v38 = vmul.f32 %v12571_v9, %v17513_v2 }
 0x87d   : > { %v9169_v43 = vmul.f32 %v12571_v9, %v17516_v49  ;;  %v9170_v25 = vmul.f32 %v12571_v9, %v17519_v27  ;;  %v9171_v10 = vmul.f32 %v12571_v9, %v17522_v0  ;;  %v9172_v53 = vmul.f32 %v12571_v9, %v17525_v18 }
 0x87e   : > { %v9173_v24 = vmul.f32 %v12571_v9, %v17528_v21  ;;  %v9174_v33 = vmul.f32 %v12571_v9, %v17531_v20  ;;  %v9175_v29 = vmul.f32 %v12571_v9, %v17534_v35  ;;  %v9176_v44 = vmul.f32 %v12571_v9, %v17537_v36 }
 0x87f   : > { %v9177_v40 = vmul.f32 %v12571_v9, %v17540_v46  ;;  %v9178_v2 = vmul.f32 %v12571_v9, %v17543_v30  ;;  %v9179_v49 = vmul.f32 %v12571_v9, %v17546_v28  ;;  %v9180_v27 = vmul.f32 %v12571_v9, %v17549_v12 }
 0x880   : > { %v9181_v0 = vmul.f32 %v12571_v9, %v17552_v47  ;;  %v9182_v18 = vmul.f32 %v12571_v9, %v17555_v62  ;;  %v9183_v21 = vmul.f32 %v12571_v9, %v17558_v52  ;;  %v9184_v20 = vmul.f32 %v12571_v9, %v17561_v14 }
 0x881   : > { %v9185_v35 = vmul.f32 %v12571_v9, %v17564_v61  ;;  %v9186_v36 = vmul.f32 %v12571_v9, %v17567_v1  ;;  %v9187_v46 = vmul.f32 %v12571_v9, %v17570_v32  ;;  %v9188_v30 = vmul.f32 %v12571_v9, %v17573_v55 }
 0x882   : > { %v9189_v28 = vmul.f32 %v12571_v9, %v17576_v31  ;;  %v9190_v12 = vmul.f32 %v12571_v9, %v17579_v23  ;;  %v9191_v47 = vmul.f32 %v12571_v9, %v17582_v42  ;;  %v9192_v62 = vmul.f32 %v12571_v9, %v17585_v17 }
 0x883   : > { %v9193_v52 = vmul.f32 %v12571_v9, %v17588_v48  ;;  %v9194_v14 = vmul.f32 %v12571_v9, %v17591_v11  ;;  %v9195_v61 = vmul.f32 %v12571_v9, %v17593_v54  ;;  %v9196_v1 = vmul.f32 %v12571_v9, %v17596_v57 }
 0x884   : > { %v9197_v32 = vmul.f32 %v12571_v9, %v17598_v19  ;;  %v9198_v55 = vmul.f32 %v12571_v9, %v17600_v5  ;;  %v9199_v31 = vmul.f32 %v12571_v9, %v17602_v8  ;;  %v9200_v23 = vmul.f32 %v12571_v9, %v17604_v4 }
 0x885   : > { %v9205_v42 = vmul.f32 %v17755_v60, %v9165_v13  ;;  %v9206_v17 = vmul.f32 %v17755_v60, %v9166_v41  ;;  %v9207_v48 = vmul.f32 %v17755_v60, %v9167_v50  ;;  %v9208_v11 = vmul.f32 %v17755_v60, %v9168_v38 }
 0x886   : > { %v9209_v54 = vmul.f32 %v17755_v60, %v9169_v43  ;;  %v9210_v57 = vmul.f32 %v17755_v60, %v9170_v25  ;;  %v9211_v19 = vmul.f32 %v17755_v60, %v9171_v10  ;;  %v9212_v5 = vmul.f32 %v17755_v60, %v9172_v53 }
 0x887   : > { %v9213_v8 = vmul.f32 %v17755_v60, %v9173_v24  ;;  %v9214_v4 = vmul.f32 %v17755_v60, %v9174_v33  ;;  %v9215_v37 = vmul.f32 %v17755_v60, %v9175_v29  ;;  %v9216_v7 = vmul.f32 %v17755_v60, %v9176_v44 }
 0x888   : > { %v9217_v3 = vmul.f32 %v17755_v60, %v9177_v40  ;;  %v9218_v16 = vmul.f32 %v17755_v60, %v9178_v2  ;;  %v9219_v6 = vmul.f32 %v17755_v60, %v9179_v49  ;;  %v9220_v51 = vmul.f32 %v17755_v60, %v9180_v27 }
 0x889   : > { %v9221_v63 = vmul.f32 %v17755_v60, %v9181_v0  ;;  %v9222_v56 = vmul.f32 %v17755_v60, %v9182_v18  ;;  %v9223_v58 = vmul.f32 %v17755_v60, %v9183_v21  ;;  %v9224_v15 = vmul.f32 %v17755_v60, %v9184_v20 }
 0x88a   : > { %v9225_v26 = vmul.f32 %v17755_v60, %v9185_v35  ;;  %v9226_v22 = vmul.f32 %v17755_v60, %v9186_v36  ;;  %v9227_v45 = vmul.f32 %v17755_v60, %v9187_v46  ;;  %v9228_v34 = vmul.f32 %v17755_v60, %v9188_v30 }
 0x88b   : > { %v9229_v9 = vmul.f32 %v17755_v60, %v9189_v28  ;;  %v9230_v39 = vmul.f32 %v17755_v60, %v9190_v12  ;;  %v9231_v13 = vmul.f32 %v17755_v60, %v9191_v47  ;;  %v9232_v41 = vmul.f32 %v17755_v60, %v9192_v62 }
 0x88c   : > { %v9233_v50 = vmul.f32 %v17755_v60, %v9193_v52  ;;  %v9234_v38 = vmul.f32 %v17755_v60, %v9194_v14  ;;  %v9235_v43 = vmul.f32 %v17755_v60, %v9195_v61  ;;  %v9236_v25 = vmul.f32 %v17755_v60, %v9196_v1 }
 0x88d   : > { %v9237_v10 = vmul.f32 %v17755_v60, %v9197_v32  ;;  %v9238_v53 = vmul.f32 %v17755_v60, %v9198_v55  ;;  %v9239_v24 = vmul.f32 %v17755_v60, %v9199_v31  ;;  %v9240_v33 = vmul.f32 %v17755_v60, %v9200_v23 }
 0x88e   : > { %v9245_v29 = vadd.f32 %v17757_v59, %v9205_v42  ;;  %v9246_v44 = vadd.f32 %v17757_v59, %v9206_v17  ;;  %v9247_v40 = vadd.f32 %v17757_v59, %v9207_v48  ;;  %v9248_v2 = vadd.f32 %v17757_v59, %v9208_v11 }
 0x88f   : > { %v9249_v49 = vadd.f32 %v17757_v59, %v9209_v54  ;;  %v9250_v27 = vadd.f32 %v17757_v59, %v9210_v57  ;;  %v9251_v0 = vadd.f32 %v17757_v59, %v9211_v19  ;;  %v9252_v18 = vadd.f32 %v17757_v59, %v9212_v5 }
 0x890   : > { %v9253_v21 = vadd.f32 %v17757_v59, %v9213_v8  ;;  %v9254_v60 = vadd.f32 %v17757_v59, %v9214_v4  ;;  %v9255_v20 = vadd.f32 %v17757_v59, %v9215_v37  ;;  %v9256_v35 = vadd.f32 %v17757_v59, %v9216_v7  ;;  %v19763_v4 = vld [vmem:[#allocation17_spill] sm:$0xff]  ;;  %v19764_v7 = vld [vmem:[#allocation18_spill] sm:$0xff] }
 0x891   : > { %v9257_v36 = vadd.f32 %v17757_v59, %v9217_v3  ;;  %v9258_v46 = vadd.f32 %v17757_v59, %v9218_v16  ;;  %v9259_v30 = vadd.f32 %v17757_v59, %v9219_v6  ;;  %v9260_v28 = vadd.f32 %v17757_v59, %v9220_v51  ;;  %v19765_v16 = vld [vmem:[#allocation19_spill] sm:$0xff]  ;;  %v19766_v51 = vld [vmem:[#allocation20_spill] sm:$0xff] }
 0x892   : > { %v9261_v12 = vadd.f32 %v17757_v59, %v9221_v63  ;;  %v9262_v47 = vadd.f32 %v17757_v59, %v9222_v56  ;;  %v9263_v62 = vadd.f32 %v17757_v59, %v9223_v58  ;;  %v9264_v52 = vadd.f32 %v17757_v59, %v9224_v15  ;;  %v19767_v56 = vld [vmem:[#allocation21_spill] sm:$0xff]  ;;  %v19768_v15 = vld [vmem:[#allocation22_spill] sm:$0xff] }
 0x893   : > { %v9265_v14 = vadd.f32 %v17757_v59, %v9225_v26  ;;  %v9266_v61 = vadd.f32 %v17757_v59, %v9226_v22  ;;  %v9267_v1 = vadd.f32 %v17757_v59, %v9227_v45  ;;  %v9268_v32 = vadd.f32 %v17757_v59, %v9228_v34  ;;  %v19769_v22 = vld [vmem:[#allocation23_spill] sm:$0xff]  ;;  %v19770_v34 = vld [vmem:[#allocation24_spill] sm:$0xff] }
 0x894   : > { %v9269_v55 = vadd.f32 %v17757_v59, %v9229_v9  ;;  %v9270_v31 = vadd.f32 %v17757_v59, %v9230_v39  ;;  %v9271_v23 = vadd.f32 %v17757_v59, %v9231_v13  ;;  %v9272_v42 = vadd.f32 %v17757_v59, %v9232_v41  ;;  %v19771_v9 = vld [vmem:[#allocation25_spill] sm:$0xff]  ;;  %v19772_v13 = vld [vmem:[#allocation26_spill] sm:$0xff] }
 0x895   : > { %v9273_v17 = vadd.f32 %v17757_v59, %v9233_v50  ;;  %v9274_v48 = vadd.f32 %v17757_v59, %v9234_v38  ;;  %v9275_v11 = vadd.f32 %v17757_v59, %v9235_v43  ;;  %v9276_v54 = vadd.f32 %v17757_v59, %v9236_v25  ;;  %v19773_v50 = vld [vmem:[#allocation27_spill] sm:$0xff]  ;;  %v19774_v43 = vld [vmem:[#allocation28_spill] sm:$0xff] }
 0x896   : > { %v9277_v57 = vadd.f32 %v17757_v59, %v9237_v10  ;;  %v9278_v19 = vadd.f32 %v17757_v59, %v9238_v53  ;;  %v9279_v5 = vadd.f32 %v17757_v59, %v9239_v24  ;;  %v9280_v8 = vadd.f32 %v17757_v59, %v9240_v33  ;;  %v19779_v10 = vld [vmem:[#allocation29_spill] sm:$0xff]  ;;  %v19780_v24 = vld [vmem:[#allocation30_spill] sm:$0xff] }
 0x897   : > { %v9317_v37 = vadd.f32 %v9245_v29, %v19763_v4  ;;  %v9318_v3 = vadd.f32 %v9246_v44, %v19764_v7  ;;  %v9319_v6 = vadd.f32 %v9247_v40, %v19765_v16  ;;  %v9320_v63 = vadd.f32 %v9248_v2, %v19766_v51  ;;  %v19781_v29 = vld [vmem:[#allocation31_spill] sm:$0xff]  ;;  %v19782_v40 = vld [vmem:[#allocation32_spill] sm:$0xff]  ;;  %v19802_v4 = vld [vmem:[#allocation38_spill] sm:$0xff] }
 0x898   : > { %v9321_v58 = vadd.f32 %v9249_v49, %v19767_v56  ;;  %v9322_v26 = vadd.f32 %v9250_v27, %v19768_v15  ;;  %v9323_v45 = vadd.f32 %v9251_v0, %v19769_v22  ;;  %v9324_v59 = vadd.f32 %v9252_v18, %v19770_v34  ;;  %v19787_v49 = vld [vmem:[#allocation2_spill] sm:$0xff]  ;;  %v19788_v0 = vld [vmem:[#allocation3_spill] sm:$0xff]  ;;  %v19804_v7 = vld [vmem:[#allocation40_spill] sm:$0xff] }
 0x899   : > { %v9325_v39 = vadd.f32 %v9253_v21, %v19771_v9  ;;  %v9326_v41 = vadd.f32 %v9254_v60, %v19772_v13  ;;  %v9327_v38 = vadd.f32 %v9255_v20, %v19773_v50  ;;  %v9328_v25 = vadd.f32 %v9256_v35, %v19774_v43  ;;  %9353 = vst.msk [vmem:[%s17867_s17] sm:$0xff] %vm19775_vm14, %v9317_v37  ;;  %v19789_v21 = vld [vmem:[#allocation4_spill] sm:$0xff]  ;;  %v19790_v20 = vld [vmem:[#allocation33_spill] sm:$0xff]  ;;  %v19803_v37 = vld [vmem:[#allocation39_spill] sm:$0xff] }
 0x89a   : > { %9354 = vst.msk [vmem:[%s17867_s17 + $0x8] sm:$0xff] %vm19776_vm10, %v9318_v3  ;;  %v9329_v53 = vadd.f32 %v9257_v36, %v19779_v10  ;;  %v9330_v33 = vadd.f32 %v9258_v46, %v19780_v24  ;;  %v9331_v44 = vadd.f32 %v9259_v30, %v19781_v29  ;;  %v9332_v2 = vadd.f32 %v9260_v28, %v19782_v40  ;;  %v19794_v36 = vld [vmem:[#allocation34_spill] sm:$0xff]  ;;  %v19795_v30 = vld [vmem:[#allocation35_spill] sm:$0xff]  ;;  %v19805_v3 = vld [vmem:[#allocation41_spill] sm:$0xff] }
 0x89b   : > { %9355 = vst.msk [vmem:[%s17867_s17 + $0x10] sm:$0xff] %vm19777_vm11, %v9319_v6  ;;  %v9333_v27 = vadd.f32 %v9261_v12, %v19787_v49  ;;  %v9334_v18 = vadd.f32 %v9262_v47, %v19788_v0  ;;  %v9335_v60 = vadd.f32 %v9263_v62, %v19789_v21  ;;  %v9336_v35 = vadd.f32 %v9264_v52, %v19790_v20  ;;  %v19796_v12 = vld [vmem:[#allocation36_spill] sm:$0xff]  ;;  %v19797_v62 = vld [vmem:[#allocation37_spill] sm:$0xff]  ;;  %vm19806_vm14 = vmmov %vm19686_vm0 }
 0x89c   : > { %9356 = vst.msk [vmem:[%s17867_s17 + $0x18] sm:$0xff] %vm19778_vm8, %v9320_v63  ;;  %v9337_v46 = vadd.f32 %v9265_v14, %v19794_v36  ;;  %v9338_v28 = vadd.f32 %v9266_v61, %v19795_v30  ;;  %v9339_v47 = vadd.f32 %v9267_v1, %v19796_v12  ;;  %v9340_v52 = vadd.f32 %v9268_v32, %v19797_v62  ;;  %vm19807_vm10 = vmmov %vm19686_vm0  ;;  %v19810_v16 = vld [vmem:[#allocation42_spill] sm:$0xff]  ;;  %v19811_v6 = vld [vmem:[#allocation43_spill] sm:$0xff] }
 0x89d   : > { %9357 = vst.msk [vmem:[%s17867_s17 + $0x20] sm:$0xff] %vm19783_vm2, %v9321_v58  ;;  %v9341_v14 = vadd.f32 %v9269_v55, %v19802_v4  ;;  %v9342_v61 = vadd.f32 %v9270_v31, %v19803_v37  ;;  %v9343_v1 = vadd.f32 %v9271_v23, %v19804_v7  ;;  %v9344_v32 = vadd.f32 %v9272_v42, %v19805_v3  ;;  %vm19808_vm11 = vmmov %vm19686_vm0  ;;  %v19812_v23 = vld [vmem:[#allocation44_spill] sm:$0xff]  ;;  %v19813_v51 = vld [vmem:[#allocation45_spill] sm:$0xff] }
 0x89e   : > { %9358 = vst.msk [vmem:[%s17867_s17 + $0x28] sm:$0xff] %vm19784_vm5, %v9322_v26  ;;  %vm19809_vm8 = vmmov %vm19686_vm0  ;;  %v9345_v55 = vadd.f32 %v9273_v17, %v19810_v16  ;;  %v9346_v31 = vadd.f32 %v9274_v48, %v19811_v6  ;;  %v9347_v42 = vadd.f32 %v9275_v11, %v19812_v23  ;;  %v9348_v63 = vadd.f32 %v9276_v54, %v19813_v51  ;;  %v19818_v17 = vld [vmem:[#allocation46_spill] sm:$0xff]  ;;  %v19819_v56 = vld [vmem:[#allocation47_spill] sm:$0xff] }
 0x89f   : > { %9359 = vst.msk [vmem:[%s17867_s17 + $0x30] sm:$0xff] %vm19785_vm9, %v9323_v45  ;;  %vm19814_vm2 = vmmov %vm19686_vm0  ;;  %v9349_v48 = vadd.f32 %v9277_v57, %v19818_v17  ;;  %v9350_v11 = vadd.f32 %v9278_v19, %v19819_v56  ;;  %v19820_v58 = vld [vmem:[#allocation48_spill] sm:$0xff]  ;;  %v19821_v54 = vld [vmem:[#allocation49_spill] sm:$0xff] }
 0x8a0   : > { %9360 = vst.msk [vmem:[%s17867_s17 + $0x38] sm:$0xff] %vm19786_vm4, %v9324_v59  ;;  %vm19815_vm5 = vmmov %vm19686_vm0  ;;  %v9351_v15 = vadd.f32 %v9279_v5, %v19820_v58  ;;  %v9352_v26 = vadd.f32 %v9280_v8, %v19821_v54 }
 0x8a1   : > { %9361 = vst.msk [vmem:[%s17867_s17 + $0x40] sm:$0xff] %vm19791_vm7, %v9325_v39  ;;  %vm19816_vm9 = vmmov %vm19686_vm0 }
 0x8a2   : > { %9362 = vst.msk [vmem:[%s17867_s17 + $0x48] sm:$0xff] %vm19792_vm6, %v9326_v41  ;;  %vm19817_vm4 = vmmov %vm19686_vm0 }
 0x8a3   : > { %9363 = vst.msk [vmem:[%s17867_s17 + $0x50] sm:$0xff] %vm19686_vm0, %v9327_v38  ;;  %vm19822_vm7 = vmmov %vm19686_vm0 }
 0x8a4   : > { %9364 = vst.msk [vmem:[%s17867_s17 + $0x58] sm:$0xff] %vm19793_vm15, %v9328_v25  ;;  %vm19823_vm6 = vmmov %vm19686_vm0 }
 0x8a5   : > { %9365 = vst.msk [vmem:[%s17867_s17 + $0x60] sm:$0xff] %vm19798_vm3, %v9329_v53  ;;  %vm19824_vm15 = vmmov %vm19686_vm0 }
 0x8a6   : > { %9366 = vst.msk [vmem:[%s17867_s17 + $0x68] sm:$0xff] %vm19799_vm12, %v9330_v33  ;;  %vm19825_vm3 = vmmov %vm19686_vm0 }
 0x8a7   : > { %9367 = vst.msk [vmem:[%s17867_s17 + $0x70] sm:$0xff] %vm19800_vm1, %v9331_v44  ;;  %vm19826_vm12 = vmmov %vm19686_vm0 }
 0x8a8   : > { %9368 = vst.msk [vmem:[%s17867_s17 + $0x78] sm:$0xff] %vm19801_vm13, %v9332_v2  ;;  %vm19827_vm1 = vmmov %vm19686_vm0 }
 0x8a9   : > { %9369 = vst.msk [vmem:[%s17867_s17 + $0x80] sm:$0xff] %vm19806_vm14, %v9333_v27  ;;  %vm19828_vm13 = vmmov %vm19686_vm0 }
 0x8aa   : > { %9370 = vst.msk [vmem:[%s17867_s17 + $0x88] sm:$0xff] %vm19807_vm10, %v9334_v18  ;;  %vm19829_vm14 = vmmov %vm19686_vm0 }
 0x8ab   : > { %9371 = vst.msk [vmem:[%s17867_s17 + $0x90] sm:$0xff] %vm19808_vm11, %v9335_v60  ;;  %vm19830_vm10 = vmmov %vm19686_vm0 }
 0x8ac   : > { %9372 = vst.msk [vmem:[%s17867_s17 + $0x98] sm:$0xff] %vm19809_vm8, %v9336_v35  ;;  %vm19831_vm11 = vmmov %vm19686_vm0 }
 0x8ad   : > { %9373 = vst.msk [vmem:[%s17867_s17 + $0xa0] sm:$0xff] %vm19814_vm2, %v9337_v46  ;;  %vm19832_vm8 = vmmov %vm19686_vm0 }
 0x8ae   : > { %9374 = vst.msk [vmem:[%s17867_s17 + $0xa8] sm:$0xff] %vm19815_vm5, %v9338_v28 }
 0x8af   : > { %9375 = vst.msk [vmem:[%s17867_s17 + $0xb0] sm:$0xff] %vm19816_vm9, %v9339_v47 }
 0x8b0   : > { %9376 = vst.msk [vmem:[%s17867_s17 + $0xb8] sm:$0xff] %vm19817_vm4, %v9340_v52 }
 0x8b1   : > { %9377 = vst.msk [vmem:[%s17867_s17 + $0xc0] sm:$0xff] %vm19822_vm7, %v9341_v14 }
 0x8b2   : > { %9378 = vst.msk [vmem:[%s17867_s17 + $0xc8] sm:$0xff] %vm19823_vm6, %v9342_v61 }
 0x8b3   : > { %9379 = vst.msk [vmem:[%s17867_s17 + $0xd0] sm:$0xff] %vm19686_vm0, %v9343_v1 }
 0x8b4   : > { %9380 = vst.msk [vmem:[%s17867_s17 + $0xd8] sm:$0xff] %vm19824_vm15, %v9344_v32 }
 0x8b5   : > { %9381 = vst.msk [vmem:[%s17867_s17 + $0xe0] sm:$0xff] %vm19825_vm3, %v9345_v55 }
 0x8b6   : > { %9382 = vst.msk [vmem:[%s17867_s17 + $0xe8] sm:$0xff] %vm19826_vm12, %v9346_v31 }
 0x8b7   : > { %9383 = vst.msk [vmem:[%s17867_s17 + $0xf0] sm:$0xff] %vm19827_vm1, %v9347_v42 }
 0x8b8   : > { %9384 = vst.msk [vmem:[%s17867_s17 + $0xf8] sm:$0xff] %vm19828_vm13, %v9348_v63 }
 0x8b9   : > { %9385 = vst.msk [vmem:[%s17867_s17 + $0x100] sm:$0xff] %vm19829_vm14, %v9349_v48 }
 0x8ba   : > { %9386 = vst.msk [vmem:[%s17867_s17 + $0x108] sm:$0xff] %vm19830_vm10, %v9350_v11 }
 0x8bb   : > { %9387 = vst.msk [vmem:[%s17867_s17 + $0x110] sm:$0xff] %vm19831_vm11, %v9351_v15 }
 0x8bc   : > { %9388 = vst.msk [vmem:[%s17867_s17 + $0x118] sm:$0xff] %vm19832_vm8, %v9352_v26 }
 0x8bd PF: > { %s14_s15 = sadd.s32 1, %s12580_s15  }
 0x8be   : > { %p11_p4 = scmp.ge.s32.totalorder %s14_s15, 4  }
 0x8c0   :  { %13 = sbr.rel (!%p11_p4) target bundleno = 1 (0x1), region = 66 }

</bundles_post_ra>
